<compile_context>
chip_gen: v5e
topology: v5e:2x2
jax: 0.10.0
libtpu: 0.0.40
codegen_flags: <defaults>
</compile_context>

<pallas_src>
import jax
import jax.numpy as jnp
import numpy as np
from jax.experimental import pallas as pl
from jax.experimental.pallas import tpu as pltpu

H = 50            # real hidden size (nn.LSTM(hidden_size=50))
HP = 128          # lane-padded per-gate hidden width (one full vreg of lanes)
GP = 4 * HP       # padded gate width: [i | f | g | o], 128 lanes each
WR = 64           # compact row count shipped over HBM for the 50-row weights

# Slots in the stacked VMEM weight scratch (NW, HP, GP).
K_WHH0F, K_WHH0R, K_W1FF, K_W1FR, K_WHH1F, K_W1RF, K_W1RR = range(7)
NW = 7


# ----------------------------- kernel helpers -------------------------------
def _gates_to_hc(gates, c):
    """gates: (BP, 4*HP), lane-aligned PyTorch gate order [i, f, g, o]."""
    i = jax.nn.sigmoid(gates[:, 0 * HP:1 * HP])
    f = jax.nn.sigmoid(gates[:, 1 * HP:2 * HP])
    g = jnp.tanh(gates[:, 2 * HP:3 * HP])
    o = jax.nn.sigmoid(gates[:, 3 * HP:4 * HP])
    c_new = f * c + i * g
    h_new = o * jnp.tanh(c_new)
    return h_new, c_new


def _cell_step(pre_gate, h, c, w_hh):
    """One LSTM step; the input projection is already folded into pre_gate."""
    gates = pre_gate + jnp.dot(h, w_hh, preferred_element_type=jnp.float32)
    return _gates_to_hc(gates, c)


# --------------------------------- kernel -----------------------------------
def bilstm_kernel(x_ref,                                  # (T, BP, 1)
                  wih0f, b0f, wih0r, b0r,                 # (1, 1, GP) each
                  b1f, b1r,                               # (1, GP) each
                  wfc_f, wfc_r, bfc,                      # (1,HP),(1,HP),(1,1)
                  whh0f_hbm, whh0r_hbm,                   # (WR, GP) in HBM
                  w1ff_hbm, w1fr_hbm, whh1f_hbm,          # (WR, GP) in HBM
                  w1rf_hbm, w1rr_hbm,                     # (WR, GP) in HBM
                  out_ref,                                # (BP, 1)
                  pg0f_ref, pg0r_ref,                     # (T, BP, GP) scratch
                  pg1f_ref,                               # (T*BP, GP) scratch
                  w_scr,                                  # (NW, HP, GP) scratch
                  dma_sems):                              # DMA sems (NW,)
    T, BP, _ = x_ref.shape

    # -- 1. kick off all weight DMAs: HBM -> rows [0:WR) of w_scr[k] ----------
    hbm = (whh0f_hbm, whh0r_hbm, w1ff_hbm, w1fr_hbm, whh1f_hbm,
           w1rf_hbm, w1rr_hbm)
    copies = [pltpu.make_async_copy(hbm[k], w_scr.at[k, pl.ds(0, WR)],
                                    dma_sems.at[k]) for k in range(NW)]
    for cp in copies:
        cp.start()

    # -- 2. hoisted layer-0 input projections (input_size=1 -> VPU broadcast) --
    x_all = x_ref[...]                                    # (T, BP, 1)
    pg0f_ref[...] = x_all * wih0f[...] + b0f[...]         # (T, BP, GP)
    pg0r_ref[...] = x_all * wih0r[...] + b0r[...]

    # -- 3. zero the padded weight rows [WR:HP) (disjoint from DMA region) ----
    pad_rows = jnp.zeros((HP - WR, GP), jnp.float32)
    for k in range(NW):
        w_scr[k, pl.ds(WR, HP - WR)] = pad_rows

    # -- 4. layer 0: fused forward + reverse recurrences ----------------------
    copies[K_WHH0F].wait()
    copies[K_WHH0R].wait()
    zeros_h = jnp.zeros((BP, HP), jnp.float32)
    h_f = c_f = zeros_h
    h_r = c_r = zeros_h
    l0f = [None] * T                       # hidden states kept as values
    l0r = [None] * T
    for t in range(T):                     # fully unrolled (T static)
        h_f, c_f = _cell_step(pg0f_ref[t], h_f, c_f, w_scr[K_WHH0F])
        l0f[t] = h_f
        tr = T - 1 - t
        h_r, c_r = _cell_step(pg0r_ref[tr], h_r, c_r, w_scr[K_WHH0R])
        l0r[tr] = h_r

    # -- 5. layer-1 forward input projection: one batched matmul per half -----
    for k in (K_W1FF, K_W1FR, K_WHH1F, K_W1RF, K_W1RR):   # DMA hidden by layer 0
        copies[k].wait()
    l0f_all = jnp.concatenate(l0f, axis=0)                # (T*BP, HP)
    l0r_all = jnp.concatenate(l0r, axis=0)
    pg1f_ref[...] = (
        jnp.dot(l0f_all, w_scr[K_W1FF], preferred_element_type=jnp.float32)
        + jnp.dot(l0r_all, w_scr[K_W1FR], preferred_element_type=jnp.float32)
        + b1f[...])

    # -- 6. layer-1 forward recurrence: only h @ W_hh inside the loop ---------
    h1 = c1 = zeros_h
    for t in range(T):
        h1, c1 = _cell_step(pg1f_ref[pl.ds(t * BP, BP)], h1, c1,
                            w_scr[K_WHH1F])

    # -- 7. layer-1 reverse: output[:, -1, H:] is the FIRST reverse step from
    #       the zero state, so the W_hh term vanishes (whh1r never shipped) ---
    pg1r_last = (
        jnp.dot(l0f[T - 1], w_scr[K_W1RF], preferred_element_type=jnp.float32)
        + jnp.dot(l0r[T - 1], w_scr[K_W1RR], preferred_element_type=jnp.float32)
        + b1r[...])
    h1r, _ = _gates_to_hc(pg1r_last, zeros_h)

    # -- 8. final Linear(100 -> 1): VPU multiply + lane reduction -------------
    out_ref[...] = (
        jnp.sum(h1 * wfc_f[...], axis=-1, keepdims=True)
        + jnp.sum(h1r * wfc_r[...], axis=-1, keepdims=True)
        + bfc[...])


# ------------------------------ weight packing -------------------------------
def _pad_gate_cols(w):
    """(rows, 4*H) gate-ordered [i,f,g,o] -> (rows, GP): each gate padded from
    50 to 128 lanes with zeros (keeps every gate slice whole-vreg aligned)."""
    parts = [jnp.pad(w[:, k * H:(k + 1) * H], ((0, 0), (0, HP - H)))
             for k in range(4)]
    return jnp.concatenate(parts, axis=1)


def _pad_rows(w, rows):
    return jnp.pad(w, ((0, rows - w.shape[0]), (0, 0)))


def _pack_params(params):
    """Pack raw (transposed, bias-summed) params:
         small: lane-aligned broadcastable weights/biases (auto-copied to VMEM)
         big:   compact (WR, GP) matrices (memory_space=pl.ANY, manual DMA)."""
    (wih0f, whh0f, b0f, wih0r, whh0r, b0r,
     wih1f, whh1f, b1f, wih1r, whh1r, b1r, wfc, bfc) = params
    del whh1r  # provably unused: module only reads output[:, -1, :]

    wih0f_p = _pad_gate_cols(wih0f).reshape(1, 1, GP)
    b0f_p = _pad_gate_cols(b0f).reshape(1, 1, GP)
    wih0r_p = _pad_gate_cols(wih0r).reshape(1, 1, GP)
    b0r_p = _pad_gate_cols(b0r).reshape(1, 1, GP)
    b1f_p = _pad_gate_cols(b1f)                           # (1, GP)
    b1r_p = _pad_gate_cols(b1r)
    wfc_f_p = jnp.pad(wfc[:H, 0].reshape(1, H), ((0, 0), (0, HP - H)))
    wfc_r_p = jnp.pad(wfc[H:, 0].reshape(1, H), ((0, 0), (0, HP - H)))
    bfc_p = bfc.reshape(1, 1)

    whh0f_c = _pad_rows(_pad_gate_cols(whh0f), WR)        # (WR, GP)
    whh0r_c = _pad_rows(_pad_gate_cols(whh0r), WR)
    wih1f_g = _pad_gate_cols(wih1f)                       # (2H, GP)
    w1ff_c = _pad_rows(wih1f_g[:H], WR)
    w1fr_c = _pad_rows(wih1f_g[H:], WR)
    whh1f_c = _pad_rows(_pad_gate_cols(whh1f), WR)
    wih1r_g = _pad_gate_cols(wih1r)
    w1rf_c = _pad_rows(wih1r_g[:H], WR)
    w1rr_c = _pad_rows(wih1r_g[H:], WR)

    small = (wih0f_p, b0f_p, wih0r_p, b0r_p, b1f_p, b1r_p,
             wfc_f_p, wfc_r_p, bfc_p)
    big = (whh0f_c, whh0r_c, w1ff_c, w1fr_c, whh1f_c, w1rf_c, w1rr_c)
    return small, big


# --------------------------------- wrapper -----------------------------------
def bilstm_forward(x, params):
    """x: (B, T, 1) float32, batch_first like the PyTorch module. -> (B, 1)."""
    B, T, _ = x.shape
    BP = max(8, ((B + 7) // 8) * 8)                       # fill sublanes
    small, big = _pack_params(params)
    x_tm = jnp.transpose(x, (1, 0, 2))                    # time-major (T, B, 1)
    x_tm = jnp.pad(x_tm, ((0, 0), (0, BP - B), (0, 0)))   # (T, BP, 1)

    vmem = pl.BlockSpec(memory_space=pltpu.MemorySpace.VMEM)
    hbm = pl.BlockSpec(memory_space=pl.ANY)
    out = pl.pallas_call(
        bilstm_kernel,
        out_shape=jax.ShapeDtypeStruct((BP, 1), jnp.float32),
        in_specs=[vmem] * (1 + len(small)) + [hbm] * len(big),
        out_specs=vmem,
        scratch_shapes=[
            pltpu.VMEM((T, BP, GP), jnp.float32),   # layer-0 fwd pre-gates
            pltpu.VMEM((T, BP, GP), jnp.float32),   # layer-0 rev pre-gates
            pltpu.VMEM((T * BP, GP), jnp.float32),  # layer-1 fwd pre-gates
            pltpu.VMEM((NW, HP, GP), jnp.float32),  # expanded weight matrices
            pltpu.SemaphoreType.DMA((NW,)),         # one sem per weight DMA
        ],
    )(x_tm, *small, *big)
    return out[:B]


# -------------------------- params / pure-JAX reference ----------------------
def init_params(key):
    """Deterministic synthetic weights matching nn.LSTM/nn.Linear shapes."""
    bound = 1.0 / np.sqrt(H)
    keys = iter(jax.random.split(key, 18))

    def u(shape, b):
        return jax.random.uniform(next(keys), shape, jnp.float32, -b, b)

    params = []
    # (layer0 fwd, layer0 rev) input_size=1; (layer1 fwd, layer1 rev) 2H.
    for in_size in (1, 1, 2 * H, 2 * H):
        w_ih = u((4 * H, in_size), bound)   # PyTorch weight_ih_l{k}[_reverse]
        w_hh = u((4 * H, H), bound)         # PyTorch weight_hh_l{k}[_reverse]
        b_ih = u((4 * H,), bound)
        b_hh = u((4 * H,), bound)
        params += [w_ih.T, w_hh.T, (b_ih + b_hh).reshape(1, 4 * H)]
    kfc = 1.0 / np.sqrt(2 * H)
    w_fc = u((1, 2 * H), kfc)               # nn.Linear(100, 1).weight
    b_fc = u((1,), kfc)                     # nn.Linear(100, 1).bias
    params += [w_fc.T, b_fc.reshape(1, 1)]
    return params


def _lstm_cell_ref(x_t, h, c, w_ih_T, w_hh_T, b):
    gates = x_t @ w_ih_T + h @ w_hh_T + b
    i = jax.nn.sigmoid(gates[:, 0 * H:1 * H])
    f = jax.nn.sigmoid(gates[:, 1 * H:2 * H])
    g = jnp.tanh(gates[:, 2 * H:3 * H])
    o = jax.nn.sigmoid(gates[:, 3 * H:4 * H])
    c_new = f * c + i * g
    return o * jnp.tanh(c_new), c_new


def ref_bilstm(x, params):
    """Pure-JAX reference mirroring torch.nn.LSTM bidirectional semantics."""
    (wih0f, whh0f, b0f, wih0r, whh0r, b0r,
     wih1f, whh1f, b1f, wih1r, whh1r, b1r, wfc, bfc) = params
    B, T, _ = x.shape

    def run_dir(xs, wih, whh, b, reverse):
        h = jnp.zeros((B, H), jnp.float32)
        c = jnp.zeros((B, H), jnp.float32)
        outs = [None] * T
        order = range(T - 1, -1, -1) if reverse else range(T)
        for t in order:
            h, c = _lstm_cell_ref(xs[:, t, :], h, c, wih, whh, b)
            outs[t] = h
        return jnp.stack(outs, axis=1)  # (B, T, H)

    l0 = jnp.concatenate([run_dir(x, wih0f, whh0f, b0f, False),
                          run_dir(x, wih0r, whh0r, b0r, True)], axis=-1)
    l1 = jnp.concatenate([run_dir(l0, wih1f, whh1f, b1f, False),
                          run_dir(l0, wih1r, whh1r, b1r, True)], axis=-1)
    return l1[:, -1, :] @ wfc + bfc


if __name__ == "__main__":
    key = jax.random.PRNGKey(0)
    kx, kp = jax.random.split(key)
    B, T = 2, 8                      # x: (batch=2, seq=8, input_size=1)
    x = jax.random.normal(kx, (B, T, 1), jnp.float32)
    params = init_params(kp)

    out = jax.block_until_ready(jax.jit(bilstm_forward)(x, params))
    assert out.shape == (B, 1)

    ref = np.asarray(ref_bilstm(x, params))
    err = np.abs(np.asarray(out) - ref).max()
    # Tolerance covers default-precision MXU dots + EUP transcendentals vs the
    # XLA reference; use lax.Precision.HIGHEST for strict fp32 parity.
    assert np.allclose(np.asarray(out), ref, rtol=1e-3, atol=1e-3), err
    print("KERNEL_OK")
</pallas_src>

<mosaic_0001>
module attributes {stable_mosaic.version = 11 : i64} {
  func.func @bilstm_kernel(%arg0: memref<8x8x1xf32, #tpu.memory_space<vmem>>, %arg1: memref<1x1x512xf32, #tpu.memory_space<vmem>>, %arg2: memref<1x1x512xf32, #tpu.memory_space<vmem>>, %arg3: memref<1x1x512xf32, #tpu.memory_space<vmem>>, %arg4: memref<1x1x512xf32, #tpu.memory_space<vmem>>, %arg5: memref<1x512xf32, #tpu.memory_space<vmem>>, %arg6: memref<1x512xf32, #tpu.memory_space<vmem>>, %arg7: memref<1x128xf32, #tpu.memory_space<vmem>>, %arg8: memref<1x128xf32, #tpu.memory_space<vmem>>, %arg9: memref<1x1xf32, #tpu.memory_space<vmem>>, %arg10: memref<64x512xf32, #tpu.memory_space<any>>, %arg11: memref<64x512xf32, #tpu.memory_space<any>>, %arg12: memref<64x512xf32, #tpu.memory_space<any>>, %arg13: memref<64x512xf32, #tpu.memory_space<any>>, %arg14: memref<64x512xf32, #tpu.memory_space<any>>, %arg15: memref<64x512xf32, #tpu.memory_space<any>>, %arg16: memref<64x512xf32, #tpu.memory_space<any>>, %arg17: memref<8x1xf32, #tpu.memory_space<vmem>>, %arg18: memref<8x8x512xf32, #tpu.memory_space<vmem>>, %arg19: memref<8x8x512xf32, #tpu.memory_space<vmem>>, %arg20: memref<64x512xf32, #tpu.memory_space<vmem>>, %arg21: memref<7x128x512xf32, #tpu.memory_space<vmem>>, %arg22: memref<7x!tpu.dma_semaphore, #tpu.memory_space<semaphore_mem>>) attributes {dimension_semantics = [], scalar_prefetch = 0 : i64, scratch_operands = 5 : i64, tpu.core_type = #tpu.core_type<tc>} {
    %c0_i32 = arith.constant 0 : i32
    %c0_i32_0 = arith.constant 0 : i32
    %c0_i32_1 = arith.constant 0 : i32
    %c0_i32_2 = arith.constant 0 : i32
    %0 = tpu.memref_slice %arg21[%c0_i32, %c0_i32_1, %c0_i32_2] : memref<7x128x512xf32, #tpu.memory_space<vmem>> -> memref<1x64x512xf32, #tpu.memory_space<vmem>>
    %1 = tpu.memref_squeeze %0 : memref<1x64x512xf32, #tpu.memory_space<vmem>> -> memref<64x512xf32, #tpu.memory_space<vmem>>
    %2 = tpu.memref_slice %arg22[%c0_i32_0] : memref<7x!tpu.dma_semaphore, #tpu.memory_space<semaphore_mem>> -> memref<1x!tpu.dma_semaphore, #tpu.memory_space<semaphore_mem>>
    %3 = tpu.memref_squeeze %2 : memref<1x!tpu.dma_semaphore, #tpu.memory_space<semaphore_mem>> -> memref<!tpu.dma_semaphore, #tpu.memory_space<semaphore_mem>>
    tpu.enqueue_dma source(%arg10 : memref<64x512xf32, #tpu.memory_space<any>>) target(%1 : memref<64x512xf32, #tpu.memory_space<vmem>>) target_semaphore(%3 : memref<!tpu.dma_semaphore, #tpu.memory_space<semaphore_mem>>)
    %c1_i32 = arith.constant 1 : i32
    %c1_i32_3 = arith.constant 1 : i32
    %c0_i32_4 = arith.constant 0 : i32
    %c0_i32_5 = arith.constant 0 : i32
    %4 = tpu.memref_slice %arg21[%c1_i32, %c0_i32_4, %c0_i32_5] : memref<7x128x512xf32, #tpu.memory_space<vmem>> -> memref<1x64x512xf32, #tpu.memory_space<vmem>>
    %5 = tpu.memref_squeeze %4 : memref<1x64x512xf32, #tpu.memory_space<vmem>> -> memref<64x512xf32, #tpu.memory_space<vmem>>
    %6 = tpu.memref_slice %arg22[%c1_i32_3] : memref<7x!tpu.dma_semaphore, #tpu.memory_space<semaphore_mem>> -> memref<1x!tpu.dma_semaphore, #tpu.memory_space<semaphore_mem>>
    %7 = tpu.memref_squeeze %6 : memref<1x!tpu.dma_semaphore, #tpu.memory_space<semaphore_mem>> -> memref<!tpu.dma_semaphore, #tpu.memory_space<semaphore_mem>>
    tpu.enqueue_dma source(%arg11 : memref<64x512xf32, #tpu.memory_space<any>>) target(%5 : memref<64x512xf32, #tpu.memory_space<vmem>>) target_semaphore(%7 : memref<!tpu.dma_semaphore, #tpu.memory_space<semaphore_mem>>)
    %c2_i32 = arith.constant 2 : i32
    %c2_i32_6 = arith.constant 2 : i32
    %c0_i32_7 = arith.constant 0 : i32
    %c0_i32_8 = arith.constant 0 : i32
    %8 = tpu.memref_slice %arg21[%c2_i32, %c0_i32_7, %c0_i32_8] : memref<7x128x512xf32, #tpu.memory_space<vmem>> -> memref<1x64x512xf32, #tpu.memory_space<vmem>>
    %9 = tpu.memref_squeeze %8 : memref<1x64x512xf32, #tpu.memory_space<vmem>> -> memref<64x512xf32, #tpu.memory_space<vmem>>
    %10 = tpu.memref_slice %arg22[%c2_i32_6] : memref<7x!tpu.dma_semaphore, #tpu.memory_space<semaphore_mem>> -> memref<1x!tpu.dma_semaphore, #tpu.memory_space<semaphore_mem>>
    %11 = tpu.memref_squeeze %10 : memref<1x!tpu.dma_semaphore, #tpu.memory_space<semaphore_mem>> -> memref<!tpu.dma_semaphore, #tpu.memory_space<semaphore_mem>>
    tpu.enqueue_dma source(%arg12 : memref<64x512xf32, #tpu.memory_space<any>>) target(%9 : memref<64x512xf32, #tpu.memory_space<vmem>>) target_semaphore(%11 : memref<!tpu.dma_semaphore, #tpu.memory_space<semaphore_mem>>)
    %c3_i32 = arith.constant 3 : i32
    %c3_i32_9 = arith.constant 3 : i32
    %c0_i32_10 = arith.constant 0 : i32
    %c0_i32_11 = arith.constant 0 : i32
    %12 = tpu.memref_slice %arg21[%c3_i32, %c0_i32_10, %c0_i32_11] : memref<7x128x512xf32, #tpu.memory_space<vmem>> -> memref<1x64x512xf32, #tpu.memory_space<vmem>>
    %13 = tpu.memref_squeeze %12 : memref<1x64x512xf32, #tpu.memory_space<vmem>> -> memref<64x512xf32, #tpu.memory_space<vmem>>
    %14 = tpu.memref_slice %arg22[%c3_i32_9] : memref<7x!tpu.dma_semaphore, #tpu.memory_space<semaphore_mem>> -> memref<1x!tpu.dma_semaphore, #tpu.memory_space<semaphore_mem>>
    %15 = tpu.memref_squeeze %14 : memref<1x!tpu.dma_semaphore, #tpu.memory_space<semaphore_mem>> -> memref<!tpu.dma_semaphore, #tpu.memory_space<semaphore_mem>>
    tpu.enqueue_dma source(%arg13 : memref<64x512xf32, #tpu.memory_space<any>>) target(%13 : memref<64x512xf32, #tpu.memory_space<vmem>>) target_semaphore(%15 : memref<!tpu.dma_semaphore, #tpu.memory_space<semaphore_mem>>)
    %c4_i32 = arith.constant 4 : i32
    %c4_i32_12 = arith.constant 4 : i32
    %c0_i32_13 = arith.constant 0 : i32
    %c0_i32_14 = arith.constant 0 : i32
    %16 = tpu.memref_slice %arg21[%c4_i32, %c0_i32_13, %c0_i32_14] : memref<7x128x512xf32, #tpu.memory_space<vmem>> -> memref<1x64x512xf32, #tpu.memory_space<vmem>>
    %17 = tpu.memref_squeeze %16 : memref<1x64x512xf32, #tpu.memory_space<vmem>> -> memref<64x512xf32, #tpu.memory_space<vmem>>
    %18 = tpu.memref_slice %arg22[%c4_i32_12] : memref<7x!tpu.dma_semaphore, #tpu.memory_space<semaphore_mem>> -> memref<1x!tpu.dma_semaphore, #tpu.memory_space<semaphore_mem>>
    %19 = tpu.memref_squeeze %18 : memref<1x!tpu.dma_semaphore, #tpu.memory_space<semaphore_mem>> -> memref<!tpu.dma_semaphore, #tpu.memory_space<semaphore_mem>>
    tpu.enqueue_dma source(%arg14 : memref<64x512xf32, #tpu.memory_space<any>>) target(%17 : memref<64x512xf32, #tpu.memory_space<vmem>>) target_semaphore(%19 : memref<!tpu.dma_semaphore, #tpu.memory_space<semaphore_mem>>)
    %c5_i32 = arith.constant 5 : i32
    %c5_i32_15 = arith.constant 5 : i32
    %c0_i32_16 = arith.constant 0 : i32
    %c0_i32_17 = arith.constant 0 : i32
    %20 = tpu.memref_slice %arg21[%c5_i32, %c0_i32_16, %c0_i32_17] : memref<7x128x512xf32, #tpu.memory_space<vmem>> -> memref<1x64x512xf32, #tpu.memory_space<vmem>>
    %21 = tpu.memref_squeeze %20 : memref<1x64x512xf32, #tpu.memory_space<vmem>> -> memref<64x512xf32, #tpu.memory_space<vmem>>
    %22 = tpu.memref_slice %arg22[%c5_i32_15] : memref<7x!tpu.dma_semaphore, #tpu.memory_space<semaphore_mem>> -> memref<1x!tpu.dma_semaphore, #tpu.memory_space<semaphore_mem>>
    %23 = tpu.memref_squeeze %22 : memref<1x!tpu.dma_semaphore, #tpu.memory_space<semaphore_mem>> -> memref<!tpu.dma_semaphore, #tpu.memory_space<semaphore_mem>>
    tpu.enqueue_dma source(%arg15 : memref<64x512xf32, #tpu.memory_space<any>>) target(%21 : memref<64x512xf32, #tpu.memory_space<vmem>>) target_semaphore(%23 : memref<!tpu.dma_semaphore, #tpu.memory_space<semaphore_mem>>)
    %c6_i32 = arith.constant 6 : i32
    %c6_i32_18 = arith.constant 6 : i32
    %c0_i32_19 = arith.constant 0 : i32
    %c0_i32_20 = arith.constant 0 : i32
    %24 = tpu.memref_slice %arg21[%c6_i32, %c0_i32_19, %c0_i32_20] : memref<7x128x512xf32, #tpu.memory_space<vmem>> -> memref<1x64x512xf32, #tpu.memory_space<vmem>>
    %25 = tpu.memref_squeeze %24 : memref<1x64x512xf32, #tpu.memory_space<vmem>> -> memref<64x512xf32, #tpu.memory_space<vmem>>
    %26 = tpu.memref_slice %arg22[%c6_i32_18] : memref<7x!tpu.dma_semaphore, #tpu.memory_space<semaphore_mem>> -> memref<1x!tpu.dma_semaphore, #tpu.memory_space<semaphore_mem>>
    %27 = tpu.memref_squeeze %26 : memref<1x!tpu.dma_semaphore, #tpu.memory_space<semaphore_mem>> -> memref<!tpu.dma_semaphore, #tpu.memory_space<semaphore_mem>>
    tpu.enqueue_dma source(%arg16 : memref<64x512xf32, #tpu.memory_space<any>>) target(%25 : memref<64x512xf32, #tpu.memory_space<vmem>>) target_semaphore(%27 : memref<!tpu.dma_semaphore, #tpu.memory_space<semaphore_mem>>)
    %c0 = arith.constant 0 : index
    %c0_21 = arith.constant 0 : index
    %c0_22 = arith.constant 0 : index
    %28 = vector.load %arg0[%c0, %c0_21, %c0_22] : memref<8x8x1xf32, #tpu.memory_space<vmem>>, vector<8x8x1xf32>
    %c0_23 = arith.constant 0 : index
    %c0_24 = arith.constant 0 : index
    %c0_25 = arith.constant 0 : index
    %29 = vector.load %arg1[%c0_23, %c0_24, %c0_25] : memref<1x1x512xf32, #tpu.memory_space<vmem>>, vector<1x1x512xf32>
    %30 = vector.broadcast %28 : vector<8x8x1xf32> to vector<8x8x512xf32>
    %31 = vector.broadcast %29 : vector<1x1x512xf32> to vector<8x8x512xf32>
    %32 = arith.mulf %30, %31 : vector<8x8x512xf32>
    %c0_26 = arith.constant 0 : index
    %c0_27 = arith.constant 0 : index
    %c0_28 = arith.constant 0 : index
    %33 = vector.load %arg2[%c0_26, %c0_27, %c0_28] : memref<1x1x512xf32, #tpu.memory_space<vmem>>, vector<1x1x512xf32>
    %34 = vector.broadcast %33 : vector<1x1x512xf32> to vector<8x8x512xf32>
    %35 = arith.addf %32, %34 : vector<8x8x512xf32>
    %c0_29 = arith.constant 0 : index
    %c0_30 = arith.constant 0 : index
    %c0_31 = arith.constant 0 : index
    %36 = vector.load %arg18[%c0_29, %c0_30, %c0_31] : memref<8x8x512xf32, #tpu.memory_space<vmem>>, vector<8x8x512xf32>
    tpu.vector_store %arg18[%c0_29, %c0_30, %c0_31], %35 {strides = array<i32>} : memref<8x8x512xf32, #tpu.memory_space<vmem>>, vector<8x8x512xf32>,
    %c0_32 = arith.constant 0 : index
    %c0_33 = arith.constant 0 : index
    %c0_34 = arith.constant 0 : index
    %37 = vector.load %arg3[%c0_32, %c0_33, %c0_34] : memref<1x1x512xf32, #tpu.memory_space<vmem>>, vector<1x1x512xf32>
    %38 = vector.broadcast %28 : vector<8x8x1xf32> to vector<8x8x512xf32>
    %39 = vector.broadcast %37 : vector<1x1x512xf32> to vector<8x8x512xf32>
    %40 = arith.mulf %38, %39 : vector<8x8x512xf32>
    %c0_35 = arith.constant 0 : index
    %c0_36 = arith.constant 0 : index
    %c0_37 = arith.constant 0 : index
    %41 = vector.load %arg4[%c0_35, %c0_36, %c0_37] : memref<1x1x512xf32, #tpu.memory_space<vmem>>, vector<1x1x512xf32>
    %42 = vector.broadcast %41 : vector<1x1x512xf32> to vector<8x8x512xf32>
    %43 = arith.addf %40, %42 : vector<8x8x512xf32>
    %c0_38 = arith.constant 0 : index
    %c0_39 = arith.constant 0 : index
    %c0_40 = arith.constant 0 : index
    %44 = vector.load %arg19[%c0_38, %c0_39, %c0_40] : memref<8x8x512xf32, #tpu.memory_space<vmem>>, vector<8x8x512xf32>
    tpu.vector_store %arg19[%c0_38, %c0_39, %c0_40], %43 {strides = array<i32>} : memref<8x8x512xf32, #tpu.memory_space<vmem>>, vector<8x8x512xf32>,
    %cst = arith.constant 0.000000e+00 : f32
    %45 = vector.broadcast %cst : f32 to vector<64x512xf32>
    %c0_41 = arith.constant 0 : index
    %c64 = arith.constant 64 : index
    %c0_42 = arith.constant 0 : index
    %46 = vector.load %arg21[%c0_41, %c64, %c0_42] : memref<7x128x512xf32, #tpu.memory_space<vmem>>, vector<1x64x512xf32>
    %47 = vector.shape_cast %46 : vector<1x64x512xf32> to vector<64x512xf32>
    %48 = vector.shape_cast %45 : vector<64x512xf32> to vector<1x64x512xf32>
    tpu.vector_store %arg21[%c0_41, %c64, %c0_42], %48 {strides = array<i32>} : memref<7x128x512xf32, #tpu.memory_space<vmem>>, vector<1x64x512xf32>,
    %c1 = arith.constant 1 : index
    %c64_43 = arith.constant 64 : index
    %c0_44 = arith.constant 0 : index
    %49 = vector.load %arg21[%c1, %c64_43, %c0_44] : memref<7x128x512xf32, #tpu.memory_space<vmem>>, vector<1x64x512xf32>
    %50 = vector.shape_cast %49 : vector<1x64x512xf32> to vector<64x512xf32>
    %51 = vector.shape_cast %45 : vector<64x512xf32> to vector<1x64x512xf32>
    tpu.vector_store %arg21[%c1, %c64_43, %c0_44], %51 {strides = array<i32>} : memref<7x128x512xf32, #tpu.memory_space<vmem>>, vector<1x64x512xf32>,
    %c2 = arith.constant 2 : index
    %c64_45 = arith.constant 64 : index
    %c0_46 = arith.constant 0 : index
    %52 = vector.load %arg21[%c2, %c64_45, %c0_46] : memref<7x128x512xf32, #tpu.memory_space<vmem>>, vector<1x64x512xf32>
    %53 = vector.shape_cast %52 : vector<1x64x512xf32> to vector<64x512xf32>
    %54 = vector.shape_cast %45 : vector<64x512xf32> to vector<1x64x512xf32>
    tpu.vector_store %arg21[%c2, %c64_45, %c0_46], %54 {strides = array<i32>} : memref<7x128x512xf32, #tpu.memory_space<vmem>>, vector<1x64x512xf32>,
    %c3 = arith.constant 3 : index
    %c64_47 = arith.constant 64 : index
    %c0_48 = arith.constant 0 : index
    %55 = vector.load %arg21[%c3, %c64_47, %c0_48] : memref<7x128x512xf32, #tpu.memory_space<vmem>>, vector<1x64x512xf32>
    %56 = vector.shape_cast %55 : vector<1x64x512xf32> to vector<64x512xf32>
    %57 = vector.shape_cast %45 : vector<64x512xf32> to vector<1x64x512xf32>
    tpu.vector_store %arg21[%c3, %c64_47, %c0_48], %57 {strides = array<i32>} : memref<7x128x512xf32, #tpu.memory_space<vmem>>, vector<1x64x512xf32>,
    %c4 = arith.constant 4 : index
    %c64_49 = arith.constant 64 : index
    %c0_50 = arith.constant 0 : index
    %58 = vector.load %arg21[%c4, %c64_49, %c0_50] : memref<7x128x512xf32, #tpu.memory_space<vmem>>, vector<1x64x512xf32>
    %59 = vector.shape_cast %58 : vector<1x64x512xf32> to vector<64x512xf32>
    %60 = vector.shape_cast %45 : vector<64x512xf32> to vector<1x64x512xf32>
    tpu.vector_store %arg21[%c4, %c64_49, %c0_50], %60 {strides = array<i32>} : memref<7x128x512xf32, #tpu.memory_space<vmem>>, vector<1x64x512xf32>,
    %c5 = arith.constant 5 : index
    %c64_51 = arith.constant 64 : index
    %c0_52 = arith.constant 0 : index
    %61 = vector.load %arg21[%c5, %c64_51, %c0_52] : memref<7x128x512xf32, #tpu.memory_space<vmem>>, vector<1x64x512xf32>
    %62 = vector.shape_cast %61 : vector<1x64x512xf32> to vector<64x512xf32>
    %63 = vector.shape_cast %45 : vector<64x512xf32> to vector<1x64x512xf32>
    tpu.vector_store %arg21[%c5, %c64_51, %c0_52], %63 {strides = array<i32>} : memref<7x128x512xf32, #tpu.memory_space<vmem>>, vector<1x64x512xf32>,
    %c6 = arith.constant 6 : index
    %c64_53 = arith.constant 64 : index
    %c0_54 = arith.constant 0 : index
    %64 = vector.load %arg21[%c6, %c64_53, %c0_54] : memref<7x128x512xf32, #tpu.memory_space<vmem>>, vector<1x64x512xf32>
    %65 = vector.shape_cast %64 : vector<1x64x512xf32> to vector<64x512xf32>
    %66 = vector.shape_cast %45 : vector<64x512xf32> to vector<1x64x512xf32>
    tpu.vector_store %arg21[%c6, %c64_53, %c0_54], %66 {strides = array<i32>} : memref<7x128x512xf32, #tpu.memory_space<vmem>>, vector<1x64x512xf32>,
    %c0_i32_55 = arith.constant 0 : i32
    %c0_i32_56 = arith.constant 0 : i32
    %c0_i32_57 = arith.constant 0 : i32
    %c0_i32_58 = arith.constant 0 : i32
    %67 = tpu.memref_slice %arg21[%c0_i32_55, %c0_i32_57, %c0_i32_58] : memref<7x128x512xf32, #tpu.memory_space<vmem>> -> memref<1x64x512xf32, #tpu.memory_space<vmem>>
    %68 = tpu.memref_squeeze %67 : memref<1x64x512xf32, #tpu.memory_space<vmem>> -> memref<64x512xf32, #tpu.memory_space<vmem>>
    %69 = tpu.memref_slice %arg22[%c0_i32_56] : memref<7x!tpu.dma_semaphore, #tpu.memory_space<semaphore_mem>> -> memref<1x!tpu.dma_semaphore, #tpu.memory_space<semaphore_mem>>
    %70 = tpu.memref_squeeze %69 : memref<1x!tpu.dma_semaphore, #tpu.memory_space<semaphore_mem>> -> memref<!tpu.dma_semaphore, #tpu.memory_space<semaphore_mem>>
    tpu.wait_dma2 semaphore(%70 : memref<!tpu.dma_semaphore, #tpu.memory_space<semaphore_mem>>) src(%arg10 : memref<64x512xf32, #tpu.memory_space<any>>) dst(%68 : memref<64x512xf32, #tpu.memory_space<vmem>>)
    %c1_i32_59 = arith.constant 1 : i32
    %c1_i32_60 = arith.constant 1 : i32
    %c0_i32_61 = arith.constant 0 : i32
    %c0_i32_62 = arith.constant 0 : i32
    %71 = tpu.memref_slice %arg21[%c1_i32_59, %c0_i32_61, %c0_i32_62] : memref<7x128x512xf32, #tpu.memory_space<vmem>> -> memref<1x64x512xf32, #tpu.memory_space<vmem>>
    %72 = tpu.memref_squeeze %71 : memref<1x64x512xf32, #tpu.memory_space<vmem>> -> memref<64x512xf32, #tpu.memory_space<vmem>>
    %73 = tpu.memref_slice %arg22[%c1_i32_60] : memref<7x!tpu.dma_semaphore, #tpu.memory_space<semaphore_mem>> -> memref<1x!tpu.dma_semaphore, #tpu.memory_space<semaphore_mem>>
    %74 = tpu.memref_squeeze %73 : memref<1x!tpu.dma_semaphore, #tpu.memory_space<semaphore_mem>> -> memref<!tpu.dma_semaphore, #tpu.memory_space<semaphore_mem>>
    tpu.wait_dma2 semaphore(%74 : memref<!tpu.dma_semaphore, #tpu.memory_space<semaphore_mem>>) src(%arg11 : memref<64x512xf32, #tpu.memory_space<any>>) dst(%72 : memref<64x512xf32, #tpu.memory_space<vmem>>)
    %cst_63 = arith.constant 0.000000e+00 : f32
    %75 = vector.broadcast %cst_63 : f32 to vector<8x128xf32>
    %c0_64 = arith.constant 0 : index
    %c0_65 = arith.constant 0 : index
    %c0_66 = arith.constant 0 : index
    %76 = vector.load %arg18[%c0_64, %c0_65, %c0_66] : memref<8x8x512xf32, #tpu.memory_space<vmem>>, vector<1x8x512xf32>
    %77 = vector.shape_cast %76 : vector<1x8x512xf32> to vector<8x512xf32>
    %c0_67 = arith.constant 0 : index
    %c0_68 = arith.constant 0 : index
    %c0_69 = arith.constant 0 : index
    %78 = vector.load %arg21[%c0_67, %c0_68, %c0_69] : memref<7x128x512xf32, #tpu.memory_space<vmem>>, vector<1x128x512xf32>
    %79 = vector.shape_cast %78 : vector<1x128x512xf32> to vector<128x512xf32>
    %cst_70 = arith.constant dense<0.000000e+00> : vector<8x512xf32>
    %80 = tpu.matmul %75, %79, %cst_70 {dimension_numbers = #tpu.dot_dimension_numbers<[1], [0], [0], [1], [0, 0, 1, 1], [], []>} : vector<8x128xf32>, vector<128x512xf32>, vector<8x512xf32> -> vector<8x512xf32>
    %81 = arith.addf %77, %80 : vector<8x512xf32>
    %82 = vector.extract_strided_slice %81 {offsets = [0, 0], sizes = [8, 128], strides = [1, 1]} : vector<8x512xf32> to vector<8x128xf32>
    %83 = arith.negf %82 : vector<8x128xf32>
    %84 = math.exp %83 : vector<8x128xf32>
    %cst_71 = arith.constant 1.000000e+00 : f32
    %85 = vector.broadcast %cst_71 : f32 to vector<8x128xf32>
    %86 = arith.addf %85, %84 : vector<8x128xf32>
    %87 = arith.divf %85, %86 : vector<8x128xf32>
    %88 = vector.extract_strided_slice %81 {offsets = [0, 128], sizes = [8, 128], strides = [1, 1]} : vector<8x512xf32> to vector<8x128xf32>
    %89 = arith.negf %88 : vector<8x128xf32>
    %90 = math.exp %89 : vector<8x128xf32>
    %cst_72 = arith.constant 1.000000e+00 : f32
    %91 = vector.broadcast %cst_72 : f32 to vector<8x128xf32>
    %92 = arith.addf %91, %90 : vector<8x128xf32>
    %93 = arith.divf %91, %92 : vector<8x128xf32>
    %94 = vector.extract_strided_slice %81 {offsets = [0, 256], sizes = [8, 128], strides = [1, 1]} : vector<8x512xf32> to vector<8x128xf32>
    %95 = math.tanh %94 : vector<8x128xf32>
    %96 = vector.extract_strided_slice %81 {offsets = [0, 384], sizes = [8, 128], strides = [1, 1]} : vector<8x512xf32> to vector<8x128xf32>
    %97 = arith.negf %96 : vector<8x128xf32>
    %98 = math.exp %97 : vector<8x128xf32>
    %cst_73 = arith.constant 1.000000e+00 : f32
    %99 = vector.broadcast %cst_73 : f32 to vector<8x128xf32>
    %100 = arith.addf %99, %98 : vector<8x128xf32>
    %101 = arith.divf %99, %100 : vector<8x128xf32>
    %102 = arith.mulf %93, %75 : vector<8x128xf32>
    %103 = arith.mulf %87, %95 : vector<8x128xf32>
    %104 = arith.addf %102, %103 : vector<8x128xf32>
    %105 = math.tanh %104 : vector<8x128xf32>
    %106 = arith.mulf %101, %105 : vector<8x128xf32>
    %c7 = arith.constant 7 : index
    %c0_74 = arith.constant 0 : index
    %c0_75 = arith.constant 0 : index
    %107 = vector.load %arg19[%c7, %c0_74, %c0_75] : memref<8x8x512xf32, #tpu.memory_space<vmem>>, vector<1x8x512xf32>
    %108 = vector.shape_cast %107 : vector<1x8x512xf32> to vector<8x512xf32>
    %c1_76 = arith.constant 1 : index
    %c0_77 = arith.constant 0 : index
    %c0_78 = arith.constant 0 : index
    %109 = vector.load %arg21[%c1_76, %c0_77, %c0_78] : memref<7x128x512xf32, #tpu.memory_space<vmem>>, vector<1x128x512xf32>
    %110 = vector.shape_cast %109 : vector<1x128x512xf32> to vector<128x512xf32>
    %cst_79 = arith.constant dense<0.000000e+00> : vector<8x512xf32>
    %111 = tpu.matmul %75, %110, %cst_79 {dimension_numbers = #tpu.dot_dimension_numbers<[1], [0], [0], [1], [0, 0, 1, 1], [], []>} : vector<8x128xf32>, vector<128x512xf32>, vector<8x512xf32> -> vector<8x512xf32>
    %112 = arith.addf %108, %111 : vector<8x512xf32>
    %113 = vector.extract_strided_slice %112 {offsets = [0, 0], sizes = [8, 128], strides = [1, 1]} : vector<8x512xf32> to vector<8x128xf32>
    %114 = arith.negf %113 : vector<8x128xf32>
    %115 = math.exp %114 : vector<8x128xf32>
    %cst_80 = arith.constant 1.000000e+00 : f32
    %116 = vector.broadcast %cst_80 : f32 to vector<8x128xf32>
    %117 = arith.addf %116, %115 : vector<8x128xf32>
    %118 = arith.divf %116, %117 : vector<8x128xf32>
    %119 = vector.extract_strided_slice %112 {offsets = [0, 128], sizes = [8, 128], strides = [1, 1]} : vector<8x512xf32> to vector<8x128xf32>
    %120 = arith.negf %119 : vector<8x128xf32>
    %121 = math.exp %120 : vector<8x128xf32>
    %cst_81 = arith.constant 1.000000e+00 : f32
    %122 = vector.broadcast %cst_81 : f32 to vector<8x128xf32>
    %123 = arith.addf %122, %121 : vector<8x128xf32>
    %124 = arith.divf %122, %123 : vector<8x128xf32>
    %125 = vector.extract_strided_slice %112 {offsets = [0, 256], sizes = [8, 128], strides = [1, 1]} : vector<8x512xf32> to vector<8x128xf32>
    %126 = math.tanh %125 : vector<8x128xf32>
    %127 = vector.extract_strided_slice %112 {offsets = [0, 384], sizes = [8, 128], strides = [1, 1]} : vector<8x512xf32> to vector<8x128xf32>
    %128 = arith.negf %127 : vector<8x128xf32>
    %129 = math.exp %128 : vector<8x128xf32>
    %cst_82 = arith.constant 1.000000e+00 : f32
    %130 = vector.broadcast %cst_82 : f32 to vector<8x128xf32>
    %131 = arith.addf %130, %129 : vector<8x128xf32>
    %132 = arith.divf %130, %131 : vector<8x128xf32>
    %133 = arith.mulf %124, %75 : vector<8x128xf32>
    %134 = arith.mulf %118, %126 : vector<8x128xf32>
    %135 = arith.addf %133, %134 : vector<8x128xf32>
    %136 = math.tanh %135 : vector<8x128xf32>
    %137 = arith.mulf %132, %136 : vector<8x128xf32>
    %c1_83 = arith.constant 1 : index
    %c0_84 = arith.constant 0 : index
    %c0_85 = arith.constant 0 : index
    %138 = vector.load %arg18[%c1_83, %c0_84, %c0_85] : memref<8x8x512xf32, #tpu.memory_space<vmem>>, vector<1x8x512xf32>
    %139 = vector.shape_cast %138 : vector<1x8x512xf32> to vector<8x512xf32>
    %c0_86 = arith.constant 0 : index
    %c0_87 = arith.constant 0 : index
    %c0_88 = arith.constant 0 : index
    %140 = vector.load %arg21[%c0_86, %c0_87, %c0_88] : memref<7x128x512xf32, #tpu.memory_space<vmem>>, vector<1x128x512xf32>
    %141 = vector.shape_cast %140 : vector<1x128x512xf32> to vector<128x512xf32>
    %cst_89 = arith.constant dense<0.000000e+00> : vector<8x512xf32>
    %142 = tpu.matmul %106, %141, %cst_89 {dimension_numbers = #tpu.dot_dimension_numbers<[1], [0], [0], [1], [0, 0, 1, 1], [], []>} : vector<8x128xf32>, vector<128x512xf32>, vector<8x512xf32> -> vector<8x512xf32>
    %143 = arith.addf %139, %142 : vector<8x512xf32>
    %144 = vector.extract_strided_slice %143 {offsets = [0, 0], sizes = [8, 128], strides = [1, 1]} : vector<8x512xf32> to vector<8x128xf32>
    %145 = arith.negf %144 : vector<8x128xf32>
    %146 = math.exp %145 : vector<8x128xf32>
    %cst_90 = arith.constant 1.000000e+00 : f32
    %147 = vector.broadcast %cst_90 : f32 to vector<8x128xf32>
    %148 = arith.addf %147, %146 : vector<8x128xf32>
    %149 = arith.divf %147, %148 : vector<8x128xf32>
    %150 = vector.extract_strided_slice %143 {offsets = [0, 128], sizes = [8, 128], strides = [1, 1]} : vector<8x512xf32> to vector<8x128xf32>
    %151 = arith.negf %150 : vector<8x128xf32>
    %152 = math.exp %151 : vector<8x128xf32>
    %cst_91 = arith.constant 1.000000e+00 : f32
    %153 = vector.broadcast %cst_91 : f32 to vector<8x128xf32>
    %154 = arith.addf %153, %152 : vector<8x128xf32>
    %155 = arith.divf %153, %154 : vector<8x128xf32>
    %156 = vector.extract_strided_slice %143 {offsets = [0, 256], sizes = [8, 128], strides = [1, 1]} : vector<8x512xf32> to vector<8x128xf32>
    %157 = math.tanh %156 : vector<8x128xf32>
    %158 = vector.extract_strided_slice %143 {offsets = [0, 384], sizes = [8, 128], strides = [1, 1]} : vector<8x512xf32> to vector<8x128xf32>
    %159 = arith.negf %158 : vector<8x128xf32>
    %160 = math.exp %159 : vector<8x128xf32>
    %cst_92 = arith.constant 1.000000e+00 : f32
    %161 = vector.broadcast %cst_92 : f32 to vector<8x128xf32>
    %162 = arith.addf %161, %160 : vector<8x128xf32>
    %163 = arith.divf %161, %162 : vector<8x128xf32>
    %164 = arith.mulf %155, %104 : vector<8x128xf32>
    %165 = arith.mulf %149, %157 : vector<8x128xf32>
    %166 = arith.addf %164, %165 : vector<8x128xf32>
    %167 = math.tanh %166 : vector<8x128xf32>
    %168 = arith.mulf %163, %167 : vector<8x128xf32>
    %c6_93 = arith.constant 6 : index
    %c0_94 = arith.constant 0 : index
    %c0_95 = arith.constant 0 : index
    %169 = vector.load %arg19[%c6_93, %c0_94, %c0_95] : memref<8x8x512xf32, #tpu.memory_space<vmem>>, vector<1x8x512xf32>
    %170 = vector.shape_cast %169 : vector<1x8x512xf32> to vector<8x512xf32>
    %c1_96 = arith.constant 1 : index
    %c0_97 = arith.constant 0 : index
    %c0_98 = arith.constant 0 : index
    %171 = vector.load %arg21[%c1_96, %c0_97, %c0_98] : memref<7x128x512xf32, #tpu.memory_space<vmem>>, vector<1x128x512xf32>
    %172 = vector.shape_cast %171 : vector<1x128x512xf32> to vector<128x512xf32>
    %cst_99 = arith.constant dense<0.000000e+00> : vector<8x512xf32>
    %173 = tpu.matmul %137, %172, %cst_99 {dimension_numbers = #tpu.dot_dimension_numbers<[1], [0], [0], [1], [0, 0, 1, 1], [], []>} : vector<8x128xf32>, vector<128x512xf32>, vector<8x512xf32> -> vector<8x512xf32>
    %174 = arith.addf %170, %173 : vector<8x512xf32>
    %175 = vector.extract_strided_slice %174 {offsets = [0, 0], sizes = [8, 128], strides = [1, 1]} : vector<8x512xf32> to vector<8x128xf32>
    %176 = arith.negf %175 : vector<8x128xf32>
    %177 = math.exp %176 : vector<8x128xf32>
    %cst_100 = arith.constant 1.000000e+00 : f32
    %178 = vector.broadcast %cst_100 : f32 to vector<8x128xf32>
    %179 = arith.addf %178, %177 : vector<8x128xf32>
    %180 = arith.divf %178, %179 : vector<8x128xf32>
    %181 = vector.extract_strided_slice %174 {offsets = [0, 128], sizes = [8, 128], strides = [1, 1]} : vector<8x512xf32> to vector<8x128xf32>
    %182 = arith.negf %181 : vector<8x128xf32>
    %183 = math.exp %182 : vector<8x128xf32>
    %cst_101 = arith.constant 1.000000e+00 : f32
    %184 = vector.broadcast %cst_101 : f32 to vector<8x128xf32>
    %185 = arith.addf %184, %183 : vector<8x128xf32>
    %186 = arith.divf %184, %185 : vector<8x128xf32>
    %187 = vector.extract_strided_slice %174 {offsets = [0, 256], sizes = [8, 128], strides = [1, 1]} : vector<8x512xf32> to vector<8x128xf32>
    %188 = math.tanh %187 : vector<8x128xf32>
    %189 = vector.extract_strided_slice %174 {offsets = [0, 384], sizes = [8, 128], strides = [1, 1]} : vector<8x512xf32> to vector<8x128xf32>
    %190 = arith.negf %189 : vector<8x128xf32>
    %191 = math.exp %190 : vector<8x128xf32>
    %cst_102 = arith.constant 1.000000e+00 : f32
    %192 = vector.broadcast %cst_102 : f32 to vector<8x128xf32>
    %193 = arith.addf %192, %191 : vector<8x128xf32>
    %194 = arith.divf %192, %193 : vector<8x128xf32>
    %195 = arith.mulf %186, %135 : vector<8x128xf32>
    %196 = arith.mulf %180, %188 : vector<8x128xf32>
    %197 = arith.addf %195, %196 : vector<8x128xf32>
    %198 = math.tanh %197 : vector<8x128xf32>
    %199 = arith.mulf %194, %198 : vector<8x128xf32>
    %c2_103 = arith.constant 2 : index
    %c0_104 = arith.constant 0 : index
    %c0_105 = arith.constant 0 : index
    %200 = vector.load %arg18[%c2_103, %c0_104, %c0_105] : memref<8x8x512xf32, #tpu.memory_space<vmem>>, vector<1x8x512xf32>
    %201 = vector.shape_cast %200 : vector<1x8x512xf32> to vector<8x512xf32>
    %c0_106 = arith.constant 0 : index
    %c0_107 = arith.constant 0 : index
    %c0_108 = arith.constant 0 : index
    %202 = vector.load %arg21[%c0_106, %c0_107, %c0_108] : memref<7x128x512xf32, #tpu.memory_space<vmem>>, vector<1x128x512xf32>
    %203 = vector.shape_cast %202 : vector<1x128x512xf32> to vector<128x512xf32>
    %cst_109 = arith.constant dense<0.000000e+00> : vector<8x512xf32>
    %204 = tpu.matmul %168, %203, %cst_109 {dimension_numbers = #tpu.dot_dimension_numbers<[1], [0], [0], [1], [0, 0, 1, 1], [], []>} : vector<8x128xf32>, vector<128x512xf32>, vector<8x512xf32> -> vector<8x512xf32>
    %205 = arith.addf %201, %204 : vector<8x512xf32>
    %206 = vector.extract_strided_slice %205 {offsets = [0, 0], sizes = [8, 128], strides = [1, 1]} : vector<8x512xf32> to vector<8x128xf32>
    %207 = arith.negf %206 : vector<8x128xf32>
    %208 = math.exp %207 : vector<8x128xf32>
    %cst_110 = arith.constant 1.000000e+00 : f32
    %209 = vector.broadcast %cst_110 : f32 to vector<8x128xf32>
    %210 = arith.addf %209, %208 : vector<8x128xf32>
    %211 = arith.divf %209, %210 : vector<8x128xf32>
    %212 = vector.extract_strided_slice %205 {offsets = [0, 128], sizes = [8, 128], strides = [1, 1]} : vector<8x512xf32> to vector<8x128xf32>
    %213 = arith.negf %212 : vector<8x128xf32>
    %214 = math.exp %213 : vector<8x128xf32>
    %cst_111 = arith.constant 1.000000e+00 : f32
    %215 = vector.broadcast %cst_111 : f32 to vector<8x128xf32>
    %216 = arith.addf %215, %214 : vector<8x128xf32>
    %217 = arith.divf %215, %216 : vector<8x128xf32>
    %218 = vector.extract_strided_slice %205 {offsets = [0, 256], sizes = [8, 128], strides = [1, 1]} : vector<8x512xf32> to vector<8x128xf32>
    %219 = math.tanh %218 : vector<8x128xf32>
    %220 = vector.extract_strided_slice %205 {offsets = [0, 384], sizes = [8, 128], strides = [1, 1]} : vector<8x512xf32> to vector<8x128xf32>
    %221 = arith.negf %220 : vector<8x128xf32>
    %222 = math.exp %221 : vector<8x128xf32>
    %cst_112 = arith.constant 1.000000e+00 : f32
    %223 = vector.broadcast %cst_112 : f32 to vector<8x128xf32>
    %224 = arith.addf %223, %222 : vector<8x128xf32>
    %225 = arith.divf %223, %224 : vector<8x128xf32>
    %226 = arith.mulf %217, %166 : vector<8x128xf32>
    %227 = arith.mulf %211, %219 : vector<8x128xf32>
    %228 = arith.addf %226, %227 : vector<8x128xf32>
    %229 = math.tanh %228 : vector<8x128xf32>
    %230 = arith.mulf %225, %229 : vector<8x128xf32>
    %c5_113 = arith.constant 5 : index
    %c0_114 = arith.constant 0 : index
    %c0_115 = arith.constant 0 : index
    %231 = vector.load %arg19[%c5_113, %c0_114, %c0_115] : memref<8x8x512xf32, #tpu.memory_space<vmem>>, vector<1x8x512xf32>
    %232 = vector.shape_cast %231 : vector<1x8x512xf32> to vector<8x512xf32>
    %c1_116 = arith.constant 1 : index
    %c0_117 = arith.constant 0 : index
    %c0_118 = arith.constant 0 : index
    %233 = vector.load %arg21[%c1_116, %c0_117, %c0_118] : memref<7x128x512xf32, #tpu.memory_space<vmem>>, vector<1x128x512xf32>
    %234 = vector.shape_cast %233 : vector<1x128x512xf32> to vector<128x512xf32>
    %cst_119 = arith.constant dense<0.000000e+00> : vector<8x512xf32>
    %235 = tpu.matmul %199, %234, %cst_119 {dimension_numbers = #tpu.dot_dimension_numbers<[1], [0], [0], [1], [0, 0, 1, 1], [], []>} : vector<8x128xf32>, vector<128x512xf32>, vector<8x512xf32> -> vector<8x512xf32>
    %236 = arith.addf %232, %235 : vector<8x512xf32>
    %237 = vector.extract_strided_slice %236 {offsets = [0, 0], sizes = [8, 128], strides = [1, 1]} : vector<8x512xf32> to vector<8x128xf32>
    %238 = arith.negf %237 : vector<8x128xf32>
    %239 = math.exp %238 : vector<8x128xf32>
    %cst_120 = arith.constant 1.000000e+00 : f32
    %240 = vector.broadcast %cst_120 : f32 to vector<8x128xf32>
    %241 = arith.addf %240, %239 : vector<8x128xf32>
    %242 = arith.divf %240, %241 : vector<8x128xf32>
    %243 = vector.extract_strided_slice %236 {offsets = [0, 128], sizes = [8, 128], strides = [1, 1]} : vector<8x512xf32> to vector<8x128xf32>
    %244 = arith.negf %243 : vector<8x128xf32>
    %245 = math.exp %244 : vector<8x128xf32>
    %cst_121 = arith.constant 1.000000e+00 : f32
    %246 = vector.broadcast %cst_121 : f32 to vector<8x128xf32>
    %247 = arith.addf %246, %245 : vector<8x128xf32>
    %248 = arith.divf %246, %247 : vector<8x128xf32>
    %249 = vector.extract_strided_slice %236 {offsets = [0, 256], sizes = [8, 128], strides = [1, 1]} : vector<8x512xf32> to vector<8x128xf32>
    %250 = math.tanh %249 : vector<8x128xf32>
    %251 = vector.extract_strided_slice %236 {offsets = [0, 384], sizes = [8, 128], strides = [1, 1]} : vector<8x512xf32> to vector<8x128xf32>
    %252 = arith.negf %251 : vector<8x128xf32>
    %253 = math.exp %252 : vector<8x128xf32>
    %cst_122 = arith.constant 1.000000e+00 : f32
    %254 = vector.broadcast %cst_122 : f32 to vector<8x128xf32>
    %255 = arith.addf %254, %253 : vector<8x128xf32>
    %256 = arith.divf %254, %255 : vector<8x128xf32>
    %257 = arith.mulf %248, %197 : vector<8x128xf32>
    %258 = arith.mulf %242, %250 : vector<8x128xf32>
    %259 = arith.addf %257, %258 : vector<8x128xf32>
    %260 = math.tanh %259 : vector<8x128xf32>
    %261 = arith.mulf %256, %260 : vector<8x128xf32>
    %c3_123 = arith.constant 3 : index
    %c0_124 = arith.constant 0 : index
    %c0_125 = arith.constant 0 : index
    %262 = vector.load %arg18[%c3_123, %c0_124, %c0_125] : memref<8x8x512xf32, #tpu.memory_space<vmem>>, vector<1x8x512xf32>
    %263 = vector.shape_cast %262 : vector<1x8x512xf32> to vector<8x512xf32>
    %c0_126 = arith.constant 0 : index
    %c0_127 = arith.constant 0 : index
    %c0_128 = arith.constant 0 : index
    %264 = vector.load %arg21[%c0_126, %c0_127, %c0_128] : memref<7x128x512xf32, #tpu.memory_space<vmem>>, vector<1x128x512xf32>
    %265 = vector.shape_cast %264 : vector<1x128x512xf32> to vector<128x512xf32>
    %cst_129 = arith.constant dense<0.000000e+00> : vector<8x512xf32>
    %266 = tpu.matmul %230, %265, %cst_129 {dimension_numbers = #tpu.dot_dimension_numbers<[1], [0], [0], [1], [0, 0, 1, 1], [], []>} : vector<8x128xf32>, vector<128x512xf32>, vector<8x512xf32> -> vector<8x512xf32>
    %267 = arith.addf %263, %266 : vector<8x512xf32>
    %268 = vector.extract_strided_slice %267 {offsets = [0, 0], sizes = [8, 128], strides = [1, 1]} : vector<8x512xf32> to vector<8x128xf32>
    %269 = arith.negf %268 : vector<8x128xf32>
    %270 = math.exp %269 : vector<8x128xf32>
    %cst_130 = arith.constant 1.000000e+00 : f32
    %271 = vector.broadcast %cst_130 : f32 to vector<8x128xf32>
    %272 = arith.addf %271, %270 : vector<8x128xf32>
    %273 = arith.divf %271, %272 : vector<8x128xf32>
    %274 = vector.extract_strided_slice %267 {offsets = [0, 128], sizes = [8, 128], strides = [1, 1]} : vector<8x512xf32> to vector<8x128xf32>
    %275 = arith.negf %274 : vector<8x128xf32>
    %276 = math.exp %275 : vector<8x128xf32>
    %cst_131 = arith.constant 1.000000e+00 : f32
    %277 = vector.broadcast %cst_131 : f32 to vector<8x128xf32>
    %278 = arith.addf %277, %276 : vector<8x128xf32>
    %279 = arith.divf %277, %278 : vector<8x128xf32>
    %280 = vector.extract_strided_slice %267 {offsets = [0, 256], sizes = [8, 128], strides = [1, 1]} : vector<8x512xf32> to vector<8x128xf32>
    %281 = math.tanh %280 : vector<8x128xf32>
    %282 = vector.extract_strided_slice %267 {offsets = [0, 384], sizes = [8, 128], strides = [1, 1]} : vector<8x512xf32> to vector<8x128xf32>
    %283 = arith.negf %282 : vector<8x128xf32>
    %284 = math.exp %283 : vector<8x128xf32>
    %cst_132 = arith.constant 1.000000e+00 : f32
    %285 = vector.broadcast %cst_132 : f32 to vector<8x128xf32>
    %286 = arith.addf %285, %284 : vector<8x128xf32>
    %287 = arith.divf %285, %286 : vector<8x128xf32>
    %288 = arith.mulf %279, %228 : vector<8x128xf32>
    %289 = arith.mulf %273, %281 : vector<8x128xf32>
    %290 = arith.addf %288, %289 : vector<8x128xf32>
    %291 = math.tanh %290 : vector<8x128xf32>
    %292 = arith.mulf %287, %291 : vector<8x128xf32>
    %c4_133 = arith.constant 4 : index
    %c0_134 = arith.constant 0 : index
    %c0_135 = arith.constant 0 : index
    %293 = vector.load %arg19[%c4_133, %c0_134, %c0_135] : memref<8x8x512xf32, #tpu.memory_space<vmem>>, vector<1x8x512xf32>
    %294 = vector.shape_cast %293 : vector<1x8x512xf32> to vector<8x512xf32>
    %c1_136 = arith.constant 1 : index
    %c0_137 = arith.constant 0 : index
    %c0_138 = arith.constant 0 : index
    %295 = vector.load %arg21[%c1_136, %c0_137, %c0_138] : memref<7x128x512xf32, #tpu.memory_space<vmem>>, vector<1x128x512xf32>
    %296 = vector.shape_cast %295 : vector<1x128x512xf32> to vector<128x512xf32>
    %cst_139 = arith.constant dense<0.000000e+00> : vector<8x512xf32>
    %297 = tpu.matmul %261, %296, %cst_139 {dimension_numbers = #tpu.dot_dimension_numbers<[1], [0], [0], [1], [0, 0, 1, 1], [], []>} : vector<8x128xf32>, vector<128x512xf32>, vector<8x512xf32> -> vector<8x512xf32>
    %298 = arith.addf %294, %297 : vector<8x512xf32>
    %299 = vector.extract_strided_slice %298 {offsets = [0, 0], sizes = [8, 128], strides = [1, 1]} : vector<8x512xf32> to vector<8x128xf32>
    %300 = arith.negf %299 : vector<8x128xf32>
    %301 = math.exp %300 : vector<8x128xf32>
    %cst_140 = arith.constant 1.000000e+00 : f32
    %302 = vector.broadcast %cst_140 : f32 to vector<8x128xf32>
    %303 = arith.addf %302, %301 : vector<8x128xf32>
    %304 = arith.divf %302, %303 : vector<8x128xf32>
    %305 = vector.extract_strided_slice %298 {offsets = [0, 128], sizes = [8, 128], strides = [1, 1]} : vector<8x512xf32> to vector<8x128xf32>
    %306 = arith.negf %305 : vector<8x128xf32>
    %307 = math.exp %306 : vector<8x128xf32>
    %cst_141 = arith.constant 1.000000e+00 : f32
    %308 = vector.broadcast %cst_141 : f32 to vector<8x128xf32>
    %309 = arith.addf %308, %307 : vector<8x128xf32>
    %310 = arith.divf %308, %309 : vector<8x128xf32>
    %311 = vector.extract_strided_slice %298 {offsets = [0, 256], sizes = [8, 128], strides = [1, 1]} : vector<8x512xf32> to vector<8x128xf32>
    %312 = math.tanh %311 : vector<8x128xf32>
    %313 = vector.extract_strided_slice %298 {offsets = [0, 384], sizes = [8, 128], strides = [1, 1]} : vector<8x512xf32> to vector<8x128xf32>
    %314 = arith.negf %313 : vector<8x128xf32>
    %315 = math.exp %314 : vector<8x128xf32>
    %cst_142 = arith.constant 1.000000e+00 : f32
    %316 = vector.broadcast %cst_142 : f32 to vector<8x128xf32>
    %317 = arith.addf %316, %315 : vector<8x128xf32>
    %318 = arith.divf %316, %317 : vector<8x128xf32>
    %319 = arith.mulf %310, %259 : vector<8x128xf32>
    %320 = arith.mulf %304, %312 : vector<8x128xf32>
    %321 = arith.addf %319, %320 : vector<8x128xf32>
    %322 = math.tanh %321 : vector<8x128xf32>
    %323 = arith.mulf %318, %322 : vector<8x128xf32>
    %c4_143 = arith.constant 4 : index
    %c0_144 = arith.constant 0 : index
    %c0_145 = arith.constant 0 : index
    %324 = vector.load %arg18[%c4_143, %c0_144, %c0_145] : memref<8x8x512xf32, #tpu.memory_space<vmem>>, vector<1x8x512xf32>
    %325 = vector.shape_cast %324 : vector<1x8x512xf32> to vector<8x512xf32>
    %c0_146 = arith.constant 0 : index
    %c0_147 = arith.constant 0 : index
    %c0_148 = arith.constant 0 : index
    %326 = vector.load %arg21[%c0_146, %c0_147, %c0_148] : memref<7x128x512xf32, #tpu.memory_space<vmem>>, vector<1x128x512xf32>
    %327 = vector.shape_cast %326 : vector<1x128x512xf32> to vector<128x512xf32>
    %cst_149 = arith.constant dense<0.000000e+00> : vector<8x512xf32>
    %328 = tpu.matmul %292, %327, %cst_149 {dimension_numbers = #tpu.dot_dimension_numbers<[1], [0], [0], [1], [0, 0, 1, 1], [], []>} : vector<8x128xf32>, vector<128x512xf32>, vector<8x512xf32> -> vector<8x512xf32>
    %329 = arith.addf %325, %328 : vector<8x512xf32>
    %330 = vector.extract_strided_slice %329 {offsets = [0, 0], sizes = [8, 128], strides = [1, 1]} : vector<8x512xf32> to vector<8x128xf32>
    %331 = arith.negf %330 : vector<8x128xf32>
    %332 = math.exp %331 : vector<8x128xf32>
    %cst_150 = arith.constant 1.000000e+00 : f32
    %333 = vector.broadcast %cst_150 : f32 to vector<8x128xf32>
    %334 = arith.addf %333, %332 : vector<8x128xf32>
    %335 = arith.divf %333, %334 : vector<8x128xf32>
    %336 = vector.extract_strided_slice %329 {offsets = [0, 128], sizes = [8, 128], strides = [1, 1]} : vector<8x512xf32> to vector<8x128xf32>
    %337 = arith.negf %336 : vector<8x128xf32>
    %338 = math.exp %337 : vector<8x128xf32>
    %cst_151 = arith.constant 1.000000e+00 : f32
    %339 = vector.broadcast %cst_151 : f32 to vector<8x128xf32>
    %340 = arith.addf %339, %338 : vector<8x128xf32>
    %341 = arith.divf %339, %340 : vector<8x128xf32>
    %342 = vector.extract_strided_slice %329 {offsets = [0, 256], sizes = [8, 128], strides = [1, 1]} : vector<8x512xf32> to vector<8x128xf32>
    %343 = math.tanh %342 : vector<8x128xf32>
    %344 = vector.extract_strided_slice %329 {offsets = [0, 384], sizes = [8, 128], strides = [1, 1]} : vector<8x512xf32> to vector<8x128xf32>
    %345 = arith.negf %344 : vector<8x128xf32>
    %346 = math.exp %345 : vector<8x128xf32>
    %cst_152 = arith.constant 1.000000e+00 : f32
    %347 = vector.broadcast %cst_152 : f32 to vector<8x128xf32>
    %348 = arith.addf %347, %346 : vector<8x128xf32>
    %349 = arith.divf %347, %348 : vector<8x128xf32>
    %350 = arith.mulf %341, %290 : vector<8x128xf32>
    %351 = arith.mulf %335, %343 : vector<8x128xf32>
    %352 = arith.addf %350, %351 : vector<8x128xf32>
    %353 = math.tanh %352 : vector<8x128xf32>
    %354 = arith.mulf %349, %353 : vector<8x128xf32>
    %c3_153 = arith.constant 3 : index
    %c0_154 = arith.constant 0 : index
    %c0_155 = arith.constant 0 : index
    %355 = vector.load %arg19[%c3_153, %c0_154, %c0_155] : memref<8x8x512xf32, #tpu.memory_space<vmem>>, vector<1x8x512xf32>
    %356 = vector.shape_cast %355 : vector<1x8x512xf32> to vector<8x512xf32>
    %c1_156 = arith.constant 1 : index
    %c0_157 = arith.constant 0 : index
    %c0_158 = arith.constant 0 : index
    %357 = vector.load %arg21[%c1_156, %c0_157, %c0_158] : memref<7x128x512xf32, #tpu.memory_space<vmem>>, vector<1x128x512xf32>
    %358 = vector.shape_cast %357 : vector<1x128x512xf32> to vector<128x512xf32>
    %cst_159 = arith.constant dense<0.000000e+00> : vector<8x512xf32>
    %359 = tpu.matmul %323, %358, %cst_159 {dimension_numbers = #tpu.dot_dimension_numbers<[1], [0], [0], [1], [0, 0, 1, 1], [], []>} : vector<8x128xf32>, vector<128x512xf32>, vector<8x512xf32> -> vector<8x512xf32>
    %360 = arith.addf %356, %359 : vector<8x512xf32>
    %361 = vector.extract_strided_slice %360 {offsets = [0, 0], sizes = [8, 128], strides = [1, 1]} : vector<8x512xf32> to vector<8x128xf32>
    %362 = arith.negf %361 : vector<8x128xf32>
    %363 = math.exp %362 : vector<8x128xf32>
    %cst_160 = arith.constant 1.000000e+00 : f32
    %364 = vector.broadcast %cst_160 : f32 to vector<8x128xf32>
    %365 = arith.addf %364, %363 : vector<8x128xf32>
    %366 = arith.divf %364, %365 : vector<8x128xf32>
    %367 = vector.extract_strided_slice %360 {offsets = [0, 128], sizes = [8, 128], strides = [1, 1]} : vector<8x512xf32> to vector<8x128xf32>
    %368 = arith.negf %367 : vector<8x128xf32>
    %369 = math.exp %368 : vector<8x128xf32>
    %cst_161 = arith.constant 1.000000e+00 : f32
    %370 = vector.broadcast %cst_161 : f32 to vector<8x128xf32>
    %371 = arith.addf %370, %369 : vector<8x128xf32>
    %372 = arith.divf %370, %371 : vector<8x128xf32>
    %373 = vector.extract_strided_slice %360 {offsets = [0, 256], sizes = [8, 128], strides = [1, 1]} : vector<8x512xf32> to vector<8x128xf32>
    %374 = math.tanh %373 : vector<8x128xf32>
    %375 = vector.extract_strided_slice %360 {offsets = [0, 384], sizes = [8, 128], strides = [1, 1]} : vector<8x512xf32> to vector<8x128xf32>
    %376 = arith.negf %375 : vector<8x128xf32>
    %377 = math.exp %376 : vector<8x128xf32>
    %cst_162 = arith.constant 1.000000e+00 : f32
    %378 = vector.broadcast %cst_162 : f32 to vector<8x128xf32>
    %379 = arith.addf %378, %377 : vector<8x128xf32>
    %380 = arith.divf %378, %379 : vector<8x128xf32>
    %381 = arith.mulf %372, %321 : vector<8x128xf32>
    %382 = arith.mulf %366, %374 : vector<8x128xf32>
    %383 = arith.addf %381, %382 : vector<8x128xf32>
    %384 = math.tanh %383 : vector<8x128xf32>
    %385 = arith.mulf %380, %384 : vector<8x128xf32>
    %c5_163 = arith.constant 5 : index
    %c0_164 = arith.constant 0 : index
    %c0_165 = arith.constant 0 : index
    %386 = vector.load %arg18[%c5_163, %c0_164, %c0_165] : memref<8x8x512xf32, #tpu.memory_space<vmem>>, vector<1x8x512xf32>
    %387 = vector.shape_cast %386 : vector<1x8x512xf32> to vector<8x512xf32>
    %c0_166 = arith.constant 0 : index
    %c0_167 = arith.constant 0 : index
    %c0_168 = arith.constant 0 : index
    %388 = vector.load %arg21[%c0_166, %c0_167, %c0_168] : memref<7x128x512xf32, #tpu.memory_space<vmem>>, vector<1x128x512xf32>
    %389 = vector.shape_cast %388 : vector<1x128x512xf32> to vector<128x512xf32>
    %cst_169 = arith.constant dense<0.000000e+00> : vector<8x512xf32>
    %390 = tpu.matmul %354, %389, %cst_169 {dimension_numbers = #tpu.dot_dimension_numbers<[1], [0], [0], [1], [0, 0, 1, 1], [], []>} : vector<8x128xf32>, vector<128x512xf32>, vector<8x512xf32> -> vector<8x512xf32>
    %391 = arith.addf %387, %390 : vector<8x512xf32>
    %392 = vector.extract_strided_slice %391 {offsets = [0, 0], sizes = [8, 128], strides = [1, 1]} : vector<8x512xf32> to vector<8x128xf32>
    %393 = arith.negf %392 : vector<8x128xf32>
    %394 = math.exp %393 : vector<8x128xf32>
    %cst_170 = arith.constant 1.000000e+00 : f32
    %395 = vector.broadcast %cst_170 : f32 to vector<8x128xf32>
    %396 = arith.addf %395, %394 : vector<8x128xf32>
    %397 = arith.divf %395, %396 : vector<8x128xf32>
    %398 = vector.extract_strided_slice %391 {offsets = [0, 128], sizes = [8, 128], strides = [1, 1]} : vector<8x512xf32> to vector<8x128xf32>
    %399 = arith.negf %398 : vector<8x128xf32>
    %400 = math.exp %399 : vector<8x128xf32>
    %cst_171 = arith.constant 1.000000e+00 : f32
    %401 = vector.broadcast %cst_171 : f32 to vector<8x128xf32>
    %402 = arith.addf %401, %400 : vector<8x128xf32>
    %403 = arith.divf %401, %402 : vector<8x128xf32>
    %404 = vector.extract_strided_slice %391 {offsets = [0, 256], sizes = [8, 128], strides = [1, 1]} : vector<8x512xf32> to vector<8x128xf32>
    %405 = math.tanh %404 : vector<8x128xf32>
    %406 = vector.extract_strided_slice %391 {offsets = [0, 384], sizes = [8, 128], strides = [1, 1]} : vector<8x512xf32> to vector<8x128xf32>
    %407 = arith.negf %406 : vector<8x128xf32>
    %408 = math.exp %407 : vector<8x128xf32>
    %cst_172 = arith.constant 1.000000e+00 : f32
    %409 = vector.broadcast %cst_172 : f32 to vector<8x128xf32>
    %410 = arith.addf %409, %408 : vector<8x128xf32>
    %411 = arith.divf %409, %410 : vector<8x128xf32>
    %412 = arith.mulf %403, %352 : vector<8x128xf32>
    %413 = arith.mulf %397, %405 : vector<8x128xf32>
    %414 = arith.addf %412, %413 : vector<8x128xf32>
    %415 = math.tanh %414 : vector<8x128xf32>
    %416 = arith.mulf %411, %415 : vector<8x128xf32>
    %c2_173 = arith.constant 2 : index
    %c0_174 = arith.constant 0 : index
    %c0_175 = arith.constant 0 : index
    %417 = vector.load %arg19[%c2_173, %c0_174, %c0_175] : memref<8x8x512xf32, #tpu.memory_space<vmem>>, vector<1x8x512xf32>
    %418 = vector.shape_cast %417 : vector<1x8x512xf32> to vector<8x512xf32>
    %c1_176 = arith.constant 1 : index
    %c0_177 = arith.constant 0 : index
    %c0_178 = arith.constant 0 : index
    %419 = vector.load %arg21[%c1_176, %c0_177, %c0_178] : memref<7x128x512xf32, #tpu.memory_space<vmem>>, vector<1x128x512xf32>
    %420 = vector.shape_cast %419 : vector<1x128x512xf32> to vector<128x512xf32>
    %cst_179 = arith.constant dense<0.000000e+00> : vector<8x512xf32>
    %421 = tpu.matmul %385, %420, %cst_179 {dimension_numbers = #tpu.dot_dimension_numbers<[1], [0], [0], [1], [0, 0, 1, 1], [], []>} : vector<8x128xf32>, vector<128x512xf32>, vector<8x512xf32> -> vector<8x512xf32>
    %422 = arith.addf %418, %421 : vector<8x512xf32>
    %423 = vector.extract_strided_slice %422 {offsets = [0, 0], sizes = [8, 128], strides = [1, 1]} : vector<8x512xf32> to vector<8x128xf32>
    %424 = arith.negf %423 : vector<8x128xf32>
    %425 = math.exp %424 : vector<8x128xf32>
    %cst_180 = arith.constant 1.000000e+00 : f32
    %426 = vector.broadcast %cst_180 : f32 to vector<8x128xf32>
    %427 = arith.addf %426, %425 : vector<8x128xf32>
    %428 = arith.divf %426, %427 : vector<8x128xf32>
    %429 = vector.extract_strided_slice %422 {offsets = [0, 128], sizes = [8, 128], strides = [1, 1]} : vector<8x512xf32> to vector<8x128xf32>
    %430 = arith.negf %429 : vector<8x128xf32>
    %431 = math.exp %430 : vector<8x128xf32>
    %cst_181 = arith.constant 1.000000e+00 : f32
    %432 = vector.broadcast %cst_181 : f32 to vector<8x128xf32>
    %433 = arith.addf %432, %431 : vector<8x128xf32>
    %434 = arith.divf %432, %433 : vector<8x128xf32>
    %435 = vector.extract_strided_slice %422 {offsets = [0, 256], sizes = [8, 128], strides = [1, 1]} : vector<8x512xf32> to vector<8x128xf32>
    %436 = math.tanh %435 : vector<8x128xf32>
    %437 = vector.extract_strided_slice %422 {offsets = [0, 384], sizes = [8, 128], strides = [1, 1]} : vector<8x512xf32> to vector<8x128xf32>
    %438 = arith.negf %437 : vector<8x128xf32>
    %439 = math.exp %438 : vector<8x128xf32>
    %cst_182 = arith.constant 1.000000e+00 : f32
    %440 = vector.broadcast %cst_182 : f32 to vector<8x128xf32>
    %441 = arith.addf %440, %439 : vector<8x128xf32>
    %442 = arith.divf %440, %441 : vector<8x128xf32>
    %443 = arith.mulf %434, %383 : vector<8x128xf32>
    %444 = arith.mulf %428, %436 : vector<8x128xf32>
    %445 = arith.addf %443, %444 : vector<8x128xf32>
    %446 = math.tanh %445 : vector<8x128xf32>
    %447 = arith.mulf %442, %446 : vector<8x128xf32>
    %c6_183 = arith.constant 6 : index
    %c0_184 = arith.constant 0 : index
    %c0_185 = arith.constant 0 : index
    %448 = vector.load %arg18[%c6_183, %c0_184, %c0_185] : memref<8x8x512xf32, #tpu.memory_space<vmem>>, vector<1x8x512xf32>
    %449 = vector.shape_cast %448 : vector<1x8x512xf32> to vector<8x512xf32>
    %c0_186 = arith.constant 0 : index
    %c0_187 = arith.constant 0 : index
    %c0_188 = arith.constant 0 : index
    %450 = vector.load %arg21[%c0_186, %c0_187, %c0_188] : memref<7x128x512xf32, #tpu.memory_space<vmem>>, vector<1x128x512xf32>
    %451 = vector.shape_cast %450 : vector<1x128x512xf32> to vector<128x512xf32>
    %cst_189 = arith.constant dense<0.000000e+00> : vector<8x512xf32>
    %452 = tpu.matmul %416, %451, %cst_189 {dimension_numbers = #tpu.dot_dimension_numbers<[1], [0], [0], [1], [0, 0, 1, 1], [], []>} : vector<8x128xf32>, vector<128x512xf32>, vector<8x512xf32> -> vector<8x512xf32>
    %453 = arith.addf %449, %452 : vector<8x512xf32>
    %454 = vector.extract_strided_slice %453 {offsets = [0, 0], sizes = [8, 128], strides = [1, 1]} : vector<8x512xf32> to vector<8x128xf32>
    %455 = arith.negf %454 : vector<8x128xf32>
    %456 = math.exp %455 : vector<8x128xf32>
    %cst_190 = arith.constant 1.000000e+00 : f32
    %457 = vector.broadcast %cst_190 : f32 to vector<8x128xf32>
    %458 = arith.addf %457, %456 : vector<8x128xf32>
    %459 = arith.divf %457, %458 : vector<8x128xf32>
    %460 = vector.extract_strided_slice %453 {offsets = [0, 128], sizes = [8, 128], strides = [1, 1]} : vector<8x512xf32> to vector<8x128xf32>
    %461 = arith.negf %460 : vector<8x128xf32>
    %462 = math.exp %461 : vector<8x128xf32>
    %cst_191 = arith.constant 1.000000e+00 : f32
    %463 = vector.broadcast %cst_191 : f32 to vector<8x128xf32>
    %464 = arith.addf %463, %462 : vector<8x128xf32>
    %465 = arith.divf %463, %464 : vector<8x128xf32>
    %466 = vector.extract_strided_slice %453 {offsets = [0, 256], sizes = [8, 128], strides = [1, 1]} : vector<8x512xf32> to vector<8x128xf32>
    %467 = math.tanh %466 : vector<8x128xf32>
    %468 = vector.extract_strided_slice %453 {offsets = [0, 384], sizes = [8, 128], strides = [1, 1]} : vector<8x512xf32> to vector<8x128xf32>
    %469 = arith.negf %468 : vector<8x128xf32>
    %470 = math.exp %469 : vector<8x128xf32>
    %cst_192 = arith.constant 1.000000e+00 : f32
    %471 = vector.broadcast %cst_192 : f32 to vector<8x128xf32>
    %472 = arith.addf %471, %470 : vector<8x128xf32>
    %473 = arith.divf %471, %472 : vector<8x128xf32>
    %474 = arith.mulf %465, %414 : vector<8x128xf32>
    %475 = arith.mulf %459, %467 : vector<8x128xf32>
    %476 = arith.addf %474, %475 : vector<8x128xf32>
    %477 = math.tanh %476 : vector<8x128xf32>
    %478 = arith.mulf %473, %477 : vector<8x128xf32>
    %c1_193 = arith.constant 1 : index
    %c0_194 = arith.constant 0 : index
    %c0_195 = arith.constant 0 : index
    %479 = vector.load %arg19[%c1_193, %c0_194, %c0_195] : memref<8x8x512xf32, #tpu.memory_space<vmem>>, vector<1x8x512xf32>
    %480 = vector.shape_cast %479 : vector<1x8x512xf32> to vector<8x512xf32>
    %c1_196 = arith.constant 1 : index
    %c0_197 = arith.constant 0 : index
    %c0_198 = arith.constant 0 : index
    %481 = vector.load %arg21[%c1_196, %c0_197, %c0_198] : memref<7x128x512xf32, #tpu.memory_space<vmem>>, vector<1x128x512xf32>
    %482 = vector.shape_cast %481 : vector<1x128x512xf32> to vector<128x512xf32>
    %cst_199 = arith.constant dense<0.000000e+00> : vector<8x512xf32>
    %483 = tpu.matmul %447, %482, %cst_199 {dimension_numbers = #tpu.dot_dimension_numbers<[1], [0], [0], [1], [0, 0, 1, 1], [], []>} : vector<8x128xf32>, vector<128x512xf32>, vector<8x512xf32> -> vector<8x512xf32>
    %484 = arith.addf %480, %483 : vector<8x512xf32>
    %485 = vector.extract_strided_slice %484 {offsets = [0, 0], sizes = [8, 128], strides = [1, 1]} : vector<8x512xf32> to vector<8x128xf32>
    %486 = arith.negf %485 : vector<8x128xf32>
    %487 = math.exp %486 : vector<8x128xf32>
    %cst_200 = arith.constant 1.000000e+00 : f32
    %488 = vector.broadcast %cst_200 : f32 to vector<8x128xf32>
    %489 = arith.addf %488, %487 : vector<8x128xf32>
    %490 = arith.divf %488, %489 : vector<8x128xf32>
    %491 = vector.extract_strided_slice %484 {offsets = [0, 128], sizes = [8, 128], strides = [1, 1]} : vector<8x512xf32> to vector<8x128xf32>
    %492 = arith.negf %491 : vector<8x128xf32>
    %493 = math.exp %492 : vector<8x128xf32>
    %cst_201 = arith.constant 1.000000e+00 : f32
    %494 = vector.broadcast %cst_201 : f32 to vector<8x128xf32>
    %495 = arith.addf %494, %493 : vector<8x128xf32>
    %496 = arith.divf %494, %495 : vector<8x128xf32>
    %497 = vector.extract_strided_slice %484 {offsets = [0, 256], sizes = [8, 128], strides = [1, 1]} : vector<8x512xf32> to vector<8x128xf32>
    %498 = math.tanh %497 : vector<8x128xf32>
    %499 = vector.extract_strided_slice %484 {offsets = [0, 384], sizes = [8, 128], strides = [1, 1]} : vector<8x512xf32> to vector<8x128xf32>
    %500 = arith.negf %499 : vector<8x128xf32>
    %501 = math.exp %500 : vector<8x128xf32>
    %cst_202 = arith.constant 1.000000e+00 : f32
    %502 = vector.broadcast %cst_202 : f32 to vector<8x128xf32>
    %503 = arith.addf %502, %501 : vector<8x128xf32>
    %504 = arith.divf %502, %503 : vector<8x128xf32>
    %505 = arith.mulf %496, %445 : vector<8x128xf32>
    %506 = arith.mulf %490, %498 : vector<8x128xf32>
    %507 = arith.addf %505, %506 : vector<8x128xf32>
    %508 = math.tanh %507 : vector<8x128xf32>
    %509 = arith.mulf %504, %508 : vector<8x128xf32>
    %c7_203 = arith.constant 7 : index
    %c0_204 = arith.constant 0 : index
    %c0_205 = arith.constant 0 : index
    %510 = vector.load %arg18[%c7_203, %c0_204, %c0_205] : memref<8x8x512xf32, #tpu.memory_space<vmem>>, vector<1x8x512xf32>
    %511 = vector.shape_cast %510 : vector<1x8x512xf32> to vector<8x512xf32>
    %c0_206 = arith.constant 0 : index
    %c0_207 = arith.constant 0 : index
    %c0_208 = arith.constant 0 : index
    %512 = vector.load %arg21[%c0_206, %c0_207, %c0_208] : memref<7x128x512xf32, #tpu.memory_space<vmem>>, vector<1x128x512xf32>
    %513 = vector.shape_cast %512 : vector<1x128x512xf32> to vector<128x512xf32>
    %cst_209 = arith.constant dense<0.000000e+00> : vector<8x512xf32>
    %514 = tpu.matmul %478, %513, %cst_209 {dimension_numbers = #tpu.dot_dimension_numbers<[1], [0], [0], [1], [0, 0, 1, 1], [], []>} : vector<8x128xf32>, vector<128x512xf32>, vector<8x512xf32> -> vector<8x512xf32>
    %515 = arith.addf %511, %514 : vector<8x512xf32>
    %516 = vector.extract_strided_slice %515 {offsets = [0, 0], sizes = [8, 128], strides = [1, 1]} : vector<8x512xf32> to vector<8x128xf32>
    %517 = arith.negf %516 : vector<8x128xf32>
    %518 = math.exp %517 : vector<8x128xf32>
    %cst_210 = arith.constant 1.000000e+00 : f32
    %519 = vector.broadcast %cst_210 : f32 to vector<8x128xf32>
    %520 = arith.addf %519, %518 : vector<8x128xf32>
    %521 = arith.divf %519, %520 : vector<8x128xf32>
    %522 = vector.extract_strided_slice %515 {offsets = [0, 128], sizes = [8, 128], strides = [1, 1]} : vector<8x512xf32> to vector<8x128xf32>
    %523 = arith.negf %522 : vector<8x128xf32>
    %524 = math.exp %523 : vector<8x128xf32>
    %cst_211 = arith.constant 1.000000e+00 : f32
    %525 = vector.broadcast %cst_211 : f32 to vector<8x128xf32>
    %526 = arith.addf %525, %524 : vector<8x128xf32>
    %527 = arith.divf %525, %526 : vector<8x128xf32>
    %528 = vector.extract_strided_slice %515 {offsets = [0, 256], sizes = [8, 128], strides = [1, 1]} : vector<8x512xf32> to vector<8x128xf32>
    %529 = math.tanh %528 : vector<8x128xf32>
    %530 = vector.extract_strided_slice %515 {offsets = [0, 384], sizes = [8, 128], strides = [1, 1]} : vector<8x512xf32> to vector<8x128xf32>
    %531 = arith.negf %530 : vector<8x128xf32>
    %532 = math.exp %531 : vector<8x128xf32>
    %cst_212 = arith.constant 1.000000e+00 : f32
    %533 = vector.broadcast %cst_212 : f32 to vector<8x128xf32>
    %534 = arith.addf %533, %532 : vector<8x128xf32>
    %535 = arith.divf %533, %534 : vector<8x128xf32>
    %536 = arith.mulf %527, %476 : vector<8x128xf32>
    %537 = arith.mulf %521, %529 : vector<8x128xf32>
    %538 = arith.addf %536, %537 : vector<8x128xf32>
    %539 = math.tanh %538 : vector<8x128xf32>
    %540 = arith.mulf %535, %539 : vector<8x128xf32>
    %c0_213 = arith.constant 0 : index
    %c0_214 = arith.constant 0 : index
    %c0_215 = arith.constant 0 : index
    %541 = vector.load %arg19[%c0_213, %c0_214, %c0_215] : memref<8x8x512xf32, #tpu.memory_space<vmem>>, vector<1x8x512xf32>
    %542 = vector.shape_cast %541 : vector<1x8x512xf32> to vector<8x512xf32>
    %c1_216 = arith.constant 1 : index
    %c0_217 = arith.constant 0 : index
    %c0_218 = arith.constant 0 : index
    %543 = vector.load %arg21[%c1_216, %c0_217, %c0_218] : memref<7x128x512xf32, #tpu.memory_space<vmem>>, vector<1x128x512xf32>
    %544 = vector.shape_cast %543 : vector<1x128x512xf32> to vector<128x512xf32>
    %cst_219 = arith.constant dense<0.000000e+00> : vector<8x512xf32>
    %545 = tpu.matmul %509, %544, %cst_219 {dimension_numbers = #tpu.dot_dimension_numbers<[1], [0], [0], [1], [0, 0, 1, 1], [], []>} : vector<8x128xf32>, vector<128x512xf32>, vector<8x512xf32> -> vector<8x512xf32>
    %546 = arith.addf %542, %545 : vector<8x512xf32>
    %547 = vector.extract_strided_slice %546 {offsets = [0, 0], sizes = [8, 128], strides = [1, 1]} : vector<8x512xf32> to vector<8x128xf32>
    %548 = arith.negf %547 : vector<8x128xf32>
    %549 = math.exp %548 : vector<8x128xf32>
    %cst_220 = arith.constant 1.000000e+00 : f32
    %550 = vector.broadcast %cst_220 : f32 to vector<8x128xf32>
    %551 = arith.addf %550, %549 : vector<8x128xf32>
    %552 = arith.divf %550, %551 : vector<8x128xf32>
    %553 = vector.extract_strided_slice %546 {offsets = [0, 128], sizes = [8, 128], strides = [1, 1]} : vector<8x512xf32> to vector<8x128xf32>
    %554 = arith.negf %553 : vector<8x128xf32>
    %555 = math.exp %554 : vector<8x128xf32>
    %cst_221 = arith.constant 1.000000e+00 : f32
    %556 = vector.broadcast %cst_221 : f32 to vector<8x128xf32>
    %557 = arith.addf %556, %555 : vector<8x128xf32>
    %558 = arith.divf %556, %557 : vector<8x128xf32>
    %559 = vector.extract_strided_slice %546 {offsets = [0, 256], sizes = [8, 128], strides = [1, 1]} : vector<8x512xf32> to vector<8x128xf32>
    %560 = math.tanh %559 : vector<8x128xf32>
    %561 = vector.extract_strided_slice %546 {offsets = [0, 384], sizes = [8, 128], strides = [1, 1]} : vector<8x512xf32> to vector<8x128xf32>
    %562 = arith.negf %561 : vector<8x128xf32>
    %563 = math.exp %562 : vector<8x128xf32>
    %cst_222 = arith.constant 1.000000e+00 : f32
    %564 = vector.broadcast %cst_222 : f32 to vector<8x128xf32>
    %565 = arith.addf %564, %563 : vector<8x128xf32>
    %566 = arith.divf %564, %565 : vector<8x128xf32>
    %567 = arith.mulf %558, %507 : vector<8x128xf32>
    %568 = arith.mulf %552, %560 : vector<8x128xf32>
    %569 = arith.addf %567, %568 : vector<8x128xf32>
    %570 = math.tanh %569 : vector<8x128xf32>
    %571 = arith.mulf %566, %570 : vector<8x128xf32>
    %c2_i32_223 = arith.constant 2 : i32
    %c2_i32_224 = arith.constant 2 : i32
    %c0_i32_225 = arith.constant 0 : i32
    %c0_i32_226 = arith.constant 0 : i32
    %572 = tpu.memref_slice %arg21[%c2_i32_223, %c0_i32_225, %c0_i32_226] : memref<7x128x512xf32, #tpu.memory_space<vmem>> -> memref<1x64x512xf32, #tpu.memory_space<vmem>>
    %573 = tpu.memref_squeeze %572 : memref<1x64x512xf32, #tpu.memory_space<vmem>> -> memref<64x512xf32, #tpu.memory_space<vmem>>
    %574 = tpu.memref_slice %arg22[%c2_i32_224] : memref<7x!tpu.dma_semaphore, #tpu.memory_space<semaphore_mem>> -> memref<1x!tpu.dma_semaphore, #tpu.memory_space<semaphore_mem>>
    %575 = tpu.memref_squeeze %574 : memref<1x!tpu.dma_semaphore, #tpu.memory_space<semaphore_mem>> -> memref<!tpu.dma_semaphore, #tpu.memory_space<semaphore_mem>>
    tpu.wait_dma2 semaphore(%575 : memref<!tpu.dma_semaphore, #tpu.memory_space<semaphore_mem>>) src(%arg12 : memref<64x512xf32, #tpu.memory_space<any>>) dst(%573 : memref<64x512xf32, #tpu.memory_space<vmem>>)
    %c3_i32_227 = arith.constant 3 : i32
    %c3_i32_228 = arith.constant 3 : i32
    %c0_i32_229 = arith.constant 0 : i32
    %c0_i32_230 = arith.constant 0 : i32
    %576 = tpu.memref_slice %arg21[%c3_i32_227, %c0_i32_229, %c0_i32_230] : memref<7x128x512xf32, #tpu.memory_space<vmem>> -> memref<1x64x512xf32, #tpu.memory_space<vmem>>
    %577 = tpu.memref_squeeze %576 : memref<1x64x512xf32, #tpu.memory_space<vmem>> -> memref<64x512xf32, #tpu.memory_space<vmem>>
    %578 = tpu.memref_slice %arg22[%c3_i32_228] : memref<7x!tpu.dma_semaphore, #tpu.memory_space<semaphore_mem>> -> memref<1x!tpu.dma_semaphore, #tpu.memory_space<semaphore_mem>>
    %579 = tpu.memref_squeeze %578 : memref<1x!tpu.dma_semaphore, #tpu.memory_space<semaphore_mem>> -> memref<!tpu.dma_semaphore, #tpu.memory_space<semaphore_mem>>
    tpu.wait_dma2 semaphore(%579 : memref<!tpu.dma_semaphore, #tpu.memory_space<semaphore_mem>>) src(%arg13 : memref<64x512xf32, #tpu.memory_space<any>>) dst(%577 : memref<64x512xf32, #tpu.memory_space<vmem>>)
    %c4_i32_231 = arith.constant 4 : i32
    %c4_i32_232 = arith.constant 4 : i32
    %c0_i32_233 = arith.constant 0 : i32
    %c0_i32_234 = arith.constant 0 : i32
    %580 = tpu.memref_slice %arg21[%c4_i32_231, %c0_i32_233, %c0_i32_234] : memref<7x128x512xf32, #tpu.memory_space<vmem>> -> memref<1x64x512xf32, #tpu.memory_space<vmem>>
    %581 = tpu.memref_squeeze %580 : memref<1x64x512xf32, #tpu.memory_space<vmem>> -> memref<64x512xf32, #tpu.memory_space<vmem>>
    %582 = tpu.memref_slice %arg22[%c4_i32_232] : memref<7x!tpu.dma_semaphore, #tpu.memory_space<semaphore_mem>> -> memref<1x!tpu.dma_semaphore, #tpu.memory_space<semaphore_mem>>
    %583 = tpu.memref_squeeze %582 : memref<1x!tpu.dma_semaphore, #tpu.memory_space<semaphore_mem>> -> memref<!tpu.dma_semaphore, #tpu.memory_space<semaphore_mem>>
    tpu.wait_dma2 semaphore(%583 : memref<!tpu.dma_semaphore, #tpu.memory_space<semaphore_mem>>) src(%arg14 : memref<64x512xf32, #tpu.memory_space<any>>) dst(%581 : memref<64x512xf32, #tpu.memory_space<vmem>>)
    %c5_i32_235 = arith.constant 5 : i32
    %c5_i32_236 = arith.constant 5 : i32
    %c0_i32_237 = arith.constant 0 : i32
    %c0_i32_238 = arith.constant 0 : i32
    %584 = tpu.memref_slice %arg21[%c5_i32_235, %c0_i32_237, %c0_i32_238] : memref<7x128x512xf32, #tpu.memory_space<vmem>> -> memref<1x64x512xf32, #tpu.memory_space<vmem>>
    %585 = tpu.memref_squeeze %584 : memref<1x64x512xf32, #tpu.memory_space<vmem>> -> memref<64x512xf32, #tpu.memory_space<vmem>>
    %586 = tpu.memref_slice %arg22[%c5_i32_236] : memref<7x!tpu.dma_semaphore, #tpu.memory_space<semaphore_mem>> -> memref<1x!tpu.dma_semaphore, #tpu.memory_space<semaphore_mem>>
    %587 = tpu.memref_squeeze %586 : memref<1x!tpu.dma_semaphore, #tpu.memory_space<semaphore_mem>> -> memref<!tpu.dma_semaphore, #tpu.memory_space<semaphore_mem>>
    tpu.wait_dma2 semaphore(%587 : memref<!tpu.dma_semaphore, #tpu.memory_space<semaphore_mem>>) src(%arg15 : memref<64x512xf32, #tpu.memory_space<any>>) dst(%585 : memref<64x512xf32, #tpu.memory_space<vmem>>)
    %c6_i32_239 = arith.constant 6 : i32
    %c6_i32_240 = arith.constant 6 : i32
    %c0_i32_241 = arith.constant 0 : i32
    %c0_i32_242 = arith.constant 0 : i32
    %588 = tpu.memref_slice %arg21[%c6_i32_239, %c0_i32_241, %c0_i32_242] : memref<7x128x512xf32, #tpu.memory_space<vmem>> -> memref<1x64x512xf32, #tpu.memory_space<vmem>>
    %589 = tpu.memref_squeeze %588 : memref<1x64x512xf32, #tpu.memory_space<vmem>> -> memref<64x512xf32, #tpu.memory_space<vmem>>
    %590 = tpu.memref_slice %arg22[%c6_i32_240] : memref<7x!tpu.dma_semaphore, #tpu.memory_space<semaphore_mem>> -> memref<1x!tpu.dma_semaphore, #tpu.memory_space<semaphore_mem>>
    %591 = tpu.memref_squeeze %590 : memref<1x!tpu.dma_semaphore, #tpu.memory_space<semaphore_mem>> -> memref<!tpu.dma_semaphore, #tpu.memory_space<semaphore_mem>>
    tpu.wait_dma2 semaphore(%591 : memref<!tpu.dma_semaphore, #tpu.memory_space<semaphore_mem>>) src(%arg16 : memref<64x512xf32, #tpu.memory_space<any>>) dst(%589 : memref<64x512xf32, #tpu.memory_space<vmem>>)
    %592 = tpu.concatenate %106, %168, %230, %292, %354, %416, %478, %540 in 0 : vector<8x128xf32>, vector<8x128xf32>, vector<8x128xf32>, vector<8x128xf32>, vector<8x128xf32>, vector<8x128xf32>, vector<8x128xf32>, vector<8x128xf32> -> vector<64x128xf32>
    %593 = tpu.concatenate %571, %509, %447, %385, %323, %261, %199, %137 in 0 : vector<8x128xf32>, vector<8x128xf32>, vector<8x128xf32>, vector<8x128xf32>, vector<8x128xf32>, vector<8x128xf32>, vector<8x128xf32>, vector<8x128xf32> -> vector<64x128xf32>
    %c2_243 = arith.constant 2 : index
    %c0_244 = arith.constant 0 : index
    %c0_245 = arith.constant 0 : index
    %594 = vector.load %arg21[%c2_243, %c0_244, %c0_245] : memref<7x128x512xf32, #tpu.memory_space<vmem>>, vector<1x128x512xf32>
    %595 = vector.shape_cast %594 : vector<1x128x512xf32> to vector<128x512xf32>
    %cst_246 = arith.constant dense<0.000000e+00> : vector<64x512xf32>
    %596 = tpu.matmul %592, %595, %cst_246 {dimension_numbers = #tpu.dot_dimension_numbers<[1], [0], [0], [1], [0, 0, 1, 1], [], []>} : vector<64x128xf32>, vector<128x512xf32>, vector<64x512xf32> -> vector<64x512xf32>
    %c3_247 = arith.constant 3 : index
    %c0_248 = arith.constant 0 : index
    %c0_249 = arith.constant 0 : index
    %597 = vector.load %arg21[%c3_247, %c0_248, %c0_249] : memref<7x128x512xf32, #tpu.memory_space<vmem>>, vector<1x128x512xf32>
    %598 = vector.shape_cast %597 : vector<1x128x512xf32> to vector<128x512xf32>
    %cst_250 = arith.constant dense<0.000000e+00> : vector<64x512xf32>
    %599 = tpu.matmul %593, %598, %cst_250 {dimension_numbers = #tpu.dot_dimension_numbers<[1], [0], [0], [1], [0, 0, 1, 1], [], []>} : vector<64x128xf32>, vector<128x512xf32>, vector<64x512xf32> -> vector<64x512xf32>
    %600 = arith.addf %596, %599 : vector<64x512xf32>
    %c0_251 = arith.constant 0 : index
    %c0_252 = arith.constant 0 : index
    %601 = vector.load %arg5[%c0_251, %c0_252] : memref<1x512xf32, #tpu.memory_space<vmem>>, vector<1x512xf32>
    %602 = vector.broadcast %601 : vector<1x512xf32> to vector<64x512xf32>
    %603 = arith.addf %600, %602 : vector<64x512xf32>
    %c0_253 = arith.constant 0 : index
    %c0_254 = arith.constant 0 : index
    %604 = vector.load %arg20[%c0_253, %c0_254] : memref<64x512xf32, #tpu.memory_space<vmem>>, vector<64x512xf32>
    tpu.vector_store %arg20[%c0_253, %c0_254], %603 {strides = array<i32>} : memref<64x512xf32, #tpu.memory_space<vmem>>, vector<64x512xf32>,
    %c0_255 = arith.constant 0 : index
    %c0_256 = arith.constant 0 : index
    %605 = vector.load %arg20[%c0_255, %c0_256] : memref<64x512xf32, #tpu.memory_space<vmem>>, vector<8x512xf32>
    %c4_257 = arith.constant 4 : index
    %c0_258 = arith.constant 0 : index
    %c0_259 = arith.constant 0 : index
    %606 = vector.load %arg21[%c4_257, %c0_258, %c0_259] : memref<7x128x512xf32, #tpu.memory_space<vmem>>, vector<1x128x512xf32>
    %607 = vector.shape_cast %606 : vector<1x128x512xf32> to vector<128x512xf32>
    %cst_260 = arith.constant dense<0.000000e+00> : vector<8x512xf32>
    %608 = tpu.matmul %75, %607, %cst_260 {dimension_numbers = #tpu.dot_dimension_numbers<[1], [0], [0], [1], [0, 0, 1, 1], [], []>} : vector<8x128xf32>, vector<128x512xf32>, vector<8x512xf32> -> vector<8x512xf32>
    %609 = arith.addf %605, %608 : vector<8x512xf32>
    %610 = vector.extract_strided_slice %609 {offsets = [0, 0], sizes = [8, 128], strides = [1, 1]} : vector<8x512xf32> to vector<8x128xf32>
    %611 = arith.negf %610 : vector<8x128xf32>
    %612 = math.exp %611 : vector<8x128xf32>
    %cst_261 = arith.constant 1.000000e+00 : f32
    %613 = vector.broadcast %cst_261 : f32 to vector<8x128xf32>
    %614 = arith.addf %613, %612 : vector<8x128xf32>
    %615 = arith.divf %613, %614 : vector<8x128xf32>
    %616 = vector.extract_strided_slice %609 {offsets = [0, 128], sizes = [8, 128], strides = [1, 1]} : vector<8x512xf32> to vector<8x128xf32>
    %617 = arith.negf %616 : vector<8x128xf32>
    %618 = math.exp %617 : vector<8x128xf32>
    %cst_262 = arith.constant 1.000000e+00 : f32
    %619 = vector.broadcast %cst_262 : f32 to vector<8x128xf32>
    %620 = arith.addf %619, %618 : vector<8x128xf32>
    %621 = arith.divf %619, %620 : vector<8x128xf32>
    %622 = vector.extract_strided_slice %609 {offsets = [0, 256], sizes = [8, 128], strides = [1, 1]} : vector<8x512xf32> to vector<8x128xf32>
    %623 = math.tanh %622 : vector<8x128xf32>
    %624 = vector.extract_strided_slice %609 {offsets = [0, 384], sizes = [8, 128], strides = [1, 1]} : vector<8x512xf32> to vector<8x128xf32>
    %625 = arith.negf %624 : vector<8x128xf32>
    %626 = math.exp %625 : vector<8x128xf32>
    %cst_263 = arith.constant 1.000000e+00 : f32
    %627 = vector.broadcast %cst_263 : f32 to vector<8x128xf32>
    %628 = arith.addf %627, %626 : vector<8x128xf32>
    %629 = arith.divf %627, %628 : vector<8x128xf32>
    %630 = arith.mulf %621, %75 : vector<8x128xf32>
    %631 = arith.mulf %615, %623 : vector<8x128xf32>
    %632 = arith.addf %630, %631 : vector<8x128xf32>
    %633 = math.tanh %632 : vector<8x128xf32>
    %634 = arith.mulf %629, %633 : vector<8x128xf32>
    %c8 = arith.constant 8 : index
    %c0_264 = arith.constant 0 : index
    %635 = vector.load %arg20[%c8, %c0_264] : memref<64x512xf32, #tpu.memory_space<vmem>>, vector<8x512xf32>
    %c4_265 = arith.constant 4 : index
    %c0_266 = arith.constant 0 : index
    %c0_267 = arith.constant 0 : index
    %636 = vector.load %arg21[%c4_265, %c0_266, %c0_267] : memref<7x128x512xf32, #tpu.memory_space<vmem>>, vector<1x128x512xf32>
    %637 = vector.shape_cast %636 : vector<1x128x512xf32> to vector<128x512xf32>
    %cst_268 = arith.constant dense<0.000000e+00> : vector<8x512xf32>
    %638 = tpu.matmul %634, %637, %cst_268 {dimension_numbers = #tpu.dot_dimension_numbers<[1], [0], [0], [1], [0, 0, 1, 1], [], []>} : vector<8x128xf32>, vector<128x512xf32>, vector<8x512xf32> -> vector<8x512xf32>
    %639 = arith.addf %635, %638 : vector<8x512xf32>
    %640 = vector.extract_strided_slice %639 {offsets = [0, 0], sizes = [8, 128], strides = [1, 1]} : vector<8x512xf32> to vector<8x128xf32>
    %641 = arith.negf %640 : vector<8x128xf32>
    %642 = math.exp %641 : vector<8x128xf32>
    %cst_269 = arith.constant 1.000000e+00 : f32
    %643 = vector.broadcast %cst_269 : f32 to vector<8x128xf32>
    %644 = arith.addf %643, %642 : vector<8x128xf32>
    %645 = arith.divf %643, %644 : vector<8x128xf32>
    %646 = vector.extract_strided_slice %639 {offsets = [0, 128], sizes = [8, 128], strides = [1, 1]} : vector<8x512xf32> to vector<8x128xf32>
    %647 = arith.negf %646 : vector<8x128xf32>
    %648 = math.exp %647 : vector<8x128xf32>
    %cst_270 = arith.constant 1.000000e+00 : f32
    %649 = vector.broadcast %cst_270 : f32 to vector<8x128xf32>
    %650 = arith.addf %649, %648 : vector<8x128xf32>
    %651 = arith.divf %649, %650 : vector<8x128xf32>
    %652 = vector.extract_strided_slice %639 {offsets = [0, 256], sizes = [8, 128], strides = [1, 1]} : vector<8x512xf32> to vector<8x128xf32>
    %653 = math.tanh %652 : vector<8x128xf32>
    %654 = vector.extract_strided_slice %639 {offsets = [0, 384], sizes = [8, 128], strides = [1, 1]} : vector<8x512xf32> to vector<8x128xf32>
    %655 = arith.negf %654 : vector<8x128xf32>
    %656 = math.exp %655 : vector<8x128xf32>
    %cst_271 = arith.constant 1.000000e+00 : f32
    %657 = vector.broadcast %cst_271 : f32 to vector<8x128xf32>
    %658 = arith.addf %657, %656 : vector<8x128xf32>
    %659 = arith.divf %657, %658 : vector<8x128xf32>
    %660 = arith.mulf %651, %632 : vector<8x128xf32>
    %661 = arith.mulf %645, %653 : vector<8x128xf32>
    %662 = arith.addf %660, %661 : vector<8x128xf32>
    %663 = math.tanh %662 : vector<8x128xf32>
    %664 = arith.mulf %659, %663 : vector<8x128xf32>
    %c16 = arith.constant 16 : index
    %c0_272 = arith.constant 0 : index
    %665 = vector.load %arg20[%c16, %c0_272] : memref<64x512xf32, #tpu.memory_space<vmem>>, vector<8x512xf32>
    %c4_273 = arith.constant 4 : index
    %c0_274 = arith.constant 0 : index
    %c0_275 = arith.constant 0 : index
    %666 = vector.load %arg21[%c4_273, %c0_274, %c0_275] : memref<7x128x512xf32, #tpu.memory_space<vmem>>, vector<1x128x512xf32>
    %667 = vector.shape_cast %666 : vector<1x128x512xf32> to vector<128x512xf32>
    %cst_276 = arith.constant dense<0.000000e+00> : vector<8x512xf32>
    %668 = tpu.matmul %664, %667, %cst_276 {dimension_numbers = #tpu.dot_dimension_numbers<[1], [0], [0], [1], [0, 0, 1, 1], [], []>} : vector<8x128xf32>, vector<128x512xf32>, vector<8x512xf32> -> vector<8x512xf32>
    %669 = arith.addf %665, %668 : vector<8x512xf32>
    %670 = vector.extract_strided_slice %669 {offsets = [0, 0], sizes = [8, 128], strides = [1, 1]} : vector<8x512xf32> to vector<8x128xf32>
    %671 = arith.negf %670 : vector<8x128xf32>
    %672 = math.exp %671 : vector<8x128xf32>
    %cst_277 = arith.constant 1.000000e+00 : f32
    %673 = vector.broadcast %cst_277 : f32 to vector<8x128xf32>
    %674 = arith.addf %673, %672 : vector<8x128xf32>
    %675 = arith.divf %673, %674 : vector<8x128xf32>
    %676 = vector.extract_strided_slice %669 {offsets = [0, 128], sizes = [8, 128], strides = [1, 1]} : vector<8x512xf32> to vector<8x128xf32>
    %677 = arith.negf %676 : vector<8x128xf32>
    %678 = math.exp %677 : vector<8x128xf32>
    %cst_278 = arith.constant 1.000000e+00 : f32
    %679 = vector.broadcast %cst_278 : f32 to vector<8x128xf32>
    %680 = arith.addf %679, %678 : vector<8x128xf32>
    %681 = arith.divf %679, %680 : vector<8x128xf32>
    %682 = vector.extract_strided_slice %669 {offsets = [0, 256], sizes = [8, 128], strides = [1, 1]} : vector<8x512xf32> to vector<8x128xf32>
    %683 = math.tanh %682 : vector<8x128xf32>
    %684 = vector.extract_strided_slice %669 {offsets = [0, 384], sizes = [8, 128], strides = [1, 1]} : vector<8x512xf32> to vector<8x128xf32>
    %685 = arith.negf %684 : vector<8x128xf32>
    %686 = math.exp %685 : vector<8x128xf32>
    %cst_279 = arith.constant 1.000000e+00 : f32
    %687 = vector.broadcast %cst_279 : f32 to vector<8x128xf32>
    %688 = arith.addf %687, %686 : vector<8x128xf32>
    %689 = arith.divf %687, %688 : vector<8x128xf32>
    %690 = arith.mulf %681, %662 : vector<8x128xf32>
    %691 = arith.mulf %675, %683 : vector<8x128xf32>
    %692 = arith.addf %690, %691 : vector<8x128xf32>
    %693 = math.tanh %692 : vector<8x128xf32>
    %694 = arith.mulf %689, %693 : vector<8x128xf32>
    %c24 = arith.constant 24 : index
    %c0_280 = arith.constant 0 : index
    %695 = vector.load %arg20[%c24, %c0_280] : memref<64x512xf32, #tpu.memory_space<vmem>>, vector<8x512xf32>
    %c4_281 = arith.constant 4 : index
    %c0_282 = arith.constant 0 : index
    %c0_283 = arith.constant 0 : index
    %696 = vector.load %arg21[%c4_281, %c0_282, %c0_283] : memref<7x128x512xf32, #tpu.memory_space<vmem>>, vector<1x128x512xf32>
    %697 = vector.shape_cast %696 : vector<1x128x512xf32> to vector<128x512xf32>
    %cst_284 = arith.constant dense<0.000000e+00> : vector<8x512xf32>
    %698 = tpu.matmul %694, %697, %cst_284 {dimension_numbers = #tpu.dot_dimension_numbers<[1], [0], [0], [1], [0, 0, 1, 1], [], []>} : vector<8x128xf32>, vector<128x512xf32>, vector<8x512xf32> -> vector<8x512xf32>
    %699 = arith.addf %695, %698 : vector<8x512xf32>
    %700 = vector.extract_strided_slice %699 {offsets = [0, 0], sizes = [8, 128], strides = [1, 1]} : vector<8x512xf32> to vector<8x128xf32>
    %701 = arith.negf %700 : vector<8x128xf32>
    %702 = math.exp %701 : vector<8x128xf32>
    %cst_285 = arith.constant 1.000000e+00 : f32
    %703 = vector.broadcast %cst_285 : f32 to vector<8x128xf32>
    %704 = arith.addf %703, %702 : vector<8x128xf32>
    %705 = arith.divf %703, %704 : vector<8x128xf32>
    %706 = vector.extract_strided_slice %699 {offsets = [0, 128], sizes = [8, 128], strides = [1, 1]} : vector<8x512xf32> to vector<8x128xf32>
    %707 = arith.negf %706 : vector<8x128xf32>
    %708 = math.exp %707 : vector<8x128xf32>
    %cst_286 = arith.constant 1.000000e+00 : f32
    %709 = vector.broadcast %cst_286 : f32 to vector<8x128xf32>
    %710 = arith.addf %709, %708 : vector<8x128xf32>
    %711 = arith.divf %709, %710 : vector<8x128xf32>
    %712 = vector.extract_strided_slice %699 {offsets = [0, 256], sizes = [8, 128], strides = [1, 1]} : vector<8x512xf32> to vector<8x128xf32>
    %713 = math.tanh %712 : vector<8x128xf32>
    %714 = vector.extract_strided_slice %699 {offsets = [0, 384], sizes = [8, 128], strides = [1, 1]} : vector<8x512xf32> to vector<8x128xf32>
    %715 = arith.negf %714 : vector<8x128xf32>
    %716 = math.exp %715 : vector<8x128xf32>
    %cst_287 = arith.constant 1.000000e+00 : f32
    %717 = vector.broadcast %cst_287 : f32 to vector<8x128xf32>
    %718 = arith.addf %717, %716 : vector<8x128xf32>
    %719 = arith.divf %717, %718 : vector<8x128xf32>
    %720 = arith.mulf %711, %692 : vector<8x128xf32>
    %721 = arith.mulf %705, %713 : vector<8x128xf32>
    %722 = arith.addf %720, %721 : vector<8x128xf32>
    %723 = math.tanh %722 : vector<8x128xf32>
    %724 = arith.mulf %719, %723 : vector<8x128xf32>
    %c32 = arith.constant 32 : index
    %c0_288 = arith.constant 0 : index
    %725 = vector.load %arg20[%c32, %c0_288] : memref<64x512xf32, #tpu.memory_space<vmem>>, vector<8x512xf32>
    %c4_289 = arith.constant 4 : index
    %c0_290 = arith.constant 0 : index
    %c0_291 = arith.constant 0 : index
    %726 = vector.load %arg21[%c4_289, %c0_290, %c0_291] : memref<7x128x512xf32, #tpu.memory_space<vmem>>, vector<1x128x512xf32>
    %727 = vector.shape_cast %726 : vector<1x128x512xf32> to vector<128x512xf32>
    %cst_292 = arith.constant dense<0.000000e+00> : vector<8x512xf32>
    %728 = tpu.matmul %724, %727, %cst_292 {dimension_numbers = #tpu.dot_dimension_numbers<[1], [0], [0], [1], [0, 0, 1, 1], [], []>} : vector<8x128xf32>, vector<128x512xf32>, vector<8x512xf32> -> vector<8x512xf32>
    %729 = arith.addf %725, %728 : vector<8x512xf32>
    %730 = vector.extract_strided_slice %729 {offsets = [0, 0], sizes = [8, 128], strides = [1, 1]} : vector<8x512xf32> to vector<8x128xf32>
    %731 = arith.negf %730 : vector<8x128xf32>
    %732 = math.exp %731 : vector<8x128xf32>
    %cst_293 = arith.constant 1.000000e+00 : f32
    %733 = vector.broadcast %cst_293 : f32 to vector<8x128xf32>
    %734 = arith.addf %733, %732 : vector<8x128xf32>
    %735 = arith.divf %733, %734 : vector<8x128xf32>
    %736 = vector.extract_strided_slice %729 {offsets = [0, 128], sizes = [8, 128], strides = [1, 1]} : vector<8x512xf32> to vector<8x128xf32>
    %737 = arith.negf %736 : vector<8x128xf32>
    %738 = math.exp %737 : vector<8x128xf32>
    %cst_294 = arith.constant 1.000000e+00 : f32
    %739 = vector.broadcast %cst_294 : f32 to vector<8x128xf32>
    %740 = arith.addf %739, %738 : vector<8x128xf32>
    %741 = arith.divf %739, %740 : vector<8x128xf32>
    %742 = vector.extract_strided_slice %729 {offsets = [0, 256], sizes = [8, 128], strides = [1, 1]} : vector<8x512xf32> to vector<8x128xf32>
    %743 = math.tanh %742 : vector<8x128xf32>
    %744 = vector.extract_strided_slice %729 {offsets = [0, 384], sizes = [8, 128], strides = [1, 1]} : vector<8x512xf32> to vector<8x128xf32>
    %745 = arith.negf %744 : vector<8x128xf32>
    %746 = math.exp %745 : vector<8x128xf32>
    %cst_295 = arith.constant 1.000000e+00 : f32
    %747 = vector.broadcast %cst_295 : f32 to vector<8x128xf32>
    %748 = arith.addf %747, %746 : vector<8x128xf32>
    %749 = arith.divf %747, %748 : vector<8x128xf32>
    %750 = arith.mulf %741, %722 : vector<8x128xf32>
    %751 = arith.mulf %735, %743 : vector<8x128xf32>
    %752 = arith.addf %750, %751 : vector<8x128xf32>
    %753 = math.tanh %752 : vector<8x128xf32>
    %754 = arith.mulf %749, %753 : vector<8x128xf32>
    %c40 = arith.constant 40 : index
    %c0_296 = arith.constant 0 : index
    %755 = vector.load %arg20[%c40, %c0_296] : memref<64x512xf32, #tpu.memory_space<vmem>>, vector<8x512xf32>
    %c4_297 = arith.constant 4 : index
    %c0_298 = arith.constant 0 : index
    %c0_299 = arith.constant 0 : index
    %756 = vector.load %arg21[%c4_297, %c0_298, %c0_299] : memref<7x128x512xf32, #tpu.memory_space<vmem>>, vector<1x128x512xf32>
    %757 = vector.shape_cast %756 : vector<1x128x512xf32> to vector<128x512xf32>
    %cst_300 = arith.constant dense<0.000000e+00> : vector<8x512xf32>
    %758 = tpu.matmul %754, %757, %cst_300 {dimension_numbers = #tpu.dot_dimension_numbers<[1], [0], [0], [1], [0, 0, 1, 1], [], []>} : vector<8x128xf32>, vector<128x512xf32>, vector<8x512xf32> -> vector<8x512xf32>
    %759 = arith.addf %755, %758 : vector<8x512xf32>
    %760 = vector.extract_strided_slice %759 {offsets = [0, 0], sizes = [8, 128], strides = [1, 1]} : vector<8x512xf32> to vector<8x128xf32>
    %761 = arith.negf %760 : vector<8x128xf32>
    %762 = math.exp %761 : vector<8x128xf32>
    %cst_301 = arith.constant 1.000000e+00 : f32
    %763 = vector.broadcast %cst_301 : f32 to vector<8x128xf32>
    %764 = arith.addf %763, %762 : vector<8x128xf32>
    %765 = arith.divf %763, %764 : vector<8x128xf32>
    %766 = vector.extract_strided_slice %759 {offsets = [0, 128], sizes = [8, 128], strides = [1, 1]} : vector<8x512xf32> to vector<8x128xf32>
    %767 = arith.negf %766 : vector<8x128xf32>
    %768 = math.exp %767 : vector<8x128xf32>
    %cst_302 = arith.constant 1.000000e+00 : f32
    %769 = vector.broadcast %cst_302 : f32 to vector<8x128xf32>
    %770 = arith.addf %769, %768 : vector<8x128xf32>
    %771 = arith.divf %769, %770 : vector<8x128xf32>
    %772 = vector.extract_strided_slice %759 {offsets = [0, 256], sizes = [8, 128], strides = [1, 1]} : vector<8x512xf32> to vector<8x128xf32>
    %773 = math.tanh %772 : vector<8x128xf32>
    %774 = vector.extract_strided_slice %759 {offsets = [0, 384], sizes = [8, 128], strides = [1, 1]} : vector<8x512xf32> to vector<8x128xf32>
    %775 = arith.negf %774 : vector<8x128xf32>
    %776 = math.exp %775 : vector<8x128xf32>
    %cst_303 = arith.constant 1.000000e+00 : f32
    %777 = vector.broadcast %cst_303 : f32 to vector<8x128xf32>
    %778 = arith.addf %777, %776 : vector<8x128xf32>
    %779 = arith.divf %777, %778 : vector<8x128xf32>
    %780 = arith.mulf %771, %752 : vector<8x128xf32>
    %781 = arith.mulf %765, %773 : vector<8x128xf32>
    %782 = arith.addf %780, %781 : vector<8x128xf32>
    %783 = math.tanh %782 : vector<8x128xf32>
    %784 = arith.mulf %779, %783 : vector<8x128xf32>
    %c48 = arith.constant 48 : index
    %c0_304 = arith.constant 0 : index
    %785 = vector.load %arg20[%c48, %c0_304] : memref<64x512xf32, #tpu.memory_space<vmem>>, vector<8x512xf32>
    %c4_305 = arith.constant 4 : index
    %c0_306 = arith.constant 0 : index
    %c0_307 = arith.constant 0 : index
    %786 = vector.load %arg21[%c4_305, %c0_306, %c0_307] : memref<7x128x512xf32, #tpu.memory_space<vmem>>, vector<1x128x512xf32>
    %787 = vector.shape_cast %786 : vector<1x128x512xf32> to vector<128x512xf32>
    %cst_308 = arith.constant dense<0.000000e+00> : vector<8x512xf32>
    %788 = tpu.matmul %784, %787, %cst_308 {dimension_numbers = #tpu.dot_dimension_numbers<[1], [0], [0], [1], [0, 0, 1, 1], [], []>} : vector<8x128xf32>, vector<128x512xf32>, vector<8x512xf32> -> vector<8x512xf32>
    %789 = arith.addf %785, %788 : vector<8x512xf32>
    %790 = vector.extract_strided_slice %789 {offsets = [0, 0], sizes = [8, 128], strides = [1, 1]} : vector<8x512xf32> to vector<8x128xf32>
    %791 = arith.negf %790 : vector<8x128xf32>
    %792 = math.exp %791 : vector<8x128xf32>
    %cst_309 = arith.constant 1.000000e+00 : f32
    %793 = vector.broadcast %cst_309 : f32 to vector<8x128xf32>
    %794 = arith.addf %793, %792 : vector<8x128xf32>
    %795 = arith.divf %793, %794 : vector<8x128xf32>
    %796 = vector.extract_strided_slice %789 {offsets = [0, 128], sizes = [8, 128], strides = [1, 1]} : vector<8x512xf32> to vector<8x128xf32>
    %797 = arith.negf %796 : vector<8x128xf32>
    %798 = math.exp %797 : vector<8x128xf32>
    %cst_310 = arith.constant 1.000000e+00 : f32
    %799 = vector.broadcast %cst_310 : f32 to vector<8x128xf32>
    %800 = arith.addf %799, %798 : vector<8x128xf32>
    %801 = arith.divf %799, %800 : vector<8x128xf32>
    %802 = vector.extract_strided_slice %789 {offsets = [0, 256], sizes = [8, 128], strides = [1, 1]} : vector<8x512xf32> to vector<8x128xf32>
    %803 = math.tanh %802 : vector<8x128xf32>
    %804 = vector.extract_strided_slice %789 {offsets = [0, 384], sizes = [8, 128], strides = [1, 1]} : vector<8x512xf32> to vector<8x128xf32>
    %805 = arith.negf %804 : vector<8x128xf32>
    %806 = math.exp %805 : vector<8x128xf32>
    %cst_311 = arith.constant 1.000000e+00 : f32
    %807 = vector.broadcast %cst_311 : f32 to vector<8x128xf32>
    %808 = arith.addf %807, %806 : vector<8x128xf32>
    %809 = arith.divf %807, %808 : vector<8x128xf32>
    %810 = arith.mulf %801, %782 : vector<8x128xf32>
    %811 = arith.mulf %795, %803 : vector<8x128xf32>
    %812 = arith.addf %810, %811 : vector<8x128xf32>
    %813 = math.tanh %812 : vector<8x128xf32>
    %814 = arith.mulf %809, %813 : vector<8x128xf32>
    %c56 = arith.constant 56 : index
    %c0_312 = arith.constant 0 : index
    %815 = vector.load %arg20[%c56, %c0_312] : memref<64x512xf32, #tpu.memory_space<vmem>>, vector<8x512xf32>
    %c4_313 = arith.constant 4 : index
    %c0_314 = arith.constant 0 : index
    %c0_315 = arith.constant 0 : index
    %816 = vector.load %arg21[%c4_313, %c0_314, %c0_315] : memref<7x128x512xf32, #tpu.memory_space<vmem>>, vector<1x128x512xf32>
    %817 = vector.shape_cast %816 : vector<1x128x512xf32> to vector<128x512xf32>
    %cst_316 = arith.constant dense<0.000000e+00> : vector<8x512xf32>
    %818 = tpu.matmul %814, %817, %cst_316 {dimension_numbers = #tpu.dot_dimension_numbers<[1], [0], [0], [1], [0, 0, 1, 1], [], []>} : vector<8x128xf32>, vector<128x512xf32>, vector<8x512xf32> -> vector<8x512xf32>
    %819 = arith.addf %815, %818 : vector<8x512xf32>
    %820 = vector.extract_strided_slice %819 {offsets = [0, 0], sizes = [8, 128], strides = [1, 1]} : vector<8x512xf32> to vector<8x128xf32>
    %821 = arith.negf %820 : vector<8x128xf32>
    %822 = math.exp %821 : vector<8x128xf32>
    %cst_317 = arith.constant 1.000000e+00 : f32
    %823 = vector.broadcast %cst_317 : f32 to vector<8x128xf32>
    %824 = arith.addf %823, %822 : vector<8x128xf32>
    %825 = arith.divf %823, %824 : vector<8x128xf32>
    %826 = vector.extract_strided_slice %819 {offsets = [0, 128], sizes = [8, 128], strides = [1, 1]} : vector<8x512xf32> to vector<8x128xf32>
    %827 = arith.negf %826 : vector<8x128xf32>
    %828 = math.exp %827 : vector<8x128xf32>
    %cst_318 = arith.constant 1.000000e+00 : f32
    %829 = vector.broadcast %cst_318 : f32 to vector<8x128xf32>
    %830 = arith.addf %829, %828 : vector<8x128xf32>
    %831 = arith.divf %829, %830 : vector<8x128xf32>
    %832 = vector.extract_strided_slice %819 {offsets = [0, 256], sizes = [8, 128], strides = [1, 1]} : vector<8x512xf32> to vector<8x128xf32>
    %833 = math.tanh %832 : vector<8x128xf32>
    %834 = vector.extract_strided_slice %819 {offsets = [0, 384], sizes = [8, 128], strides = [1, 1]} : vector<8x512xf32> to vector<8x128xf32>
    %835 = arith.negf %834 : vector<8x128xf32>
    %836 = math.exp %835 : vector<8x128xf32>
    %cst_319 = arith.constant 1.000000e+00 : f32
    %837 = vector.broadcast %cst_319 : f32 to vector<8x128xf32>
    %838 = arith.addf %837, %836 : vector<8x128xf32>
    %839 = arith.divf %837, %838 : vector<8x128xf32>
    %840 = arith.mulf %831, %812 : vector<8x128xf32>
    %841 = arith.mulf %825, %833 : vector<8x128xf32>
    %842 = arith.addf %840, %841 : vector<8x128xf32>
    %843 = math.tanh %842 : vector<8x128xf32>
    %844 = arith.mulf %839, %843 : vector<8x128xf32>
    %c5_320 = arith.constant 5 : index
    %c0_321 = arith.constant 0 : index
    %c0_322 = arith.constant 0 : index
    %845 = vector.load %arg21[%c5_320, %c0_321, %c0_322] : memref<7x128x512xf32, #tpu.memory_space<vmem>>, vector<1x128x512xf32>
    %846 = vector.shape_cast %845 : vector<1x128x512xf32> to vector<128x512xf32>
    %cst_323 = arith.constant dense<0.000000e+00> : vector<8x512xf32>
    %847 = tpu.matmul %540, %846, %cst_323 {dimension_numbers = #tpu.dot_dimension_numbers<[1], [0], [0], [1], [0, 0, 1, 1], [], []>} : vector<8x128xf32>, vector<128x512xf32>, vector<8x512xf32> -> vector<8x512xf32>
    %c6_324 = arith.constant 6 : index
    %c0_325 = arith.constant 0 : index
    %c0_326 = arith.constant 0 : index
    %848 = vector.load %arg21[%c6_324, %c0_325, %c0_326] : memref<7x128x512xf32, #tpu.memory_space<vmem>>, vector<1x128x512xf32>
    %849 = vector.shape_cast %848 : vector<1x128x512xf32> to vector<128x512xf32>
    %cst_327 = arith.constant dense<0.000000e+00> : vector<8x512xf32>
    %850 = tpu.matmul %137, %849, %cst_327 {dimension_numbers = #tpu.dot_dimension_numbers<[1], [0], [0], [1], [0, 0, 1, 1], [], []>} : vector<8x128xf32>, vector<128x512xf32>, vector<8x512xf32> -> vector<8x512xf32>
    %851 = arith.addf %847, %850 : vector<8x512xf32>
    %c0_328 = arith.constant 0 : index
    %c0_329 = arith.constant 0 : index
    %852 = vector.load %arg6[%c0_328, %c0_329] : memref<1x512xf32, #tpu.memory_space<vmem>>, vector<1x512xf32>
    %853 = vector.broadcast %852 : vector<1x512xf32> to vector<8x512xf32>
    %854 = arith.addf %851, %853 : vector<8x512xf32>
    %855 = vector.extract_strided_slice %854 {offsets = [0, 0], sizes = [8, 128], strides = [1, 1]} : vector<8x512xf32> to vector<8x128xf32>
    %856 = arith.negf %855 : vector<8x128xf32>
    %857 = math.exp %856 : vector<8x128xf32>
    %cst_330 = arith.constant 1.000000e+00 : f32
    %858 = vector.broadcast %cst_330 : f32 to vector<8x128xf32>
    %859 = arith.addf %858, %857 : vector<8x128xf32>
    %860 = arith.divf %858, %859 : vector<8x128xf32>
    %861 = vector.extract_strided_slice %854 {offsets = [0, 128], sizes = [8, 128], strides = [1, 1]} : vector<8x512xf32> to vector<8x128xf32>
    %862 = arith.negf %861 : vector<8x128xf32>
    %863 = math.exp %862 : vector<8x128xf32>
    %cst_331 = arith.constant 1.000000e+00 : f32
    %864 = vector.broadcast %cst_331 : f32 to vector<8x128xf32>
    %865 = arith.addf %864, %863 : vector<8x128xf32>
    %866 = arith.divf %864, %865 : vector<8x128xf32>
    %867 = vector.extract_strided_slice %854 {offsets = [0, 256], sizes = [8, 128], strides = [1, 1]} : vector<8x512xf32> to vector<8x128xf32>
    %868 = math.tanh %867 : vector<8x128xf32>
    %869 = vector.extract_strided_slice %854 {offsets = [0, 384], sizes = [8, 128], strides = [1, 1]} : vector<8x512xf32> to vector<8x128xf32>
    %870 = arith.negf %869 : vector<8x128xf32>
    %871 = math.exp %870 : vector<8x128xf32>
    %cst_332 = arith.constant 1.000000e+00 : f32
    %872 = vector.broadcast %cst_332 : f32 to vector<8x128xf32>
    %873 = arith.addf %872, %871 : vector<8x128xf32>
    %874 = arith.divf %872, %873 : vector<8x128xf32>
    %875 = arith.mulf %866, %75 : vector<8x128xf32>
    %876 = arith.mulf %860, %868 : vector<8x128xf32>
    %877 = arith.addf %875, %876 : vector<8x128xf32>
    %878 = math.tanh %877 : vector<8x128xf32>
    %879 = arith.mulf %874, %878 : vector<8x128xf32>
    %c0_333 = arith.constant 0 : index
    %c0_334 = arith.constant 0 : index
    %880 = vector.load %arg7[%c0_333, %c0_334] : memref<1x128xf32, #tpu.memory_space<vmem>>, vector<1x128xf32>
    %881 = vector.broadcast %880 : vector<1x128xf32> to vector<8x128xf32>
    %882 = arith.mulf %844, %881 : vector<8x128xf32>
    %cst_335 = arith.constant dense<0.000000e+00> : vector<8xf32>
    %883 = vector.multi_reduction <add>, %882, %cst_335 [1] : vector<8x128xf32> to vector<8xf32>
    %884 = vector.shape_cast %883 : vector<8xf32> to vector<8x1xf32>
    %c0_336 = arith.constant 0 : index
    %c0_337 = arith.constant 0 : index
    %885 = vector.load %arg8[%c0_336, %c0_337] : memref<1x128xf32, #tpu.memory_space<vmem>>, vector<1x128xf32>
    %886 = vector.broadcast %885 : vector<1x128xf32> to vector<8x128xf32>
    %887 = arith.mulf %879, %886 : vector<8x128xf32>
    %cst_338 = arith.constant dense<0.000000e+00> : vector<8xf32>
    %888 = vector.multi_reduction <add>, %887, %cst_338 [1] : vector<8x128xf32> to vector<8xf32>
    %889 = vector.shape_cast %888 : vector<8xf32> to vector<8x1xf32>
    %890 = arith.addf %884, %889 : vector<8x1xf32>
    %c0_339 = arith.constant 0 : index
    %c0_340 = arith.constant 0 : index
    %891 = vector.load %arg9[%c0_339, %c0_340] : memref<1x1xf32, #tpu.memory_space<vmem>>, vector<1x1xf32>
    %892 = vector.broadcast %891 : vector<1x1xf32> to vector<8x1xf32>
    %893 = arith.addf %890, %892 : vector<8x1xf32>
    %c0_341 = arith.constant 0 : index
    %c0_342 = arith.constant 0 : index
    %894 = vector.load %arg17[%c0_341, %c0_342] : memref<8x1xf32, #tpu.memory_space<vmem>>, vector<8x1xf32>
    tpu.vector_store %arg17[%c0_341, %c0_342], %893 {strides = array<i32>} : memref<8x1xf32, #tpu.memory_space<vmem>>, vector<8x1xf32>,
    return
  }
}

</mosaic_0001>

<bundles_post_ra>
// kernel: bilstm_forward.1
= control target key start
LH: loop header
LB: loop body
LE: loop exit
PB: predicated region body
PF: predicated region fallthrough
CT: control target
= control target key end

     0   :  { %s9616_s0 = inlined_call_operand.vmem [shape: f32[8,8,1], index: 0, kind: input, shape index: {}]   ;;  %s9617_s1 = inlined_call_operand.vmem [shape: f32[1,1,512], index: 1, kind: input, shape index: {}]   ;;  %s9618_s2 = inlined_call_operand.vmem [shape: f32[1,1,512], index: 2, kind: input, shape index: {}]   ;;  %s9619_s3 = inlined_call_operand.vmem [shape: f32[1,1,512], index: 3, kind: input, shape index: {}]   ;;  %s9620_s4 = inlined_call_operand.vmem [shape: f32[1,1,512], index: 4, kind: input, shape index: {}]   ;;  %s9621_s5 = inlined_call_operand.vmem [shape: f32[1,512], index: 5, kind: input, shape index: {}]   ;;  %s9622_s6 = inlined_call_operand.vmem [shape: f32[1,512], index: 6, kind: input, shape index: {}]   ;;  %s9623_s7 = inlined_call_operand.vmem [shape: f32[1,128], index: 7, kind: input, shape index: {}]   ;;  %s9624_s8 = inlined_call_operand.vmem [shape: f32[1,128], index: 8, kind: input, shape index: {}]   ;;  %s9625_s9 = inlined_call_operand.<no memory space> [shape: f32[1,1], index: 9, kind: input, shape index: {}]   ;;  %s9626_s10 = inlined_call_operand.vmem [shape: f32[64,512], index: 10, kind: input, shape index: {}]   ;;  %s9627_s11 = inlined_call_operand.vmem [shape: f32[64,512], index: 11, kind: input, shape index: {}]   ;;  %s9628_s12 = inlined_call_operand.vmem [shape: f32[64,512], index: 12, kind: input, shape index: {}]   ;;  %s9629_s13 = inlined_call_operand.vmem [shape: f32[64,512], index: 13, kind: input, shape index: {}]   ;;  %s9630_s14 = inlined_call_operand.vmem [shape: f32[64,512], index: 14, kind: input, shape index: {}]   ;;  %s9631_s15 = inlined_call_operand.vmem [shape: f32[64,512], index: 15, kind: input, shape index: {}]   ;;  %s9632_s16 = inlined_call_operand.vmem [shape: f32[64,512], index: 16, kind: input, shape index: {}]   ;;  %s9633_s17 = inlined_call_operand.vmem [shape: f32[8,1], index: 17, kind: output, shape index: {}]  }
   0x1   :  { %9773 = sst [smem:[#allocation278_spill]] %s9616_s0  ;;  %v22_v0 = vstv %s9625_s9  ;;  %v6565_v1 = vld [vmem:[%s9626_s10] sm:$0xff]  ;;  %v6570_v2 = vld [vmem:[%s9626_s10 + $0x8] sm:$0xff]  ;;  %v6575_v3 = vld [vmem:[%s9626_s10 + $0x10] sm:$0xff] }
   0x2   :  { %9774 = sst [smem:[#allocation279_spill]] %s9617_s1  ;;  %9775 = vst [vmem:[#allocation22_spill] sm:$0xff] %v6575_v3  ;;  %v6580_v4 = vld [vmem:[%s9626_s10 + $0x18] sm:$0xff]  ;;  %v6585_v5 = vld [vmem:[%s9626_s10 + $0x20] sm:$0xff]  ;;  %v6590_v6 = vld [vmem:[%s9626_s10 + $0x28] sm:$0xff] }
   0x3   :  { %23 = vst [vmem:[#allocation7] sm:$0x1] %v22_v0  ;;  %v6595_v7 = vld [vmem:[%s9626_s10 + $0x30] sm:$0xff]  ;;  %v6600_v8 = vld [vmem:[%s9626_s10 + $0x38] sm:$0xff]  ;;  %v6605_v9 = vld [vmem:[%s9626_s10 + $0x40] sm:$0xff] }
   0x4   :  { %v6610_v10 = vld [vmem:[%s9626_s10 + $0x48] sm:$0xff]  ;;  %v6615_v11 = vld [vmem:[%s9626_s10 + $0x50] sm:$0xff]  ;;  %v6620_v12 = vld [vmem:[%s9626_s10 + $0x58] sm:$0xff] }
   0x5   :  { %v6625_v13 = vld [vmem:[%s9626_s10 + $0x60] sm:$0xff]  ;;  %v6630_v14 = vld [vmem:[%s9626_s10 + $0x68] sm:$0xff]  ;;  %v6635_v15 = vld [vmem:[%s9626_s10 + $0x70] sm:$0xff] }
   0x6   :  { %v6640_v16 = vld [vmem:[%s9626_s10 + $0x78] sm:$0xff]  ;;  %v6645_v17 = vld [vmem:[%s9626_s10 + $0x80] sm:$0xff]  ;;  %v6650_v18 = vld [vmem:[%s9626_s10 + $0x88] sm:$0xff] }
   0x7   :  { %v6655_v19 = vld [vmem:[%s9626_s10 + $0x90] sm:$0xff]  ;;  %v6660_v20 = vld [vmem:[%s9626_s10 + $0x98] sm:$0xff]  ;;  %v6665_v21 = vld [vmem:[%s9626_s10 + $0xa0] sm:$0xff] }
   0x8   :  { %v6670_v22 = vld [vmem:[%s9626_s10 + $0xa8] sm:$0xff]  ;;  %v6675_v23 = vld [vmem:[%s9626_s10 + $0xb0] sm:$0xff]  ;;  %v6680_v24 = vld [vmem:[%s9626_s10 + $0xb8] sm:$0xff] }
   0x9   :  { %v6685_v25 = vld [vmem:[%s9626_s10 + $0xc0] sm:$0xff]  ;;  %v6690_v26 = vld [vmem:[%s9626_s10 + $0xc8] sm:$0xff]  ;;  %v6695_v27 = vld [vmem:[%s9626_s10 + $0xd0] sm:$0xff] }
   0xa   :  { %v6700_v28 = vld [vmem:[%s9626_s10 + $0xd8] sm:$0xff]  ;;  %v6705_v29 = vld [vmem:[%s9626_s10 + $0xe0] sm:$0xff]  ;;  %v6710_v30 = vld [vmem:[%s9626_s10 + $0xe8] sm:$0xff] }
   0xb   :  { %v6715_v31 = vld [vmem:[%s9626_s10 + $0xf0] sm:$0xff]  ;;  %v6720_v32 = vld [vmem:[%s9626_s10 + $0xf8] sm:$0xff] }
   0xc   :  { %123 = vsyncadd [#allocation6], 4096  ;;  %v6725_v33 = vld [vmem:[%s9627_s11] sm:$0xff]  ;;  %v6730_v34 = vld [vmem:[%s9627_s11 + $0x8] sm:$0xff] }
   0xd   :  { %9776 = vst [vmem:[#allocation23_spill] sm:$0xff] %v6725_v33  ;;  %v6735_v35 = vld [vmem:[%s9627_s11 + $0x10] sm:$0xff]  ;;  %v6740_v36 = vld [vmem:[%s9627_s11 + $0x18] sm:$0xff]  ;;  %v6745_v37 = vld [vmem:[%s9627_s11 + $0x20] sm:$0xff] }
   0xe   :  { %9777 = vst [vmem:[#allocation24_spill] sm:$0xff] %v6730_v34  ;;  %v6750_v38 = vld [vmem:[%s9627_s11 + $0x28] sm:$0xff]  ;;  %v6755_v39 = vld [vmem:[%s9627_s11 + $0x30] sm:$0xff]  ;;  %v6760_v40 = vld [vmem:[%s9627_s11 + $0x38] sm:$0xff] }
   0xf   :  { %9778 = vst [vmem:[#allocation25_spill] sm:$0xff] %v6735_v35  ;;  %v6765_v41 = vld [vmem:[%s9627_s11 + $0x40] sm:$0xff]  ;;  %v6770_v42 = vld [vmem:[%s9627_s11 + $0x48] sm:$0xff]  ;;  %v6775_v43 = vld [vmem:[%s9627_s11 + $0x50] sm:$0xff] }
  0x10   :  { %9779 = vst [vmem:[#allocation26_spill] sm:$0xff] %v6740_v36  ;;  %v6780_v44 = vld [vmem:[%s9627_s11 + $0x58] sm:$0xff]  ;;  %v6785_v45 = vld [vmem:[%s9627_s11 + $0x60] sm:$0xff]  ;;  %v6790_v46 = vld [vmem:[%s9627_s11 + $0x68] sm:$0xff] }
  0x11   :  { %9780 = vst [vmem:[#allocation27_spill] sm:$0xff] %v6745_v37  ;;  %v6795_v47 = vld [vmem:[%s9627_s11 + $0x70] sm:$0xff]  ;;  %v6800_v48 = vld [vmem:[%s9627_s11 + $0x78] sm:$0xff]  ;;  %v6805_v49 = vld [vmem:[%s9627_s11 + $0x80] sm:$0xff] }
  0x12   :  { %9781 = vst [vmem:[#allocation28_spill] sm:$0xff] %v6750_v38  ;;  %v6810_v50 = vld [vmem:[%s9627_s11 + $0x88] sm:$0xff]  ;;  %v6815_v51 = vld [vmem:[%s9627_s11 + $0x90] sm:$0xff]  ;;  %v6820_v52 = vld [vmem:[%s9627_s11 + $0x98] sm:$0xff] }
  0x13   :  { %9782 = vst [vmem:[#allocation29_spill] sm:$0xff] %v6755_v39  ;;  %v6825_v53 = vld [vmem:[%s9627_s11 + $0xa0] sm:$0xff]  ;;  %v6830_v54 = vld [vmem:[%s9627_s11 + $0xa8] sm:$0xff]  ;;  %v6835_v55 = vld [vmem:[%s9627_s11 + $0xb0] sm:$0xff] }
  0x14   :  { %9783 = vst [vmem:[#allocation30_spill] sm:$0xff] %v6760_v40  ;;  %v6840_v56 = vld [vmem:[%s9627_s11 + $0xb8] sm:$0xff]  ;;  %v6845_v57 = vld [vmem:[%s9627_s11 + $0xc0] sm:$0xff]  ;;  %v6850_v58 = vld [vmem:[%s9627_s11 + $0xc8] sm:$0xff] }
  0x15   :  { %9784 = vst [vmem:[#allocation31_spill] sm:$0xff] %v6765_v41  ;;  %v6855_v59 = vld [vmem:[%s9627_s11 + $0xd0] sm:$0xff]  ;;  %v6860_v60 = vld [vmem:[%s9627_s11 + $0xd8] sm:$0xff]  ;;  %v6865_v61 = vld [vmem:[%s9627_s11 + $0xe0] sm:$0xff] }
  0x16   :  { %9785 = vst [vmem:[#allocation32_spill] sm:$0xff] %v6770_v42  ;;  %v6870_v62 = vld [vmem:[%s9627_s11 + $0xe8] sm:$0xff]  ;;  %v6875_v63 = vld [vmem:[%s9627_s11 + $0xf0] sm:$0xff]  ;;  %v6880_v0 = vld [vmem:[%s9627_s11 + $0xf8] sm:$0xff] }
  0x17   :  { %9786 = vst [vmem:[#allocation33_spill] sm:$0xff] %v6775_v43 }
  0x18   :  { %9787 = vst [vmem:[#allocation34_spill] sm:$0xff] %v6780_v44 }
  0x19   :  { %9788 = vst [vmem:[#allocation35_spill] sm:$0xff] %v6785_v45 }
  0x1a   :  { %9789 = vst [vmem:[#allocation36_spill] sm:$0xff] %v6790_v46 }
  0x1b   :  { %9790 = vst [vmem:[#allocation37_spill] sm:$0xff] %v6795_v47 }
  0x1c   :  { %9791 = vst [vmem:[#allocation38_spill] sm:$0xff] %v6800_v48 }
  0x1d   :  { %9792 = vst [vmem:[#allocation39_spill] sm:$0xff] %v6805_v49 }
  0x1e   :  { %9793 = vst [vmem:[#allocation40_spill] sm:$0xff] %v6810_v50 }
  0x1f   :  { %9794 = vst [vmem:[#allocation41_spill] sm:$0xff] %v6815_v51 }
  0x20   :  { %9795 = vst [vmem:[#allocation42_spill] sm:$0xff] %v6820_v52 }
  0x21   :  { %9796 = vst [vmem:[#allocation43_spill] sm:$0xff] %v6825_v53 }
  0x22   :  { %9797 = vst [vmem:[#allocation44_spill] sm:$0xff] %v6830_v54 }
  0x23   :  { %9798 = vst [vmem:[#allocation45_spill] sm:$0xff] %v6835_v55 }
  0x24   :  { %9799 = vst [vmem:[#allocation46_spill] sm:$0xff] %v6840_v56 }
  0x25   :  { %9800 = vst [vmem:[#allocation47_spill] sm:$0xff] %v6845_v57 }
  0x26   :  { %9801 = vst [vmem:[#allocation48_spill] sm:$0xff] %v6850_v58 }
  0x27   :  { %9802 = vst [vmem:[#allocation49_spill] sm:$0xff] %v6855_v59 }
  0x28   :  { %9803 = vst [vmem:[#allocation50_spill] sm:$0xff] %v6860_v60 }
  0x29   :  { %9804 = vst [vmem:[#allocation51_spill] sm:$0xff] %v6870_v62 }
  0x2a   :  { %9805 = vst [vmem:[#allocation52_spill] sm:$0xff] %v6875_v63 }
  0x2b   :  { %9806 = vst [vmem:[#allocation53_spill] sm:$0xff] %v6880_v0 }
  0x2c   :  { %205 = vsyncadd [#allocation6 + $0x1], 4096  ;;  %v6885_v35 = vld [vmem:[%s9628_s12] sm:$0xff]  ;;  %v6890_v39 = vld [vmem:[%s9628_s12 + $0x8] sm:$0xff] }
  0x2d   :  { %9807 = vst [vmem:[#allocation54_spill] sm:$0xff] %v6885_v35  ;;  %v6895_v43 = vld [vmem:[%s9628_s12 + $0x10] sm:$0xff]  ;;  %v6900_v36 = vld [vmem:[%s9628_s12 + $0x18] sm:$0xff]  ;;  %v6905_v34 = vld [vmem:[%s9628_s12 + $0x20] sm:$0xff] }
  0x2e   :  { %9808 = vst [vmem:[#allocation55_spill] sm:$0xff] %v6890_v39  ;;  %v6910_v35 = vld [vmem:[%s9628_s12 + $0x28] sm:$0xff]  ;;  %v6915_v39 = vld [vmem:[%s9628_s12 + $0x30] sm:$0xff] }
  0x2f   :  { %9809 = vst [vmem:[#allocation56_spill] sm:$0xff] %v6895_v43  ;;  %v6920_v43 = vld [vmem:[%s9628_s12 + $0x38] sm:$0xff] }
  0x30   :  { %9810 = vst [vmem:[#allocation57_spill] sm:$0xff] %v6900_v36  ;;  %v6925_v36 = vld [vmem:[%s9628_s12 + $0x40] sm:$0xff] }
  0x31   :  { %9811 = vst [vmem:[#allocation58_spill] sm:$0xff] %v6905_v34  ;;  %v6930_v34 = vld [vmem:[%s9628_s12 + $0x48] sm:$0xff] }
  0x32   :  { %9812 = vst [vmem:[#allocation59_spill] sm:$0xff] %v6910_v35  ;;  %v6935_v35 = vld [vmem:[%s9628_s12 + $0x50] sm:$0xff] }
  0x33   :  { %9813 = vst [vmem:[#allocation60_spill] sm:$0xff] %v6915_v39  ;;  %v6940_v39 = vld [vmem:[%s9628_s12 + $0x58] sm:$0xff] }
  0x34   :  { %9814 = vst [vmem:[#allocation61_spill] sm:$0xff] %v6920_v43  ;;  %v6945_v43 = vld [vmem:[%s9628_s12 + $0x60] sm:$0xff] }
  0x35   :  { %9815 = vst [vmem:[#allocation62_spill] sm:$0xff] %v6925_v36  ;;  %v6950_v36 = vld [vmem:[%s9628_s12 + $0x68] sm:$0xff] }
  0x36   :  { %9816 = vst [vmem:[#allocation63_spill] sm:$0xff] %v6930_v34  ;;  %v6955_v34 = vld [vmem:[%s9628_s12 + $0x70] sm:$0xff] }
  0x37   :  { %9817 = vst [vmem:[#allocation64_spill] sm:$0xff] %v6935_v35  ;;  %v6960_v35 = vld [vmem:[%s9628_s12 + $0x78] sm:$0xff] }
  0x38   :  { %9818 = vst [vmem:[#allocation65_spill] sm:$0xff] %v6940_v39  ;;  %v6965_v39 = vld [vmem:[%s9628_s12 + $0x80] sm:$0xff] }
  0x39   :  { %9819 = vst [vmem:[#allocation66_spill] sm:$0xff] %v6945_v43  ;;  %v6970_v43 = vld [vmem:[%s9628_s12 + $0x88] sm:$0xff] }
  0x3a   :  { %9820 = vst [vmem:[#allocation67_spill] sm:$0xff] %v6950_v36  ;;  %v6975_v36 = vld [vmem:[%s9628_s12 + $0x90] sm:$0xff] }
  0x3b   :  { %9821 = vst [vmem:[#allocation68_spill] sm:$0xff] %v6955_v34  ;;  %v6980_v34 = vld [vmem:[%s9628_s12 + $0x98] sm:$0xff] }
  0x3c   :  { %9822 = vst [vmem:[#allocation69_spill] sm:$0xff] %v6960_v35  ;;  %v6985_v35 = vld [vmem:[%s9628_s12 + $0xa0] sm:$0xff] }
  0x3d   :  { %9823 = vst [vmem:[#allocation70_spill] sm:$0xff] %v6965_v39  ;;  %v6990_v39 = vld [vmem:[%s9628_s12 + $0xa8] sm:$0xff] }
  0x3e   :  { %9824 = vst [vmem:[#allocation71_spill] sm:$0xff] %v6970_v43  ;;  %v6995_v43 = vld [vmem:[%s9628_s12 + $0xb0] sm:$0xff] }
  0x3f   :  { %9825 = vst [vmem:[#allocation72_spill] sm:$0xff] %v6975_v36  ;;  %v7000_v36 = vld [vmem:[%s9628_s12 + $0xb8] sm:$0xff] }
  0x40   :  { %9826 = vst [vmem:[#allocation73_spill] sm:$0xff] %v6980_v34  ;;  %v7005_v34 = vld [vmem:[%s9628_s12 + $0xc0] sm:$0xff] }
  0x41   :  { %9827 = vst [vmem:[#allocation74_spill] sm:$0xff] %v6985_v35  ;;  %v7010_v35 = vld [vmem:[%s9628_s12 + $0xc8] sm:$0xff] }
  0x42   :  { %9828 = vst [vmem:[#allocation75_spill] sm:$0xff] %v6990_v39  ;;  %v7015_v39 = vld [vmem:[%s9628_s12 + $0xd0] sm:$0xff] }
  0x43   :  { %9829 = vst [vmem:[#allocation76_spill] sm:$0xff] %v6995_v43  ;;  %v7020_v43 = vld [vmem:[%s9628_s12 + $0xd8] sm:$0xff] }
  0x44   :  { %9830 = vst [vmem:[#allocation77_spill] sm:$0xff] %v7000_v36  ;;  %v7025_v36 = vld [vmem:[%s9628_s12 + $0xe0] sm:$0xff] }
  0x45   :  { %9831 = vst [vmem:[#allocation78_spill] sm:$0xff] %v7005_v34  ;;  %v7030_v34 = vld [vmem:[%s9628_s12 + $0xe8] sm:$0xff] }
  0x46   :  { %9832 = vst [vmem:[#allocation79_spill] sm:$0xff] %v7010_v35  ;;  %v7035_v35 = vld [vmem:[%s9628_s12 + $0xf0] sm:$0xff] }
  0x47   :  { %9833 = vst [vmem:[#allocation80_spill] sm:$0xff] %v7015_v39  ;;  %v7040_v39 = vld [vmem:[%s9628_s12 + $0xf8] sm:$0xff] }
  0x48   :  { %9834 = vst [vmem:[#allocation81_spill] sm:$0xff] %v7020_v43 }
  0x49   :  { %9835 = vst [vmem:[#allocation82_spill] sm:$0xff] %v7025_v36 }
  0x4a   :  { %9836 = vst [vmem:[#allocation83_spill] sm:$0xff] %v7030_v34 }
  0x4b   :  { %9837 = vst [vmem:[#allocation84_spill] sm:$0xff] %v7035_v35 }
  0x4c   :  { %9838 = vst [vmem:[#allocation85_spill] sm:$0xff] %v7040_v39 }
  0x4d   :  { %287 = vsyncadd [#allocation6 + $0x2], 4096  ;;  %v7045_v43 = vld [vmem:[%s9629_s13] sm:$0xff]  ;;  %v7050_v34 = vld [vmem:[%s9629_s13 + $0x8] sm:$0xff] }
  0x4e   :  { %9839 = vst [vmem:[#allocation86_spill] sm:$0xff] %v7045_v43  ;;  %v7055_v35 = vld [vmem:[%s9629_s13 + $0x10] sm:$0xff]  ;;  %v7060_v39 = vld [vmem:[%s9629_s13 + $0x18] sm:$0xff]  ;;  %v7065_v36 = vld [vmem:[%s9629_s13 + $0x20] sm:$0xff] }
  0x4f   :  { %9840 = vst [vmem:[#allocation87_spill] sm:$0xff] %v7050_v34  ;;  %v7070_v43 = vld [vmem:[%s9629_s13 + $0x28] sm:$0xff]  ;;  %v7075_v34 = vld [vmem:[%s9629_s13 + $0x30] sm:$0xff] }
  0x50   :  { %9841 = vst [vmem:[#allocation88_spill] sm:$0xff] %v7055_v35  ;;  %v7080_v35 = vld [vmem:[%s9629_s13 + $0x38] sm:$0xff] }
  0x51   :  { %9842 = vst [vmem:[#allocation89_spill] sm:$0xff] %v7060_v39  ;;  %v7085_v39 = vld [vmem:[%s9629_s13 + $0x40] sm:$0xff] }
  0x52   :  { %9843 = vst [vmem:[#allocation90_spill] sm:$0xff] %v7065_v36  ;;  %v7090_v36 = vld [vmem:[%s9629_s13 + $0x48] sm:$0xff] }
  0x53   :  { %9844 = vst [vmem:[#allocation91_spill] sm:$0xff] %v7070_v43  ;;  %v7095_v43 = vld [vmem:[%s9629_s13 + $0x50] sm:$0xff] }
  0x54   :  { %9845 = vst [vmem:[#allocation92_spill] sm:$0xff] %v7075_v34  ;;  %v7100_v34 = vld [vmem:[%s9629_s13 + $0x58] sm:$0xff] }
  0x55   :  { %9846 = vst [vmem:[#allocation93_spill] sm:$0xff] %v7080_v35  ;;  %v7105_v35 = vld [vmem:[%s9629_s13 + $0x60] sm:$0xff] }
  0x56   :  { %9847 = vst [vmem:[#allocation94_spill] sm:$0xff] %v7085_v39  ;;  %v7110_v39 = vld [vmem:[%s9629_s13 + $0x68] sm:$0xff] }
  0x57   :  { %9848 = vst [vmem:[#allocation95_spill] sm:$0xff] %v7090_v36  ;;  %v7115_v36 = vld [vmem:[%s9629_s13 + $0x70] sm:$0xff] }
  0x58   :  { %9849 = vst [vmem:[#allocation96_spill] sm:$0xff] %v7095_v43  ;;  %v7120_v43 = vld [vmem:[%s9629_s13 + $0x78] sm:$0xff] }
  0x59   :  { %9850 = vst [vmem:[#allocation97_spill] sm:$0xff] %v7100_v34  ;;  %v7125_v34 = vld [vmem:[%s9629_s13 + $0x80] sm:$0xff] }
  0x5a   :  { %9851 = vst [vmem:[#allocation98_spill] sm:$0xff] %v7105_v35  ;;  %v7130_v35 = vld [vmem:[%s9629_s13 + $0x88] sm:$0xff] }
  0x5b   :  { %9852 = vst [vmem:[#allocation99_spill] sm:$0xff] %v7110_v39  ;;  %v7135_v39 = vld [vmem:[%s9629_s13 + $0x90] sm:$0xff] }
  0x5c   :  { %9853 = vst [vmem:[#allocation100_spill] sm:$0xff] %v7115_v36  ;;  %v7140_v36 = vld [vmem:[%s9629_s13 + $0x98] sm:$0xff] }
  0x5d   :  { %9854 = vst [vmem:[#allocation101_spill] sm:$0xff] %v7120_v43  ;;  %v7145_v43 = vld [vmem:[%s9629_s13 + $0xa0] sm:$0xff] }
  0x5e   :  { %9855 = vst [vmem:[#allocation102_spill] sm:$0xff] %v7125_v34  ;;  %v7150_v34 = vld [vmem:[%s9629_s13 + $0xa8] sm:$0xff] }
  0x5f   :  { %9856 = vst [vmem:[#allocation103_spill] sm:$0xff] %v7130_v35  ;;  %v7155_v35 = vld [vmem:[%s9629_s13 + $0xb0] sm:$0xff] }
  0x60   :  { %9857 = vst [vmem:[#allocation104_spill] sm:$0xff] %v7135_v39  ;;  %v7160_v39 = vld [vmem:[%s9629_s13 + $0xb8] sm:$0xff] }
  0x61   :  { %9858 = vst [vmem:[#allocation105_spill] sm:$0xff] %v7140_v36  ;;  %v7165_v36 = vld [vmem:[%s9629_s13 + $0xc0] sm:$0xff] }
  0x62   :  { %9859 = vst [vmem:[#allocation106_spill] sm:$0xff] %v7145_v43  ;;  %v7170_v43 = vld [vmem:[%s9629_s13 + $0xc8] sm:$0xff] }
  0x63   :  { %9860 = vst [vmem:[#allocation107_spill] sm:$0xff] %v7150_v34  ;;  %v7175_v34 = vld [vmem:[%s9629_s13 + $0xd0] sm:$0xff] }
  0x64   :  { %9861 = vst [vmem:[#allocation108_spill] sm:$0xff] %v7155_v35  ;;  %v7180_v35 = vld [vmem:[%s9629_s13 + $0xd8] sm:$0xff] }
  0x65   :  { %9862 = vst [vmem:[#allocation109_spill] sm:$0xff] %v7160_v39  ;;  %v7185_v39 = vld [vmem:[%s9629_s13 + $0xe0] sm:$0xff] }
  0x66   :  { %9863 = vst [vmem:[#allocation110_spill] sm:$0xff] %v7165_v36  ;;  %v7190_v36 = vld [vmem:[%s9629_s13 + $0xe8] sm:$0xff] }
  0x67   :  { %9864 = vst [vmem:[#allocation111_spill] sm:$0xff] %v7170_v43  ;;  %v7195_v43 = vld [vmem:[%s9629_s13 + $0xf0] sm:$0xff] }
  0x68   :  { %9865 = vst [vmem:[#allocation112_spill] sm:$0xff] %v7175_v34  ;;  %v7200_v34 = vld [vmem:[%s9629_s13 + $0xf8] sm:$0xff] }
  0x69   :  { %9866 = vst [vmem:[#allocation113_spill] sm:$0xff] %v7180_v35 }
  0x6a   :  { %9867 = vst [vmem:[#allocation114_spill] sm:$0xff] %v7185_v39 }
  0x6b   :  { %9868 = vst [vmem:[#allocation115_spill] sm:$0xff] %v7190_v36 }
  0x6c   :  { %9869 = vst [vmem:[#allocation116_spill] sm:$0xff] %v7195_v43 }
  0x6d   :  { %9870 = vst [vmem:[#allocation117_spill] sm:$0xff] %v7200_v34 }
  0x6e   :  { %369 = vsyncadd [#allocation6 + $0x3], 4096  ;;  %v7205_v35 = vld [vmem:[%s9630_s14] sm:$0xff]  ;;  %v7210_v36 = vld [vmem:[%s9630_s14 + $0x8] sm:$0xff] }
  0x6f   :  { %9871 = vst [vmem:[#allocation118_spill] sm:$0xff] %v7205_v35  ;;  %v7215_v43 = vld [vmem:[%s9630_s14 + $0x10] sm:$0xff]  ;;  %v7220_v34 = vld [vmem:[%s9630_s14 + $0x18] sm:$0xff]  ;;  %v7225_v39 = vld [vmem:[%s9630_s14 + $0x20] sm:$0xff] }
  0x70   :  { %9872 = vst [vmem:[#allocation119_spill] sm:$0xff] %v7210_v36  ;;  %v7230_v35 = vld [vmem:[%s9630_s14 + $0x28] sm:$0xff]  ;;  %v7235_v36 = vld [vmem:[%s9630_s14 + $0x30] sm:$0xff] }
  0x71   :  { %9873 = vst [vmem:[#allocation120_spill] sm:$0xff] %v7215_v43  ;;  %v7240_v43 = vld [vmem:[%s9630_s14 + $0x38] sm:$0xff] }
  0x72   :  { %9874 = vst [vmem:[#allocation121_spill] sm:$0xff] %v7220_v34  ;;  %v7245_v34 = vld [vmem:[%s9630_s14 + $0x40] sm:$0xff] }
  0x73   :  { %9875 = vst [vmem:[#allocation122_spill] sm:$0xff] %v7225_v39  ;;  %v7250_v39 = vld [vmem:[%s9630_s14 + $0x48] sm:$0xff] }
  0x74   :  { %9876 = vst [vmem:[#allocation123_spill] sm:$0xff] %v7230_v35  ;;  %v7255_v35 = vld [vmem:[%s9630_s14 + $0x50] sm:$0xff] }
  0x75   :  { %9877 = vst [vmem:[#allocation124_spill] sm:$0xff] %v7235_v36  ;;  %v7260_v36 = vld [vmem:[%s9630_s14 + $0x58] sm:$0xff] }
  0x76   :  { %9878 = vst [vmem:[#allocation125_spill] sm:$0xff] %v7240_v43  ;;  %v7265_v43 = vld [vmem:[%s9630_s14 + $0x60] sm:$0xff] }
  0x77   :  { %9879 = vst [vmem:[#allocation126_spill] sm:$0xff] %v7245_v34  ;;  %v7270_v34 = vld [vmem:[%s9630_s14 + $0x68] sm:$0xff] }
  0x78   :  { %9880 = vst [vmem:[#allocation127_spill] sm:$0xff] %v7250_v39  ;;  %v7275_v39 = vld [vmem:[%s9630_s14 + $0x70] sm:$0xff] }
  0x79   :  { %9881 = vst [vmem:[#allocation128_spill] sm:$0xff] %v7255_v35  ;;  %v7280_v35 = vld [vmem:[%s9630_s14 + $0x78] sm:$0xff] }
  0x7a   :  { %9882 = vst [vmem:[#allocation129_spill] sm:$0xff] %v7260_v36  ;;  %v7285_v36 = vld [vmem:[%s9630_s14 + $0x80] sm:$0xff] }
  0x7b   :  { %9883 = vst [vmem:[#allocation130_spill] sm:$0xff] %v7265_v43  ;;  %v7290_v43 = vld [vmem:[%s9630_s14 + $0x88] sm:$0xff] }
  0x7c   :  { %9884 = vst [vmem:[#allocation131_spill] sm:$0xff] %v7270_v34  ;;  %v7295_v34 = vld [vmem:[%s9630_s14 + $0x90] sm:$0xff] }
  0x7d   :  { %9885 = vst [vmem:[#allocation132_spill] sm:$0xff] %v7275_v39  ;;  %v7300_v39 = vld [vmem:[%s9630_s14 + $0x98] sm:$0xff] }
  0x7e   :  { %9886 = vst [vmem:[#allocation133_spill] sm:$0xff] %v7280_v35  ;;  %v7305_v35 = vld [vmem:[%s9630_s14 + $0xa0] sm:$0xff] }
  0x7f   :  { %9887 = vst [vmem:[#allocation134_spill] sm:$0xff] %v7285_v36  ;;  %v7310_v36 = vld [vmem:[%s9630_s14 + $0xa8] sm:$0xff] }
  0x80   :  { %9888 = vst [vmem:[#allocation135_spill] sm:$0xff] %v7290_v43  ;;  %v7315_v43 = vld [vmem:[%s9630_s14 + $0xb0] sm:$0xff] }
  0x81   :  { %9889 = vst [vmem:[#allocation136_spill] sm:$0xff] %v7295_v34  ;;  %v7320_v34 = vld [vmem:[%s9630_s14 + $0xb8] sm:$0xff] }
  0x82   :  { %9890 = vst [vmem:[#allocation137_spill] sm:$0xff] %v7300_v39  ;;  %v7325_v39 = vld [vmem:[%s9630_s14 + $0xc0] sm:$0xff] }
  0x83   :  { %9891 = vst [vmem:[#allocation138_spill] sm:$0xff] %v7305_v35  ;;  %v7330_v35 = vld [vmem:[%s9630_s14 + $0xc8] sm:$0xff] }
  0x84   :  { %9892 = vst [vmem:[#allocation139_spill] sm:$0xff] %v7310_v36  ;;  %v7335_v36 = vld [vmem:[%s9630_s14 + $0xd0] sm:$0xff] }
  0x85   :  { %9893 = vst [vmem:[#allocation140_spill] sm:$0xff] %v7315_v43  ;;  %v7340_v43 = vld [vmem:[%s9630_s14 + $0xd8] sm:$0xff] }
  0x86   :  { %9894 = vst [vmem:[#allocation141_spill] sm:$0xff] %v7320_v34  ;;  %v7345_v34 = vld [vmem:[%s9630_s14 + $0xe0] sm:$0xff] }
  0x87   :  { %9895 = vst [vmem:[#allocation142_spill] sm:$0xff] %v7325_v39  ;;  %v7350_v39 = vld [vmem:[%s9630_s14 + $0xe8] sm:$0xff] }
  0x88   :  { %9896 = vst [vmem:[#allocation143_spill] sm:$0xff] %v7330_v35  ;;  %v7355_v35 = vld [vmem:[%s9630_s14 + $0xf0] sm:$0xff] }
  0x89   :  { %9897 = vst [vmem:[#allocation144_spill] sm:$0xff] %v7335_v36  ;;  %v7360_v36 = vld [vmem:[%s9630_s14 + $0xf8] sm:$0xff] }
  0x8a   :  { %9898 = vst [vmem:[#allocation145_spill] sm:$0xff] %v7340_v43 }
  0x8b   :  { %9899 = vst [vmem:[#allocation146_spill] sm:$0xff] %v7345_v34 }
  0x8c   :  { %9900 = vst [vmem:[#allocation147_spill] sm:$0xff] %v7350_v39 }
  0x8d   :  { %9901 = vst [vmem:[#allocation148_spill] sm:$0xff] %v7355_v35 }
  0x8e   :  { %9902 = vst [vmem:[#allocation149_spill] sm:$0xff] %v7360_v36 }
  0x8f   :  { %451 = vsyncadd [#allocation6 + $0x4], 4096  ;;  %v7365_v43 = vld [vmem:[%s9631_s15] sm:$0xff]  ;;  %v7370_v39 = vld [vmem:[%s9631_s15 + $0x8] sm:$0xff] }
  0x90   :  { %9903 = vst [vmem:[#allocation150_spill] sm:$0xff] %v7365_v43  ;;  %v7375_v35 = vld [vmem:[%s9631_s15 + $0x10] sm:$0xff]  ;;  %v7380_v36 = vld [vmem:[%s9631_s15 + $0x18] sm:$0xff]  ;;  %v7385_v34 = vld [vmem:[%s9631_s15 + $0x20] sm:$0xff] }
  0x91   :  { %9904 = vst [vmem:[#allocation151_spill] sm:$0xff] %v7370_v39  ;;  %v7390_v43 = vld [vmem:[%s9631_s15 + $0x28] sm:$0xff]  ;;  %v7395_v39 = vld [vmem:[%s9631_s15 + $0x30] sm:$0xff] }
  0x92   :  { %9905 = vst [vmem:[#allocation152_spill] sm:$0xff] %v7375_v35  ;;  %v7400_v35 = vld [vmem:[%s9631_s15 + $0x38] sm:$0xff] }
  0x93   :  { %9906 = vst [vmem:[#allocation153_spill] sm:$0xff] %v7380_v36  ;;  %v7405_v36 = vld [vmem:[%s9631_s15 + $0x40] sm:$0xff] }
  0x94   :  { %9907 = vst [vmem:[#allocation154_spill] sm:$0xff] %v7385_v34  ;;  %v7410_v34 = vld [vmem:[%s9631_s15 + $0x48] sm:$0xff] }
  0x95   :  { %9908 = vst [vmem:[#allocation155_spill] sm:$0xff] %v7390_v43  ;;  %v7415_v43 = vld [vmem:[%s9631_s15 + $0x50] sm:$0xff] }
  0x96   :  { %9909 = vst [vmem:[#allocation156_spill] sm:$0xff] %v7395_v39  ;;  %v7420_v39 = vld [vmem:[%s9631_s15 + $0x58] sm:$0xff] }
  0x97   :  { %9910 = vst [vmem:[#allocation157_spill] sm:$0xff] %v7400_v35  ;;  %v7425_v35 = vld [vmem:[%s9631_s15 + $0x60] sm:$0xff] }
  0x98   :  { %9911 = vst [vmem:[#allocation158_spill] sm:$0xff] %v7405_v36  ;;  %v7430_v36 = vld [vmem:[%s9631_s15 + $0x68] sm:$0xff] }
  0x99   :  { %9912 = vst [vmem:[#allocation159_spill] sm:$0xff] %v7410_v34  ;;  %v7435_v34 = vld [vmem:[%s9631_s15 + $0x70] sm:$0xff] }
  0x9a   :  { %9913 = vst [vmem:[#allocation160_spill] sm:$0xff] %v7415_v43  ;;  %v7440_v43 = vld [vmem:[%s9631_s15 + $0x78] sm:$0xff] }
  0x9b   :  { %9914 = vst [vmem:[#allocation161_spill] sm:$0xff] %v7420_v39  ;;  %v7445_v39 = vld [vmem:[%s9631_s15 + $0x80] sm:$0xff] }
  0x9c   :  { %9915 = vst [vmem:[#allocation162_spill] sm:$0xff] %v7425_v35  ;;  %v7450_v35 = vld [vmem:[%s9631_s15 + $0x88] sm:$0xff] }
  0x9d   :  { %9916 = vst [vmem:[#allocation163_spill] sm:$0xff] %v7430_v36  ;;  %v7455_v36 = vld [vmem:[%s9631_s15 + $0x90] sm:$0xff] }
  0x9e   :  { %9917 = vst [vmem:[#allocation164_spill] sm:$0xff] %v7435_v34  ;;  %v7460_v34 = vld [vmem:[%s9631_s15 + $0x98] sm:$0xff] }
  0x9f   :  { %9918 = vst [vmem:[#allocation165_spill] sm:$0xff] %v7440_v43  ;;  %v7465_v43 = vld [vmem:[%s9631_s15 + $0xa0] sm:$0xff] }
  0xa0   :  { %9919 = vst [vmem:[#allocation166_spill] sm:$0xff] %v7445_v39  ;;  %v7470_v39 = vld [vmem:[%s9631_s15 + $0xa8] sm:$0xff] }
  0xa1   :  { %9920 = vst [vmem:[#allocation167_spill] sm:$0xff] %v7450_v35  ;;  %v7475_v35 = vld [vmem:[%s9631_s15 + $0xb0] sm:$0xff] }
  0xa2   :  { %9921 = vst [vmem:[#allocation168_spill] sm:$0xff] %v7455_v36  ;;  %v7480_v36 = vld [vmem:[%s9631_s15 + $0xb8] sm:$0xff] }
  0xa3   :  { %9922 = vst [vmem:[#allocation169_spill] sm:$0xff] %v7460_v34  ;;  %v7485_v34 = vld [vmem:[%s9631_s15 + $0xc0] sm:$0xff] }
  0xa4   :  { %9923 = vst [vmem:[#allocation170_spill] sm:$0xff] %v7465_v43  ;;  %v7490_v43 = vld [vmem:[%s9631_s15 + $0xc8] sm:$0xff] }
  0xa5   :  { %9924 = vst [vmem:[#allocation171_spill] sm:$0xff] %v7470_v39  ;;  %v7495_v39 = vld [vmem:[%s9631_s15 + $0xd0] sm:$0xff] }
  0xa6   :  { %9925 = vst [vmem:[#allocation172_spill] sm:$0xff] %v7475_v35  ;;  %v7500_v35 = vld [vmem:[%s9631_s15 + $0xd8] sm:$0xff] }
  0xa7   :  { %9926 = vst [vmem:[#allocation173_spill] sm:$0xff] %v7480_v36  ;;  %v7505_v36 = vld [vmem:[%s9631_s15 + $0xe0] sm:$0xff] }
  0xa8   :  { %9927 = vst [vmem:[#allocation174_spill] sm:$0xff] %v7485_v34  ;;  %v7510_v34 = vld [vmem:[%s9631_s15 + $0xe8] sm:$0xff] }
  0xa9   :  { %9928 = vst [vmem:[#allocation175_spill] sm:$0xff] %v7490_v43  ;;  %v7515_v43 = vld [vmem:[%s9631_s15 + $0xf0] sm:$0xff] }
  0xaa   :  { %9929 = vst [vmem:[#allocation176_spill] sm:$0xff] %v7495_v39  ;;  %v7520_v39 = vld [vmem:[%s9631_s15 + $0xf8] sm:$0xff] }
  0xab   :  { %9930 = vst [vmem:[#allocation177_spill] sm:$0xff] %v7500_v35 }
  0xac   :  { %9931 = vst [vmem:[#allocation178_spill] sm:$0xff] %v7505_v36 }
  0xad   :  { %9932 = vst [vmem:[#allocation179_spill] sm:$0xff] %v7510_v34 }
  0xae   :  { %9933 = vst [vmem:[#allocation180_spill] sm:$0xff] %v7515_v43 }
  0xaf   :  { %9934 = vst [vmem:[#allocation181_spill] sm:$0xff] %v7520_v39 }
  0xb0   :  { %533 = vsyncadd [#allocation6 + $0x5], 4096  ;;  %v7525_v35 = vld [vmem:[%s9632_s16] sm:$0xff]  ;;  %v7530_v34 = vld [vmem:[%s9632_s16 + $0x8] sm:$0xff]  ;;  %s9967_s25 = sld [smem:[#allocation278_spill]]  ;;  %v6467_v33 = vmov 0  }
  0xb1   :  { %9935 = vst [vmem:[#allocation182_spill] sm:$0xff] %v7525_v35  ;;  %v7535_v43 = vld [vmem:[%s9632_s16 + $0x10] sm:$0xff]  ;;  %v7540_v39 = vld [vmem:[%s9632_s16 + $0x18] sm:$0xff]  ;;  %v7545_v36 = vld [vmem:[%s9632_s16 + $0x20] sm:$0xff]  ;;  %6048 = vset.pattern.permute.xlu1 %v6467_v33  ;;  %6047 = vset.pattern.permute.xlu0 %v6467_v33 }
  0xb2   :  { %9936 = vst [vmem:[#allocation183_spill] sm:$0xff] %v7530_v34  ;;  %v7550_v35 = vld [vmem:[%s9632_s16 + $0x28] sm:$0xff]  ;;  %v7555_v34 = vld [vmem:[%s9632_s16 + $0x30] sm:$0xff]  ;;  %6049 = vset.pattern.permute.xlu2 %v6467_v33 }
  0xb3   :  { %9937 = vst [vmem:[#allocation184_spill] sm:$0xff] %v7535_v43  ;;  %v7560_v43 = vld [vmem:[%s9632_s16 + $0x38] sm:$0xff] }
  0xb4   :  { %9938 = vst [vmem:[#allocation185_spill] sm:$0xff] %v7540_v39  ;;  %v7565_v39 = vld [vmem:[%s9632_s16 + $0x40] sm:$0xff] }
  0xb5   :  { %9939 = vst [vmem:[#allocation186_spill] sm:$0xff] %v7545_v36  ;;  %v7570_v36 = vld [vmem:[%s9632_s16 + $0x48] sm:$0xff] }
  0xb6   :  { %9940 = vst [vmem:[#allocation187_spill] sm:$0xff] %v7550_v35  ;;  %v7575_v35 = vld [vmem:[%s9632_s16 + $0x50] sm:$0xff] }
  0xb7   :  { %9941 = vst [vmem:[#allocation188_spill] sm:$0xff] %v7555_v34  ;;  %v7580_v34 = vld [vmem:[%s9632_s16 + $0x58] sm:$0xff] }
  0xb8   :  { %9942 = vst [vmem:[#allocation189_spill] sm:$0xff] %v7560_v43  ;;  %v7585_v43 = vld [vmem:[%s9632_s16 + $0x60] sm:$0xff] }
  0xb9   :  { %9943 = vst [vmem:[#allocation190_spill] sm:$0xff] %v7565_v39  ;;  %v7590_v39 = vld [vmem:[%s9632_s16 + $0x68] sm:$0xff] }
  0xba   :  { %9944 = vst [vmem:[#allocation191_spill] sm:$0xff] %v7570_v36  ;;  %v7595_v36 = vld [vmem:[%s9632_s16 + $0x70] sm:$0xff] }
  0xbb   :  { %9945 = vst [vmem:[#allocation192_spill] sm:$0xff] %v7575_v35  ;;  %v7600_v35 = vld [vmem:[%s9632_s16 + $0x78] sm:$0xff] }
  0xbc   :  { %9946 = vst [vmem:[#allocation193_spill] sm:$0xff] %v7580_v34  ;;  %v7605_v34 = vld [vmem:[%s9632_s16 + $0x80] sm:$0xff] }
  0xbd   :  { %9947 = vst [vmem:[#allocation194_spill] sm:$0xff] %v7585_v43  ;;  %v7610_v43 = vld [vmem:[%s9632_s16 + $0x88] sm:$0xff] }
  0xbe   :  { %9948 = vst [vmem:[#allocation195_spill] sm:$0xff] %v7590_v39  ;;  %v7615_v39 = vld [vmem:[%s9632_s16 + $0x90] sm:$0xff] }
  0xbf   :  { %9949 = vst [vmem:[#allocation196_spill] sm:$0xff] %v7595_v36  ;;  %v7620_v36 = vld [vmem:[%s9632_s16 + $0x98] sm:$0xff] }
  0xc0   :  { %9950 = vst [vmem:[#allocation197_spill] sm:$0xff] %v7600_v35  ;;  %v7625_v35 = vld [vmem:[%s9632_s16 + $0xa0] sm:$0xff] }
  0xc1   :  { %9951 = vst [vmem:[#allocation198_spill] sm:$0xff] %v7605_v34  ;;  %v7630_v34 = vld [vmem:[%s9632_s16 + $0xa8] sm:$0xff] }
  0xc2   :  { %9952 = vst [vmem:[#allocation199_spill] sm:$0xff] %v7610_v43  ;;  %v7635_v43 = vld [vmem:[%s9632_s16 + $0xb0] sm:$0xff] }
  0xc3   :  { %9953 = vst [vmem:[#allocation200_spill] sm:$0xff] %v7615_v39  ;;  %v7640_v39 = vld [vmem:[%s9632_s16 + $0xb8] sm:$0xff] }
  0xc4   :  { %9954 = vst [vmem:[#allocation201_spill] sm:$0xff] %v7620_v36  ;;  %v7645_v36 = vld [vmem:[%s9632_s16 + $0xc0] sm:$0xff] }
  0xc5   :  { %9955 = vst [vmem:[#allocation202_spill] sm:$0xff] %v7625_v35  ;;  %v7650_v35 = vld [vmem:[%s9632_s16 + $0xc8] sm:$0xff] }
  0xc6   :  { %9956 = vst [vmem:[#allocation203_spill] sm:$0xff] %v7630_v34  ;;  %v7655_v34 = vld [vmem:[%s9632_s16 + $0xd0] sm:$0xff] }
  0xc7   :  { %9957 = vst [vmem:[#allocation204_spill] sm:$0xff] %v7635_v43  ;;  %v7660_v43 = vld [vmem:[%s9632_s16 + $0xd8] sm:$0xff] }
  0xc8   :  { %9958 = vst [vmem:[#allocation205_spill] sm:$0xff] %v7640_v39  ;;  %v7665_v39 = vld [vmem:[%s9632_s16 + $0xe0] sm:$0xff] }
  0xc9   :  { %9959 = vst [vmem:[#allocation206_spill] sm:$0xff] %v7645_v36  ;;  %v7670_v36 = vld [vmem:[%s9632_s16 + $0xe8] sm:$0xff] }
  0xca   :  { %9960 = vst [vmem:[#allocation207_spill] sm:$0xff] %v7650_v35  ;;  %v7675_v35 = vld [vmem:[%s9632_s16 + $0xf0] sm:$0xff] }
  0xcb   :  { %9961 = vst [vmem:[#allocation208_spill] sm:$0xff] %v7655_v34  ;;  %v7680_v34 = vld [vmem:[%s9632_s16 + $0xf8] sm:$0xff] }
  0xcc   :  { %9962 = vst [vmem:[#allocation209_spill] sm:$0xff] %v7660_v43  ;;  %v618_v43 = vld [vmem:[%s9967_s25 + $0x10] sm:$0xff] }
  0xcd   :  { %9963 = vst [vmem:[#allocation210_spill] sm:$0xff] %v7665_v39  ;;  %v616_v39 = vld [vmem:[%s9967_s25] sm:$0xff]  ;;  %637 = vperm.xlu1 %6048, %v618_v43  }
  0xce   :  { %9964 = vst [vmem:[#allocation211_spill] sm:$0xff] %v7670_v36  ;;  %627 = vperm.xlu0 %6047, %v616_v39  }
  0xcf   :  { %9965 = vst [vmem:[#allocation212_spill] sm:$0xff] %v7675_v35  ;;  %v620_v35 = vld [vmem:[%s9967_s25 + $0x20] sm:$0xff] }
  0xd0   :  { %9966 = vst [vmem:[#allocation213_spill] sm:$0xff] %v7680_v34  ;;  %647 = vperm.xlu2 %6049, %v620_v35  }
  0xd1   :  { %615 = vsyncadd [#allocation6 + $0x6], 4096  ;;  %v619_v34 = vld [vmem:[%s9967_s25 + $0x18] sm:$0xff]  ;;  %v617_v36 = vld [vmem:[%s9967_s25 + $0x8] sm:$0xff]  ;;  %s9968_s20 = sld [smem:[#allocation279_spill]] }
  0xd2   :  { %v621_v43 = vld [vmem:[%s9967_s25 + $0x28] sm:$0xff]  ;;  %v623_v33 = vld [vmem:[%s9967_s25 + $0x38] sm:$0xff]  ;;  %v622_v35 = vld [vmem:[%s9967_s25 + $0x30] sm:$0xff] }
  0xd5   :  { %642 = vperm.xlu1 %6048, %v619_v34   ;;  %v706_v34 = vld [vmem:[%s9618_s2] sm:$0xf] }
  0xd6   :  { %632 = vperm.xlu0 %6047, %v617_v36   ;;  %v780_v36 = vld [vmem:[%s9619_s3] sm:$0xf]  ;;  %v7726_v38 = vperm.slane %v706_v34, 0  ;;  %v7728_v37 = vperm.slane %v706_v34, 1  ;;  %v7730_v51 = vperm.slane %v706_v34, 2  ;;  %v7732_v44 = vperm.slane %v706_v34, 3 }
  0xd7   :  { %v624_v39 = vld [vmem:[%s9968_s20] sm:$0xf]  ;;  %v7734_v42 = vperm.slane %v780_v36, 0  ;;  %v7736_v41 = vperm.slane %v780_v36, 1  ;;  %v7738_v55 = vperm.slane %v780_v36, 2 }
  0xd8   :  { %652 = vperm.xlu2 %6049, %v621_v43   ;;  %v7715_v43 = vperm.slane %v624_v39, 0  ;;  %v7717_v47 = vperm.slane %v624_v39, 1  ;;  %v7719_v40 = vperm.slane %v624_v39, 2 }
  0xdd   :  { %662 = vperm.xlu1 %6048, %v623_v33   ;;  %v7721_v33 = vperm.slane %v624_v39, 3  ;;  %v7740_v39 = vperm.slane %v780_v36, 3 }
  0xde   :  { %657 = vperm.xlu0 %6047, %v622_v35   ;;  %v822_v35 = vld [vmem:[%s9620_s4] sm:$0xf] }
  0xdf   :  { %v7742_v48 = vperm.slane %v822_v35, 0  ;;  %v7744_v46 = vperm.slane %v822_v35, 1  ;;  %v7746_v45 = vperm.slane %v822_v35, 2  ;;  %v7748_v59 = vperm.slane %v822_v35, 3 }
 0x12a   :  { %v648_v52 = vpop.permute.xlu2 %647 }
 0x12b   :  { %v690_v34 = vmul.f32 %v7715_v43, %v648_v52  ;;  %v691_v50 = vmul.f32 %v7717_v47, %v648_v52  ;;  %v692_v49 = vmul.f32 %v7719_v40, %v648_v52  ;;  %v693_v63 = vmul.f32 %v7721_v33, %v648_v52 }
 0x12c   :  { %v806_v36 = vmul.f32 %v7734_v42, %v648_v52  ;;  %v807_v56 = vmul.f32 %v7736_v41, %v648_v52  ;;  %v808_v54 = vmul.f32 %v7738_v55, %v648_v52  ;;  %v809_v53 = vmul.f32 %v7740_v39, %v648_v52 }
 0x12d   :  { %v7759_v35 = vadd.f32 %v7726_v38, %v690_v34  ;;  %v7762_v60 = vadd.f32 %v7728_v37, %v691_v50  ;;  %v7765_v58 = vadd.f32 %v7730_v51, %v692_v49  ;;  %v7768_v57 = vadd.f32 %v7732_v44, %v693_v63 }
 0x12e   :  { %v7771_v3 = vadd.f32 %v7742_v48, %v806_v36  ;;  %v7774_v0 = vadd.f32 %v7744_v46, %v807_v56  ;;  %v7777_v52 = vadd.f32 %v7746_v45, %v808_v54  ;;  %v7780_v34 = vadd.f32 %v7748_v59, %v809_v53 }
 0x12f   :  { %9969 = vst [vmem:[#allocation214_spill] sm:$0xff] %v7759_v35 }
 0x130   :  { %9970 = vst [vmem:[#allocation215_spill] sm:$0xff] %v7762_v60 }
 0x131   :  { %9971 = vst [vmem:[#allocation216_spill] sm:$0xff] %v7765_v58 }
 0x132   :  { %9972 = vst [vmem:[#allocation217_spill] sm:$0xff] %v7768_v57  ;;  %v653_v50 = vpop.permute.xlu2 %652 }
 0x133   :  { %9973 = vst [vmem:[#allocation218_spill] sm:$0xff] %v7771_v3  ;;  %v694_v60 = vmul.f32 %v7715_v43, %v653_v50  ;;  %v695_v49 = vmul.f32 %v7717_v47, %v653_v50  ;;  %v696_v63 = vmul.f32 %v7719_v40, %v653_v50  ;;  %v697_v58 = vmul.f32 %v7721_v33, %v653_v50 }
 0x134   :  { %9974 = vst [vmem:[#allocation219_spill] sm:$0xff] %v7774_v0  ;;  %v810_v36 = vmul.f32 %v7734_v42, %v653_v50  ;;  %v811_v56 = vmul.f32 %v7736_v41, %v653_v50  ;;  %v812_v57 = vmul.f32 %v7738_v55, %v653_v50  ;;  %v813_v54 = vmul.f32 %v7740_v39, %v653_v50 }
 0x135   :  { %9975 = vst [vmem:[#allocation220_spill] sm:$0xff] %v7777_v52  ;;  %v7791_v53 = vadd.f32 %v7726_v38, %v694_v60  ;;  %v7794_v35 = vadd.f32 %v7728_v37, %v695_v49  ;;  %v7797_v52 = vadd.f32 %v7730_v51, %v696_v63 }
 0x136   :  { %9976 = vst [vmem:[#allocation221_spill] sm:$0xff] %v7780_v34  ;;  %v7800_v34 = vadd.f32 %v7732_v44, %v697_v58  ;;  %v7803_v0 = vadd.f32 %v7742_v48, %v810_v36  ;;  %v7806_v3 = vadd.f32 %v7744_v46, %v811_v56  ;;  %v7809_v50 = vadd.f32 %v7746_v45, %v812_v57 }
 0x137   :  { %9977 = vst [vmem:[#allocation222_spill] sm:$0xff] %v7791_v53  ;;  %v7812_v60 = vadd.f32 %v7748_v59, %v813_v54 }
 0x138   :  { %9978 = vst [vmem:[#allocation223_spill] sm:$0xff] %v7794_v35 }
 0x139   :  { %9979 = vst [vmem:[#allocation224_spill] sm:$0xff] %v7797_v52 }
 0x13a   :  { %9980 = vst [vmem:[#allocation225_spill] sm:$0xff] %v7800_v34 }
 0x13b   :  { %9981 = vst [vmem:[#allocation226_spill] sm:$0xff] %v7803_v0 }
 0x13c   :  { %9982 = vst [vmem:[#allocation227_spill] sm:$0xff] %v7806_v3 }
 0x13d   :  { %9983 = vst [vmem:[#allocation228_spill] sm:$0xff] %v7809_v50 }
 0x13e   :  { %9984 = vst [vmem:[#allocation229_spill] sm:$0xff] %v7812_v60 }
 0x13f   :  { %v638_v49 = vpop.permute.xlu1 %637 }
 0x140   :  { %v628_v35 = vpop.permute.xlu0 %627  ;;  %v682_v63 = vmul.f32 %v7715_v43, %v638_v49  ;;  %v683_v52 = vmul.f32 %v7717_v47, %v638_v49  ;;  %v684_v58 = vmul.f32 %v7719_v40, %v638_v49  ;;  %v685_v36 = vmul.f32 %v7721_v33, %v638_v49 }
 0x141   :  { %v798_v34 = vmul.f32 %v7734_v42, %v638_v49  ;;  %v799_v56 = vmul.f32 %v7736_v41, %v638_v49  ;;  %v800_v57 = vmul.f32 %v7738_v55, %v638_v49  ;;  %v801_v53 = vmul.f32 %v7740_v39, %v638_v49 }
 0x142   :  { %v7823_v54 = vadd.f32 %v7726_v38, %v682_v63  ;;  %v7826_v50 = vadd.f32 %v7728_v37, %v683_v52  ;;  %v7829_v60 = vadd.f32 %v7730_v51, %v684_v58  ;;  %v7832_v3 = vadd.f32 %v7732_v44, %v685_v36 }
 0x143   :  { %v7835_v0 = vadd.f32 %v7742_v48, %v798_v34  ;;  %v7838_v62 = vadd.f32 %v7744_v46, %v799_v56  ;;  %v7841_v49 = vadd.f32 %v7746_v45, %v800_v57  ;;  %v7844_v63 = vadd.f32 %v7748_v59, %v801_v53 }
 0x144   :  { %9985 = vst [vmem:[#allocation230_spill] sm:$0xff] %v7823_v54  ;;  %v674_v52 = vmul.f32 %v7715_v43, %v628_v35  ;;  %v675_v58 = vmul.f32 %v7717_v47, %v628_v35  ;;  %v677_v36 = vmul.f32 %v7721_v33, %v628_v35  ;;  %v790_v34 = vmul.f32 %v7734_v42, %v628_v35 }
 0x145   :  { %9986 = vst [vmem:[#allocation231_spill] sm:$0xff] %v7826_v50  ;;  %v792_v56 = vmul.f32 %v7738_v55, %v628_v35  ;;  %v793_v57 = vmul.f32 %v7740_v39, %v628_v35 }
 0x146   :  { %9987 = vst [vmem:[#allocation232_spill] sm:$0xff] %v7829_v60  ;;  %v676_v60 = vmul.f32 %v7719_v40, %v628_v35  ;;  %v7858_v53 = vadd.f32 %v7728_v37, %v675_v58 }
 0x147   :  { %9988 = vst [vmem:[#allocation233_spill] sm:$0xff] %v7832_v3  ;;  %v7867_v3 = vadd.f32 %v7742_v48, %v790_v34  ;;  %v643_v58 = vpop.permute.xlu1 %642 }
 0x148   :  { %9989 = vst [vmem:[#allocation234_spill] sm:$0xff] %v7835_v0  ;;  %v791_v0 = vmul.f32 %v7736_v41, %v628_v35  ;;  %v7873_v35 = vadd.f32 %v7746_v45, %v792_v56  ;;  %v633_v54 = vpop.permute.xlu0 %632  ;;  %v689_v34 = vmul.f32 %v7721_v33, %v643_v58  ;;  %v804_v56 = vmul.f32 %v7738_v55, %v643_v58 }
 0x149   :  { %9990 = vst [vmem:[#allocation235_spill] sm:$0xff] %v7838_v62  ;;  %v7864_v62 = vadd.f32 %v7732_v44, %v677_v36  ;;  %v688_v36 = vmul.f32 %v7719_v40, %v643_v58 }
 0x14a   :  { %9991 = vst [vmem:[#allocation236_spill] sm:$0xff] %v7841_v49  ;;  %v7855_v49 = vadd.f32 %v7726_v38, %v674_v52  ;;  %v7870_v50 = vadd.f32 %v7744_v46, %v791_v0  ;;  %v7876_v52 = vadd.f32 %v7748_v59, %v793_v57  ;;  %v803_v0 = vmul.f32 %v7736_v41, %v643_v58 }
 0x14b   :  { %9992 = vst [vmem:[#allocation237_spill] sm:$0xff] %v7844_v63  ;;  %v7861_v63 = vadd.f32 %v7730_v51, %v676_v60  ;;  %v686_v60 = vmul.f32 %v7715_v43, %v643_v58 }
 0x14c   :  { %9993 = vst [vmem:[#allocation238_spill] sm:$0xff] %v7855_v49  ;;  %v7902_v49 = vadd.f32 %v7744_v46, %v803_v0  ;;  %v796_v0 = vmul.f32 %v7738_v55, %v633_v54 }
 0x14d   :  { %9994 = vst [vmem:[#allocation239_spill] sm:$0xff] %v7858_v53  ;;  %v7887_v57 = vadd.f32 %v7726_v38, %v686_v60 }
 0x14e   :  { %9995 = vst [vmem:[#allocation240_spill] sm:$0xff] %v7861_v63  ;;  %v687_v63 = vmul.f32 %v7717_v47, %v643_v58 }
 0x14f   :  { %9996 = vst [vmem:[#allocation241_spill] sm:$0xff] %v7864_v62  ;;  %v7896_v62 = vadd.f32 %v7732_v44, %v689_v34  ;;  %v681_v34 = vmul.f32 %v7721_v33, %v633_v54 }
 0x150   :  { %9997 = vst [vmem:[#allocation242_spill] sm:$0xff] %v7867_v3  ;;  %v802_v3 = vmul.f32 %v7734_v42, %v643_v58 }
 0x151   :  { %9998 = vst [vmem:[#allocation243_spill] sm:$0xff] %v7870_v50  ;;  %v7893_v50 = vadd.f32 %v7730_v51, %v688_v36  ;;  %v679_v36 = vmul.f32 %v7717_v47, %v633_v54 }
 0x152   :  { %9999 = vst [vmem:[#allocation244_spill] sm:$0xff] %v7873_v35  ;;  %v805_v35 = vmul.f32 %v7740_v39, %v643_v58  ;;  %v7899_v53 = vadd.f32 %v7742_v48, %v802_v3  ;;  %v7905_v58 = vadd.f32 %v7746_v45, %v804_v56  ;;  %v794_v3 = vmul.f32 %v7734_v42, %v633_v54 }
 0x153   :  { %10000 = vst [vmem:[#allocation245_spill] sm:$0xff] %v7876_v52  ;;  %v7890_v52 = vadd.f32 %v7728_v37, %v687_v63  ;;  %v678_v63 = vmul.f32 %v7715_v43, %v633_v54  ;;  %v797_v56 = vmul.f32 %v7740_v39, %v633_v54 }
 0x154   :  { %10001 = vst [vmem:[#allocation246_spill] sm:$0xff] %v7887_v57  ;;  %v7908_v60 = vadd.f32 %v7748_v59, %v805_v35  ;;  %v7922_v35 = vadd.f32 %v7728_v37, %v679_v36  ;;  %v663_v36 = vpop.permute.xlu1 %662 }
 0x155   :  { %10002 = vst [vmem:[#allocation247_spill] sm:$0xff] %v7890_v52  ;;  %v702_v57 = vmul.f32 %v7715_v43, %v663_v36 }
 0x156   :  { %10003 = vst [vmem:[#allocation248_spill] sm:$0xff] %v7893_v50  ;;  %v680_v50 = vmul.f32 %v7719_v40, %v633_v54 }
 0x157   :  { %10004 = vst [vmem:[#allocation249_spill] sm:$0xff] %v7896_v62  ;;  %v7931_v62 = vadd.f32 %v7742_v48, %v794_v3  ;;  %v818_v3 = vmul.f32 %v7734_v42, %v663_v36 }
 0x158   :  { %10005 = vst [vmem:[#allocation250_spill] sm:$0xff] %v7899_v53  ;;  %v795_v53 = vmul.f32 %v7736_v41, %v633_v54  ;;  %v7937_v54 = vadd.f32 %v7746_v45, %v796_v0  ;;  %v821_v0 = vmul.f32 %v7740_v39, %v663_v36 }
 0x159   :  { %10006 = vst [vmem:[#allocation251_spill] sm:$0xff] %v7902_v49  ;;  %v7928_v49 = vadd.f32 %v7732_v44, %v681_v34  ;;  %v704_v34 = vmul.f32 %v7719_v40, %v663_v36 }
 0x15a   :  { %10007 = vst [vmem:[#allocation252_spill] sm:$0xff] %v7905_v58  ;;  %v7919_v58 = vadd.f32 %v7726_v38, %v678_v63  ;;  %v7934_v52 = vadd.f32 %v7744_v46, %v795_v53  ;;  %v7940_v63 = vadd.f32 %v7748_v59, %v797_v56  ;;  %v819_v53 = vmul.f32 %v7736_v41, %v663_v36 }
 0x15b   :  { %10008 = vst [vmem:[#allocation253_spill] sm:$0xff] %v7908_v60  ;;  %v7925_v60 = vadd.f32 %v7730_v51, %v680_v50  ;;  %v703_v50 = vmul.f32 %v7717_v47, %v663_v36  ;;  %v7951_v56 = vadd.f32 %v7726_v38, %v702_v57  ;;  %v7972_v57 = vadd.f32 %v7748_v59, %v821_v0 }
 0x15c   :  { %10009 = vst [vmem:[#allocation254_spill] sm:$0xff] %v7919_v58  ;;  %v7966_v58 = vadd.f32 %v7744_v46, %v819_v53 }
 0x15d   :  { %10010 = vst [vmem:[#allocation255_spill] sm:$0xff] %v7922_v35  ;;  %v7963_v35 = vadd.f32 %v7742_v48, %v818_v3 }
 0x15e   :  { %10011 = vst [vmem:[#allocation256_spill] sm:$0xff] %v7925_v60  ;;  %v705_v60 = vmul.f32 %v7721_v33, %v663_v36 }
 0x15f   :  { %10012 = vst [vmem:[#allocation257_spill] sm:$0xff] %v7928_v49 }
 0x160   :  { %10013 = vst [vmem:[#allocation258_spill] sm:$0xff] %v7931_v62  ;;  %v7957_v62 = vadd.f32 %v7730_v51, %v704_v34  ;;  %v7960_v49 = vadd.f32 %v7732_v44, %v705_v60 }
 0x161   :  { %10014 = vst [vmem:[#allocation259_spill] sm:$0xff] %v7934_v52  ;;  %v820_v52 = vmul.f32 %v7738_v55, %v663_v36 }
 0x162   :  { %10015 = vst [vmem:[#allocation260_spill] sm:$0xff] %v7937_v54  ;;  %v658_v54 = vpop.permute.xlu0 %657 }
 0x163   :  { %10016 = vst [vmem:[#allocation261_spill] sm:$0xff] %v7940_v63  ;;  %v7954_v63 = vadd.f32 %v7728_v37, %v703_v50  ;;  %v7969_v36 = vadd.f32 %v7746_v45, %v820_v52  ;;  %v698_v50 = vmul.f32 %v7715_v43, %v658_v54  ;;  %v699_v34 = vmul.f32 %v7717_v47, %v658_v54 }
 0x164   :  { %10017 = vst [vmem:[#allocation262_spill] sm:$0xff] %v7951_v56  ;;  %v701_v60 = vmul.f32 %v7721_v33, %v658_v54  ;;  %v814_v3 = vmul.f32 %v7734_v42, %v658_v54  ;;  %v816_v53 = vmul.f32 %v7738_v55, %v658_v54  ;;  %v817_v52 = vmul.f32 %v7740_v39, %v658_v54 }
 0x165   :  { %10018 = vst [vmem:[#allocation263_spill] sm:$0xff] %v7954_v63  ;;  %v7983_v63 = vadd.f32 %v7726_v38, %v698_v50  ;;  %v7986_v0 = vadd.f32 %v7728_v37, %v699_v34 }
 0x166   :  { %10019 = vst [vmem:[#allocation264_spill] sm:$0xff] %v7957_v62  ;;  %v700_v62 = vmul.f32 %v7719_v40, %v658_v54  ;;  %v7992_v40 = vadd.f32 %v7732_v44, %v701_v60  ;;  %v7995_v42 = vadd.f32 %v7742_v48, %v814_v3  ;;  %v8001_v55 = vadd.f32 %v7746_v45, %v816_v53 }
 0x167   :  { %10020 = vst [vmem:[#allocation265_spill] sm:$0xff] %v7960_v49  ;;  %v815_v49 = vmul.f32 %v7736_v41, %v658_v54  ;;  %v8004_v38 = vadd.f32 %v7748_v59, %v817_v52 }
 0x168   :  { %10021 = vst [vmem:[#allocation266_spill] sm:$0xff] %v7963_v35  ;;  %v7989_v47 = vadd.f32 %v7730_v51, %v700_v62 }
 0x169   :  { %10022 = vst [vmem:[#allocation267_spill] sm:$0xff] %v7966_v58  ;;  %v7998_v41 = vadd.f32 %v7744_v46, %v815_v49 }
 0x16a   :  { %10023 = vst [vmem:[#allocation268_spill] sm:$0xff] %v7969_v36 }
 0x16b   :  { %10024 = vst [vmem:[#allocation269_spill] sm:$0xff] %v7972_v57 }
 0x16c   :  { %10025 = vst [vmem:[#allocation270_spill] sm:$0xff] %v7983_v63 }
 0x16d   :  { %10026 = vst [vmem:[#allocation271_spill] sm:$0xff] %v7986_v0 }
 0x16e   :  { %10027 = vst [vmem:[#allocation272_spill] sm:$0xff] %v7989_v47 }
 0x16f   :  { %10028 = vst [vmem:[#allocation273_spill] sm:$0xff] %v7992_v40 }
 0x170   :  { %10029 = vst [vmem:[#allocation274_spill] sm:$0xff] %v7995_v42 }
 0x171   :  { %10030 = vst [vmem:[#allocation275_spill] sm:$0xff] %v7998_v41 }
 0x172   :  { %10031 = vst [vmem:[#allocation276_spill] sm:$0xff] %v8001_v55 }
 0x173   :  { %10032 = vst [vmem:[#allocation277_spill] sm:$0xff] %v8004_v38 }
 0x174   :  { %6453 = dma.done.wait [#allocation6], 4096 }
 0x175   :  { %6454 = vsyncadd [#allocation6], 4294963200  ;;  %1202 = vmatpush.msra.mxu0 %v6705_v29  ;;  %1222 = vmatpush.msra.mxu1 %v6710_v30 }
 0x176   :  { %6455 = dma.done.wait [#allocation6 + $0x1], 4096 }
 0x177   :  { %6456 = vsyncadd [#allocation6 + $0x1], 4294963200  ;;  %1262 = vmatpush.msra.mxu3 %v6720_v32  ;;  %1242 = vmatpush.msra.mxu2 %v6715_v31  ;;  %v9699_v37 = vmov 0.0   ;;  %v10033_v44 = vld [vmem:[#allocation51_spill] sm:$0xff]  ;;  %v10034_v45 = vld [vmem:[#allocation53_spill] sm:$0xff]  ;;  %v10062_v57 = vmov 0.0  }
 0x178   :  { %1203 = vmatpush.msra.mxu0 %v6685_v25  ;;  %1223 = vmatpush.msra.mxu1 %v6690_v26  ;;  %v10035_v46 = vld [vmem:[#allocation22_spill] sm:$0xff]  ;;  %v10036_v48 = vld [vmem:[#allocation47_spill] sm:$0xff]  ;;  %v10037_v51 = vld [vmem:[#allocation48_spill] sm:$0xff] }
 0x179   :  { %1263 = vmatpush.msra.mxu3 %v6700_v28  ;;  %1243 = vmatpush.msra.mxu2 %v6695_v27  ;;  %v10038_v59 = vld [vmem:[#allocation50_spill] sm:$0xff]  ;;  %v10039_v62 = vld [vmem:[#allocation43_spill] sm:$0xff]  ;;  %v10040_v43 = vld [vmem:[#allocation44_spill] sm:$0xff] }
 0x17a   :  { %1204 = vmatpush.msra.mxu0 %v6665_v21  ;;  %1224 = vmatpush.msra.mxu1 %v6670_v22  ;;  %v10041_v33 = vld [vmem:[#allocation46_spill] sm:$0xff]  ;;  %v10042_v39 = vld [vmem:[#allocation52_spill] sm:$0xff]  ;;  %v10043_v49 = vld [vmem:[#allocation39_spill] sm:$0xff] }
 0x17b   :  { %1264 = vmatpush.msra.mxu3 %v6680_v24  ;;  %1244 = vmatpush.msra.mxu2 %v6675_v23  ;;  %v10044_v54 = vld [vmem:[#allocation40_spill] sm:$0xff]  ;;  %v10045_v50 = vld [vmem:[#allocation42_spill] sm:$0xff]  ;;  %v10046_v34 = vld [vmem:[#allocation49_spill] sm:$0xff] }
 0x17c   :  { %1205 = vmatpush.msra.mxu0 %v6645_v17  ;;  %1225 = vmatpush.msra.mxu1 %v6650_v18  ;;  %v10047_v60 = vld [vmem:[#allocation35_spill] sm:$0xff]  ;;  %v10048_v3 = vld [vmem:[#allocation36_spill] sm:$0xff]  ;;  %v10049_v53 = vld [vmem:[#allocation38_spill] sm:$0xff] }
 0x17d   :  { %1265 = vmatpush.msra.mxu3 %v6660_v20  ;;  %1245 = vmatpush.msra.mxu2 %v6655_v19  ;;  %v10050_v52 = vld [vmem:[#allocation45_spill] sm:$0xff]  ;;  %v10052_v56 = vld [vmem:[#allocation32_spill] sm:$0xff]  ;;  %v10053_v47 = vld [vmem:[#allocation34_spill] sm:$0xff] }
 0x17e   :  { %1206 = vmatpush.msra.mxu0 %v6625_v13  ;;  %1226 = vmatpush.msra.mxu1 %v6630_v14  ;;  %v10054_v40 = vld [vmem:[#allocation41_spill] sm:$0xff]  ;;  %v10055_v0 = vld [vmem:[#allocation27_spill] sm:$0xff]  ;;  %v10056_v63 = vld [vmem:[#allocation28_spill] sm:$0xff] }
 0x17f   :  { %1266 = vmatpush.msra.mxu3 %v6640_v16  ;;  %1246 = vmatpush.msra.mxu2 %v6635_v15  ;;  %v10057_v55 = vld [vmem:[#allocation30_spill] sm:$0xff]  ;;  %v10058_v38 = vld [vmem:[#allocation37_spill] sm:$0xff]  ;;  %v10059_v41 = vld [vmem:[#allocation23_spill] sm:$0xff] }
 0x180   :  { %1207 = vmatpush.msra.mxu0 %v6605_v9  ;;  %1227 = vmatpush.msra.mxu1 %v6610_v10  ;;  %v10060_v42 = vld [vmem:[#allocation24_spill] sm:$0xff]  ;;  %v10061_v36 = vld [vmem:[#allocation26_spill] sm:$0xff]  ;;  %v10063_v58 = vld [vmem:[#allocation33_spill] sm:$0xff] }
 0x181   :  { %1267 = vmatpush.msra.mxu3 %v6620_v12  ;;  %1247 = vmatpush.msra.mxu2 %v6615_v11  ;;  %v10064_v35 = vld [vmem:[#allocation29_spill] sm:$0xff] }
 0x182   :  { %1208 = vmatpush.msra.mxu0 %v6585_v5  ;;  %1228 = vmatpush.msra.mxu1 %v6590_v6 }
 0x183   :  { %1268 = vmatpush.msra.mxu3 %v6600_v8  ;;  %1248 = vmatpush.msra.mxu2 %v6595_v7 }
 0x184   :  { %1209 = vmatpush.msra.mxu0 %v6565_v1  ;;  %1229 = vmatpush.msra.mxu1 %v6570_v2 }
 0x185   :  { %1269 = vmatpush.msra.mxu3 %v6580_v4  ;;  %1210 = vmatmul.f32.vlgmr.msra.gmra.mxu0 %v9699_v37 }
 0x186   :  { %1230 = vmatmul.f32.vlgmr.msra.gmra.mxu1 %v9699_v37  ;;  %1270 = vmatmul.f32.vlgmr.msra.gmra.mxu3 %v9699_v37 }
 0x187   :  { %1418 = vmatpush.msrb.mxu0 %v6865_v61  ;;  %1438 = vmatpush.msrb.mxu1 %v10033_v44 }
 0x188   :  { %1478 = vmatpush.msrb.mxu3 %v10034_v45  ;;  %1249 = vmatpush.msra.mxu2 %v10035_v46 }
 0x189   :  { %1419 = vmatpush.msrb.mxu0 %v10036_v48  ;;  %1439 = vmatpush.msrb.mxu1 %v10037_v51 }
 0x18a   :  { %1479 = vmatpush.msrb.mxu3 %v10038_v59  ;;  %1250 = vmatmul.f32.vlgmr.msra.gmra.mxu2 %v9699_v37  ;;  %v10051_v37 = vld [vmem:[#allocation31_spill] sm:$0xff] }
 0x18b   :  { %1420 = vmatpush.msrb.mxu0 %v10039_v62  ;;  %1440 = vmatpush.msrb.mxu1 %v10040_v43 }
 0x18c   :  { %1480 = vmatpush.msrb.mxu3 %v10041_v33  ;;  %1458 = vmatpush.msrb.mxu2 %v10042_v39 }
 0x18d   :  { %1421 = vmatpush.msrb.mxu0 %v10043_v49  ;;  %1441 = vmatpush.msrb.mxu1 %v10044_v54 }
 0x18e   :  { %1481 = vmatpush.msrb.mxu3 %v10045_v50  ;;  %1459 = vmatpush.msrb.mxu2 %v10046_v34 }
 0x18f   :  { %1422 = vmatpush.msrb.mxu0 %v10047_v60  ;;  %1442 = vmatpush.msrb.mxu1 %v10048_v3 }
 0x190   :  { %1482 = vmatpush.msrb.mxu3 %v10049_v53  ;;  %1460 = vmatpush.msrb.mxu2 %v10050_v52 }
 0x191   :  { %1423 = vmatpush.msrb.mxu0 %v10051_v37  ;;  %1443 = vmatpush.msrb.mxu1 %v10052_v56 }
 0x192   :  { %1483 = vmatpush.msrb.mxu3 %v10053_v47  ;;  %1461 = vmatpush.msrb.mxu2 %v10054_v40 }
 0x193   :  { %1424 = vmatpush.msrb.mxu0 %v10055_v0  ;;  %1444 = vmatpush.msrb.mxu1 %v10056_v63 }
 0x194   :  { %1484 = vmatpush.msrb.mxu3 %v10057_v55  ;;  %1462 = vmatpush.msrb.mxu2 %v10058_v38 }
 0x195   :  { %1425 = vmatpush.msrb.mxu0 %v10059_v41  ;;  %1445 = vmatpush.msrb.mxu1 %v10060_v42 }
 0x196   :  { %1485 = vmatpush.msrb.mxu3 %v10061_v36  ;;  %1426 = vmatmul.f32.vlgmr.msrb.gmra.mxu0 %v10062_v57  ;;  %v10065_v36 = vld [vmem:[#allocation25_spill] sm:$0xff] }
 0x197   :  { %1446 = vmatmul.f32.vlgmr.msrb.gmra.mxu1 %v10062_v57  ;;  %1486 = vmatmul.f32.vlgmr.msrb.gmra.mxu3 %v10062_v57 }
 0x198   :  { %1463 = vmatpush.msrb.mxu2 %v10063_v58  ;;  %1570 = vmatpush.msra.mxu0 %v6705_v29 }
 0x199   :  { %1590 = vmatpush.msra.mxu1 %v6710_v30  ;;  %1630 = vmatpush.msra.mxu3 %v6720_v32 }
 0x19a   :  { %1464 = vmatpush.msrb.mxu2 %v10064_v35  ;;  %1571 = vmatpush.msra.mxu0 %v6685_v25 }
 0x19b   :  { %1591 = vmatpush.msra.mxu1 %v6690_v26  ;;  %1631 = vmatpush.msra.mxu3 %v6700_v28 }
 0x19c   :  { %1465 = vmatpush.msrb.mxu2 %v10065_v36  ;;  %1572 = vmatpush.msra.mxu0 %v6665_v21 }
 0x19d   :  { %1466 = vmatmul.f32.vlgmr.msrb.gmra.mxu2 %v10062_v57  ;;  %1592 = vmatpush.msra.mxu1 %v6670_v22  ;;  %v10066_v57 = vld [vmem:[#allocation26_spill] sm:$0xff] }
 0x19e   :  { %1610 = vmatpush.msra.mxu2 %v6715_v31  ;;  %1632 = vmatpush.msra.mxu3 %v6680_v24 }
 0x19f   :  { %1573 = vmatpush.msra.mxu0 %v6645_v17  ;;  %1593 = vmatpush.msra.mxu1 %v6650_v18 }
 0x1a0   :  { %1611 = vmatpush.msra.mxu2 %v6695_v27  ;;  %1633 = vmatpush.msra.mxu3 %v6660_v20 }
 0x1a1   :  { %1574 = vmatpush.msra.mxu0 %v6625_v13  ;;  %1594 = vmatpush.msra.mxu1 %v6630_v14 }
 0x1a2   :  { %1612 = vmatpush.msra.mxu2 %v6675_v23  ;;  %1634 = vmatpush.msra.mxu3 %v6640_v16 }
 0x1a3   :  { %1575 = vmatpush.msra.mxu0 %v6605_v9  ;;  %1595 = vmatpush.msra.mxu1 %v6610_v10 }
 0x1a4   :  { %1613 = vmatpush.msra.mxu2 %v6655_v19  ;;  %1635 = vmatpush.msra.mxu3 %v6620_v12 }
 0x1a5   :  { %1576 = vmatpush.msra.mxu0 %v6585_v5  ;;  %1596 = vmatpush.msra.mxu1 %v6590_v6 }
 0x1a6   :  { %1614 = vmatpush.msra.mxu2 %v6635_v15  ;;  %1636 = vmatpush.msra.mxu3 %v6600_v8 }
 0x1a7   :  { %1577 = vmatpush.msra.mxu0 %v6565_v1  ;;  %1597 = vmatpush.msra.mxu1 %v6570_v2 }
 0x1a8   :  { %1615 = vmatpush.msra.mxu2 %v6615_v11  ;;  %1637 = vmatpush.msra.mxu3 %v6580_v4 }
 0x1a9   :  { %1722 = vmatpush.msrb.mxu0 %v6865_v61  ;;  %1742 = vmatpush.msrb.mxu1 %v10033_v44 }
 0x1aa   :  { %1616 = vmatpush.msra.mxu2 %v6595_v7  ;;  %1782 = vmatpush.msrb.mxu3 %v10034_v45 }
 0x1ab   :  { %1723 = vmatpush.msrb.mxu0 %v10036_v48  ;;  %1743 = vmatpush.msrb.mxu1 %v10037_v51 }
 0x1ac   :  { %1617 = vmatpush.msra.mxu2 %v10035_v46  ;;  %1783 = vmatpush.msrb.mxu3 %v10038_v59 }
 0x1ad   :  { %1724 = vmatpush.msrb.mxu0 %v10039_v62  ;;  %1744 = vmatpush.msrb.mxu1 %v10040_v43 }
 0x1ae   :  { %1762 = vmatpush.msrb.mxu2 %v10042_v39  ;;  %1784 = vmatpush.msrb.mxu3 %v10041_v33 }
 0x1af   :  { %1725 = vmatpush.msrb.mxu0 %v10043_v49  ;;  %1745 = vmatpush.msrb.mxu1 %v10044_v54 }
 0x1b0   :  { %1763 = vmatpush.msrb.mxu2 %v10046_v34  ;;  %1785 = vmatpush.msrb.mxu3 %v10045_v50 }
 0x1b1   :  { %1726 = vmatpush.msrb.mxu0 %v10047_v60  ;;  %1746 = vmatpush.msrb.mxu1 %v10048_v3 }
 0x1b2   :  { %1764 = vmatpush.msrb.mxu2 %v10050_v52  ;;  %1786 = vmatpush.msrb.mxu3 %v10049_v53  ;;  %v10068_v53 = vld [vmem:[#allocation239_spill] sm:$0xff] }
 0x1b3   :  { %1727 = vmatpush.msrb.mxu0 %v10051_v37  ;;  %1747 = vmatpush.msrb.mxu1 %v10052_v56  ;;  %v10067_v56 = vld [vmem:[#allocation238_spill] sm:$0xff] }
 0x1b4   :  { %1765 = vmatpush.msrb.mxu2 %v10054_v40  ;;  %1787 = vmatpush.msrb.mxu3 %v10053_v47 }
 0x1b5   :  { %1728 = vmatpush.msrb.mxu0 %v10055_v0  ;;  %1748 = vmatpush.msrb.mxu1 %v10056_v63 }
 0x1b6   :  { %1766 = vmatpush.msrb.mxu2 %v10058_v38  ;;  %1788 = vmatpush.msrb.mxu3 %v10057_v55 }
 0x1b7   :  { %1729 = vmatpush.msrb.mxu0 %v10059_v41  ;;  %1749 = vmatpush.msrb.mxu1 %v10060_v42  ;;  %v10069_v41 = vld [vmem:[#allocation241_spill] sm:$0xff] }
 0x1b8   :  { %1767 = vmatpush.msrb.mxu2 %v10063_v58  ;;  %1789 = vmatpush.msrb.mxu3 %v10066_v57 }
 0x1ba   :  { %1768 = vmatpush.msrb.mxu2 %v10064_v35 }
 0x1bc   :  { %1769 = vmatpush.msrb.mxu2 %v10065_v36 }
 0x202   :  { %v1211_v47 = vpop.f32.mrf.mxu0 }
 0x203   :  { %v1274_v37 = vadd.f32 %v1211_v47, %v10067_v56  ;;  %v1231_v0 = vpop.f32.mrf.mxu1  ;;  %v10070_v56 = vld [vmem:[#allocation240_spill] sm:$0xff] }
 0x204   :  { %v1275_v63 = vadd.f32 %v1231_v0, %v10068_v53  ;;  %v10072_v53 = vld [vmem:[#allocation267_spill] sm:$0xff] }
 0x205   :  { %v5963_v38 = vmul.f32 -1.442695, %v1274_v37  ;;  %v10071_v37 = vld [vmem:[#allocation266_spill] sm:$0xff] }
 0x206   :  { %v5964_v55 = vmul.f32 -1.442695, %v1275_v63 }
 0x207   :  { %6050 = vpow2.f32 %v5963_v38 }
 0x208   :  { %6052 = vpow2.f32 %v5964_v55 }
 0x209   :  { %v1271_v58 = vpop.f32.mrf.mxu3 }
 0x20a   :  { %v1277_v3 = vadd.f32 %v1271_v58, %v10069_v41 }
 0x20c   :  { %v5965_v42 = vmul.f32 -1.442695, %v1277_v3 }
 0x20d   :  { %v6051_v60 = vpop.eup %6050  ;;  %v1251_v36 = vpop.f32.mrf.mxu2 }
 0x20e   :  { %v6053_v57 = vpop.eup %6052  ;;  %v1281_v50 = vadd.f32 1.0, %v6051_v60  ;;  %6054 = vpow2.f32 %v5965_v42  ;;  %v1276_v47 = vadd.f32 %v1251_v36, %v10070_v56 }
 0x20f   :  { %v1300_v35 = vadd.f32 1.0, %v6053_v57 }
 0x210   :  { %6056 = vrcp.f32 %v1281_v50  ;;  %v1291_v56 = vand.u32 2147483647, %v1281_v50  ;;  %vm1287_vm0 = vweird.f32 %v1281_v50 }
 0x211   :  { %6058 = vrcp.f32 %v1300_v35  ;;  %vm1306_vm2 = vweird.f32 %v1300_v35 }
 0x212   :  { %6060 = vtanh.f32 %v1276_v47  ;;  %vm8152_vm4 = vcmp.eq.f32.partialorder %v1291_v56, 8.507059e+37 }
 0x213   :  { %v1427_v40 = vpop.f32.mrf.mxu0 }
 0x214   :  { %v6055_v0 = vpop.eup %6054  ;;  %v1490_v63 = vadd.f32 %v1427_v40, %v10071_v37  ;;  %v1447_v38 = vpop.f32.mrf.mxu1  ;;  %v1312_v40 = vand.u32 2147483648, %v1300_v35 }
 0x215   :  { %v8147_v55 = vadd.f32 1.0, %v6055_v0  ;;  %v1491_v58 = vadd.f32 %v1447_v38, %v10072_v53  ;;  %v1293_v0 = vand.u32 2147483648, %v1281_v50  ;;  %v1310_v38 = vand.u32 2147483647, %v1300_v35 }
 0x216   :  { %v6057_v41 = vpop.eup %6056  ;;  %v5966_v3 = vmul.f32 -1.442695, %v1490_v63  ;;  %v10073_v63 = vld [vmem:[#allocation269_spill] sm:$0xff] }
 0x217   :  { %v6059_v60 = vpop.eup %6058  ;;  %v1283_v42 = vmul.f32 %v6057_v41, %v1281_v50  ;;  %6062 = vrcp.f32 %v8147_v55  ;;  %v5967_v57 = vmul.f32 -1.442695, %v1491_v58  ;;  %vm1288_vm1 = vweird.f32 %v6057_v41 }
 0x218   :  { %v1302_v54 = vmul.f32 %v6059_v60, %v1300_v35  ;;  %6064 = vpow2.f32 %v5966_v3  ;;  %v6061_v53 = vpop.eup %6060  ;;  %vm1307_vm3 = vweird.f32 %v6059_v60  ;;  %vm1289_vm5 = vmor %vm1287_vm0, %vm1288_vm1  ;;  %vm1311_vm7 = vcmp.eq.f32.partialorder %v1310_v38, 8.507059e+37  ;;  %v10076_v38 = vld [vmem:[#allocation268_spill] sm:$0xff] }
 0x219   :  { %v1284_v36 = vsub.f32 1.0, %v1283_v42  ;;  %6066 = vpow2.f32 %v5967_v57  ;;  %v1313_v57 = vor.u32 1.1754944e-38, %v1312_v40  ;;  %vm1308_vm6 = vmor %vm1306_vm2, %vm1307_vm3  ;;  %vm1326_vm8 = vweird.f32 %v8147_v55 }
 0x21a   :  { %v1303_v49 = vsub.f32 1.0, %v1302_v54  ;;  %v1487_v37 = vpop.f32.mrf.mxu3 }
 0x21b   :  { %v1285_v33 = vmul.f32 %v6057_v41, %v1284_v36  ;;  %v1493_v47 = vadd.f32 %v1487_v37, %v10073_v63  ;;  %v1294_v36 = vor.u32 1.1754944e-38, %v1293_v0 }
 0x21c   :  { %v1304_v52 = vmul.f32 %v6059_v60, %v1303_v49 }
 0x21d   :  { %v6063_v58 = vpop.eup %6062  ;;  %v1286_v43 = vadd.f32 %v6057_v41, %v1285_v33  ;;  %v5968_v54 = vmul.f32 -1.442695, %v1493_v47 }
 0x21e   :  { %v6065_v42 = vpop.eup %6064  ;;  %v1322_v62 = vmul.f32 %v6063_v58, %v8147_v55  ;;  %v1305_v59 = vadd.f32 %v6059_v60, %v1304_v52  ;;  %vm1327_vm9 = vweird.f32 %v6063_v58 }
 0x21f   :  { %v6067_v37 = vpop.eup %6066  ;;  %v8158_v63 = vadd.f32 1.0, %v6065_v42  ;;  %v1290_v49 = vsel %vm1289_vm5, %v6057_v41, %v1286_v43  ;;  %6068 = vpow2.f32 %v5968_v54  ;;  %v1332_v43 = vand.u32 2147483648, %v8147_v55  ;;  %vm8176_vm10 = vmor %vm1326_vm8, %vm1327_vm9 }
 0x220   :  { %v1323_v33 = vsub.f32 1.0, %v1322_v62  ;;  %v8161_v56 = vadd.f32 1.0, %v6067_v37  ;;  %v1295_v40 = vsel %vm8152_vm4, %v1294_v36, %v1290_v49  ;;  %v1309_v47 = vsel %vm1308_vm6, %v6059_v60, %v1305_v59  ;;  %v1467_v42 = vpop.f32.mrf.mxu2 }
 0x221   :  { %6070 = vrcp.f32 %v8158_v63  ;;  %v1314_v50 = vsel %vm1311_vm7, %v1313_v57, %v1309_v47  ;;  %v1337_v0 = vmul.f32 %v6061_v53, %v1295_v40  ;;  %v1492_v3 = vadd.f32 %v1467_v42, %v10076_v38 }
 0x222   :  { %6072 = vrcp.f32 %v8161_v56  ;;  %v1336_v52 = vmul.f32 0.0, %v1314_v50  ;;  %v1324_v62 = vmul.f32 %v6063_v58, %v1323_v33  ;;  %v1330_v59 = vand.u32 2147483647, %v8147_v55 }
 0x223   :  { %v1333_v49 = vor.u32 1.1754944e-38, %v1332_v43  ;;  %v1528_v50 = vand.u32 2147483648, %v8161_v56  ;;  %v1526_v38 = vand.u32 2147483647, %v8161_v56  ;;  %vm1503_vm14 = vweird.f32 %v8158_v63 }
 0x224   :  { %v8168_v35 = vadd.f32 %v1337_v0, %v1336_v52  ;;  %v1325_v53 = vadd.f32 %v6063_v58, %v1324_v62  ;;  %vm1331_vm11 = vcmp.eq.f32.partialorder %v1330_v59, 8.507059e+37  ;;  %v1509_v0 = vand.u32 2147483648, %v8158_v63 }
 0x225   :  { %v6069_v41 = vpop.eup %6068  ;;  %v1507_v62 = vand.u32 2147483647, %v8158_v63  ;;  %vm1522_vm15 = vweird.f32 %v8161_v56  ;;  %vm1527_vm3 = vcmp.eq.f32.partialorder %v1526_v38, 8.507059e+37 }
 0x226   :  { %6074 = vtanh.f32 %v8168_v35  ;;  %v8174_v60 = vadd.f32 1.0, %v6069_v41  ;;  %v1329_v55 = vsel %vm8176_vm10, %v6063_v58, %v1325_v53 }
 0x227   :  { %v6071_v57 = vpop.eup %6070  ;;  %v1334_v41 = vsel %vm1331_vm11, %v1333_v49, %v1329_v55  ;;  %vm1508_vm1 = vcmp.eq.f32.partialorder %v1507_v62, 8.507059e+37 }
 0x228   :  { %v6073_v36 = vpop.eup %6072  ;;  %v1499_v37 = vmul.f32 %v6071_v57, %v8158_v63  ;;  %6076 = vrcp.f32 %v8174_v60  ;;  %vm1504_vm12 = vweird.f32 %v6071_v57  ;;  %vm1542_vm5 = vweird.f32 %v8174_v60 }
 0x229   :  { %v1518_v33 = vmul.f32 %v6073_v36, %v8161_v56  ;;  %6078 = vtanh.f32 %v1492_v3  ;;  %vm1523_vm13 = vweird.f32 %v6073_v36  ;;  %vm1505_vm0 = vmor %vm1503_vm14, %vm1504_vm12  ;;  %v1546_v62 = vand.u32 2147483647, %v8174_v60 }
 0x22a   :  { %v1500_v40 = vsub.f32 1.0, %v1499_v37  ;;  %v1510_v37 = vor.u32 1.1754944e-38, %v1509_v0  ;;  %vm1524_vm2 = vmor %vm1522_vm15, %vm1523_vm13 }
 0x22b   :  { %v1519_v47 = vsub.f32 1.0, %v1518_v33  ;;  %v1529_v33 = vor.u32 1.1754944e-38, %v1528_v50  ;;  %vm1547_vm7 = vcmp.eq.f32.partialorder %v1546_v62, 8.507059e+37  ;;  %v10097_v62 = vld [vmem:[#allocation34_spill] sm:$0xff] }
 0x22c   :  { %v6075_v52 = vpop.eup %6074  ;;  %v1501_v42 = vmul.f32 %v6071_v57, %v1500_v40 }
 0x22d   :  { %v1520_v43 = vmul.f32 %v6073_v36, %v1519_v47  ;;  %v8189_v3 = vmul.f32 %v6075_v52, %v1334_v41 }
 0x22e   :  { %v8191_v58 = vpop.eup %6076  ;;  %v1502_v59 = vadd.f32 %v6071_v57, %v1501_v42  ;;  %v1548_v42 = vand.u32 2147483648, %v8174_v60 }
 0x22f   :  { %10079 = vst [vmem:[#allocation51_spill] sm:$0xff] %v8189_v3  ;;  %v6079_v53 = vpop.eup %6078  ;;  %v1538_v54 = vmul.f32 %v8191_v58, %v8174_v60  ;;  %v1521_v49 = vadd.f32 %v6073_v36, %v1520_v43  ;;  %1578 = vmatmul.f32.vlgmr.msra.gmra.mxu0 %v8189_v3  ;;  %1598 = vmatmul.f32.vlgmr.msra.gmra.mxu1 %v8189_v3  ;;  %vm1543_vm4 = vweird.f32 %v8191_v58 }
 0x230   :  { %v1506_v55 = vsel %vm1505_vm0, %v6071_v57, %v1502_v59  ;;  %1618 = vmatmul.f32.vlgmr.msra.gmra.mxu2 %v8189_v3  ;;  %1638 = vmatmul.f32.vlgmr.msra.gmra.mxu3 %v8189_v3  ;;  %vm1544_vm6 = vmor %vm1542_vm5, %vm1543_vm4  ;;  %v1549_v43 = vor.u32 1.1754944e-38, %v1548_v42  ;;  %v10081_v59 = vld [vmem:[#allocation50_spill] sm:$0xff]  ;;  %v10096_v42 = vld [vmem:[#allocation33_spill] sm:$0xff] }
 0x231   :  { %v1539_v63 = vsub.f32 1.0, %v1538_v54  ;;  %v1511_v56 = vsel %vm1508_vm1, %v1510_v37, %v1506_v55  ;;  %v1525_v40 = vsel %vm1524_vm2, %v6073_v36, %v1521_v49  ;;  %1874 = vmatpush.msra.mxu0 %v6705_v29  ;;  %1894 = vmatpush.msra.mxu1 %v6710_v30  ;;  %v10083_v54 = vld [vmem:[#allocation44_spill] sm:$0xff]  ;;  %v10084_v37 = vld [vmem:[#allocation45_spill] sm:$0xff]  ;;  %v10085_v49 = vld [vmem:[#allocation46_spill] sm:$0xff] }
 0x232   :  { %v1530_v47 = vsel %vm1527_vm3, %v1529_v33, %v1525_v40  ;;  %v1553_v0 = vmul.f32 %v6079_v53, %v1511_v56  ;;  %1914 = vmatpush.msra.mxu2 %v6715_v31  ;;  %1934 = vmatpush.msra.mxu3 %v6720_v32  ;;  %v10082_v53 = vld [vmem:[#allocation43_spill] sm:$0xff]  ;;  %v10087_v55 = vld [vmem:[#allocation40_spill] sm:$0xff]  ;;  %v10089_v56 = vld [vmem:[#allocation42_spill] sm:$0xff] }
 0x233   :  { %v1552_v57 = vmul.f32 0.0, %v1530_v47  ;;  %v1540_v50 = vmul.f32 %v8191_v58, %v1539_v63  ;;  %1875 = vmatpush.msra.mxu0 %v6685_v25  ;;  %1895 = vmatpush.msra.mxu1 %v6690_v26  ;;  %v10086_v33 = vld [vmem:[#allocation39_spill] sm:$0xff]  ;;  %v10088_v63 = vld [vmem:[#allocation41_spill] sm:$0xff]  ;;  %v10091_v47 = vld [vmem:[#allocation36_spill] sm:$0xff] }
 0x234   :  { %1915 = vmatpush.msra.mxu2 %v6695_v27  ;;  %1935 = vmatpush.msra.mxu3 %v6700_v28  ;;  %v10090_v40 = vld [vmem:[#allocation35_spill] sm:$0xff] }
 0x235   :  { %v8211_v36 = vadd.f32 %v1553_v0, %v1552_v57  ;;  %1876 = vmatpush.msra.mxu0 %v6665_v21  ;;  %1896 = vmatpush.msra.mxu1 %v6670_v22  ;;  %v1541_v52 = vadd.f32 %v8191_v58, %v1540_v50  ;;  %v10092_v0 = vld [vmem:[#allocation37_spill] sm:$0xff]  ;;  %v10093_v57 = vld [vmem:[#allocation38_spill] sm:$0xff]  ;;  %v10094_v50 = vld [vmem:[#allocation31_spill] sm:$0xff] }
 0x236   :  { %1916 = vmatpush.msra.mxu2 %v6675_v23  ;;  %1936 = vmatpush.msra.mxu3 %v6680_v24  ;;  %v10102_v3 = vld [vmem:[#allocation23_spill] sm:$0xff] }
 0x237   :  { %6080 = vtanh.f32 %v8211_v36  ;;  %1877 = vmatpush.msra.mxu0 %v6645_v17  ;;  %1897 = vmatpush.msra.mxu1 %v6650_v18  ;;  %v1545_v41 = vsel %vm1544_vm6, %v8191_v58, %v1541_v52  ;;  %v10095_v52 = vld [vmem:[#allocation32_spill] sm:$0xff] }
 0x238   :  { %1917 = vmatpush.msra.mxu2 %v6655_v19  ;;  %1937 = vmatpush.msra.mxu3 %v6660_v20  ;;  %v1550_v38 = vsel %vm1547_vm7, %v1549_v43, %v1545_v41  ;;  %v10098_v41 = vld [vmem:[#allocation27_spill] sm:$0xff]  ;;  %v10099_v43 = vld [vmem:[#allocation28_spill] sm:$0xff] }
 0x239   :  { %1878 = vmatpush.msra.mxu0 %v6625_v13  ;;  %1898 = vmatpush.msra.mxu1 %v6630_v14 }
 0x23a   :  { %1918 = vmatpush.msra.mxu2 %v6635_v15  ;;  %1938 = vmatpush.msra.mxu3 %v6640_v16 }
 0x23b   :  { %1879 = vmatpush.msra.mxu0 %v6605_v9  ;;  %1899 = vmatpush.msra.mxu1 %v6610_v10 }
 0x23c   :  { %1919 = vmatpush.msra.mxu2 %v6615_v11  ;;  %1939 = vmatpush.msra.mxu3 %v6620_v12 }
 0x23d   :  { %v6081_v60 = vpop.eup %6080  ;;  %1880 = vmatpush.msra.mxu0 %v6585_v5  ;;  %1900 = vmatpush.msra.mxu1 %v6590_v6 }
 0x23e   :  { %v8238_v58 = vmul.f32 %v6081_v60, %v1550_v38  ;;  %1920 = vmatpush.msra.mxu2 %v6595_v7  ;;  %1940 = vmatpush.msra.mxu3 %v6600_v8  ;;  %v10100_v60 = vld [vmem:[#allocation29_spill] sm:$0xff]  ;;  %v10101_v38 = vld [vmem:[#allocation30_spill] sm:$0xff] }
 0x23f   :  { %1881 = vmatpush.msra.mxu0 %v6565_v1  ;;  %1901 = vmatpush.msra.mxu1 %v6570_v2 }
 0x240   :  { %10080 = vst [vmem:[#allocation22_spill] sm:$0xff] %v8238_v58  ;;  %1730 = vmatmul.f32.vlgmr.msrb.gmra.mxu0 %v8238_v58  ;;  %1750 = vmatmul.f32.vlgmr.msrb.gmra.mxu1 %v8238_v58 }
 0x241   :  { %1770 = vmatmul.f32.vlgmr.msrb.gmra.mxu2 %v8238_v58  ;;  %1790 = vmatmul.f32.vlgmr.msrb.gmra.mxu3 %v8238_v58  ;;  %v10103_v58 = vld [vmem:[#allocation24_spill] sm:$0xff] }
 0x242   :  { %1921 = vmatpush.msra.mxu2 %v10035_v46  ;;  %1941 = vmatpush.msra.mxu3 %v6580_v4 }
 0x243   :  { %2026 = vmatpush.msrb.mxu0 %v6865_v61  ;;  %2046 = vmatpush.msrb.mxu1 %v10033_v44 }
 0x244   :  { %2066 = vmatpush.msrb.mxu2 %v10042_v39  ;;  %2086 = vmatpush.msrb.mxu3 %v10034_v45 }
 0x245   :  { %2027 = vmatpush.msrb.mxu0 %v10036_v48  ;;  %2047 = vmatpush.msrb.mxu1 %v10037_v51 }
 0x246   :  { %2067 = vmatpush.msrb.mxu2 %v10046_v34  ;;  %2087 = vmatpush.msrb.mxu3 %v10081_v59 }
 0x247   :  { %2028 = vmatpush.msrb.mxu0 %v10082_v53  ;;  %2048 = vmatpush.msrb.mxu1 %v10083_v54 }
 0x248   :  { %2068 = vmatpush.msrb.mxu2 %v10084_v37  ;;  %2088 = vmatpush.msrb.mxu3 %v10085_v49 }
 0x249   :  { %2029 = vmatpush.msrb.mxu0 %v10086_v33  ;;  %2049 = vmatpush.msrb.mxu1 %v10087_v55 }
 0x24a   :  { %2069 = vmatpush.msrb.mxu2 %v10088_v63  ;;  %2089 = vmatpush.msrb.mxu3 %v10089_v56 }
 0x24b   :  { %2030 = vmatpush.msrb.mxu0 %v10090_v40  ;;  %2050 = vmatpush.msrb.mxu1 %v10091_v47  ;;  %v10107_v47 = vld [vmem:[#allocation255_spill] sm:$0xff] }
 0x24c   :  { %2070 = vmatpush.msrb.mxu2 %v10092_v0  ;;  %2090 = vmatpush.msrb.mxu3 %v10093_v57  ;;  %v10104_v57 = vld [vmem:[#allocation25_spill] sm:$0xff]  ;;  %v10106_v0 = vld [vmem:[#allocation254_spill] sm:$0xff] }
 0x24d   :  { %2031 = vmatpush.msrb.mxu0 %v10094_v50  ;;  %2051 = vmatpush.msrb.mxu1 %v10095_v52  ;;  %v10105_v50 = vld [vmem:[#allocation26_spill] sm:$0xff] }
 0x24e   :  { %2071 = vmatpush.msrb.mxu2 %v10096_v42  ;;  %2091 = vmatpush.msrb.mxu3 %v10097_v62 }
 0x24f   :  { %2032 = vmatpush.msrb.mxu0 %v10098_v41  ;;  %2052 = vmatpush.msrb.mxu1 %v10099_v43 }
 0x250   :  { %2072 = vmatpush.msrb.mxu2 %v10100_v60  ;;  %2092 = vmatpush.msrb.mxu3 %v10101_v38  ;;  %v10108_v38 = vld [vmem:[#allocation257_spill] sm:$0xff] }
 0x251   :  { %2033 = vmatpush.msrb.mxu0 %v10102_v3  ;;  %2053 = vmatpush.msrb.mxu1 %v10103_v58 }
 0x252   :  { %2073 = vmatpush.msrb.mxu2 %v10104_v57  ;;  %2093 = vmatpush.msrb.mxu3 %v10105_v50 }
 0x2ac   :  { %v1579_v52 = vpop.f32.mrf.mxu0  ;;  %v1599_v42 = vpop.f32.mrf.mxu1 }
 0x2ad   :  { %v1642_v62 = vadd.f32 %v1579_v52, %v10106_v0  ;;  %v1643_v41 = vadd.f32 %v1599_v42, %v10107_v47  ;;  %v10109_v47 = vld [vmem:[#allocation274_spill] sm:$0xff] }
 0x2af   :  { %v5969_v40 = vmul.f32 -1.442695, %v1642_v62  ;;  %v5970_v43 = vmul.f32 -1.442695, %v1643_v41  ;;  %v10110_v62 = vld [vmem:[#allocation275_spill] sm:$0xff] }
 0x2b1   :  { %6082 = vpow2.f32 %v5969_v40 }
 0x2b2   :  { %6084 = vpow2.f32 %v5970_v43 }
 0x2b3   :  { %v1639_v60 = vpop.f32.mrf.mxu3  ;;  %v1619_v50 = vpop.f32.mrf.mxu2 }
 0x2b4   :  { %v1645_v56 = vadd.f32 %v1639_v60, %v10108_v38  ;;  %v10111_v60 = vld [vmem:[#allocation256_spill] sm:$0xff] }
 0x2b6   :  { %v5971_v3 = vmul.f32 -1.442695, %v1645_v56  ;;  %v1644_v56 = vadd.f32 %v1619_v50, %v10111_v60  ;;  %v10112_v50 = vld [vmem:[#allocation277_spill] sm:$0xff] }
 0x2b7   :  { %v6083_v63 = vpop.eup %6082 }
 0x2b8   :  { %v6085_v58 = vpop.eup %6084  ;;  %v1649_v55 = vadd.f32 1.0, %v6083_v63  ;;  %6086 = vpow2.f32 %v5971_v3 }
 0x2b9   :  { %v1668_v57 = vadd.f32 1.0, %v6085_v58 }
 0x2ba   :  { %6088 = vrcp.f32 %v1649_v55  ;;  %v1659_v54 = vand.u32 2147483647, %v1649_v55  ;;  %vm1655_vm10 = vweird.f32 %v1649_v55 }
 0x2bb   :  { %6090 = vrcp.f32 %v1668_v57  ;;  %vm1674_vm11 = vweird.f32 %v1668_v57 }
 0x2bc   :  { %vm1660_vm12 = vcmp.eq.f32.partialorder %v1659_v54, 8.507059e+37 }
 0x2bd   :  { %v1731_v33 = vpop.f32.mrf.mxu0  ;;  %v1751_v0 = vpop.f32.mrf.mxu1 }
 0x2be   :  { %v6087_v52 = vpop.eup %6086  ;;  %v1794_v42 = vadd.f32 %v1731_v33, %v10109_v47  ;;  %v1795_v40 = vadd.f32 %v1751_v0, %v10110_v62  ;;  %v1680_v33 = vand.u32 2147483648, %v1668_v57  ;;  %v1661_v47 = vand.u32 2147483648, %v1649_v55 }
 0x2bf   :  { %v8287_v41 = vadd.f32 1.0, %v6087_v52  ;;  %v1678_v62 = vand.u32 2147483647, %v1668_v57 }
 0x2c0   :  { %v6089_v43 = vpop.eup %6088  ;;  %v5972_v38 = vmul.f32 -1.442695, %v1794_v42  ;;  %v5973_v49 = vmul.f32 -1.442695, %v1795_v40 }
 0x2c1   :  { %v6091_v63 = vpop.eup %6090  ;;  %v1651_v3 = vmul.f32 %v6089_v43, %v1649_v55  ;;  %6092 = vrcp.f32 %v8287_v41  ;;  %vm1656_vm8 = vweird.f32 %v6089_v43  ;;  %vm1679_vm15 = vcmp.eq.f32.partialorder %v1678_v62, 8.507059e+37  ;;  %v10113_v62 = vld [vmem:[#allocation276_spill] sm:$0xff] }
 0x2c2   :  { %v1670_v58 = vmul.f32 %v6091_v63, %v1668_v57  ;;  %6094 = vpow2.f32 %v5972_v38  ;;  %vm1675_vm9 = vweird.f32 %v6091_v63  ;;  %vm1657_vm13 = vmor %vm1655_vm10, %vm1656_vm8  ;;  %vm1694_vm1 = vweird.f32 %v8287_v41 }
 0x2c3   :  { %v1652_v37 = vsub.f32 1.0, %v1651_v3  ;;  %6096 = vpow2.f32 %v5973_v49  ;;  %v1681_v49 = vor.u32 1.1754944e-38, %v1680_v33  ;;  %vm1676_vm14 = vmor %vm1674_vm11, %vm1675_vm9 }
 0x2c4   :  { %v1671_v53 = vsub.f32 1.0, %v1670_v58  ;;  %6098 = vtanh.f32 %v1644_v56  ;;  %v1791_v0 = vpop.f32.mrf.mxu3  ;;  %v1662_v58 = vor.u32 1.1754944e-38, %v1661_v47  ;;  %v1771_v48 = vpop.f32.mrf.mxu2 }
 0x2c5   :  { %v1653_v52 = vmul.f32 %v6089_v43, %v1652_v37  ;;  %v1797_v42 = vadd.f32 %v1791_v0, %v10112_v50 }
 0x2c6   :  { %v1672_v40 = vmul.f32 %v6091_v63, %v1671_v53 }
 0x2c7   :  { %v6093_v60 = vpop.eup %6092  ;;  %v1654_v59 = vadd.f32 %v6089_v43, %v1653_v52  ;;  %v5974_v38 = vmul.f32 -1.442695, %v1797_v42 }
 0x2c8   :  { %v6095_v3 = vpop.eup %6094  ;;  %v1673_v34 = vadd.f32 %v6091_v63, %v1672_v40  ;;  %v1690_v56 = vmul.f32 %v6093_v60, %v8287_v41  ;;  %vm1695_vm0 = vweird.f32 %v6093_v60 }
 0x2c9   :  { %v6097_v37 = vpop.eup %6096  ;;  %v1658_v51 = vsel %vm1657_vm13, %v6089_v43, %v1654_v59  ;;  %v1801_v0 = vadd.f32 1.0, %v6095_v3  ;;  %6100 = vpow2.f32 %v5974_v38  ;;  %v1796_v38 = vadd.f32 %v1771_v48, %v10113_v62  ;;  %vm1696_vm2 = vmor %vm1694_vm1, %vm1695_vm0 }
 0x2ca   :  { %v6099_v53 = vpop.eup %6098  ;;  %v1663_v55 = vsel %vm1660_vm12, %v1662_v58, %v1658_v51  ;;  %v1677_v50 = vsel %vm1676_vm14, %v6091_v63, %v1673_v34  ;;  %v1691_v57 = vsub.f32 1.0, %v1690_v56  ;;  %v1820_v52 = vadd.f32 1.0, %v6097_v37 }
 0x2cb   :  { %v1682_v54 = vsel %vm1679_vm15, %v1681_v49, %v1677_v50  ;;  %v1705_v42 = vmul.f32 %v6099_v53, %v1663_v55  ;;  %6102 = vrcp.f32 %v1801_v0  ;;  %v1698_v51 = vand.u32 2147483647, %v8287_v41 }
 0x2cc   :  { %v1704_v33 = vmul.f32 %v1682_v54, %v8168_v35  ;;  %6104 = vrcp.f32 %v1820_v52  ;;  %v1692_v47 = vmul.f32 %v6093_v60, %v1691_v57  ;;  %v1700_v34 = vand.u32 2147483648, %v8287_v41 }
 0x2cd   :  { %vm1699_vm3 = vcmp.eq.f32.partialorder %v1698_v51, 8.507059e+37  ;;  %v1832_v53 = vand.u32 2147483648, %v1820_v52  ;;  %v1813_v55 = vand.u32 2147483648, %v1801_v0  ;;  %v1811_v48 = vand.u32 2147483647, %v1801_v0 }
 0x2ce   :  { %v8294_v40 = vadd.f32 %v1705_v42, %v1704_v33  ;;  %v1693_v59 = vadd.f32 %v6093_v60, %v1692_v47  ;;  %v1830_v42 = vand.u32 2147483647, %v1820_v52  ;;  %vm1807_vm6 = vweird.f32 %v1801_v0 }
 0x2cf   :  { %v6101_v45 = vpop.eup %6100  ;;  %vm1826_vm7 = vweird.f32 %v1820_v52  ;;  %v1833_v62 = vor.u32 1.1754944e-38, %v1832_v53  ;;  %vm1812_vm10 = vcmp.eq.f32.partialorder %v1811_v48, 8.507059e+37 }
 0x2d0   :  { %6106 = vtanh.f32 %v8294_v40  ;;  %v8297_v43 = vadd.f32 1.0, %v6101_v45  ;;  %v1697_v58 = vsel %vm1696_vm2, %v6093_v60, %v1693_v59  ;;  %v1701_v45 = vor.u32 1.1754944e-38, %v1700_v34 }
 0x2d1   :  { %v6103_v63 = vpop.eup %6102  ;;  %v1814_v59 = vor.u32 1.1754944e-38, %v1813_v55  ;;  %vm1831_vm11 = vcmp.eq.f32.partialorder %v1830_v42, 8.507059e+37  ;;  %v10118_v42 = vld [vmem:[#allocation48_spill] sm:$0xff] }
 0x2d2   :  { %v6105_v35 = vpop.eup %6104  ;;  %v1803_v3 = vmul.f32 %v6103_v63, %v1801_v0  ;;  %6108 = vrcp.f32 %v8297_v43  ;;  %vm1808_vm4 = vweird.f32 %v6103_v63  ;;  %v1702_v54 = vsel %vm1699_vm3, %v1701_v45, %v1697_v58 }
 0x2d3   :  { %v1822_v49 = vmul.f32 %v6105_v35, %v1820_v52  ;;  %6110 = vtanh.f32 %v1796_v38  ;;  %vm1827_vm5 = vweird.f32 %v6105_v35  ;;  %vm1809_vm8 = vmor %vm1807_vm6, %vm1808_vm4  ;;  %vm1846_vm13 = vweird.f32 %v8297_v43 }
 0x2d4   :  { %v1804_v56 = vsub.f32 1.0, %v1803_v3  ;;  %vm1828_vm9 = vmor %vm1826_vm7, %vm1827_vm5  ;;  %v1850_v53 = vand.u32 2147483647, %v8297_v43 }
 0x2d5   :  { %v1823_v37 = vsub.f32 1.0, %v1822_v49 }
 0x2d6   :  { %v6107_v50 = vpop.eup %6106  ;;  %v1805_v57 = vmul.f32 %v6103_v63, %v1804_v56  ;;  %vm1851_vm15 = vcmp.eq.f32.partialorder %v1850_v53, 8.507059e+37  ;;  %v10136_v53 = vld [vmem:[#allocation34_spill] sm:$0xff] }
 0x2d7   :  { %v1824_v41 = vmul.f32 %v6105_v35, %v1823_v37  ;;  %v8304_v33 = vmul.f32 %v6107_v50, %v1702_v54  ;;  %v10116_v54 = vld [vmem:[#allocation53_spill] sm:$0xff] }
 0x2d8   :  { %v8306_v47 = vpop.eup %6108  ;;  %v1806_v60 = vadd.f32 %v6103_v63, %v1805_v57 }
 0x2d9   :  { %10114 = vst [vmem:[#allocation52_spill] sm:$0xff] %v8304_v33  ;;  %v1825_v51 = vadd.f32 %v6105_v35, %v1824_v41  ;;  %v1842_v34 = vmul.f32 %v8306_v47, %v8297_v43  ;;  %1882 = vmatmul.f32.vlgmr.msra.gmra.mxu0 %v8304_v33  ;;  %1902 = vmatmul.f32.vlgmr.msra.gmra.mxu1 %v8304_v33  ;;  %v6111_v0 = vpop.eup %6110  ;;  %vm1847_vm12 = vweird.f32 %v8306_v47  ;;  %v10117_v41 = vld [vmem:[#allocation47_spill] sm:$0xff] }
 0x2da   :  { %v1810_v38 = vsel %vm1809_vm8, %v6103_v63, %v1806_v60  ;;  %1922 = vmatmul.f32.vlgmr.msra.gmra.mxu2 %v8304_v33  ;;  %1942 = vmatmul.f32.vlgmr.msra.gmra.mxu3 %v8304_v33  ;;  %vm1848_vm14 = vmor %vm1846_vm13, %vm1847_vm12  ;;  %v10120_v60 = vld [vmem:[#allocation50_spill] sm:$0xff]  ;;  %v10141_v33 = vld [vmem:[#allocation23_spill] sm:$0xff] }
 0x2db   :  { %v1815_v52 = vsel %vm1812_vm10, %v1814_v59, %v1810_v38  ;;  %v1829_v3 = vsel %vm1828_vm9, %v6105_v35, %v1825_v51  ;;  %v1843_v49 = vsub.f32 1.0, %v1842_v34  ;;  %2178 = vmatpush.msra.mxu0 %v6705_v29  ;;  %2198 = vmatpush.msra.mxu1 %v6710_v30  ;;  %v10121_v59 = vld [vmem:[#allocation43_spill] sm:$0xff]  ;;  %v10122_v51 = vld [vmem:[#allocation44_spill] sm:$0xff]  ;;  %v10123_v34 = vld [vmem:[#allocation45_spill] sm:$0xff] }
 0x2dc   :  { %v1834_v58 = vsel %vm1831_vm11, %v1833_v62, %v1829_v3  ;;  %v1857_v56 = vmul.f32 %v6111_v0, %v1815_v52  ;;  %2218 = vmatpush.msra.mxu2 %v6715_v31  ;;  %2238 = vmatpush.msra.mxu3 %v6720_v32  ;;  %v10124_v62 = vld [vmem:[#allocation46_spill] sm:$0xff]  ;;  %v10125_v38 = vld [vmem:[#allocation39_spill] sm:$0xff]  ;;  %v10126_v0 = vld [vmem:[#allocation40_spill] sm:$0xff] }
 0x2dd   :  { %v1856_v63 = vmul.f32 %v1834_v58, %v8211_v36  ;;  %v1844_v45 = vmul.f32 %v8306_v47, %v1843_v49  ;;  %2179 = vmatpush.msra.mxu0 %v6685_v25  ;;  %2199 = vmatpush.msra.mxu1 %v6690_v26  ;;  %v1852_v36 = vand.u32 2147483648, %v8297_v43  ;;  %v10127_v52 = vld [vmem:[#allocation41_spill] sm:$0xff]  ;;  %v10128_v3 = vld [vmem:[#allocation42_spill] sm:$0xff]  ;;  %v10129_v49 = vld [vmem:[#allocation35_spill] sm:$0xff] }
 0x2de   :  { %2219 = vmatpush.msra.mxu2 %v6695_v27  ;;  %2239 = vmatpush.msra.mxu3 %v6700_v28  ;;  %v10130_v58 = vld [vmem:[#allocation36_spill] sm:$0xff] }
 0x2df   :  { %v8324_v35 = vadd.f32 %v1857_v56, %v1856_v63  ;;  %2180 = vmatpush.msra.mxu0 %v6665_v21  ;;  %2200 = vmatpush.msra.mxu1 %v6670_v22  ;;  %v1845_v37 = vadd.f32 %v8306_v47, %v1844_v45  ;;  %v1853_v50 = vor.u32 1.1754944e-38, %v1852_v36  ;;  %v10131_v56 = vld [vmem:[#allocation37_spill] sm:$0xff]  ;;  %v10132_v63 = vld [vmem:[#allocation38_spill] sm:$0xff]  ;;  %v10133_v45 = vld [vmem:[#allocation31_spill] sm:$0xff] }
 0x2e0   :  { %2220 = vmatpush.msra.mxu2 %v6675_v23  ;;  %2240 = vmatpush.msra.mxu3 %v6680_v24  ;;  %v10135_v36 = vld [vmem:[#allocation33_spill] sm:$0xff] }
 0x2e1   :  { %6112 = vtanh.f32 %v8324_v35  ;;  %2181 = vmatpush.msra.mxu0 %v6645_v17  ;;  %2201 = vmatpush.msra.mxu1 %v6650_v18  ;;  %v1849_v55 = vsel %vm1848_vm14, %v8306_v47, %v1845_v37  ;;  %v10119_v47 = vld [vmem:[#allocation49_spill] sm:$0xff]  ;;  %v10134_v37 = vld [vmem:[#allocation32_spill] sm:$0xff] }
 0x2e2   :  { %2221 = vmatpush.msra.mxu2 %v6655_v19  ;;  %2241 = vmatpush.msra.mxu3 %v6660_v20  ;;  %v1854_v57 = vsel %vm1851_vm15, %v1853_v50, %v1849_v55  ;;  %v10137_v55 = vld [vmem:[#allocation27_spill] sm:$0xff]  ;;  %v10138_v50 = vld [vmem:[#allocation28_spill] sm:$0xff] }
 0x2e3   :  { %2182 = vmatpush.msra.mxu0 %v6625_v13  ;;  %2202 = vmatpush.msra.mxu1 %v6630_v14 }
 0x2e4   :  { %2222 = vmatpush.msra.mxu2 %v6635_v15  ;;  %2242 = vmatpush.msra.mxu3 %v6640_v16 }
 0x2e5   :  { %2183 = vmatpush.msra.mxu0 %v6605_v9  ;;  %2203 = vmatpush.msra.mxu1 %v6610_v10 }
 0x2e6   :  { %2223 = vmatpush.msra.mxu2 %v6615_v11  ;;  %2243 = vmatpush.msra.mxu3 %v6620_v12 }
 0x2e7   :  { %v6113_v43 = vpop.eup %6112  ;;  %2184 = vmatpush.msra.mxu0 %v6585_v5  ;;  %2204 = vmatpush.msra.mxu1 %v6590_v6 }
 0x2e8   :  { %v8351_v48 = vmul.f32 %v6113_v43, %v1854_v57  ;;  %2224 = vmatpush.msra.mxu2 %v6595_v7  ;;  %2244 = vmatpush.msra.mxu3 %v6600_v8  ;;  %v10139_v43 = vld [vmem:[#allocation29_spill] sm:$0xff]  ;;  %v10140_v57 = vld [vmem:[#allocation30_spill] sm:$0xff] }
 0x2e9   :  { %2185 = vmatpush.msra.mxu0 %v6565_v1  ;;  %2205 = vmatpush.msra.mxu1 %v6570_v2 }
 0x2ea   :  { %10115 = vst [vmem:[#allocation238_spill] sm:$0xff] %v8351_v48  ;;  %2034 = vmatmul.f32.vlgmr.msrb.gmra.mxu0 %v8351_v48  ;;  %2054 = vmatmul.f32.vlgmr.msrb.gmra.mxu1 %v8351_v48 }
 0x2eb   :  { %2074 = vmatmul.f32.vlgmr.msrb.gmra.mxu2 %v8351_v48  ;;  %2094 = vmatmul.f32.vlgmr.msrb.gmra.mxu3 %v8351_v48  ;;  %v10142_v48 = vld [vmem:[#allocation24_spill] sm:$0xff] }
 0x2ec   :  { %2225 = vmatpush.msra.mxu2 %v10035_v46  ;;  %2245 = vmatpush.msra.mxu3 %v6580_v4 }
 0x2ed   :  { %2330 = vmatpush.msrb.mxu0 %v6865_v61  ;;  %2350 = vmatpush.msrb.mxu1 %v10033_v44 }
 0x2ee   :  { %2370 = vmatpush.msrb.mxu2 %v10042_v39  ;;  %2390 = vmatpush.msrb.mxu3 %v10116_v54 }
 0x2ef   :  { %2331 = vmatpush.msrb.mxu0 %v10117_v41  ;;  %2351 = vmatpush.msrb.mxu1 %v10118_v42 }
 0x2f0   :  { %2371 = vmatpush.msrb.mxu2 %v10119_v47  ;;  %2391 = vmatpush.msrb.mxu3 %v10120_v60 }
 0x2f1   :  { %2332 = vmatpush.msrb.mxu0 %v10121_v59  ;;  %2352 = vmatpush.msrb.mxu1 %v10122_v51 }
 0x2f2   :  { %2372 = vmatpush.msrb.mxu2 %v10123_v34  ;;  %2392 = vmatpush.msrb.mxu3 %v10124_v62 }
 0x2f3   :  { %2333 = vmatpush.msrb.mxu0 %v10125_v38  ;;  %2353 = vmatpush.msrb.mxu1 %v10126_v0 }
 0x2f4   :  { %2373 = vmatpush.msrb.mxu2 %v10127_v52  ;;  %2393 = vmatpush.msrb.mxu3 %v10128_v3 }
 0x2f5   :  { %2334 = vmatpush.msrb.mxu0 %v10129_v49  ;;  %2354 = vmatpush.msrb.mxu1 %v10130_v58  ;;  %v10146_v58 = vld [vmem:[#allocation231_spill] sm:$0xff] }
 0x2f6   :  { %2374 = vmatpush.msrb.mxu2 %v10131_v56  ;;  %2394 = vmatpush.msrb.mxu3 %v10132_v63  ;;  %v10143_v63 = vld [vmem:[#allocation25_spill] sm:$0xff]  ;;  %v10145_v56 = vld [vmem:[#allocation230_spill] sm:$0xff] }
 0x2f7   :  { %2335 = vmatpush.msrb.mxu0 %v10133_v45  ;;  %2355 = vmatpush.msrb.mxu1 %v10134_v37  ;;  %v10144_v45 = vld [vmem:[#allocation26_spill] sm:$0xff] }
 0x2f8   :  { %2375 = vmatpush.msrb.mxu2 %v10135_v36  ;;  %2395 = vmatpush.msrb.mxu3 %v10136_v53 }
 0x2f9   :  { %2336 = vmatpush.msrb.mxu0 %v10137_v55  ;;  %2356 = vmatpush.msrb.mxu1 %v10138_v50 }
 0x2fa   :  { %2376 = vmatpush.msrb.mxu2 %v10139_v43  ;;  %2396 = vmatpush.msrb.mxu3 %v10140_v57  ;;  %v10147_v57 = vld [vmem:[#allocation233_spill] sm:$0xff] }
 0x2fb   :  { %2337 = vmatpush.msrb.mxu0 %v10141_v33  ;;  %2357 = vmatpush.msrb.mxu1 %v10142_v48 }
 0x2fc   :  { %2377 = vmatpush.msrb.mxu2 %v10143_v63  ;;  %2397 = vmatpush.msrb.mxu3 %v10144_v45 }
 0x356   :  { %v1883_v37 = vpop.f32.mrf.mxu0  ;;  %v1903_v36 = vpop.f32.mrf.mxu1 }
 0x357   :  { %v1946_v53 = vadd.f32 %v1883_v37, %v10145_v56  ;;  %v1947_v55 = vadd.f32 %v1903_v36, %v10146_v58  ;;  %v10148_v58 = vld [vmem:[#allocation226_spill] sm:$0xff] }
 0x359   :  { %v5975_v49 = vmul.f32 -1.442695, %v1946_v53  ;;  %v5976_v50 = vmul.f32 -1.442695, %v1947_v55  ;;  %v10149_v53 = vld [vmem:[#allocation227_spill] sm:$0xff] }
 0x35b   :  { %6114 = vpow2.f32 %v5975_v49 }
 0x35c   :  { %6116 = vpow2.f32 %v5976_v50 }
 0x35d   :  { %v1943_v43 = vpop.f32.mrf.mxu3  ;;  %v1923_v45 = vpop.f32.mrf.mxu2 }
 0x35e   :  { %v1949_v3 = vadd.f32 %v1943_v43, %v10147_v57  ;;  %v10150_v43 = vld [vmem:[#allocation232_spill] sm:$0xff] }
 0x360   :  { %v5977_v33 = vmul.f32 -1.442695, %v1949_v3  ;;  %v1948_v3 = vadd.f32 %v1923_v45, %v10150_v43  ;;  %v10151_v45 = vld [vmem:[#allocation229_spill] sm:$0xff] }
 0x361   :  { %v6115_v52 = vpop.eup %6114 }
 0x362   :  { %v6117_v48 = vpop.eup %6116  ;;  %v1953_v0 = vadd.f32 1.0, %v6115_v52  ;;  %6118 = vpow2.f32 %v5977_v33 }
 0x363   :  { %v1972_v63 = vadd.f32 1.0, %v6117_v48 }
 0x364   :  { %6120 = vrcp.f32 %v1953_v0  ;;  %v1963_v51 = vand.u32 2147483647, %v1953_v0  ;;  %vm1959_vm2 = vweird.f32 %v1953_v0 }
 0x365   :  { %6122 = vrcp.f32 %v1972_v63  ;;  %vm1978_vm3 = vweird.f32 %v1972_v63 }
 0x366   :  { %vm1964_vm4 = vcmp.eq.f32.partialorder %v1963_v51, 8.507059e+37 }
 0x367   :  { %v2035_v38 = vpop.f32.mrf.mxu0  ;;  %v2055_v56 = vpop.f32.mrf.mxu1 }
 0x368   :  { %v6119_v37 = vpop.eup %6118  ;;  %v2098_v36 = vadd.f32 %v2035_v38, %v10148_v58  ;;  %v2099_v49 = vadd.f32 %v2055_v56, %v10149_v53  ;;  %v1984_v38 = vand.u32 2147483648, %v1972_v63  ;;  %v1965_v58 = vand.u32 2147483648, %v1953_v0 }
 0x369   :  { %v8400_v55 = vadd.f32 1.0, %v6119_v37  ;;  %v1982_v53 = vand.u32 2147483647, %v1972_v63 }
 0x36a   :  { %v6121_v50 = vpop.eup %6120  ;;  %v5978_v57 = vmul.f32 -1.442695, %v2098_v36  ;;  %v5979_v62 = vmul.f32 -1.442695, %v2099_v49 }
 0x36b   :  { %v6123_v52 = vpop.eup %6122  ;;  %v1955_v33 = vmul.f32 %v6121_v50, %v1953_v0  ;;  %6124 = vrcp.f32 %v8400_v55  ;;  %vm1960_vm0 = vweird.f32 %v6121_v50  ;;  %vm1983_vm7 = vcmp.eq.f32.partialorder %v1982_v53, 8.507059e+37  ;;  %v10152_v53 = vld [vmem:[#allocation228_spill] sm:$0xff] }
 0x36c   :  { %v1974_v48 = vmul.f32 %v6123_v52, %v1972_v63  ;;  %6126 = vpow2.f32 %v5978_v57  ;;  %vm1979_vm1 = vweird.f32 %v6123_v52  ;;  %vm1961_vm5 = vmor %vm1959_vm2, %vm1960_vm0  ;;  %vm1998_vm9 = vweird.f32 %v8400_v55 }
 0x36d   :  { %v1956_v34 = vsub.f32 1.0, %v1955_v33  ;;  %6128 = vpow2.f32 %v5979_v62  ;;  %v1985_v62 = vor.u32 1.1754944e-38, %v1984_v38  ;;  %vm1980_vm6 = vmor %vm1978_vm3, %vm1979_vm1 }
 0x36e   :  { %v1975_v59 = vsub.f32 1.0, %v1974_v48  ;;  %6130 = vtanh.f32 %v1948_v3  ;;  %v2095_v56 = vpop.f32.mrf.mxu3  ;;  %v1966_v48 = vor.u32 1.1754944e-38, %v1965_v58  ;;  %v2075_v41 = vpop.f32.mrf.mxu2 }
 0x36f   :  { %v1957_v37 = vmul.f32 %v6121_v50, %v1956_v34  ;;  %v2101_v36 = vadd.f32 %v2095_v56, %v10151_v45 }
 0x370   :  { %v1976_v49 = vmul.f32 %v6123_v52, %v1975_v59 }
 0x371   :  { %v6125_v43 = vpop.eup %6124  ;;  %v1958_v60 = vadd.f32 %v6121_v50, %v1957_v37  ;;  %v5980_v57 = vmul.f32 -1.442695, %v2101_v36 }
 0x372   :  { %v6127_v33 = vpop.eup %6126  ;;  %v1977_v47 = vadd.f32 %v6123_v52, %v1976_v49  ;;  %v1994_v3 = vmul.f32 %v6125_v43, %v8400_v55  ;;  %vm1999_vm8 = vweird.f32 %v6125_v43 }
 0x373   :  { %v6129_v34 = vpop.eup %6128  ;;  %v1962_v42 = vsel %vm1961_vm5, %v6121_v50, %v1958_v60  ;;  %v2105_v56 = vadd.f32 1.0, %v6127_v33  ;;  %6132 = vpow2.f32 %v5980_v57  ;;  %v2100_v57 = vadd.f32 %v2075_v41, %v10152_v53  ;;  %vm2000_vm10 = vmor %vm1998_vm9, %vm1999_vm8 }
 0x374   :  { %v6131_v59 = vpop.eup %6130  ;;  %v1967_v0 = vsel %vm1964_vm4, %v1966_v48, %v1962_v42  ;;  %v1981_v45 = vsel %vm1980_vm6, %v6123_v52, %v1977_v47  ;;  %v1995_v63 = vsub.f32 1.0, %v1994_v3  ;;  %v2124_v37 = vadd.f32 1.0, %v6129_v34 }
 0x375   :  { %v1986_v51 = vsel %vm1983_vm7, %v1985_v62, %v1981_v45  ;;  %v2009_v36 = vmul.f32 %v6131_v59, %v1967_v0  ;;  %6134 = vrcp.f32 %v2105_v56  ;;  %v2002_v42 = vand.u32 2147483647, %v8400_v55 }
 0x376   :  { %v2008_v38 = vmul.f32 %v1986_v51, %v8294_v40  ;;  %6136 = vrcp.f32 %v2124_v37  ;;  %v1996_v58 = vmul.f32 %v6125_v43, %v1995_v63  ;;  %v2004_v47 = vand.u32 2147483648, %v8400_v55 }
 0x377   :  { %vm2003_vm11 = vcmp.eq.f32.partialorder %v2002_v42, 8.507059e+37  ;;  %v2136_v59 = vand.u32 2147483648, %v2124_v37  ;;  %v2117_v0 = vand.u32 2147483648, %v2105_v56  ;;  %v2115_v41 = vand.u32 2147483647, %v2105_v56 }
 0x378   :  { %v8407_v49 = vadd.f32 %v2009_v36, %v2008_v38  ;;  %v1997_v60 = vadd.f32 %v6125_v43, %v1996_v58  ;;  %v2134_v36 = vand.u32 2147483647, %v2124_v37  ;;  %vm2111_vm14 = vweird.f32 %v2105_v56 }
 0x379   :  { %v6133_v54 = vpop.eup %6132  ;;  %vm2130_vm15 = vweird.f32 %v2124_v37  ;;  %v2137_v53 = vor.u32 1.1754944e-38, %v2136_v59  ;;  %vm2116_vm2 = vcmp.eq.f32.partialorder %v2115_v41, 8.507059e+37 }
 0x37a   :  { %6138 = vtanh.f32 %v8407_v49  ;;  %v8410_v50 = vadd.f32 1.0, %v6133_v54  ;;  %v2001_v48 = vsel %vm2000_vm10, %v6125_v43, %v1997_v60  ;;  %v2005_v54 = vor.u32 1.1754944e-38, %v2004_v47 }
 0x37b   :  { %v6135_v52 = vpop.eup %6134  ;;  %v2118_v60 = vor.u32 1.1754944e-38, %v2117_v0  ;;  %vm2135_vm3 = vcmp.eq.f32.partialorder %v2134_v36, 8.507059e+37  ;;  %v10157_v36 = vld [vmem:[#allocation48_spill] sm:$0xff] }
 0x37c   :  { %v6137_v40 = vpop.eup %6136  ;;  %v2107_v33 = vmul.f32 %v6135_v52, %v2105_v56  ;;  %6140 = vrcp.f32 %v8410_v50  ;;  %vm2112_vm12 = vweird.f32 %v6135_v52  ;;  %v2006_v51 = vsel %vm2003_vm11, %v2005_v54, %v2001_v48 }
 0x37d   :  { %v2126_v62 = vmul.f32 %v6137_v40, %v2124_v37  ;;  %6142 = vtanh.f32 %v2100_v57  ;;  %vm2131_vm13 = vweird.f32 %v6137_v40  ;;  %vm2113_vm0 = vmor %vm2111_vm14, %vm2112_vm12  ;;  %vm2150_vm5 = vweird.f32 %v8410_v50 }
 0x37e   :  { %v2108_v3 = vsub.f32 1.0, %v2107_v33  ;;  %vm2132_vm1 = vmor %vm2130_vm15, %vm2131_vm13  ;;  %v2154_v59 = vand.u32 2147483647, %v8410_v50 }
 0x37f   :  { %v2127_v34 = vsub.f32 1.0, %v2126_v62 }
 0x380   :  { %v6139_v45 = vpop.eup %6138  ;;  %v2109_v63 = vmul.f32 %v6135_v52, %v2108_v3  ;;  %vm2155_vm7 = vcmp.eq.f32.partialorder %v2154_v59, 8.507059e+37  ;;  %v10175_v59 = vld [vmem:[#allocation34_spill] sm:$0xff] }
 0x381   :  { %v2128_v55 = vmul.f32 %v6137_v40, %v2127_v34  ;;  %v8417_v38 = vmul.f32 %v6139_v45, %v2006_v51  ;;  %v10155_v51 = vld [vmem:[#allocation53_spill] sm:$0xff] }
 0x382   :  { %v8419_v58 = vpop.eup %6140  ;;  %v2110_v43 = vadd.f32 %v6135_v52, %v2109_v63 }
 0x383   :  { %10153 = vst [vmem:[#allocation239_spill] sm:$0xff] %v8417_v38  ;;  %v2129_v42 = vadd.f32 %v6137_v40, %v2128_v55  ;;  %v2146_v47 = vmul.f32 %v8419_v58, %v8410_v50  ;;  %2186 = vmatmul.f32.vlgmr.msra.gmra.mxu0 %v8417_v38  ;;  %2206 = vmatmul.f32.vlgmr.msra.gmra.mxu1 %v8417_v38  ;;  %v6143_v56 = vpop.eup %6142  ;;  %vm2151_vm4 = vweird.f32 %v8419_v58  ;;  %v10156_v55 = vld [vmem:[#allocation47_spill] sm:$0xff] }
 0x384   :  { %v2114_v57 = vsel %vm2113_vm0, %v6135_v52, %v2110_v43  ;;  %2226 = vmatmul.f32.vlgmr.msra.gmra.mxu2 %v8417_v38  ;;  %2246 = vmatmul.f32.vlgmr.msra.gmra.mxu3 %v8417_v38  ;;  %vm2152_vm6 = vmor %vm2150_vm5, %vm2151_vm4  ;;  %v10159_v43 = vld [vmem:[#allocation50_spill] sm:$0xff]  ;;  %v10180_v38 = vld [vmem:[#allocation23_spill] sm:$0xff] }
 0x385   :  { %v2119_v37 = vsel %vm2116_vm2, %v2118_v60, %v2114_v57  ;;  %v2133_v33 = vsel %vm2132_vm1, %v6137_v40, %v2129_v42  ;;  %v2147_v62 = vsub.f32 1.0, %v2146_v47  ;;  %2482 = vmatpush.msra.mxu0 %v6705_v29  ;;  %2502 = vmatpush.msra.mxu1 %v6710_v30  ;;  %v10160_v60 = vld [vmem:[#allocation43_spill] sm:$0xff]  ;;  %v10161_v42 = vld [vmem:[#allocation44_spill] sm:$0xff]  ;;  %v10162_v47 = vld [vmem:[#allocation45_spill] sm:$0xff] }
 0x386   :  { %v2138_v48 = vsel %vm2135_vm3, %v2137_v53, %v2133_v33  ;;  %v2161_v3 = vmul.f32 %v6143_v56, %v2119_v37  ;;  %2522 = vmatpush.msra.mxu2 %v6715_v31  ;;  %2542 = vmatpush.msra.mxu3 %v6720_v32  ;;  %v10163_v53 = vld [vmem:[#allocation46_spill] sm:$0xff]  ;;  %v10164_v57 = vld [vmem:[#allocation39_spill] sm:$0xff]  ;;  %v10165_v56 = vld [vmem:[#allocation40_spill] sm:$0xff] }
 0x387   :  { %v2160_v52 = vmul.f32 %v2138_v48, %v8324_v35  ;;  %v2148_v54 = vmul.f32 %v8419_v58, %v2147_v62  ;;  %2483 = vmatpush.msra.mxu0 %v6685_v25  ;;  %2503 = vmatpush.msra.mxu1 %v6690_v26  ;;  %v2156_v35 = vand.u32 2147483648, %v8410_v50  ;;  %v10166_v37 = vld [vmem:[#allocation41_spill] sm:$0xff]  ;;  %v10167_v33 = vld [vmem:[#allocation42_spill] sm:$0xff]  ;;  %v10168_v62 = vld [vmem:[#allocation35_spill] sm:$0xff] }
 0x388   :  { %2523 = vmatpush.msra.mxu2 %v6695_v27  ;;  %2543 = vmatpush.msra.mxu3 %v6700_v28  ;;  %v10169_v48 = vld [vmem:[#allocation36_spill] sm:$0xff] }
 0x389   :  { %v8437_v40 = vadd.f32 %v2161_v3, %v2160_v52  ;;  %2484 = vmatpush.msra.mxu0 %v6665_v21  ;;  %2504 = vmatpush.msra.mxu1 %v6670_v22  ;;  %v2149_v34 = vadd.f32 %v8419_v58, %v2148_v54  ;;  %v2157_v45 = vor.u32 1.1754944e-38, %v2156_v35  ;;  %v10170_v3 = vld [vmem:[#allocation37_spill] sm:$0xff]  ;;  %v10171_v52 = vld [vmem:[#allocation38_spill] sm:$0xff]  ;;  %v10172_v54 = vld [vmem:[#allocation31_spill] sm:$0xff] }
 0x38a   :  { %2524 = vmatpush.msra.mxu2 %v6675_v23  ;;  %2544 = vmatpush.msra.mxu3 %v6680_v24  ;;  %v10174_v35 = vld [vmem:[#allocation33_spill] sm:$0xff] }
 0x38b   :  { %6144 = vtanh.f32 %v8437_v40  ;;  %2485 = vmatpush.msra.mxu0 %v6645_v17  ;;  %2505 = vmatpush.msra.mxu1 %v6650_v18  ;;  %v2153_v0 = vsel %vm2152_vm6, %v8419_v58, %v2149_v34  ;;  %v10158_v58 = vld [vmem:[#allocation49_spill] sm:$0xff]  ;;  %v10173_v34 = vld [vmem:[#allocation32_spill] sm:$0xff] }
 0x38c   :  { %2525 = vmatpush.msra.mxu2 %v6655_v19  ;;  %2545 = vmatpush.msra.mxu3 %v6660_v20  ;;  %v2158_v63 = vsel %vm2155_vm7, %v2157_v45, %v2153_v0  ;;  %v10176_v0 = vld [vmem:[#allocation27_spill] sm:$0xff]  ;;  %v10177_v45 = vld [vmem:[#allocation28_spill] sm:$0xff] }
 0x38d   :  { %2486 = vmatpush.msra.mxu0 %v6625_v13  ;;  %2506 = vmatpush.msra.mxu1 %v6630_v14 }
 0x38e   :  { %2526 = vmatpush.msra.mxu2 %v6635_v15  ;;  %2546 = vmatpush.msra.mxu3 %v6640_v16 }
 0x38f   :  { %2487 = vmatpush.msra.mxu0 %v6605_v9  ;;  %2507 = vmatpush.msra.mxu1 %v6610_v10 }
 0x390   :  { %2527 = vmatpush.msra.mxu2 %v6615_v11  ;;  %2547 = vmatpush.msra.mxu3 %v6620_v12 }
 0x391   :  { %v6145_v50 = vpop.eup %6144  ;;  %2488 = vmatpush.msra.mxu0 %v6585_v5  ;;  %2508 = vmatpush.msra.mxu1 %v6590_v6 }
 0x392   :  { %v8464_v41 = vmul.f32 %v6145_v50, %v2158_v63  ;;  %2528 = vmatpush.msra.mxu2 %v6595_v7  ;;  %2548 = vmatpush.msra.mxu3 %v6600_v8  ;;  %v10178_v50 = vld [vmem:[#allocation29_spill] sm:$0xff]  ;;  %v10179_v63 = vld [vmem:[#allocation30_spill] sm:$0xff] }
 0x393   :  { %2489 = vmatpush.msra.mxu0 %v6565_v1  ;;  %2509 = vmatpush.msra.mxu1 %v6570_v2 }
 0x394   :  { %10154 = vst [vmem:[#allocation241_spill] sm:$0xff] %v8464_v41  ;;  %2338 = vmatmul.f32.vlgmr.msrb.gmra.mxu0 %v8464_v41  ;;  %2358 = vmatmul.f32.vlgmr.msrb.gmra.mxu1 %v8464_v41 }
 0x395   :  { %2378 = vmatmul.f32.vlgmr.msrb.gmra.mxu2 %v8464_v41  ;;  %2398 = vmatmul.f32.vlgmr.msrb.gmra.mxu3 %v8464_v41  ;;  %v10181_v41 = vld [vmem:[#allocation24_spill] sm:$0xff] }
 0x396   :  { %2529 = vmatpush.msra.mxu2 %v10035_v46  ;;  %2549 = vmatpush.msra.mxu3 %v6580_v4 }
 0x397   :  { %2634 = vmatpush.msrb.mxu0 %v6865_v61  ;;  %2654 = vmatpush.msrb.mxu1 %v10033_v44 }
 0x398   :  { %2674 = vmatpush.msrb.mxu2 %v10042_v39  ;;  %2694 = vmatpush.msrb.mxu3 %v10155_v51 }
 0x399   :  { %2635 = vmatpush.msrb.mxu0 %v10156_v55  ;;  %2655 = vmatpush.msrb.mxu1 %v10157_v36 }
 0x39a   :  { %2675 = vmatpush.msrb.mxu2 %v10158_v58  ;;  %2695 = vmatpush.msrb.mxu3 %v10159_v43 }
 0x39b   :  { %2636 = vmatpush.msrb.mxu0 %v10160_v60  ;;  %2656 = vmatpush.msrb.mxu1 %v10161_v42 }
 0x39c   :  { %2676 = vmatpush.msrb.mxu2 %v10162_v47  ;;  %2696 = vmatpush.msrb.mxu3 %v10163_v53 }
 0x39d   :  { %2637 = vmatpush.msrb.mxu0 %v10164_v57  ;;  %2657 = vmatpush.msrb.mxu1 %v10165_v56 }
 0x39e   :  { %2677 = vmatpush.msrb.mxu2 %v10166_v37  ;;  %2697 = vmatpush.msrb.mxu3 %v10167_v33 }
 0x39f   :  { %2638 = vmatpush.msrb.mxu0 %v10168_v62  ;;  %2658 = vmatpush.msrb.mxu1 %v10169_v48  ;;  %v10185_v48 = vld [vmem:[#allocation247_spill] sm:$0xff] }
 0x3a0   :  { %2678 = vmatpush.msrb.mxu2 %v10170_v3  ;;  %2698 = vmatpush.msrb.mxu3 %v10171_v52  ;;  %v10182_v52 = vld [vmem:[#allocation25_spill] sm:$0xff]  ;;  %v10184_v3 = vld [vmem:[#allocation246_spill] sm:$0xff] }
 0x3a1   :  { %2639 = vmatpush.msrb.mxu0 %v10172_v54  ;;  %2659 = vmatpush.msrb.mxu1 %v10173_v34  ;;  %v10183_v54 = vld [vmem:[#allocation26_spill] sm:$0xff] }
 0x3a2   :  { %2679 = vmatpush.msrb.mxu2 %v10174_v35  ;;  %2699 = vmatpush.msrb.mxu3 %v10175_v59 }
 0x3a3   :  { %2640 = vmatpush.msrb.mxu0 %v10176_v0  ;;  %2660 = vmatpush.msrb.mxu1 %v10177_v45 }
 0x3a4   :  { %2680 = vmatpush.msrb.mxu2 %v10178_v50  ;;  %2700 = vmatpush.msrb.mxu3 %v10179_v63  ;;  %v10186_v63 = vld [vmem:[#allocation249_spill] sm:$0xff] }
 0x3a5   :  { %2641 = vmatpush.msrb.mxu0 %v10180_v38  ;;  %2661 = vmatpush.msrb.mxu1 %v10181_v41 }
 0x3a6   :  { %2681 = vmatpush.msrb.mxu2 %v10182_v52  ;;  %2701 = vmatpush.msrb.mxu3 %v10183_v54 }
 0x400   :  { %v2187_v34 = vpop.f32.mrf.mxu0  ;;  %v2207_v35 = vpop.f32.mrf.mxu1 }
 0x401   :  { %v2250_v59 = vadd.f32 %v2187_v34, %v10184_v3  ;;  %v2251_v0 = vadd.f32 %v2207_v35, %v10185_v48  ;;  %v10187_v48 = vld [vmem:[#allocation218_spill] sm:$0xff] }
 0x403   :  { %v5981_v62 = vmul.f32 -1.442695, %v2250_v59  ;;  %v5982_v45 = vmul.f32 -1.442695, %v2251_v0  ;;  %v10188_v59 = vld [vmem:[#allocation219_spill] sm:$0xff] }
 0x405   :  { %6146 = vpow2.f32 %v5981_v62 }
 0x406   :  { %6148 = vpow2.f32 %v5982_v45 }
 0x407   :  { %v2247_v50 = vpop.f32.mrf.mxu3  ;;  %v2227_v54 = vpop.f32.mrf.mxu2 }
 0x408   :  { %v2253_v33 = vadd.f32 %v2247_v50, %v10186_v63  ;;  %v10189_v50 = vld [vmem:[#allocation248_spill] sm:$0xff] }
 0x40a   :  { %v5983_v38 = vmul.f32 -1.442695, %v2253_v33  ;;  %v2252_v33 = vadd.f32 %v2227_v54, %v10189_v50  ;;  %v10190_v54 = vld [vmem:[#allocation221_spill] sm:$0xff] }
 0x40b   :  { %v6147_v37 = vpop.eup %6146 }
 0x40c   :  { %v6149_v41 = vpop.eup %6148  ;;  %v2257_v56 = vadd.f32 1.0, %v6147_v37  ;;  %6150 = vpow2.f32 %v5983_v38 }
 0x40d   :  { %v2276_v52 = vadd.f32 1.0, %v6149_v41 }
 0x40e   :  { %6152 = vrcp.f32 %v2257_v56  ;;  %v2267_v42 = vand.u32 2147483647, %v2257_v56  ;;  %vm2263_vm10 = vweird.f32 %v2257_v56 }
 0x40f   :  { %6154 = vrcp.f32 %v2276_v52  ;;  %vm2282_vm11 = vweird.f32 %v2276_v52 }
 0x410   :  { %vm2268_vm12 = vcmp.eq.f32.partialorder %v2267_v42, 8.507059e+37 }
 0x411   :  { %v2339_v57 = vpop.f32.mrf.mxu0  ;;  %v2359_v3 = vpop.f32.mrf.mxu1 }
 0x412   :  { %v6151_v34 = vpop.eup %6150  ;;  %v2402_v35 = vadd.f32 %v2339_v57, %v10187_v48  ;;  %v2403_v62 = vadd.f32 %v2359_v3, %v10188_v59  ;;  %v2288_v57 = vand.u32 2147483648, %v2276_v52  ;;  %v2269_v48 = vand.u32 2147483648, %v2257_v56 }
 0x413   :  { %v8513_v0 = vadd.f32 1.0, %v6151_v34  ;;  %v2286_v59 = vand.u32 2147483647, %v2276_v52 }
 0x414   :  { %v6153_v45 = vpop.eup %6152  ;;  %v5984_v63 = vmul.f32 -1.442695, %v2402_v35  ;;  %v5985_v53 = vmul.f32 -1.442695, %v2403_v62 }
 0x415   :  { %v6155_v37 = vpop.eup %6154  ;;  %v2259_v38 = vmul.f32 %v6153_v45, %v2257_v56  ;;  %6156 = vrcp.f32 %v8513_v0  ;;  %vm2264_vm8 = vweird.f32 %v6153_v45  ;;  %vm2287_vm15 = vcmp.eq.f32.partialorder %v2286_v59, 8.507059e+37  ;;  %v10191_v59 = vld [vmem:[#allocation220_spill] sm:$0xff] }
 0x416   :  { %v2278_v41 = vmul.f32 %v6155_v37, %v2276_v52  ;;  %6158 = vpow2.f32 %v5984_v63  ;;  %vm2283_vm9 = vweird.f32 %v6155_v37  ;;  %vm2265_vm13 = vmor %vm2263_vm10, %vm2264_vm8  ;;  %vm2302_vm1 = vweird.f32 %v8513_v0 }
 0x417   :  { %v2260_v47 = vsub.f32 1.0, %v2259_v38  ;;  %6160 = vpow2.f32 %v5985_v53  ;;  %v2289_v53 = vor.u32 1.1754944e-38, %v2288_v57  ;;  %vm2284_vm14 = vmor %vm2282_vm11, %vm2283_vm9 }
 0x418   :  { %v2279_v60 = vsub.f32 1.0, %v2278_v41  ;;  %6162 = vtanh.f32 %v2252_v33  ;;  %v2399_v3 = vpop.f32.mrf.mxu3  ;;  %v2270_v41 = vor.u32 1.1754944e-38, %v2269_v48  ;;  %v2379_v55 = vpop.f32.mrf.mxu2 }
 0x419   :  { %v2261_v34 = vmul.f32 %v6153_v45, %v2260_v47  ;;  %v2405_v35 = vadd.f32 %v2399_v3, %v10190_v54 }
 0x41a   :  { %v2280_v62 = vmul.f32 %v6155_v37, %v2279_v60 }
 0x41b   :  { %v6157_v50 = vpop.eup %6156  ;;  %v2262_v43 = vadd.f32 %v6153_v45, %v2261_v34  ;;  %v5986_v63 = vmul.f32 -1.442695, %v2405_v35 }
 0x41c   :  { %v6159_v38 = vpop.eup %6158  ;;  %v2281_v58 = vadd.f32 %v6155_v37, %v2280_v62  ;;  %v2298_v33 = vmul.f32 %v6157_v50, %v8513_v0  ;;  %vm2303_vm0 = vweird.f32 %v6157_v50 }
 0x41d   :  { %v6161_v47 = vpop.eup %6160  ;;  %v2266_v36 = vsel %vm2265_vm13, %v6153_v45, %v2262_v43  ;;  %v2409_v3 = vadd.f32 1.0, %v6159_v38  ;;  %6164 = vpow2.f32 %v5986_v63  ;;  %v2404_v63 = vadd.f32 %v2379_v55, %v10191_v59  ;;  %vm2304_vm2 = vmor %vm2302_vm1, %vm2303_vm0 }
 0x41e   :  { %v6163_v60 = vpop.eup %6162  ;;  %v2271_v56 = vsel %vm2268_vm12, %v2270_v41, %v2266_v36  ;;  %v2285_v54 = vsel %vm2284_vm14, %v6155_v37, %v2281_v58  ;;  %v2299_v52 = vsub.f32 1.0, %v2298_v33  ;;  %v2428_v34 = vadd.f32 1.0, %v6161_v47 }
 0x41f   :  { %v2290_v42 = vsel %vm2287_vm15, %v2289_v53, %v2285_v54  ;;  %v2313_v35 = vmul.f32 %v6163_v60, %v2271_v56  ;;  %6166 = vrcp.f32 %v2409_v3  ;;  %v2306_v36 = vand.u32 2147483647, %v8513_v0 }
 0x420   :  { %v2312_v57 = vmul.f32 %v2290_v42, %v8407_v49  ;;  %6168 = vrcp.f32 %v2428_v34  ;;  %v2300_v48 = vmul.f32 %v6157_v50, %v2299_v52  ;;  %v2308_v58 = vand.u32 2147483648, %v8513_v0 }
 0x421   :  { %vm2307_vm3 = vcmp.eq.f32.partialorder %v2306_v36, 8.507059e+37  ;;  %v2440_v60 = vand.u32 2147483648, %v2428_v34  ;;  %v2421_v56 = vand.u32 2147483648, %v2409_v3  ;;  %v2419_v55 = vand.u32 2147483647, %v2409_v3 }
 0x422   :  { %v8520_v62 = vadd.f32 %v2313_v35, %v2312_v57  ;;  %v2301_v43 = vadd.f32 %v6157_v50, %v2300_v48  ;;  %v2438_v35 = vand.u32 2147483647, %v2428_v34  ;;  %vm2415_vm6 = vweird.f32 %v2409_v3 }
 0x423   :  { %v6165_v51 = vpop.eup %6164  ;;  %vm2434_vm7 = vweird.f32 %v2428_v34  ;;  %v2441_v59 = vor.u32 1.1754944e-38, %v2440_v60  ;;  %vm2420_vm10 = vcmp.eq.f32.partialorder %v2419_v55, 8.507059e+37 }
 0x424   :  { %6170 = vtanh.f32 %v8520_v62  ;;  %v8523_v45 = vadd.f32 1.0, %v6165_v51  ;;  %v2305_v41 = vsel %vm2304_vm2, %v6157_v50, %v2301_v43  ;;  %v2309_v51 = vor.u32 1.1754944e-38, %v2308_v58 }
 0x425   :  { %v6167_v37 = vpop.eup %6166  ;;  %v2422_v43 = vor.u32 1.1754944e-38, %v2421_v56  ;;  %vm2439_vm11 = vcmp.eq.f32.partialorder %v2438_v35, 8.507059e+37  ;;  %v10196_v35 = vld [vmem:[#allocation48_spill] sm:$0xff] }
 0x426   :  { %v6169_v49 = vpop.eup %6168  ;;  %v2411_v38 = vmul.f32 %v6167_v37, %v2409_v3  ;;  %6172 = vrcp.f32 %v8523_v45  ;;  %vm2416_vm4 = vweird.f32 %v6167_v37  ;;  %v2310_v42 = vsel %vm2307_vm3, %v2309_v51, %v2305_v41 }
 0x427   :  { %v2430_v53 = vmul.f32 %v6169_v49, %v2428_v34  ;;  %6174 = vtanh.f32 %v2404_v63  ;;  %vm2435_vm5 = vweird.f32 %v6169_v49  ;;  %vm2417_vm8 = vmor %vm2415_vm6, %vm2416_vm4  ;;  %vm2454_vm13 = vweird.f32 %v8523_v45 }
 0x428   :  { %v2412_v33 = vsub.f32 1.0, %v2411_v38  ;;  %vm2436_vm9 = vmor %vm2434_vm7, %vm2435_vm5  ;;  %v2458_v60 = vand.u32 2147483647, %v8523_v45 }
 0x429   :  { %v2431_v47 = vsub.f32 1.0, %v2430_v53 }
 0x42a   :  { %v6171_v54 = vpop.eup %6170  ;;  %v2413_v52 = vmul.f32 %v6167_v37, %v2412_v33  ;;  %vm2459_vm15 = vcmp.eq.f32.partialorder %v2458_v60, 8.507059e+37  ;;  %v10214_v60 = vld [vmem:[#allocation34_spill] sm:$0xff] }
 0x42b   :  { %v2432_v0 = vmul.f32 %v6169_v49, %v2431_v47  ;;  %v8530_v57 = vmul.f32 %v6171_v54, %v2310_v42  ;;  %v10194_v42 = vld [vmem:[#allocation53_spill] sm:$0xff] }
 0x42c   :  { %v8532_v48 = vpop.eup %6172  ;;  %v2414_v50 = vadd.f32 %v6167_v37, %v2413_v52 }
 0x42d   :  { %10192 = vst [vmem:[#allocation240_spill] sm:$0xff] %v8530_v57  ;;  %v2433_v36 = vadd.f32 %v6169_v49, %v2432_v0  ;;  %v2450_v58 = vmul.f32 %v8532_v48, %v8523_v45  ;;  %2490 = vmatmul.f32.vlgmr.msra.gmra.mxu0 %v8530_v57  ;;  %2510 = vmatmul.f32.vlgmr.msra.gmra.mxu1 %v8530_v57  ;;  %v6175_v3 = vpop.eup %6174  ;;  %vm2455_vm12 = vweird.f32 %v8532_v48  ;;  %v10195_v0 = vld [vmem:[#allocation47_spill] sm:$0xff] }
 0x42e   :  { %v2418_v63 = vsel %vm2417_vm8, %v6167_v37, %v2414_v50  ;;  %2530 = vmatmul.f32.vlgmr.msra.gmra.mxu2 %v8530_v57  ;;  %2550 = vmatmul.f32.vlgmr.msra.gmra.mxu3 %v8530_v57  ;;  %vm2456_vm14 = vmor %vm2454_vm13, %vm2455_vm12  ;;  %v10198_v50 = vld [vmem:[#allocation50_spill] sm:$0xff]  ;;  %v10219_v57 = vld [vmem:[#allocation23_spill] sm:$0xff] }
 0x42f   :  { %v2423_v34 = vsel %vm2420_vm10, %v2422_v43, %v2418_v63  ;;  %v2437_v38 = vsel %vm2436_vm9, %v6169_v49, %v2433_v36  ;;  %v2451_v53 = vsub.f32 1.0, %v2450_v58  ;;  %2786 = vmatpush.msra.mxu0 %v6705_v29  ;;  %2806 = vmatpush.msra.mxu1 %v6710_v30  ;;  %v10199_v43 = vld [vmem:[#allocation43_spill] sm:$0xff]  ;;  %v10200_v36 = vld [vmem:[#allocation44_spill] sm:$0xff]  ;;  %v10201_v58 = vld [vmem:[#allocation45_spill] sm:$0xff] }
 0x430   :  { %v2442_v41 = vsel %vm2439_vm11, %v2441_v59, %v2437_v38  ;;  %v2465_v33 = vmul.f32 %v6175_v3, %v2423_v34  ;;  %2826 = vmatpush.msra.mxu2 %v6715_v31  ;;  %2846 = vmatpush.msra.mxu3 %v6720_v32  ;;  %v10202_v59 = vld [vmem:[#allocation46_spill] sm:$0xff]  ;;  %v10203_v63 = vld [vmem:[#allocation39_spill] sm:$0xff]  ;;  %v10204_v3 = vld [vmem:[#allocation40_spill] sm:$0xff] }
 0x431   :  { %v2464_v37 = vmul.f32 %v2442_v41, %v8437_v40  ;;  %v2452_v51 = vmul.f32 %v8532_v48, %v2451_v53  ;;  %2787 = vmatpush.msra.mxu0 %v6685_v25  ;;  %2807 = vmatpush.msra.mxu1 %v6690_v26  ;;  %v2460_v40 = vand.u32 2147483648, %v8523_v45  ;;  %v10205_v34 = vld [vmem:[#allocation41_spill] sm:$0xff]  ;;  %v10206_v38 = vld [vmem:[#allocation42_spill] sm:$0xff]  ;;  %v10207_v53 = vld [vmem:[#allocation35_spill] sm:$0xff] }
 0x432   :  { %2827 = vmatpush.msra.mxu2 %v6695_v27  ;;  %2847 = vmatpush.msra.mxu3 %v6700_v28  ;;  %v10208_v41 = vld [vmem:[#allocation36_spill] sm:$0xff] }
 0x433   :  { %v8550_v49 = vadd.f32 %v2465_v33, %v2464_v37  ;;  %2788 = vmatpush.msra.mxu0 %v6665_v21  ;;  %2808 = vmatpush.msra.mxu1 %v6670_v22  ;;  %v2453_v47 = vadd.f32 %v8532_v48, %v2452_v51  ;;  %v2461_v54 = vor.u32 1.1754944e-38, %v2460_v40  ;;  %v10209_v33 = vld [vmem:[#allocation37_spill] sm:$0xff]  ;;  %v10210_v37 = vld [vmem:[#allocation38_spill] sm:$0xff]  ;;  %v10211_v51 = vld [vmem:[#allocation31_spill] sm:$0xff] }
 0x434   :  { %2828 = vmatpush.msra.mxu2 %v6675_v23  ;;  %2848 = vmatpush.msra.mxu3 %v6680_v24  ;;  %v10213_v40 = vld [vmem:[#allocation33_spill] sm:$0xff] }
 0x435   :  { %6176 = vtanh.f32 %v8550_v49  ;;  %2789 = vmatpush.msra.mxu0 %v6645_v17  ;;  %2809 = vmatpush.msra.mxu1 %v6650_v18  ;;  %v2457_v56 = vsel %vm2456_vm14, %v8532_v48, %v2453_v47  ;;  %v10197_v48 = vld [vmem:[#allocation49_spill] sm:$0xff]  ;;  %v10212_v47 = vld [vmem:[#allocation32_spill] sm:$0xff] }
 0x436   :  { %2829 = vmatpush.msra.mxu2 %v6655_v19  ;;  %2849 = vmatpush.msra.mxu3 %v6660_v20  ;;  %v2462_v52 = vsel %vm2459_vm15, %v2461_v54, %v2457_v56  ;;  %v10215_v56 = vld [vmem:[#allocation27_spill] sm:$0xff]  ;;  %v10216_v54 = vld [vmem:[#allocation28_spill] sm:$0xff] }
 0x437   :  { %2790 = vmatpush.msra.mxu0 %v6625_v13  ;;  %2810 = vmatpush.msra.mxu1 %v6630_v14 }
 0x438   :  { %2830 = vmatpush.msra.mxu2 %v6635_v15  ;;  %2850 = vmatpush.msra.mxu3 %v6640_v16 }
 0x439   :  { %2791 = vmatpush.msra.mxu0 %v6605_v9  ;;  %2811 = vmatpush.msra.mxu1 %v6610_v10 }
 0x43a   :  { %2831 = vmatpush.msra.mxu2 %v6615_v11  ;;  %2851 = vmatpush.msra.mxu3 %v6620_v12 }
 0x43b   :  { %v6177_v45 = vpop.eup %6176  ;;  %2792 = vmatpush.msra.mxu0 %v6585_v5  ;;  %2812 = vmatpush.msra.mxu1 %v6590_v6 }
 0x43c   :  { %v8577_v55 = vmul.f32 %v6177_v45, %v2462_v52  ;;  %2832 = vmatpush.msra.mxu2 %v6595_v7  ;;  %2852 = vmatpush.msra.mxu3 %v6600_v8  ;;  %v10217_v45 = vld [vmem:[#allocation29_spill] sm:$0xff]  ;;  %v10218_v52 = vld [vmem:[#allocation30_spill] sm:$0xff] }
 0x43d   :  { %2793 = vmatpush.msra.mxu0 %v6565_v1  ;;  %2813 = vmatpush.msra.mxu1 %v6570_v2 }
 0x43e   :  { %10193 = vst [vmem:[#allocation266_spill] sm:$0xff] %v8577_v55  ;;  %2642 = vmatmul.f32.vlgmr.msrb.gmra.mxu0 %v8577_v55  ;;  %2662 = vmatmul.f32.vlgmr.msrb.gmra.mxu1 %v8577_v55 }
 0x43f   :  { %2682 = vmatmul.f32.vlgmr.msrb.gmra.mxu2 %v8577_v55  ;;  %2702 = vmatmul.f32.vlgmr.msrb.gmra.mxu3 %v8577_v55  ;;  %v10220_v55 = vld [vmem:[#allocation24_spill] sm:$0xff] }
 0x440   :  { %2833 = vmatpush.msra.mxu2 %v10035_v46  ;;  %2853 = vmatpush.msra.mxu3 %v6580_v4 }
 0x441   :  { %2938 = vmatpush.msrb.mxu0 %v6865_v61  ;;  %2958 = vmatpush.msrb.mxu1 %v10033_v44 }
 0x442   :  { %2978 = vmatpush.msrb.mxu2 %v10042_v39  ;;  %2998 = vmatpush.msrb.mxu3 %v10194_v42 }
 0x443   :  { %2939 = vmatpush.msrb.mxu0 %v10195_v0  ;;  %2959 = vmatpush.msrb.mxu1 %v10196_v35 }
 0x444   :  { %2979 = vmatpush.msrb.mxu2 %v10197_v48  ;;  %2999 = vmatpush.msrb.mxu3 %v10198_v50 }
 0x445   :  { %2940 = vmatpush.msrb.mxu0 %v10199_v43  ;;  %2960 = vmatpush.msrb.mxu1 %v10200_v36 }
 0x446   :  { %2980 = vmatpush.msrb.mxu2 %v10201_v58  ;;  %3000 = vmatpush.msrb.mxu3 %v10202_v59 }
 0x447   :  { %2941 = vmatpush.msrb.mxu0 %v10203_v63  ;;  %2961 = vmatpush.msrb.mxu1 %v10204_v3 }
 0x448   :  { %2981 = vmatpush.msrb.mxu2 %v10205_v34  ;;  %3001 = vmatpush.msrb.mxu3 %v10206_v38 }
 0x449   :  { %2942 = vmatpush.msrb.mxu0 %v10207_v53  ;;  %2962 = vmatpush.msrb.mxu1 %v10208_v41  ;;  %v10224_v41 = vld [vmem:[#allocation215_spill] sm:$0xff] }
 0x44a   :  { %2982 = vmatpush.msrb.mxu2 %v10209_v33  ;;  %3002 = vmatpush.msrb.mxu3 %v10210_v37  ;;  %v10221_v37 = vld [vmem:[#allocation25_spill] sm:$0xff]  ;;  %v10223_v33 = vld [vmem:[#allocation214_spill] sm:$0xff] }
 0x44b   :  { %2943 = vmatpush.msrb.mxu0 %v10211_v51  ;;  %2963 = vmatpush.msrb.mxu1 %v10212_v47  ;;  %v10222_v51 = vld [vmem:[#allocation26_spill] sm:$0xff] }
 0x44c   :  { %2983 = vmatpush.msrb.mxu2 %v10213_v40  ;;  %3003 = vmatpush.msrb.mxu3 %v10214_v60 }
 0x44d   :  { %2944 = vmatpush.msrb.mxu0 %v10215_v56  ;;  %2964 = vmatpush.msrb.mxu1 %v10216_v54 }
 0x44e   :  { %2984 = vmatpush.msrb.mxu2 %v10217_v45  ;;  %3004 = vmatpush.msrb.mxu3 %v10218_v52  ;;  %v10225_v52 = vld [vmem:[#allocation217_spill] sm:$0xff] }
 0x44f   :  { %2945 = vmatpush.msrb.mxu0 %v10219_v57  ;;  %2965 = vmatpush.msrb.mxu1 %v10220_v55 }
 0x450   :  { %2985 = vmatpush.msrb.mxu2 %v10221_v37  ;;  %3005 = vmatpush.msrb.mxu3 %v10222_v51 }
 0x4aa   :  { %v2491_v47 = vpop.f32.mrf.mxu0  ;;  %v2511_v40 = vpop.f32.mrf.mxu1 }
 0x4ab   :  { %v2554_v60 = vadd.f32 %v2491_v47, %v10223_v33  ;;  %v2555_v56 = vadd.f32 %v2511_v40, %v10224_v41  ;;  %v10226_v41 = vld [vmem:[#allocation250_spill] sm:$0xff] }
 0x4ad   :  { %v5987_v53 = vmul.f32 -1.442695, %v2554_v60  ;;  %v5988_v54 = vmul.f32 -1.442695, %v2555_v56  ;;  %v10227_v60 = vld [vmem:[#allocation251_spill] sm:$0xff] }
 0x4af   :  { %6178 = vpow2.f32 %v5987_v53 }
 0x4b0   :  { %6180 = vpow2.f32 %v5988_v54 }
 0x4b1   :  { %v2551_v45 = vpop.f32.mrf.mxu3  ;;  %v2531_v51 = vpop.f32.mrf.mxu2 }
 0x4b2   :  { %v2557_v38 = vadd.f32 %v2551_v45, %v10225_v52  ;;  %v10228_v45 = vld [vmem:[#allocation216_spill] sm:$0xff] }
 0x4b4   :  { %v5989_v57 = vmul.f32 -1.442695, %v2557_v38  ;;  %v2556_v38 = vadd.f32 %v2531_v51, %v10228_v45  ;;  %v10229_v51 = vld [vmem:[#allocation253_spill] sm:$0xff] }
 0x4b5   :  { %v6179_v34 = vpop.eup %6178 }
 0x4b6   :  { %v6181_v55 = vpop.eup %6180  ;;  %v2561_v3 = vadd.f32 1.0, %v6179_v34  ;;  %6182 = vpow2.f32 %v5989_v57 }
 0x4b7   :  { %v2580_v37 = vadd.f32 1.0, %v6181_v55 }
 0x4b8   :  { %6184 = vrcp.f32 %v2561_v3  ;;  %v2571_v36 = vand.u32 2147483647, %v2561_v3  ;;  %vm2567_vm2 = vweird.f32 %v2561_v3 }
 0x4b9   :  { %6186 = vrcp.f32 %v2580_v37  ;;  %vm2586_vm3 = vweird.f32 %v2580_v37 }
 0x4ba   :  { %vm2572_vm4 = vcmp.eq.f32.partialorder %v2571_v36, 8.507059e+37 }
 0x4bb   :  { %v2643_v63 = vpop.f32.mrf.mxu0  ;;  %v2663_v33 = vpop.f32.mrf.mxu1 }
 0x4bc   :  { %v6183_v47 = vpop.eup %6182  ;;  %v2706_v40 = vadd.f32 %v2643_v63, %v10226_v41  ;;  %v2707_v53 = vadd.f32 %v2663_v33, %v10227_v60  ;;  %v2592_v63 = vand.u32 2147483648, %v2580_v37  ;;  %v2573_v41 = vand.u32 2147483648, %v2561_v3 }
 0x4bd   :  { %v8626_v56 = vadd.f32 1.0, %v6183_v47  ;;  %v2590_v60 = vand.u32 2147483647, %v2580_v37 }
 0x4be   :  { %v6185_v54 = vpop.eup %6184  ;;  %v5990_v52 = vmul.f32 -1.442695, %v2706_v40  ;;  %v5991_v59 = vmul.f32 -1.442695, %v2707_v53 }
 0x4bf   :  { %v6187_v34 = vpop.eup %6186  ;;  %v2563_v57 = vmul.f32 %v6185_v54, %v2561_v3  ;;  %6188 = vrcp.f32 %v8626_v56  ;;  %vm2568_vm0 = vweird.f32 %v6185_v54  ;;  %vm2591_vm7 = vcmp.eq.f32.partialorder %v2590_v60, 8.507059e+37  ;;  %v10230_v60 = vld [vmem:[#allocation252_spill] sm:$0xff] }
 0x4c0   :  { %v2582_v55 = vmul.f32 %v6187_v34, %v2580_v37  ;;  %6190 = vpow2.f32 %v5990_v52  ;;  %vm2587_vm1 = vweird.f32 %v6187_v34  ;;  %vm2569_vm5 = vmor %vm2567_vm2, %vm2568_vm0  ;;  %vm2606_vm9 = vweird.f32 %v8626_v56 }
 0x4c1   :  { %v2564_v58 = vsub.f32 1.0, %v2563_v57  ;;  %6192 = vpow2.f32 %v5991_v59  ;;  %v2593_v59 = vor.u32 1.1754944e-38, %v2592_v63  ;;  %vm2588_vm6 = vmor %vm2586_vm3, %vm2587_vm1 }
 0x4c2   :  { %v2583_v43 = vsub.f32 1.0, %v2582_v55  ;;  %6194 = vtanh.f32 %v2556_v38  ;;  %v2703_v33 = vpop.f32.mrf.mxu3  ;;  %v2574_v55 = vor.u32 1.1754944e-38, %v2573_v41  ;;  %v2683_v0 = vpop.f32.mrf.mxu2 }
 0x4c3   :  { %v2565_v47 = vmul.f32 %v6185_v54, %v2564_v58  ;;  %v2709_v40 = vadd.f32 %v2703_v33, %v10229_v51 }
 0x4c4   :  { %v2584_v53 = vmul.f32 %v6187_v34, %v2583_v43 }
 0x4c5   :  { %v6189_v45 = vpop.eup %6188  ;;  %v2566_v50 = vadd.f32 %v6185_v54, %v2565_v47  ;;  %v5992_v52 = vmul.f32 -1.442695, %v2709_v40 }
 0x4c6   :  { %v6191_v57 = vpop.eup %6190  ;;  %v2585_v48 = vadd.f32 %v6187_v34, %v2584_v53  ;;  %v2602_v38 = vmul.f32 %v6189_v45, %v8626_v56  ;;  %vm2607_vm8 = vweird.f32 %v6189_v45 }
 0x4c7   :  { %v6193_v58 = vpop.eup %6192  ;;  %v2570_v35 = vsel %vm2569_vm5, %v6185_v54, %v2566_v50  ;;  %v2713_v33 = vadd.f32 1.0, %v6191_v57  ;;  %6196 = vpow2.f32 %v5992_v52  ;;  %v2708_v52 = vadd.f32 %v2683_v0, %v10230_v60  ;;  %vm2608_vm10 = vmor %vm2606_vm9, %vm2607_vm8 }
 0x4c8   :  { %v6195_v43 = vpop.eup %6194  ;;  %v2575_v3 = vsel %vm2572_vm4, %v2574_v55, %v2570_v35  ;;  %v2589_v51 = vsel %vm2588_vm6, %v6187_v34, %v2585_v48  ;;  %v2603_v37 = vsub.f32 1.0, %v2602_v38  ;;  %v2732_v47 = vadd.f32 1.0, %v6193_v58 }
 0x4c9   :  { %v2594_v36 = vsel %vm2591_vm7, %v2593_v59, %v2589_v51  ;;  %v2617_v40 = vmul.f32 %v6195_v43, %v2575_v3  ;;  %6198 = vrcp.f32 %v2713_v33  ;;  %v2610_v35 = vand.u32 2147483647, %v8626_v56 }
 0x4ca   :  { %v2616_v63 = vmul.f32 %v2594_v36, %v8520_v62  ;;  %6200 = vrcp.f32 %v2732_v47  ;;  %v2604_v41 = vmul.f32 %v6189_v45, %v2603_v37  ;;  %v2612_v48 = vand.u32 2147483648, %v8626_v56 }
 0x4cb   :  { %vm2611_vm11 = vcmp.eq.f32.partialorder %v2610_v35, 8.507059e+37  ;;  %v2744_v43 = vand.u32 2147483648, %v2732_v47  ;;  %v2725_v3 = vand.u32 2147483648, %v2713_v33  ;;  %v2723_v0 = vand.u32 2147483647, %v2713_v33 }
 0x4cc   :  { %v8633_v53 = vadd.f32 %v2617_v40, %v2616_v63  ;;  %v2605_v50 = vadd.f32 %v6189_v45, %v2604_v41  ;;  %v2742_v40 = vand.u32 2147483647, %v2732_v47  ;;  %vm2719_vm14 = vweird.f32 %v2713_v33 }
 0x4cd   :  { %v6197_v42 = vpop.eup %6196  ;;  %vm2738_vm15 = vweird.f32 %v2732_v47  ;;  %v2745_v60 = vor.u32 1.1754944e-38, %v2744_v43  ;;  %vm2724_vm2 = vcmp.eq.f32.partialorder %v2723_v0, 8.507059e+37 }
 0x4ce   :  { %6202 = vtanh.f32 %v8633_v53  ;;  %v8636_v54 = vadd.f32 1.0, %v6197_v42  ;;  %v2609_v55 = vsel %vm2608_vm10, %v6189_v45, %v2605_v50  ;;  %v2613_v42 = vor.u32 1.1754944e-38, %v2612_v48 }
 0x4cf   :  { %v6199_v34 = vpop.eup %6198  ;;  %v2726_v50 = vor.u32 1.1754944e-38, %v2725_v3  ;;  %vm2743_vm3 = vcmp.eq.f32.partialorder %v2742_v40, 8.507059e+37  ;;  %v10235_v40 = vld [vmem:[#allocation48_spill] sm:$0xff] }
 0x4d0   :  { %v6201_v62 = vpop.eup %6200  ;;  %v2715_v57 = vmul.f32 %v6199_v34, %v2713_v33  ;;  %6204 = vrcp.f32 %v8636_v54  ;;  %vm2720_vm12 = vweird.f32 %v6199_v34  ;;  %v2614_v36 = vsel %vm2611_vm11, %v2613_v42, %v2609_v55 }
 0x4d1   :  { %v2734_v59 = vmul.f32 %v6201_v62, %v2732_v47  ;;  %6206 = vtanh.f32 %v2708_v52  ;;  %vm2739_vm13 = vweird.f32 %v6201_v62  ;;  %vm2721_vm0 = vmor %vm2719_vm14, %vm2720_vm12  ;;  %vm2758_vm5 = vweird.f32 %v8636_v54 }
 0x4d2   :  { %v2716_v38 = vsub.f32 1.0, %v2715_v57  ;;  %vm2740_vm1 = vmor %vm2738_vm15, %vm2739_vm13  ;;  %v2762_v43 = vand.u32 2147483647, %v8636_v54 }
 0x4d3   :  { %v2735_v58 = vsub.f32 1.0, %v2734_v59 }
 0x4d4   :  { %v6203_v51 = vpop.eup %6202  ;;  %v2717_v37 = vmul.f32 %v6199_v34, %v2716_v38  ;;  %vm2763_vm7 = vcmp.eq.f32.partialorder %v2762_v43, 8.507059e+37  ;;  %v10253_v43 = vld [vmem:[#allocation34_spill] sm:$0xff] }
 0x4d5   :  { %v2736_v56 = vmul.f32 %v6201_v62, %v2735_v58  ;;  %v8643_v63 = vmul.f32 %v6203_v51, %v2614_v36  ;;  %v10233_v36 = vld [vmem:[#allocation53_spill] sm:$0xff] }
 0x4d6   :  { %v8645_v41 = vpop.eup %6204  ;;  %v2718_v45 = vadd.f32 %v6199_v34, %v2717_v37 }
 0x4d7   :  { %10231 = vst [vmem:[#allocation267_spill] sm:$0xff] %v8643_v63  ;;  %v2737_v35 = vadd.f32 %v6201_v62, %v2736_v56  ;;  %v2754_v48 = vmul.f32 %v8645_v41, %v8636_v54  ;;  %2794 = vmatmul.f32.vlgmr.msra.gmra.mxu0 %v8643_v63  ;;  %2814 = vmatmul.f32.vlgmr.msra.gmra.mxu1 %v8643_v63  ;;  %v6207_v33 = vpop.eup %6206  ;;  %vm2759_vm4 = vweird.f32 %v8645_v41  ;;  %v10234_v56 = vld [vmem:[#allocation47_spill] sm:$0xff] }
 0x4d8   :  { %v2722_v52 = vsel %vm2721_vm0, %v6199_v34, %v2718_v45  ;;  %2834 = vmatmul.f32.vlgmr.msra.gmra.mxu2 %v8643_v63  ;;  %2854 = vmatmul.f32.vlgmr.msra.gmra.mxu3 %v8643_v63  ;;  %vm2760_vm6 = vmor %vm2758_vm5, %vm2759_vm4  ;;  %v10237_v45 = vld [vmem:[#allocation50_spill] sm:$0xff]  ;;  %v10258_v63 = vld [vmem:[#allocation23_spill] sm:$0xff] }
 0x4d9   :  { %v2727_v47 = vsel %vm2724_vm2, %v2726_v50, %v2722_v52  ;;  %v2741_v57 = vsel %vm2740_vm1, %v6201_v62, %v2737_v35  ;;  %v2755_v59 = vsub.f32 1.0, %v2754_v48  ;;  %3090 = vmatpush.msra.mxu0 %v6705_v29  ;;  %3110 = vmatpush.msra.mxu1 %v6710_v30  ;;  %v10238_v50 = vld [vmem:[#allocation43_spill] sm:$0xff]  ;;  %v10239_v35 = vld [vmem:[#allocation44_spill] sm:$0xff]  ;;  %v10240_v48 = vld [vmem:[#allocation45_spill] sm:$0xff] }
 0x4da   :  { %v2746_v55 = vsel %vm2743_vm3, %v2745_v60, %v2741_v57  ;;  %v2769_v38 = vmul.f32 %v6207_v33, %v2727_v47  ;;  %3130 = vmatpush.msra.mxu2 %v6715_v31  ;;  %3150 = vmatpush.msra.mxu3 %v6720_v32  ;;  %v10241_v60 = vld [vmem:[#allocation46_spill] sm:$0xff]  ;;  %v10242_v52 = vld [vmem:[#allocation39_spill] sm:$0xff]  ;;  %v10243_v33 = vld [vmem:[#allocation40_spill] sm:$0xff] }
 0x4db   :  { %v2768_v34 = vmul.f32 %v2746_v55, %v8550_v49  ;;  %v2756_v42 = vmul.f32 %v8645_v41, %v2755_v59  ;;  %3091 = vmatpush.msra.mxu0 %v6685_v25  ;;  %3111 = vmatpush.msra.mxu1 %v6690_v26  ;;  %v2764_v49 = vand.u32 2147483648, %v8636_v54  ;;  %v10244_v47 = vld [vmem:[#allocation41_spill] sm:$0xff]  ;;  %v10245_v57 = vld [vmem:[#allocation42_spill] sm:$0xff]  ;;  %v10246_v59 = vld [vmem:[#allocation35_spill] sm:$0xff] }
 0x4dc   :  { %3131 = vmatpush.msra.mxu2 %v6695_v27  ;;  %3151 = vmatpush.msra.mxu3 %v6700_v28  ;;  %v10247_v55 = vld [vmem:[#allocation36_spill] sm:$0xff] }
 0x4dd   :  { %v8663_v62 = vadd.f32 %v2769_v38, %v2768_v34  ;;  %3092 = vmatpush.msra.mxu0 %v6665_v21  ;;  %3112 = vmatpush.msra.mxu1 %v6670_v22  ;;  %v2757_v58 = vadd.f32 %v8645_v41, %v2756_v42  ;;  %v2765_v51 = vor.u32 1.1754944e-38, %v2764_v49  ;;  %v10248_v38 = vld [vmem:[#allocation37_spill] sm:$0xff]  ;;  %v10249_v34 = vld [vmem:[#allocation38_spill] sm:$0xff]  ;;  %v10250_v42 = vld [vmem:[#allocation31_spill] sm:$0xff] }
 0x4de   :  { %3132 = vmatpush.msra.mxu2 %v6675_v23  ;;  %3152 = vmatpush.msra.mxu3 %v6680_v24  ;;  %v10252_v49 = vld [vmem:[#allocation33_spill] sm:$0xff] }
 0x4df   :  { %6208 = vtanh.f32 %v8663_v62  ;;  %3093 = vmatpush.msra.mxu0 %v6645_v17  ;;  %3113 = vmatpush.msra.mxu1 %v6650_v18  ;;  %v2761_v3 = vsel %vm2760_vm6, %v8645_v41, %v2757_v58  ;;  %v10236_v41 = vld [vmem:[#allocation49_spill] sm:$0xff]  ;;  %v10251_v58 = vld [vmem:[#allocation32_spill] sm:$0xff] }
 0x4e0   :  { %3133 = vmatpush.msra.mxu2 %v6655_v19  ;;  %3153 = vmatpush.msra.mxu3 %v6660_v20  ;;  %v2766_v37 = vsel %vm2763_vm7, %v2765_v51, %v2761_v3  ;;  %v10254_v3 = vld [vmem:[#allocation27_spill] sm:$0xff]  ;;  %v10255_v51 = vld [vmem:[#allocation28_spill] sm:$0xff] }
 0x4e1   :  { %3094 = vmatpush.msra.mxu0 %v6625_v13  ;;  %3114 = vmatpush.msra.mxu1 %v6630_v14 }
 0x4e2   :  { %3134 = vmatpush.msra.mxu2 %v6635_v15  ;;  %3154 = vmatpush.msra.mxu3 %v6640_v16 }
 0x4e3   :  { %3095 = vmatpush.msra.mxu0 %v6605_v9  ;;  %3115 = vmatpush.msra.mxu1 %v6610_v10 }
 0x4e4   :  { %3135 = vmatpush.msra.mxu2 %v6615_v11  ;;  %3155 = vmatpush.msra.mxu3 %v6620_v12 }
 0x4e5   :  { %v6209_v54 = vpop.eup %6208  ;;  %3096 = vmatpush.msra.mxu0 %v6585_v5  ;;  %3116 = vmatpush.msra.mxu1 %v6590_v6 }
 0x4e6   :  { %v8690_v0 = vmul.f32 %v6209_v54, %v2766_v37  ;;  %3136 = vmatpush.msra.mxu2 %v6595_v7  ;;  %3156 = vmatpush.msra.mxu3 %v6600_v8  ;;  %v10256_v54 = vld [vmem:[#allocation29_spill] sm:$0xff]  ;;  %v10257_v37 = vld [vmem:[#allocation30_spill] sm:$0xff] }
 0x4e7   :  { %3097 = vmatpush.msra.mxu0 %v6565_v1  ;;  %3117 = vmatpush.msra.mxu1 %v6570_v2 }
 0x4e8   :  { %10232 = vst [vmem:[#allocation269_spill] sm:$0xff] %v8690_v0  ;;  %2946 = vmatmul.f32.vlgmr.msrb.gmra.mxu0 %v8690_v0  ;;  %2966 = vmatmul.f32.vlgmr.msrb.gmra.mxu1 %v8690_v0 }
 0x4e9   :  { %2986 = vmatmul.f32.vlgmr.msrb.gmra.mxu2 %v8690_v0  ;;  %3006 = vmatmul.f32.vlgmr.msrb.gmra.mxu3 %v8690_v0  ;;  %v10259_v0 = vld [vmem:[#allocation24_spill] sm:$0xff] }
 0x4ea   :  { %3137 = vmatpush.msra.mxu2 %v10035_v46  ;;  %3157 = vmatpush.msra.mxu3 %v6580_v4 }
 0x4eb   :  { %3242 = vmatpush.msrb.mxu0 %v6865_v61  ;;  %3262 = vmatpush.msrb.mxu1 %v10033_v44 }
 0x4ec   :  { %3282 = vmatpush.msrb.mxu2 %v10042_v39  ;;  %3302 = vmatpush.msrb.mxu3 %v10233_v36 }
 0x4ed   :  { %3243 = vmatpush.msrb.mxu0 %v10234_v56  ;;  %3263 = vmatpush.msrb.mxu1 %v10235_v40 }
 0x4ee   :  { %3283 = vmatpush.msrb.mxu2 %v10236_v41  ;;  %3303 = vmatpush.msrb.mxu3 %v10237_v45 }
 0x4ef   :  { %3244 = vmatpush.msrb.mxu0 %v10238_v50  ;;  %3264 = vmatpush.msrb.mxu1 %v10239_v35 }
 0x4f0   :  { %3284 = vmatpush.msrb.mxu2 %v10240_v48  ;;  %3304 = vmatpush.msrb.mxu3 %v10241_v60 }
 0x4f1   :  { %3245 = vmatpush.msrb.mxu0 %v10242_v52  ;;  %3265 = vmatpush.msrb.mxu1 %v10243_v33 }
 0x4f2   :  { %3285 = vmatpush.msrb.mxu2 %v10244_v47  ;;  %3305 = vmatpush.msrb.mxu3 %v10245_v57 }
 0x4f3   :  { %3246 = vmatpush.msrb.mxu0 %v10246_v59  ;;  %3266 = vmatpush.msrb.mxu1 %v10247_v55  ;;  %v10263_v55 = vld [vmem:[#allocation223_spill] sm:$0xff] }
 0x4f4   :  { %3286 = vmatpush.msrb.mxu2 %v10248_v38  ;;  %3306 = vmatpush.msrb.mxu3 %v10249_v34  ;;  %v10260_v34 = vld [vmem:[#allocation25_spill] sm:$0xff]  ;;  %v10262_v38 = vld [vmem:[#allocation222_spill] sm:$0xff] }
 0x4f5   :  { %3247 = vmatpush.msrb.mxu0 %v10250_v42  ;;  %3267 = vmatpush.msrb.mxu1 %v10251_v58  ;;  %v10261_v42 = vld [vmem:[#allocation26_spill] sm:$0xff] }
 0x4f6   :  { %3287 = vmatpush.msrb.mxu2 %v10252_v49  ;;  %3307 = vmatpush.msrb.mxu3 %v10253_v43 }
 0x4f7   :  { %3248 = vmatpush.msrb.mxu0 %v10254_v3  ;;  %3268 = vmatpush.msrb.mxu1 %v10255_v51 }
 0x4f8   :  { %3288 = vmatpush.msrb.mxu2 %v10256_v54  ;;  %3308 = vmatpush.msrb.mxu3 %v10257_v37  ;;  %v10264_v37 = vld [vmem:[#allocation225_spill] sm:$0xff] }
 0x4f9   :  { %3249 = vmatpush.msrb.mxu0 %v10258_v63  ;;  %3269 = vmatpush.msrb.mxu1 %v10259_v0 }
 0x4fa   :  { %3289 = vmatpush.msrb.mxu2 %v10260_v34  ;;  %3309 = vmatpush.msrb.mxu3 %v10261_v42 }
 0x554   :  { %v2795_v58 = vpop.f32.mrf.mxu0  ;;  %v2815_v49 = vpop.f32.mrf.mxu1 }
 0x555   :  { %v2858_v43 = vadd.f32 %v2795_v58, %v10262_v38  ;;  %v2859_v3 = vadd.f32 %v2815_v49, %v10263_v55  ;;  %v10265_v55 = vld [vmem:[#allocation234_spill] sm:$0xff] }
 0x557   :  { %v5993_v59 = vmul.f32 -1.442695, %v2858_v43  ;;  %v5994_v51 = vmul.f32 -1.442695, %v2859_v3  ;;  %v10266_v43 = vld [vmem:[#allocation235_spill] sm:$0xff] }
 0x559   :  { %6210 = vpow2.f32 %v5993_v59 }
 0x55a   :  { %6212 = vpow2.f32 %v5994_v51 }
 0x55b   :  { %v2855_v54 = vpop.f32.mrf.mxu3  ;;  %v2835_v42 = vpop.f32.mrf.mxu2 }
 0x55c   :  { %v2861_v57 = vadd.f32 %v2855_v54, %v10264_v37  ;;  %v10267_v54 = vld [vmem:[#allocation224_spill] sm:$0xff] }
 0x55e   :  { %v5995_v63 = vmul.f32 -1.442695, %v2861_v57  ;;  %v2860_v57 = vadd.f32 %v2835_v42, %v10267_v54  ;;  %v10268_v42 = vld [vmem:[#allocation237_spill] sm:$0xff] }
 0x55f   :  { %v6211_v47 = vpop.eup %6210 }
 0x560   :  { %v6213_v0 = vpop.eup %6212  ;;  %v2865_v33 = vadd.f32 1.0, %v6211_v47  ;;  %6214 = vpow2.f32 %v5995_v63 }
 0x561   :  { %v2884_v34 = vadd.f32 1.0, %v6213_v0 }
 0x562   :  { %6216 = vrcp.f32 %v2865_v33  ;;  %v2875_v35 = vand.u32 2147483647, %v2865_v33  ;;  %vm2871_vm10 = vweird.f32 %v2865_v33 }
 0x563   :  { %6218 = vrcp.f32 %v2884_v34  ;;  %vm2890_vm11 = vweird.f32 %v2884_v34 }
 0x564   :  { %vm2876_vm12 = vcmp.eq.f32.partialorder %v2875_v35, 8.507059e+37 }
 0x565   :  { %v2947_v52 = vpop.f32.mrf.mxu0  ;;  %v2967_v38 = vpop.f32.mrf.mxu1 }
 0x566   :  { %v6215_v58 = vpop.eup %6214  ;;  %v3010_v49 = vadd.f32 %v2947_v52, %v10265_v55  ;;  %v3011_v59 = vadd.f32 %v2967_v38, %v10266_v43  ;;  %v2896_v52 = vand.u32 2147483648, %v2884_v34  ;;  %v2877_v55 = vand.u32 2147483648, %v2865_v33 }
 0x567   :  { %v8739_v3 = vadd.f32 1.0, %v6215_v58  ;;  %v2894_v43 = vand.u32 2147483647, %v2884_v34 }
 0x568   :  { %v6217_v51 = vpop.eup %6216  ;;  %v5996_v37 = vmul.f32 -1.442695, %v3010_v49  ;;  %v5997_v60 = vmul.f32 -1.442695, %v3011_v59 }
 0x569   :  { %v6219_v47 = vpop.eup %6218  ;;  %v2867_v63 = vmul.f32 %v6217_v51, %v2865_v33  ;;  %6220 = vrcp.f32 %v8739_v3  ;;  %vm2872_vm8 = vweird.f32 %v6217_v51  ;;  %vm2895_vm15 = vcmp.eq.f32.partialorder %v2894_v43, 8.507059e+37  ;;  %v10269_v43 = vld [vmem:[#allocation236_spill] sm:$0xff] }
 0x56a   :  { %v2886_v0 = vmul.f32 %v6219_v47, %v2884_v34  ;;  %6222 = vpow2.f32 %v5996_v37  ;;  %vm2891_vm9 = vweird.f32 %v6219_v47  ;;  %vm2873_vm13 = vmor %vm2871_vm10, %vm2872_vm8  ;;  %vm2910_vm1 = vweird.f32 %v8739_v3 }
 0x56b   :  { %v2868_v48 = vsub.f32 1.0, %v2867_v63  ;;  %6224 = vpow2.f32 %v5997_v60  ;;  %v2897_v60 = vor.u32 1.1754944e-38, %v2896_v52  ;;  %vm2892_vm14 = vmor %vm2890_vm11, %vm2891_vm9 }
 0x56c   :  { %v2887_v50 = vsub.f32 1.0, %v2886_v0  ;;  %6226 = vtanh.f32 %v2860_v57  ;;  %v3007_v38 = vpop.f32.mrf.mxu3  ;;  %v2878_v0 = vor.u32 1.1754944e-38, %v2877_v55  ;;  %v2987_v56 = vpop.f32.mrf.mxu2 }
 0x56d   :  { %v2869_v58 = vmul.f32 %v6217_v51, %v2868_v48  ;;  %v3013_v49 = vadd.f32 %v3007_v38, %v10268_v42 }
 0x56e   :  { %v2888_v59 = vmul.f32 %v6219_v47, %v2887_v50 }
 0x56f   :  { %v6221_v54 = vpop.eup %6220  ;;  %v2870_v45 = vadd.f32 %v6217_v51, %v2869_v58  ;;  %v5998_v37 = vmul.f32 -1.442695, %v3013_v49 }
 0x570   :  { %v6223_v63 = vpop.eup %6222  ;;  %v2889_v41 = vadd.f32 %v6219_v47, %v2888_v59  ;;  %v2906_v57 = vmul.f32 %v6221_v54, %v8739_v3  ;;  %vm2911_vm0 = vweird.f32 %v6221_v54 }
 0x571   :  { %v6225_v48 = vpop.eup %6224  ;;  %v2874_v40 = vsel %vm2873_vm13, %v6217_v51, %v2870_v45  ;;  %v3017_v38 = vadd.f32 1.0, %v6223_v63  ;;  %6228 = vpow2.f32 %v5998_v37  ;;  %v3012_v37 = vadd.f32 %v2987_v56, %v10269_v43  ;;  %vm2912_vm2 = vmor %vm2910_vm1, %vm2911_vm0 }
 0x572   :  { %v6227_v50 = vpop.eup %6226  ;;  %v2879_v33 = vsel %vm2876_vm12, %v2878_v0, %v2874_v40  ;;  %v2893_v42 = vsel %vm2892_vm14, %v6219_v47, %v2889_v41  ;;  %v2907_v34 = vsub.f32 1.0, %v2906_v57  ;;  %v3036_v58 = vadd.f32 1.0, %v6225_v48 }
 0x573   :  { %v2898_v35 = vsel %vm2895_vm15, %v2897_v60, %v2893_v42  ;;  %v2921_v49 = vmul.f32 %v6227_v50, %v2879_v33  ;;  %6230 = vrcp.f32 %v3017_v38  ;;  %v2914_v40 = vand.u32 2147483647, %v8739_v3 }
 0x574   :  { %v2920_v52 = vmul.f32 %v2898_v35, %v8633_v53  ;;  %6232 = vrcp.f32 %v3036_v58  ;;  %v2908_v55 = vmul.f32 %v6221_v54, %v2907_v34  ;;  %v2916_v41 = vand.u32 2147483648, %v8739_v3 }
 0x575   :  { %vm2915_vm3 = vcmp.eq.f32.partialorder %v2914_v40, 8.507059e+37  ;;  %v3048_v50 = vand.u32 2147483648, %v3036_v58  ;;  %v3029_v33 = vand.u32 2147483648, %v3017_v38  ;;  %v3027_v56 = vand.u32 2147483647, %v3017_v38 }
 0x576   :  { %v8746_v59 = vadd.f32 %v2921_v49, %v2920_v52  ;;  %v2909_v45 = vadd.f32 %v6221_v54, %v2908_v55  ;;  %v3046_v49 = vand.u32 2147483647, %v3036_v58  ;;  %vm3023_vm6 = vweird.f32 %v3017_v38 }
 0x577   :  { %v6229_v36 = vpop.eup %6228  ;;  %vm3042_vm7 = vweird.f32 %v3036_v58  ;;  %v3049_v43 = vor.u32 1.1754944e-38, %v3048_v50  ;;  %vm3028_vm10 = vcmp.eq.f32.partialorder %v3027_v56, 8.507059e+37 }
 0x578   :  { %6234 = vtanh.f32 %v8746_v59  ;;  %v8749_v51 = vadd.f32 1.0, %v6229_v36  ;;  %v2913_v0 = vsel %vm2912_vm2, %v6221_v54, %v2909_v45  ;;  %v2917_v36 = vor.u32 1.1754944e-38, %v2916_v41 }
 0x579   :  { %v6231_v47 = vpop.eup %6230  ;;  %v3030_v45 = vor.u32 1.1754944e-38, %v3029_v33  ;;  %vm3047_vm11 = vcmp.eq.f32.partialorder %v3046_v49, 8.507059e+37  ;;  %v10299_v33 = vld [vmem:[#allocation270_spill] sm:$0xff] }
 0x57a   :  { %v6233_v53 = vpop.eup %6232  ;;  %v3019_v63 = vmul.f32 %v6231_v47, %v3017_v38  ;;  %6236 = vrcp.f32 %v8749_v51  ;;  %vm3024_vm4 = vweird.f32 %v6231_v47  ;;  %v2918_v35 = vsel %vm2915_vm3, %v2917_v36, %v2913_v0 }
 0x57b   :  { %v3038_v60 = vmul.f32 %v6233_v53, %v3036_v58  ;;  %6238 = vtanh.f32 %v3012_v37  ;;  %vm3043_vm5 = vweird.f32 %v6233_v53  ;;  %vm3025_vm8 = vmor %vm3023_vm6, %vm3024_vm4  ;;  %vm3062_vm13 = vweird.f32 %v8749_v51 }
 0x57c   :  { %v3020_v57 = vsub.f32 1.0, %v3019_v63  ;;  %vm3044_vm9 = vmor %vm3042_vm7, %vm3043_vm5 }
 0x57d   :  { %v3039_v48 = vsub.f32 1.0, %v3038_v60 }
 0x57e   :  { %v6235_v42 = vpop.eup %6234  ;;  %v3021_v34 = vmul.f32 %v6231_v47, %v3020_v57 }
 0x57f   :  { %v3040_v3 = vmul.f32 %v6233_v53, %v3039_v48  ;;  %v8756_v52 = vmul.f32 %v6235_v42, %v2918_v35 }
 0x580   :  { %v8758_v55 = vpop.eup %6236  ;;  %v3022_v54 = vadd.f32 %v6231_v47, %v3021_v34  ;;  %v10300_v34 = vld [vmem:[#allocation271_spill] sm:$0xff] }
 0x581   :  { %v3041_v40 = vadd.f32 %v6233_v53, %v3040_v3  ;;  %v3058_v41 = vmul.f32 %v8758_v55, %v8749_v51  ;;  %3098 = vmatmul.f32.vlgmr.msra.gmra.mxu0 %v8756_v52  ;;  %3118 = vmatmul.f32.vlgmr.msra.gmra.mxu1 %v8756_v52  ;;  %v6239_v38 = vpop.eup %6238  ;;  %vm3063_vm12 = vweird.f32 %v8758_v55 }
 0x582   :  { %v3026_v37 = vsel %vm3025_vm8, %v6231_v47, %v3022_v54  ;;  %3138 = vmatmul.f32.vlgmr.msra.gmra.mxu2 %v8756_v52  ;;  %3158 = vmatmul.f32.vlgmr.msra.gmra.mxu3 %v8756_v52  ;;  %vm3064_vm14 = vmor %vm3062_vm13, %vm3063_vm12 }
 0x583   :  { %v3031_v58 = vsel %vm3028_vm10, %v3030_v45, %v3026_v37  ;;  %v3045_v63 = vsel %vm3044_vm9, %v6233_v53, %v3041_v40  ;;  %v3059_v60 = vsub.f32 1.0, %v3058_v41  ;;  %3394 = vmatpush.msra.mxu0 %v6705_v29  ;;  %3414 = vmatpush.msra.mxu1 %v6710_v30  ;;  %v10298_v53 = vld [vmem:[#allocation26_spill] sm:$0xff] }
 0x584   :  { %v3050_v0 = vsel %vm3047_vm11, %v3049_v43, %v3045_v63  ;;  %v3073_v57 = vmul.f32 %v6239_v38, %v3031_v58  ;;  %3434 = vmatpush.msra.mxu2 %v6715_v31  ;;  %3454 = vmatpush.msra.mxu3 %v6720_v32  ;;  %v10290_v31 = vld [vmem:[#allocation34_spill] sm:$0xff]  ;;  %v10291_v32 = vld [vmem:[#allocation27_spill] sm:$0xff] }
 0x585   :  { %v3072_v47 = vmul.f32 %v3050_v0, %v8663_v62  ;;  %v3060_v36 = vmul.f32 %v8758_v55, %v3059_v60  ;;  %3395 = vmatpush.msra.mxu0 %v6685_v25  ;;  %3415 = vmatpush.msra.mxu1 %v6690_v26  ;;  %v3068_v25 = vand.u32 2147483648, %v8749_v51  ;;  %v10287_v26 = vld [vmem:[#allocation31_spill] sm:$0xff]  ;;  %v10296_v62 = vld [vmem:[#allocation24_spill] sm:$0xff]  ;;  %v10302_v0 = vld [vmem:[#allocation258_spill] sm:$0xff] }
 0x586   :  { %3435 = vmatpush.msra.mxu2 %v6695_v27  ;;  %3455 = vmatpush.msra.mxu3 %v6700_v28  ;;  %v10288_v27 = vld [vmem:[#allocation32_spill] sm:$0xff]  ;;  %v10289_v28 = vld [vmem:[#allocation33_spill] sm:$0xff] }
 0x587   :  { %v8776_v29 = vadd.f32 %v3073_v57, %v3072_v47  ;;  %3396 = vmatpush.msra.mxu0 %v6665_v21  ;;  %3416 = vmatpush.msra.mxu1 %v6670_v22  ;;  %v3061_v30 = vadd.f32 %v8758_v55, %v3060_v36  ;;  %v3066_v21 = vand.u32 2147483647, %v8749_v51  ;;  %v10297_v51 = vld [vmem:[#allocation25_spill] sm:$0xff]  ;;  %v10303_v47 = vld [vmem:[#allocation259_spill] sm:$0xff] }
 0x588   :  { %3436 = vmatpush.msra.mxu2 %v6675_v23  ;;  %3456 = vmatpush.msra.mxu3 %v6680_v24  ;;  %v10285_v23 = vld [vmem:[#allocation37_spill] sm:$0xff]  ;;  %v10286_v24 = vld [vmem:[#allocation38_spill] sm:$0xff] }
 0x589   :  { %6240 = vtanh.f32 %v8776_v29  ;;  %3397 = vmatpush.msra.mxu0 %v6645_v17  ;;  %3417 = vmatpush.msra.mxu1 %v6650_v18  ;;  %v3065_v22 = vsel %vm3064_vm14, %v8758_v55, %v3061_v30  ;;  %v3069_v17 = vor.u32 1.1754944e-38, %v3068_v25  ;;  %vm3067_vm15 = vcmp.eq.f32.partialorder %v3066_v21, 8.507059e+37  ;;  %v10301_v55 = vld [vmem:[#allocation273_spill] sm:$0xff]  ;;  %v10304_v21 = vld [vmem:[#allocation272_spill] sm:$0xff] }
 0x58a   :  { %3437 = vmatpush.msra.mxu2 %v6655_v19  ;;  %3457 = vmatpush.msra.mxu3 %v6660_v20  ;;  %v10283_v19 = vld [vmem:[#allocation35_spill] sm:$0xff]  ;;  %v10284_v20 = vld [vmem:[#allocation36_spill] sm:$0xff] }
 0x58b   :  { %3398 = vmatpush.msra.mxu0 %v6625_v13  ;;  %3418 = vmatpush.msra.mxu1 %v6630_v14  ;;  %v3070_v13 = vsel %vm3067_vm15, %v3069_v17, %v3065_v22 }
 0x58c   :  { %3438 = vmatpush.msra.mxu2 %v6635_v15  ;;  %3458 = vmatpush.msra.mxu3 %v6640_v16  ;;  %v10281_v15 = vld [vmem:[#allocation41_spill] sm:$0xff]  ;;  %v10282_v16 = vld [vmem:[#allocation42_spill] sm:$0xff] }
 0x58d   :  { %3399 = vmatpush.msra.mxu0 %v6605_v9  ;;  %3419 = vmatpush.msra.mxu1 %v6610_v10  ;;  %v10276_v9 = vld [vmem:[#allocation44_spill] sm:$0xff]  ;;  %v10278_v10 = vld [vmem:[#allocation46_spill] sm:$0xff] }
 0x58e   :  { %3439 = vmatpush.msra.mxu2 %v6615_v11  ;;  %3459 = vmatpush.msra.mxu3 %v6620_v12  ;;  %v10279_v11 = vld [vmem:[#allocation39_spill] sm:$0xff]  ;;  %v10280_v12 = vld [vmem:[#allocation40_spill] sm:$0xff] }
 0x58f   :  { %v6241_v18 = vpop.eup %6240  ;;  %3400 = vmatpush.msra.mxu0 %v6585_v5  ;;  %3420 = vmatpush.msra.mxu1 %v6590_v6  ;;  %v10272_v5 = vld [vmem:[#allocation48_spill] sm:$0xff]  ;;  %v10273_v6 = vld [vmem:[#allocation49_spill] sm:$0xff] }
 0x590   :  { %v8803_v14 = vmul.f32 %v6241_v18, %v3070_v13  ;;  %3440 = vmatpush.msra.mxu2 %v6595_v7  ;;  %3460 = vmatpush.msra.mxu3 %v6600_v8  ;;  %v10274_v7 = vld [vmem:[#allocation50_spill] sm:$0xff]  ;;  %v10275_v8 = vld [vmem:[#allocation43_spill] sm:$0xff] }
 0x591   :  { %3401 = vmatpush.msra.mxu0 %v6565_v1  ;;  %3421 = vmatpush.msra.mxu1 %v6570_v2  ;;  %v10270_v1 = vld [vmem:[#allocation53_spill] sm:$0xff]  ;;  %v10271_v2 = vld [vmem:[#allocation47_spill] sm:$0xff] }
 0x592   :  { %3250 = vmatmul.f32.vlgmr.msrb.gmra.mxu0 %v8803_v14  ;;  %3270 = vmatmul.f32.vlgmr.msrb.gmra.mxu1 %v8803_v14 }
 0x593   :  { %3290 = vmatmul.f32.vlgmr.msrb.gmra.mxu2 %v8803_v14  ;;  %3310 = vmatmul.f32.vlgmr.msrb.gmra.mxu3 %v8803_v14 }
 0x594   :  { %3441 = vmatpush.msra.mxu2 %v10035_v46  ;;  %3461 = vmatpush.msra.mxu3 %v6580_v4  ;;  %v10277_v4 = vld [vmem:[#allocation45_spill] sm:$0xff]  ;;  %v10294_v46 = vld [vmem:[#allocation30_spill] sm:$0xff] }
 0x595   :  { %3545 = vmatpush.msrb.mxu0 %v6865_v61  ;;  %3565 = vmatpush.msrb.mxu1 %v10033_v44  ;;  %v10292_v61 = vld [vmem:[#allocation28_spill] sm:$0xff]  ;;  %v10293_v44 = vld [vmem:[#allocation29_spill] sm:$0xff] }
 0x596   :  { %3585 = vmatpush.msrb.mxu2 %v10042_v39  ;;  %3605 = vmatpush.msrb.mxu3 %v10270_v1  ;;  %v10295_v39 = vld [vmem:[#allocation23_spill] sm:$0xff] }
 0x597   :  { %3546 = vmatpush.msrb.mxu0 %v10271_v2  ;;  %3566 = vmatpush.msrb.mxu1 %v10272_v5 }
 0x598   :  { %3586 = vmatpush.msrb.mxu2 %v10273_v6  ;;  %3606 = vmatpush.msrb.mxu3 %v10274_v7 }
 0x599   :  { %3547 = vmatpush.msrb.mxu0 %v10275_v8  ;;  %3567 = vmatpush.msrb.mxu1 %v10276_v9 }
 0x59a   :  { %3587 = vmatpush.msrb.mxu2 %v10277_v4  ;;  %3607 = vmatpush.msrb.mxu3 %v10278_v10 }
 0x59b   :  { %3548 = vmatpush.msrb.mxu0 %v10279_v11  ;;  %3568 = vmatpush.msrb.mxu1 %v10280_v12  ;;  %v10305_v12 = vld [vmem:[#allocation261_spill] sm:$0xff] }
 0x59c   :  { %3588 = vmatpush.msrb.mxu2 %v10281_v15  ;;  %3608 = vmatpush.msrb.mxu3 %v10282_v16 }
 0x59d   :  { %3549 = vmatpush.msrb.mxu0 %v10283_v19  ;;  %3569 = vmatpush.msrb.mxu1 %v10284_v20 }
 0x59e   :  { %3589 = vmatpush.msrb.mxu2 %v10285_v23  ;;  %3609 = vmatpush.msrb.mxu3 %v10286_v24 }
 0x59f   :  { %3550 = vmatpush.msrb.mxu0 %v10287_v26  ;;  %3570 = vmatpush.msrb.mxu1 %v10288_v27 }
 0x5a0   :  { %3590 = vmatpush.msrb.mxu2 %v10289_v28  ;;  %3610 = vmatpush.msrb.mxu3 %v10290_v31 }
 0x5a1   :  { %3551 = vmatpush.msrb.mxu0 %v10291_v32  ;;  %3571 = vmatpush.msrb.mxu1 %v10292_v61 }
 0x5a2   :  { %3591 = vmatpush.msrb.mxu2 %v10293_v44  ;;  %3611 = vmatpush.msrb.mxu3 %v10294_v46 }
 0x5a3   :  { %3552 = vmatpush.msrb.mxu0 %v10295_v39  ;;  %3572 = vmatpush.msrb.mxu1 %v10296_v62 }
 0x5a4   :  { %3592 = vmatpush.msrb.mxu2 %v10297_v51  ;;  %3612 = vmatpush.msrb.mxu3 %v10298_v53 }
 0x5fe   :  { %v3099_v48 = vpop.f32.mrf.mxu0  ;;  %v3119_v50 = vpop.f32.mrf.mxu1 }
 0x5ff   :  { %v3162_v42 = vadd.f32 %v3099_v48, %v10299_v33  ;;  %v3163_v56 = vadd.f32 %v3119_v50, %v10300_v34 }
 0x601   :  { %v5999_v35 = vmul.f32 -1.442695, %v3162_v42  ;;  %v6000_v3 = vmul.f32 -1.442695, %v3163_v56 }
 0x603   :  { %6242 = vpow2.f32 %v5999_v35 }
 0x604   :  { %6244 = vpow2.f32 %v6000_v3 }
 0x605   :  { %v3159_v49 = vpop.f32.mrf.mxu3  ;;  %v3139_v38 = vpop.f32.mrf.mxu2 }
 0x606   :  { %v3165_v54 = vadd.f32 %v3159_v49, %v10301_v55  ;;  %v3164_v22 = vadd.f32 %v3139_v38, %v10304_v21 }
 0x608   :  { %v6001_v45 = vmul.f32 -1.442695, %v3165_v54 }
 0x609   :  { %v6243_v40 = vpop.eup %6242 }
 0x60a   :  { %v6245_v41 = vpop.eup %6244  ;;  %v3169_v43 = vadd.f32 1.0, %v6243_v40  ;;  %6246 = vpow2.f32 %v6001_v45  ;;  %v10306_v40 = vld [vmem:[#allocation260_spill] sm:$0xff] }
 0x60b   :  { %v3188_v37 = vadd.f32 1.0, %v6245_v41 }
 0x60c   :  { %6248 = vrcp.f32 %v3169_v43  ;;  %v3179_v6 = vand.u32 2147483647, %v3169_v43  ;;  %v3181_v9 = vand.u32 2147483648, %v3169_v43  ;;  %vm3175_vm2 = vweird.f32 %v3169_v43 }
 0x60d   :  { %6250 = vrcp.f32 %v3188_v37  ;;  %v3200_v8 = vand.u32 2147483648, %v3188_v37  ;;  %v3198_v11 = vand.u32 2147483647, %v3188_v37  ;;  %vm3194_vm3 = vweird.f32 %v3188_v37 }
 0x60e   :  { %vm3180_vm4 = vcmp.eq.f32.partialorder %v3179_v6, 8.507059e+37  ;;  %v3182_v27 = vor.u32 1.1754944e-38, %v3181_v9 }
 0x60f   :  { %v3251_v58 = vpop.f32.mrf.mxu0  ;;  %v3271_v63 = vpop.f32.mrf.mxu1  ;;  %v3201_v26 = vor.u32 1.1754944e-38, %v3200_v8  ;;  %vm3199_vm7 = vcmp.eq.f32.partialorder %v3198_v11, 8.507059e+37 }
 0x610   :  { %v6247_v60 = vpop.eup %6246  ;;  %v3314_v57 = vadd.f32 %v3251_v58, %v10302_v0  ;;  %v3315_v36 = vadd.f32 %v3271_v63, %v10303_v47 }
 0x611   :  { %v8852_v30 = vadd.f32 1.0, %v6247_v60 }
 0x612   :  { %v6249_v25 = vpop.eup %6248  ;;  %v6002_v17 = vmul.f32 -1.442695, %v3314_v57  ;;  %v6003_v18 = vmul.f32 -1.442695, %v3315_v36 }
 0x613   :  { %v6251_v13 = vpop.eup %6250  ;;  %v3171_v1 = vmul.f32 %v6249_v25, %v3169_v43  ;;  %6252 = vrcp.f32 %v8852_v30  ;;  %vm3176_vm0 = vweird.f32 %v6249_v25  ;;  %v3218_v55 = vand.u32 2147483647, %v8852_v30 }
 0x614   :  { %v3190_v2 = vmul.f32 %v6251_v13, %v3188_v37  ;;  %6254 = vpow2.f32 %v6002_v17  ;;  %vm3195_vm1 = vweird.f32 %v6251_v13  ;;  %vm3177_vm5 = vmor %vm3175_vm2, %vm3176_vm0  ;;  %v3220_v54 = vand.u32 2147483648, %v8852_v30 }
 0x615   :  { %v3172_v5 = vsub.f32 1.0, %v3171_v1  ;;  %6256 = vpow2.f32 %v6003_v18  ;;  %vm3196_vm6 = vmor %vm3194_vm3, %vm3195_vm1  ;;  %vm3214_vm9 = vweird.f32 %v8852_v30  ;;  %vm3219_vm11 = vcmp.eq.f32.partialorder %v3218_v55, 8.507059e+37 }
 0x616   :  { %v3191_v7 = vsub.f32 1.0, %v3190_v2  ;;  %6258 = vtanh.f32 %v3164_v22  ;;  %v3311_v4 = vpop.f32.mrf.mxu3  ;;  %v3291_v56 = vpop.f32.mrf.mxu2  ;;  %v3221_v63 = vor.u32 1.1754944e-38, %v3220_v54 }
 0x617   :  { %v3173_v10 = vmul.f32 %v6249_v25, %v3172_v5  ;;  %v3317_v15 = vadd.f32 %v3311_v4, %v10305_v12  ;;  %v3316_v41 = vadd.f32 %v3291_v56, %v10306_v40 }
 0x618   :  { %v3192_v16 = vmul.f32 %v6251_v13, %v3191_v7 }
 0x619   :  { %v6253_v19 = vpop.eup %6252  ;;  %v3174_v20 = vadd.f32 %v6249_v25, %v3173_v10  ;;  %v6004_v23 = vmul.f32 -1.442695, %v3317_v15 }
 0x61a   :  { %v6255_v24 = vpop.eup %6254  ;;  %v3193_v28 = vadd.f32 %v6251_v13, %v3192_v16  ;;  %v3210_v31 = vmul.f32 %v6253_v19, %v8852_v30  ;;  %vm3215_vm8 = vweird.f32 %v6253_v19 }
 0x61b   :  { %v6257_v32 = vpop.eup %6256  ;;  %v3178_v61 = vsel %vm3177_vm5, %v6249_v25, %v3174_v20  ;;  %v3321_v44 = vadd.f32 1.0, %v6255_v24  ;;  %6260 = vpow2.f32 %v6004_v23  ;;  %vm3216_vm10 = vmor %vm3214_vm9, %vm3215_vm8 }
 0x61c   :  { %v6259_v46 = vpop.eup %6258  ;;  %v3183_v39 = vsel %vm3180_vm4, %v3182_v27, %v3178_v61  ;;  %v3197_v62 = vsel %vm3196_vm6, %v6251_v13, %v3193_v28  ;;  %v3211_v51 = vsub.f32 1.0, %v3210_v31  ;;  %v3340_v53 = vadd.f32 1.0, %v6257_v32 }
 0x61d   :  { %v3202_v48 = vsel %vm3199_vm7, %v3201_v26, %v3197_v62  ;;  %v3225_v50 = vmul.f32 %v6259_v46, %v3183_v39  ;;  %6262 = vrcp.f32 %v3321_v44  ;;  %v3333_v57 = vand.u32 2147483648, %v3321_v44  ;;  %v10308_v39 = vld [vmem:[#allocation263_spill] sm:$0xff] }
 0x61e   :  { %v3224_v33 = vmul.f32 %v3202_v48, %v8746_v59  ;;  %6264 = vrcp.f32 %v3340_v53  ;;  %v3212_v42 = vmul.f32 %v6253_v19, %v3211_v51  ;;  %v3352_v0 = vand.u32 2147483648, %v3340_v53 }
 0x61f   :  { %v3331_v25 = vand.u32 2147483647, %v3321_v44  ;;  %v3350_v22 = vand.u32 2147483647, %v3340_v53  ;;  %vm3327_vm14 = vweird.f32 %v3321_v44  ;;  %vm3346_vm15 = vweird.f32 %v3340_v53 }
 0x620   :  { %v8859_v34 = vadd.f32 %v3225_v50, %v3224_v33  ;;  %v3213_v3 = vadd.f32 %v6253_v19, %v3212_v42  ;;  %v3334_v1 = vor.u32 1.1754944e-38, %v3333_v57  ;;  %v3353_v6 = vor.u32 1.1754944e-38, %v3352_v0  ;;  %v10309_v50 = vld [vmem:[#allocation265_spill] sm:$0xff] }
 0x621   :  { %v6261_v35 = vpop.eup %6260  ;;  %vm3332_vm2 = vcmp.eq.f32.partialorder %v3331_v25, 8.507059e+37  ;;  %vm3351_vm3 = vcmp.eq.f32.partialorder %v3350_v22, 8.507059e+37 }
 0x622   :  { %6266 = vtanh.f32 %v8859_v34  ;;  %v8862_v49 = vadd.f32 1.0, %v6261_v35  ;;  %v3217_v38 = vsel %vm3216_vm10, %v6253_v19, %v3213_v3 }
 0x623   :  { %v6263_v45 = vpop.eup %6262  ;;  %v3222_v21 = vsel %vm3219_vm11, %v3221_v63, %v3217_v38  ;;  %v10312_v38 = vld [vmem:[#allocation243_spill] sm:$0xff] }
 0x624   :  { %v6265_v59 = vpop.eup %6264  ;;  %v3323_v43 = vmul.f32 %v6263_v45, %v3321_v44  ;;  %6268 = vrcp.f32 %v8862_v49  ;;  %vm3328_vm12 = vweird.f32 %v6263_v45  ;;  %v3372_v23 = vand.u32 2147483648, %v8862_v49  ;;  %v10307_v44 = vld [vmem:[#allocation262_spill] sm:$0xff] }
 0x625   :  { %v3342_v37 = vmul.f32 %v6265_v59, %v3340_v53  ;;  %6270 = vtanh.f32 %v3316_v41  ;;  %vm3347_vm13 = vweird.f32 %v6265_v59  ;;  %vm3329_vm0 = vmor %vm3327_vm14, %vm3328_vm12  ;;  %vm3366_vm5 = vweird.f32 %v8862_v49  ;;  %v10310_v41 = vld [vmem:[#allocation264_spill] sm:$0xff] }
 0x626   :  { %v3324_v58 = vsub.f32 1.0, %v3323_v43  ;;  %vm3348_vm1 = vmor %vm3346_vm15, %vm3347_vm13  ;;  %v3370_v24 = vand.u32 2147483647, %v8862_v49  ;;  %v3373_v27 = vor.u32 1.1754944e-38, %v3372_v23  ;;  %v10311_v43 = vld [vmem:[#allocation242_spill] sm:$0xff] }
 0x627   :  { %v3343_v60 = vsub.f32 1.0, %v3342_v37 }
 0x628   :  { %v6267_v47 = vpop.eup %6266  ;;  %v3325_v36 = vmul.f32 %v6263_v45, %v3324_v58  ;;  %vm3371_vm7 = vcmp.eq.f32.partialorder %v3370_v24, 8.507059e+37 }
 0x629   :  { %v3344_v30 = vmul.f32 %v6265_v59, %v3343_v60  ;;  %v8869_v17 = vmul.f32 %v6267_v47, %v3222_v21 }
 0x62a   :  { %v6269_v18 = vpop.eup %6268  ;;  %v3326_v13 = vadd.f32 %v6263_v45, %v3325_v36 }
 0x62b   :  { %v3345_v2 = vadd.f32 %v6265_v59, %v3344_v30  ;;  %v3362_v5 = vmul.f32 %v6269_v18, %v8862_v49  ;;  %3402 = vmatmul.f32.vlgmr.msra.gmra.mxu0 %v8869_v17  ;;  %3422 = vmatmul.f32.vlgmr.msra.gmra.mxu1 %v8869_v17  ;;  %v6271_v8 = vpop.eup %6270  ;;  %vm3367_vm4 = vweird.f32 %v6269_v18 }
 0x62c   :  { %v3330_v7 = vsel %vm3329_vm0, %v6263_v45, %v3326_v13  ;;  %3442 = vmatmul.f32.vlgmr.msra.gmra.mxu2 %v8869_v17  ;;  %3462 = vmatmul.f32.vlgmr.msra.gmra.mxu3 %v8869_v17  ;;  %vm3368_vm6 = vmor %vm3366_vm5, %vm3367_vm4 }
 0x62d   :  { %v3335_v9 = vsel %vm3332_vm2, %v3334_v1, %v3330_v7  ;;  %v3349_v4 = vsel %vm3348_vm1, %v6265_v59, %v3345_v2  ;;  %v3363_v10 = vsub.f32 1.0, %v3362_v5 }
 0x62e   :  { %v3354_v11 = vsel %vm3351_vm3, %v3353_v6, %v3349_v4  ;;  %v3377_v12 = vmul.f32 %v6271_v8, %v3335_v9  ;;  %v10313_v6 = vld [vmem:[#allocation245_spill] sm:$0xff] }
 0x62f   :  { %v3376_v15 = vmul.f32 %v3354_v11, %v8776_v29  ;;  %v3364_v16 = vmul.f32 %v6269_v18, %v3363_v10 }
 0x631   :  { %v8877_v19 = vadd.f32 %v3377_v12, %v3376_v15  ;;  %v3365_v20 = vadd.f32 %v6269_v18, %v3364_v16 }
 0x633   :  { %6272 = vtanh.f32 %v8877_v19  ;;  %v3369_v26 = vsel %vm3368_vm6, %v6269_v18, %v3365_v20 }
 0x634   :  { %v3374_v31 = vsel %vm3371_vm7, %v3373_v27, %v3369_v26 }
 0x639   :  { %v6273_v28 = vpop.eup %6272 }
 0x63a   :  { %v8883_v29 = vmul.f32 %v6273_v28, %v3374_v31 }
 0x63c   :  { %3553 = vmatmul.f32.vlgmr.msrb.gmra.mxu0 %v8883_v29  ;;  %3573 = vmatmul.f32.vlgmr.msrb.gmra.mxu1 %v8883_v29 }
 0x63d   :  { %3593 = vmatmul.f32.vlgmr.msrb.gmra.mxu2 %v8883_v29  ;;  %3613 = vmatmul.f32.vlgmr.msrb.gmra.mxu3 %v8883_v29 }
 0x6a8   :  { %v3403_v32 = vpop.f32.mrf.mxu0  ;;  %v3423_v61 = vpop.f32.mrf.mxu1 }
 0x6a9   :  { %v3466_v46 = vadd.f32 %v3403_v32, %v10307_v44  ;;  %v3467_v62 = vadd.f32 %v3423_v61, %v10308_v39 }
 0x6ab   :  { %v6005_v51 = vmul.f32 -1.442695, %v3466_v46  ;;  %v6006_v53 = vmul.f32 -1.442695, %v3467_v62 }
 0x6ad   :  { %6274 = vpow2.f32 %v6005_v51 }
 0x6ae   :  { %6276 = vpow2.f32 %v6006_v53 }
 0x6af   :  { %v3463_v48 = vpop.f32.mrf.mxu3  ;;  %v3443_v55 = vpop.f32.mrf.mxu2 }
 0x6b0   :  { %v3469_v33 = vadd.f32 %v3463_v48, %v10309_v50  ;;  %v3468_v59 = vadd.f32 %v3443_v55, %v10310_v41 }
 0x6b2   :  { %v6007_v42 = vmul.f32 -1.442695, %v3469_v33 }
 0x6b3   :  { %v6275_v56 = vpop.eup %6274 }
 0x6b4   :  { %v6277_v35 = vpop.eup %6276  ;;  %v3473_v3 = vadd.f32 1.0, %v6275_v56  ;;  %6278 = vpow2.f32 %v6007_v42  ;;  %v10314_v56 = vld [vmem:[#allocation244_spill] sm:$0xff] }
 0x6b5   :  { %v3492_v49 = vadd.f32 1.0, %v6277_v35 }
 0x6b6   :  { %6280 = vrcp.f32 %v3473_v3  ;;  %v3483_v30 = vand.u32 2147483647, %v3473_v3  ;;  %v3485_v13 = vand.u32 2147483648, %v3473_v3  ;;  %vm3479_vm11 = vweird.f32 %v3473_v3 }
 0x6b7   :  { %6282 = vrcp.f32 %v3492_v49  ;;  %v3504_v18 = vand.u32 2147483648, %v3492_v49  ;;  %v3502_v5 = vand.u32 2147483647, %v3492_v49  ;;  %vm3498_vm10 = vweird.f32 %v3492_v49 }
 0x6b8   :  { %vm3484_vm13 = vcmp.eq.f32.partialorder %v3483_v30, 8.507059e+37  ;;  %v3486_v12 = vor.u32 1.1754944e-38, %v3485_v13 }
 0x6b9   :  { %v3554_v54 = vpop.f32.mrf.mxu0  ;;  %v3574_v45 = vpop.f32.mrf.mxu1  ;;  %v3505_v23 = vor.u32 1.1754944e-38, %v3504_v18  ;;  %vm3503_vm15 = vcmp.eq.f32.partialorder %v3502_v5, 8.507059e+37 }
 0x6ba   :  { %v6279_v40 = vpop.eup %6278  ;;  %v3617_v37 = vadd.f32 %v3554_v54, %v10311_v43  ;;  %v3618_v58 = vadd.f32 %v3574_v45, %v10312_v38 }
 0x6bb   :  { %v8895_v63 = vadd.f32 1.0, %v6279_v40 }
 0x6bc   :  { %v6281_v60 = vpop.eup %6280  ;;  %v6008_v0 = vmul.f32 -1.442695, %v3617_v37  ;;  %v6009_v57 = vmul.f32 -1.442695, %v3618_v58 }
 0x6bd   :  { %v6283_v47 = vpop.eup %6282  ;;  %v3475_v36 = vmul.f32 %v6281_v60, %v3473_v3  ;;  %6284 = vrcp.f32 %v8895_v63  ;;  %vm3480_vm8 = vweird.f32 %v6281_v60  ;;  %v3524_v33 = vand.u32 2147483648, %v8895_v63 }
 0x6be   :  { %v3494_v25 = vmul.f32 %v6283_v47, %v3492_v49  ;;  %6286 = vtanh.f32 %v3468_v59  ;;  %vm3499_vm9 = vweird.f32 %v6283_v47  ;;  %vm3481_vm12 = vmor %vm3479_vm11, %vm3480_vm8  ;;  %vm3518_vm1 = vweird.f32 %v8895_v63 }
 0x6bf   :  { %v3476_v21 = vsub.f32 1.0, %v3475_v36  ;;  %6288 = vpow2.f32 %v6008_v0  ;;  %vm3500_vm14 = vmor %vm3498_vm10, %vm3499_vm9  ;;  %v3522_v42 = vand.u32 2147483647, %v8895_v63  ;;  %v3525_v45 = vor.u32 1.1754944e-38, %v3524_v33 }
 0x6c0   :  { %v3495_v22 = vsub.f32 1.0, %v3494_v25  ;;  %6290 = vpow2.f32 %v6009_v57  ;;  %v3614_v1 = vpop.f32.mrf.mxu3  ;;  %v3594_v53 = vpop.f32.mrf.mxu2 }
 0x6c1   :  { %v3477_v2 = vmul.f32 %v6281_v60, %v3476_v21  ;;  %v3620_v7 = vadd.f32 %v3614_v1, %v10313_v6  ;;  %v3619_v35 = vadd.f32 %v3594_v53, %v10314_v56  ;;  %vm3523_vm3 = vcmp.eq.f32.partialorder %v3522_v42, 8.507059e+37 }
 0x6c2   :  { %v3496_v8 = vmul.f32 %v6283_v47, %v3495_v22 }
 0x6c3   :  { %v6285_v9 = vpop.eup %6284  ;;  %v3478_v4 = vadd.f32 %v6281_v60, %v3477_v2  ;;  %v6010_v10 = vmul.f32 -1.442695, %v3620_v7 }
 0x6c4   :  { %v6287_v11 = vpop.eup %6286  ;;  %v3497_v15 = vadd.f32 %v6283_v47, %v3496_v8  ;;  %v3514_v16 = vmul.f32 %v6285_v9, %v8895_v63  ;;  %vm3519_vm0 = vweird.f32 %v6285_v9 }
 0x6c5   :  { %v6289_v20 = vpop.eup %6288  ;;  %v3482_v24 = vsel %vm3481_vm12, %v6281_v60, %v3478_v4  ;;  %6292 = vpow2.f32 %v6010_v10  ;;  %vm3520_vm2 = vmor %vm3518_vm1, %vm3519_vm0 }
 0x6c6   :  { %v6291_v26 = vpop.eup %6290  ;;  %v3487_v27 = vsel %vm3484_vm13, %v3486_v12, %v3482_v24  ;;  %v3501_v28 = vsel %vm3500_vm14, %v6283_v47, %v3497_v15  ;;  %v3515_v31 = vsub.f32 1.0, %v3514_v16  ;;  %v3624_v32 = vadd.f32 1.0, %v6289_v20 }
 0x6c7   :  { %v3506_v61 = vsel %vm3503_vm15, %v3505_v23, %v3501_v28  ;;  %v3529_v44 = vmul.f32 %v6287_v11, %v3487_v27  ;;  %v3643_v46 = vadd.f32 1.0, %v6291_v26 }
 0x6c8   :  { %v3528_v39 = vmul.f32 %v3506_v61, %v8859_v34  ;;  %v3516_v62 = vmul.f32 %v6285_v9, %v3515_v31  ;;  %6294 = vrcp.f32 %v3624_v32  ;;  %v3636_v58 = vand.u32 2147483648, %v3624_v32 }
 0x6c9   :  { %6296 = vrcp.f32 %v3643_v46  ;;  %v3655_v38 = vand.u32 2147483648, %v3643_v46  ;;  %v3634_v0 = vand.u32 2147483647, %v3624_v32  ;;  %v3653_v47 = vand.u32 2147483647, %v3643_v46 }
 0x6ca   :  { %v3530_v51 = vadd.f32 %v3529_v44, %v3528_v39  ;;  %v3517_v50 = vadd.f32 %v6285_v9, %v3516_v62  ;;  %vm3630_vm6 = vweird.f32 %v3624_v32  ;;  %vm3649_vm7 = vweird.f32 %v3643_v46 }
 0x6cb   :  { %v6293_v48 = vpop.eup %6292  ;;  %v3637_v21 = vor.u32 1.1754944e-38, %v3636_v58  ;;  %v3656_v13 = vor.u32 1.1754944e-38, %v3655_v38  ;;  %vm3635_vm10 = vcmp.eq.f32.partialorder %v3634_v0, 8.507059e+37  ;;  %vm3654_vm11 = vcmp.eq.f32.partialorder %v3653_v47, 8.507059e+37 }
 0x6cc   :  { %6298 = vtanh.f32 %v3530_v51  ;;  %v3663_v3 = vadd.f32 1.0, %v6293_v48  ;;  %v3521_v55 = vsel %vm3520_vm2, %v6285_v9, %v3517_v50 }
 0x6cd   :  { %v3526_v43 = vsel %vm3523_vm3, %v3525_v45, %v3521_v55 }
 0x6ce   :  { %v6295_v49 = vpop.eup %6294  ;;  %6300 = vrcp.f32 %v3663_v3  ;;  %v3675_v12 = vand.u32 2147483648, %v3663_v3  ;;  %vm3669_vm13 = vweird.f32 %v3663_v3  ;;  %v3673_v15 = vand.u32 2147483647, %v3663_v3 }
 0x6cf   :  { %v6297_v34 = vpop.eup %6296  ;;  %v3626_v54 = vmul.f32 %v6295_v49, %v3624_v32  ;;  %6302 = vtanh.f32 %v3619_v35  ;;  %vm3631_vm4 = vweird.f32 %v6295_v49 }
 0x6d0   :  { %v3645_v40 = vmul.f32 %v6297_v34, %v3643_v46  ;;  %vm3650_vm5 = vweird.f32 %v6297_v34  ;;  %vm3632_vm8 = vmor %vm3630_vm6, %vm3631_vm4  ;;  %v3676_v20 = vor.u32 1.1754944e-38, %v3675_v12  ;;  %vm3674_vm15 = vcmp.eq.f32.partialorder %v3673_v15, 8.507059e+37 }
 0x6d1   :  { %v3627_v41 = vsub.f32 1.0, %v3626_v54  ;;  %vm3651_vm9 = vmor %vm3649_vm7, %vm3650_vm5 }
 0x6d2   :  { %v6299_v59 = vpop.eup %6298  ;;  %v3646_v37 = vsub.f32 1.0, %v3645_v40 }
 0x6d3   :  { %v8905_v63 = vmul.f32 %v6299_v59, %v3526_v43  ;;  %v3628_v60 = vmul.f32 %v6295_v49, %v3627_v41 }
 0x6d4   :  { %v3647_v57 = vmul.f32 %v6297_v34, %v3646_v37  ;;  %v6301_v36 = vpop.eup %6300 }
 0x6d5   :  { %10315 = vst [vmem:[#allocation268_spill] sm:$0xff] %v8905_v63  ;;  %v3629_v25 = vadd.f32 %v6295_v49, %v3628_v60  ;;  %v3665_v22 = vmul.f32 %v6301_v36, %v3663_v3  ;;  %v6303_v18 = vpop.eup %6302  ;;  %vm3670_vm12 = vweird.f32 %v6301_v36 }
 0x6d6   :  { %v3648_v30 = vadd.f32 %v6297_v34, %v3647_v57  ;;  %vm3671_vm14 = vmor %vm3669_vm13, %vm3670_vm12 }
 0x6d7   :  { %v3633_v1 = vsel %vm3632_vm8, %v6295_v49, %v3629_v25  ;;  %v3666_v6 = vsub.f32 1.0, %v3665_v22 }
 0x6d8   :  { %v3638_v2 = vsel %vm3635_vm10, %v3637_v21, %v3633_v1  ;;  %v3652_v5 = vsel %vm3651_vm9, %v6297_v34, %v3648_v30 }
 0x6d9   :  { %v3657_v7 = vsel %vm3654_vm11, %v3656_v13, %v3652_v5  ;;  %v3680_v8 = vmul.f32 %v6303_v18, %v3638_v2  ;;  %v3667_v4 = vmul.f32 %v6301_v36, %v3666_v6 }
 0x6da   :  { %v3679_v9 = vmul.f32 %v3657_v7, %v8877_v19 }
 0x6db   :  { %v3668_v11 = vadd.f32 %v6301_v36, %v3667_v4 }
 0x6dc   :  { %v3681_v10 = vadd.f32 %v3680_v8, %v3679_v9 }
 0x6dd   :  { %v3672_v16 = vsel %vm3671_vm14, %v6301_v36, %v3668_v11 }
 0x6de   :  { %6304 = vtanh.f32 %v3681_v10  ;;  %v3677_v24 = vsel %vm3674_vm15, %v3676_v20, %v3672_v16 }
 0x6e4   :  { %v6305_v23 = vpop.eup %6304 }
 0x6e5   :  { %v3683_v26 = vmul.f32 %v6305_v23, %v3677_v24 }
 0x6e6   :  { %6457 = dma.done.wait [#allocation6 + $0x2], 4096 }
 0x6e7   :  { %6458 = vsyncadd [#allocation6 + $0x2], 4294963200 }
 0x6e8   :  { %6459 = dma.done.wait [#allocation6 + $0x3], 4096 }
 0x6e9   :  { %6460 = vsyncadd [#allocation6 + $0x3], 4294963200 }
 0x6ea   :  { %6461 = dma.done.wait [#allocation6 + $0x4], 4096 }
 0x6eb   :  { %6462 = vsyncadd [#allocation6 + $0x4], 4294963200 }
 0x6ec   :  { %6463 = dma.done.wait [#allocation6 + $0x5], 4096 }
 0x6ed   :  { %6464 = vsyncadd [#allocation6 + $0x5], 4294963200  ;;  %v10316_v19 = vld [vmem:[#allocation114_spill] sm:$0xff]  ;;  %v10317_v27 = vld [vmem:[#allocation115_spill] sm:$0xff] }
 0x6ee   :  { %3830 = vmatpush.msra.mxu0 %v10316_v19  ;;  %3871 = vmatpush.msra.mxu1 %v10317_v27 }
 0x6ef   :  { %6465 = dma.done.wait [#allocation6 + $0x6], 4096 }
 0x6f0   :  { %6466 = vsyncadd [#allocation6 + $0x6], 4294963200  ;;  %v10318_v28 = vld [vmem:[#allocation116_spill] sm:$0xff]  ;;  %v10319_v31 = vld [vmem:[#allocation117_spill] sm:$0xff] }
 0x6f1   :  { %3912 = vmatpush.msra.mxu2 %v10318_v28  ;;  %3953 = vmatpush.msra.mxu3 %v10319_v31  ;;  %v10320_v32 = vld [vmem:[#allocation110_spill] sm:$0xff]  ;;  %v10321_v61 = vld [vmem:[#allocation111_spill] sm:$0xff]  ;;  %v10322_v44 = vld [vmem:[#allocation112_spill] sm:$0xff] }
 0x6f2   :  { %3831 = vmatpush.msra.mxu0 %v10320_v32  ;;  %3872 = vmatpush.msra.mxu1 %v10321_v61  ;;  %v10323_v46 = vld [vmem:[#allocation113_spill] sm:$0xff]  ;;  %v10324_v39 = vld [vmem:[#allocation106_spill] sm:$0xff]  ;;  %v10325_v62 = vld [vmem:[#allocation107_spill] sm:$0xff] }
 0x6f3   :  { %3913 = vmatpush.msra.mxu2 %v10322_v44  ;;  %3954 = vmatpush.msra.mxu3 %v10323_v46  ;;  %v10326_v51 = vld [vmem:[#allocation108_spill] sm:$0xff]  ;;  %v10327_v53 = vld [vmem:[#allocation109_spill] sm:$0xff]  ;;  %v10328_v48 = vld [vmem:[#allocation102_spill] sm:$0xff] }
 0x6f4   :  { %3832 = vmatpush.msra.mxu0 %v10324_v39  ;;  %3873 = vmatpush.msra.mxu1 %v10325_v62  ;;  %v10329_v50 = vld [vmem:[#allocation103_spill] sm:$0xff]  ;;  %v10330_v33 = vld [vmem:[#allocation104_spill] sm:$0xff]  ;;  %v10331_v42 = vld [vmem:[#allocation105_spill] sm:$0xff] }
 0x6f5   :  { %3914 = vmatpush.msra.mxu2 %v10326_v51  ;;  %3955 = vmatpush.msra.mxu3 %v10327_v53  ;;  %v10332_v56 = vld [vmem:[#allocation98_spill] sm:$0xff]  ;;  %v10333_v35 = vld [vmem:[#allocation99_spill] sm:$0xff]  ;;  %v10334_v3 = vld [vmem:[#allocation100_spill] sm:$0xff] }
 0x6f6   :  { %3833 = vmatpush.msra.mxu0 %v10328_v48  ;;  %3874 = vmatpush.msra.mxu1 %v10329_v50  ;;  %v10335_v49 = vld [vmem:[#allocation101_spill] sm:$0xff]  ;;  %v10336_v34 = vld [vmem:[#allocation94_spill] sm:$0xff]  ;;  %v10337_v55 = vld [vmem:[#allocation95_spill] sm:$0xff] }
 0x6f7   :  { %3915 = vmatpush.msra.mxu2 %v10330_v33  ;;  %3956 = vmatpush.msra.mxu3 %v10331_v42  ;;  %v10338_v54 = vld [vmem:[#allocation96_spill] sm:$0xff]  ;;  %v10339_v45 = vld [vmem:[#allocation97_spill] sm:$0xff]  ;;  %v10340_v40 = vld [vmem:[#allocation90_spill] sm:$0xff] }
 0x6f8   :  { %3834 = vmatpush.msra.mxu0 %v10332_v56  ;;  %3875 = vmatpush.msra.mxu1 %v10333_v35  ;;  %v10341_v41 = vld [vmem:[#allocation91_spill] sm:$0xff]  ;;  %v10342_v59 = vld [vmem:[#allocation92_spill] sm:$0xff]  ;;  %v10343_v43 = vld [vmem:[#allocation93_spill] sm:$0xff] }
 0x6f9   :  { %3916 = vmatpush.msra.mxu2 %v10334_v3  ;;  %3957 = vmatpush.msra.mxu3 %v10335_v49  ;;  %v10344_v37 = vld [vmem:[#allocation86_spill] sm:$0xff]  ;;  %v10345_v38 = vld [vmem:[#allocation87_spill] sm:$0xff]  ;;  %v10346_v58 = vld [vmem:[#allocation88_spill] sm:$0xff] }
 0x6fa   :  { %3835 = vmatpush.msra.mxu0 %v10336_v34  ;;  %3876 = vmatpush.msra.mxu1 %v10337_v55  ;;  %v10347_v60 = vld [vmem:[#allocation89_spill] sm:$0xff]  ;;  %v10348_v0 = vld [vmem:[#allocation82_spill] sm:$0xff]  ;;  %v10349_v57 = vld [vmem:[#allocation83_spill] sm:$0xff] }
 0x6fb   :  { %3917 = vmatpush.msra.mxu2 %v10338_v54  ;;  %3958 = vmatpush.msra.mxu3 %v10339_v45  ;;  %v10350_v47 = vld [vmem:[#allocation85_spill] sm:$0xff]  ;;  %v10351_v36 = vld [vmem:[#allocation84_spill] sm:$0xff]  ;;  %v10352_v25 = vld [vmem:[#allocation78_spill] sm:$0xff] }
 0x6fc   :  { %3836 = vmatpush.msra.mxu0 %v10340_v40  ;;  %3877 = vmatpush.msra.mxu1 %v10341_v41  ;;  %v10353_v21 = vld [vmem:[#allocation79_spill] sm:$0xff]  ;;  %v10354_v30 = vld [vmem:[#allocation81_spill] sm:$0xff]  ;;  %v10355_v22 = vld [vmem:[#allocation80_spill] sm:$0xff] }
 0x6fd   :  { %3918 = vmatpush.msra.mxu2 %v10342_v59  ;;  %3959 = vmatpush.msra.mxu3 %v10343_v43  ;;  %v10356_v18 = vld [vmem:[#allocation74_spill] sm:$0xff]  ;;  %v10357_v13 = vld [vmem:[#allocation75_spill] sm:$0xff]  ;;  %v10358_v1 = vld [vmem:[#allocation77_spill] sm:$0xff] }
 0x6fe   :  { %3837 = vmatpush.msra.mxu0 %v10344_v37  ;;  %3878 = vmatpush.msra.mxu1 %v10345_v38  ;;  %v10359_v2 = vld [vmem:[#allocation76_spill] sm:$0xff]  ;;  %v10360_v5 = vld [vmem:[#allocation70_spill] sm:$0xff]  ;;  %v10361_v6 = vld [vmem:[#allocation71_spill] sm:$0xff] }
 0x6ff   :  { %3919 = vmatpush.msra.mxu2 %v10346_v58  ;;  %3960 = vmatpush.msra.mxu3 %v10347_v60  ;;  %v10362_v7 = vld [vmem:[#allocation73_spill] sm:$0xff]  ;;  %v10363_v8 = vld [vmem:[#allocation72_spill] sm:$0xff]  ;;  %v10364_v9 = vld [vmem:[#allocation66_spill] sm:$0xff] }
 0x700   :  { %3838 = vmatmul.f32.vlgmr.msra.gmra.mxu0 %v3683_v26  ;;  %3879 = vmatmul.f32.vlgmr.msra.gmra.mxu1 %v3683_v26  ;;  %v10365_v4 = vld [vmem:[#allocation67_spill] sm:$0xff]  ;;  %v10366_v10 = vld [vmem:[#allocation69_spill] sm:$0xff]  ;;  %v10367_v11 = vld [vmem:[#allocation68_spill] sm:$0xff] }
 0x701   :  { %3920 = vmatmul.f32.vlgmr.msra.gmra.mxu2 %v3683_v26  ;;  %3961 = vmatmul.f32.vlgmr.msra.gmra.mxu3 %v3683_v26  ;;  %v10368_v12 = vld [vmem:[#allocation62_spill] sm:$0xff]  ;;  %v10369_v15 = vld [vmem:[#allocation63_spill] sm:$0xff]  ;;  %v10371_v16 = vld [vmem:[#allocation64_spill] sm:$0xff] }
 0x702   :  { %3994 = vmatpush.msrb.mxu0 %v10348_v0  ;;  %4035 = vmatpush.msrb.mxu1 %v10349_v57  ;;  %v10372_v20 = vld [vmem:[#allocation58_spill] sm:$0xff]  ;;  %v10373_v23 = vld [vmem:[#allocation59_spill] sm:$0xff]  ;;  %v10374_v24 = vld [vmem:[#allocation61_spill] sm:$0xff] }
 0x703   :  { %4117 = vmatpush.msrb.mxu3 %v10350_v47  ;;  %4076 = vmatpush.msrb.mxu2 %v10351_v36  ;;  %v10375_v26 = vld [vmem:[#allocation60_spill] sm:$0xff]  ;;  %v10376_v19 = vld [vmem:[#allocation54_spill] sm:$0xff]  ;;  %v10377_v27 = vld [vmem:[#allocation55_spill] sm:$0xff] }
 0x704   :  { %3995 = vmatpush.msrb.mxu0 %v10352_v25  ;;  %4036 = vmatpush.msrb.mxu1 %v10353_v21  ;;  %v10378_v28 = vld [vmem:[#allocation57_spill] sm:$0xff]  ;;  %v10379_v31 = vld [vmem:[#allocation56_spill] sm:$0xff]  ;;  %v10380_v32 = vld [vmem:[#allocation146_spill] sm:$0xff] }
 0x705   :  { %4118 = vmatpush.msrb.mxu3 %v10354_v30  ;;  %4077 = vmatpush.msrb.mxu2 %v10355_v22  ;;  %v10381_v61 = vld [vmem:[#allocation147_spill] sm:$0xff]  ;;  %v10383_v44 = vld [vmem:[#allocation148_spill] sm:$0xff]  ;;  %v10384_v46 = vld [vmem:[#allocation269_spill] sm:$0xff] }
 0x706   :  { %3996 = vmatpush.msrb.mxu0 %v10356_v18  ;;  %4037 = vmatpush.msrb.mxu1 %v10357_v13  ;;  %v10385_v39 = vld [vmem:[#allocation142_spill] sm:$0xff]  ;;  %v10386_v62 = vld [vmem:[#allocation143_spill] sm:$0xff]  ;;  %v10387_v51 = vld [vmem:[#allocation145_spill] sm:$0xff] }
 0x707   :  { %4119 = vmatpush.msrb.mxu3 %v10358_v1  ;;  %4078 = vmatpush.msrb.mxu2 %v10359_v2  ;;  %v10388_v53 = vld [vmem:[#allocation144_spill] sm:$0xff]  ;;  %v10389_v48 = vld [vmem:[#allocation138_spill] sm:$0xff]  ;;  %v10390_v50 = vld [vmem:[#allocation139_spill] sm:$0xff] }
 0x708   :  { %3841 = vmatmul.f32.gmra.mxu0 %v8883_v29  ;;  %3882 = vmatmul.f32.gmra.mxu1 %v8883_v29  ;;  %v10391_v33 = vld [vmem:[#allocation141_spill] sm:$0xff]  ;;  %v10392_v42 = vld [vmem:[#allocation140_spill] sm:$0xff]  ;;  %v10393_v56 = vld [vmem:[#allocation134_spill] sm:$0xff] }
 0x709   :  { %3923 = vmatmul.f32.gmra.mxu2 %v8883_v29  ;;  %3964 = vmatmul.f32.gmra.mxu3 %v8883_v29  ;;  %v10370_v29 = vld [vmem:[#allocation65_spill] sm:$0xff]  ;;  %v10394_v35 = vld [vmem:[#allocation135_spill] sm:$0xff]  ;;  %v10396_v49 = vld [vmem:[#allocation136_spill] sm:$0xff] }
 0x70a   :  { %3997 = vmatpush.msrb.mxu0 %v10360_v5  ;;  %4038 = vmatpush.msrb.mxu1 %v10361_v6  ;;  %v10395_v3 = vld [vmem:[#allocation137_spill] sm:$0xff]  ;;  %v10397_v34 = vld [vmem:[#allocation266_spill] sm:$0xff]  ;;  %v10399_v54 = vld [vmem:[#allocation131_spill] sm:$0xff] }
 0x70b   :  { %4120 = vmatpush.msrb.mxu3 %v10362_v7  ;;  %4079 = vmatpush.msrb.mxu2 %v10363_v8  ;;  %v10398_v55 = vld [vmem:[#allocation130_spill] sm:$0xff]  ;;  %v10400_v45 = vld [vmem:[#allocation133_spill] sm:$0xff]  ;;  %v10401_v40 = vld [vmem:[#allocation132_spill] sm:$0xff] }
 0x70c   :  { %3998 = vmatpush.msrb.mxu0 %v10364_v9  ;;  %4039 = vmatpush.msrb.mxu1 %v10365_v4  ;;  %v10402_v41 = vld [vmem:[#allocation126_spill] sm:$0xff]  ;;  %v10403_v59 = vld [vmem:[#allocation127_spill] sm:$0xff]  ;;  %v10404_v43 = vld [vmem:[#allocation129_spill] sm:$0xff] }
 0x70d   :  { %4121 = vmatpush.msrb.mxu3 %v10366_v10  ;;  %4080 = vmatpush.msrb.mxu2 %v10367_v11  ;;  %v10405_v37 = vld [vmem:[#allocation128_spill] sm:$0xff]  ;;  %v10406_v38 = vld [vmem:[#allocation122_spill] sm:$0xff]  ;;  %v10407_v58 = vld [vmem:[#allocation123_spill] sm:$0xff] }
 0x70e   :  { %3999 = vmatpush.msrb.mxu0 %v10368_v12  ;;  %4040 = vmatpush.msrb.mxu1 %v10369_v15  ;;  %v10408_v60 = vld [vmem:[#allocation125_spill] sm:$0xff]  ;;  %v10409_v0 = vld [vmem:[#allocation124_spill] sm:$0xff]  ;;  %v10411_v47 = vld [vmem:[#allocation118_spill] sm:$0xff] }
 0x70f   :  { %4122 = vmatpush.msrb.mxu3 %v10370_v29  ;;  %4081 = vmatpush.msrb.mxu2 %v10371_v16  ;;  %v10410_v57 = vld [vmem:[#allocation241_spill] sm:$0xff]  ;;  %v10412_v36 = vld [vmem:[#allocation119_spill] sm:$0xff]  ;;  %v10414_v21 = vld [vmem:[#allocation120_spill] sm:$0xff] }
 0x710   :  { %3844 = vmatmul.f32.gmra.mxu0 %v8803_v14  ;;  %3885 = vmatmul.f32.gmra.mxu1 %v8803_v14  ;;  %v10413_v25 = vld [vmem:[#allocation121_spill] sm:$0xff]  ;;  %v10415_v30 = vld [vmem:[#allocation238_spill] sm:$0xff]  ;;  %v10417_v18 = vld [vmem:[#allocation51_spill] sm:$0xff] }
 0x711   :  { %3926 = vmatmul.f32.gmra.mxu2 %v8803_v14  ;;  %3967 = vmatmul.f32.gmra.mxu3 %v8803_v14  ;;  %v10382_v14 = vld [vmem:[#allocation149_spill] sm:$0xff]  ;;  %v10416_v22 = vld [vmem:[#allocation22_spill] sm:$0xff]  ;;  %v10418_v13 = vld [vmem:[#allocation52_spill] sm:$0xff] }
 0x712   :  { %4000 = vmatpush.msrb.mxu0 %v10372_v20  ;;  %4041 = vmatpush.msrb.mxu1 %v10373_v23  ;;  %v10419_v1 = vld [vmem:[#allocation239_spill] sm:$0xff]  ;;  %v10420_v2 = vld [vmem:[#allocation240_spill] sm:$0xff] }
 0x713   :  { %4123 = vmatpush.msrb.mxu3 %v10374_v24  ;;  %4082 = vmatpush.msrb.mxu2 %v10375_v26  ;;  %v10421_v5 = vld [vmem:[#allocation267_spill] sm:$0xff] }
 0x714   :  { %4001 = vmatpush.msrb.mxu0 %v10376_v19  ;;  %4042 = vmatpush.msrb.mxu1 %v10377_v27 }
 0x715   :  { %4124 = vmatpush.msrb.mxu3 %v10378_v28  ;;  %4083 = vmatpush.msrb.mxu2 %v10379_v31 }
 0x716   :  { %4300 = vmatpush.msra.mxu0 %v10380_v32  ;;  %4320 = vmatpush.msra.mxu1 %v10381_v61 }
 0x717   :  { %4360 = vmatpush.msra.mxu3 %v10382_v14  ;;  %4340 = vmatpush.msra.mxu2 %v10383_v44 }
 0x718   :  { %3847 = vmatmul.f32.gmra.mxu0 %v10384_v46  ;;  %3888 = vmatmul.f32.gmra.mxu1 %v10384_v46 }
 0x719   :  { %3929 = vmatmul.f32.gmra.mxu2 %v10384_v46  ;;  %3970 = vmatmul.f32.gmra.mxu3 %v10384_v46 }
 0x71a   :  { %4301 = vmatpush.msra.mxu0 %v10385_v39  ;;  %4321 = vmatpush.msra.mxu1 %v10386_v62 }
 0x71b   :  { %4361 = vmatpush.msra.mxu3 %v10387_v51  ;;  %4341 = vmatpush.msra.mxu2 %v10388_v53 }
 0x71c   :  { %4302 = vmatpush.msra.mxu0 %v10389_v48  ;;  %4322 = vmatpush.msra.mxu1 %v10390_v50 }
 0x71d   :  { %4362 = vmatpush.msra.mxu3 %v10391_v33  ;;  %4342 = vmatpush.msra.mxu2 %v10392_v42 }
 0x71e   :  { %4303 = vmatpush.msra.mxu0 %v10393_v56  ;;  %4323 = vmatpush.msra.mxu1 %v10394_v35 }
 0x71f   :  { %4363 = vmatpush.msra.mxu3 %v10395_v3  ;;  %4343 = vmatpush.msra.mxu2 %v10396_v49 }
 0x720   :  { %3850 = vmatmul.f32.gmra.mxu0 %v10397_v34  ;;  %3891 = vmatmul.f32.gmra.mxu1 %v10397_v34 }
 0x721   :  { %3932 = vmatmul.f32.gmra.mxu2 %v10397_v34  ;;  %3973 = vmatmul.f32.gmra.mxu3 %v10397_v34 }
 0x722   :  { %4304 = vmatpush.msra.mxu0 %v10398_v55  ;;  %4324 = vmatpush.msra.mxu1 %v10399_v54 }
 0x723   :  { %4364 = vmatpush.msra.mxu3 %v10400_v45  ;;  %4344 = vmatpush.msra.mxu2 %v10401_v40 }
 0x724   :  { %4305 = vmatpush.msra.mxu0 %v10402_v41  ;;  %4325 = vmatpush.msra.mxu1 %v10403_v59 }
 0x725   :  { %4365 = vmatpush.msra.mxu3 %v10404_v43  ;;  %4345 = vmatpush.msra.mxu2 %v10405_v37 }
 0x726   :  { %4306 = vmatpush.msra.mxu0 %v10406_v38  ;;  %4326 = vmatpush.msra.mxu1 %v10407_v58 }
 0x727   :  { %4366 = vmatpush.msra.mxu3 %v10408_v60  ;;  %4346 = vmatpush.msra.mxu2 %v10409_v0 }
 0x728   :  { %3853 = vmatmul.f32.gmra.mxu0 %v10410_v57  ;;  %3894 = vmatmul.f32.gmra.mxu1 %v10410_v57 }
 0x729   :  { %3935 = vmatmul.f32.gmra.mxu2 %v10410_v57  ;;  %3976 = vmatmul.f32.gmra.mxu3 %v10410_v57 }
 0x72a   :  { %4307 = vmatpush.msra.mxu0 %v10411_v47  ;;  %4327 = vmatpush.msra.mxu1 %v10412_v36 }
 0x72b   :  { %4367 = vmatpush.msra.mxu3 %v10413_v25  ;;  %4347 = vmatpush.msra.mxu2 %v10414_v21 }
 0x730   :  { %3856 = vmatmul.f32.gmra.mxu0 %v10415_v30  ;;  %3897 = vmatmul.f32.gmra.mxu1 %v10415_v30 }
 0x731   :  { %3938 = vmatmul.f32.gmra.mxu2 %v10415_v30  ;;  %3979 = vmatmul.f32.gmra.mxu3 %v10415_v30 }
 0x738   :  { %3859 = vmatmul.f32.gmra.mxu0 %v10416_v22  ;;  %3900 = vmatmul.f32.gmra.mxu1 %v10416_v22 }
 0x739   :  { %3941 = vmatmul.f32.gmra.mxu2 %v10416_v22  ;;  %3982 = vmatmul.f32.gmra.mxu3 %v10416_v22 }
 0x740   :  { %4002 = vmatmul.f32.vlgmr.msrb.gmra.mxu0 %v10417_v18  ;;  %4043 = vmatmul.f32.vlgmr.msrb.gmra.mxu1 %v10417_v18 }
 0x741   :  { %4084 = vmatmul.f32.vlgmr.msrb.gmra.mxu2 %v10417_v18  ;;  %4125 = vmatmul.f32.vlgmr.msrb.gmra.mxu3 %v10417_v18 }
 0x742   :  { %4451 = vmatpush.msrb.mxu0 %v10380_v32  ;;  %4471 = vmatpush.msrb.mxu1 %v10381_v61 }
 0x743   :  { %4491 = vmatpush.msrb.mxu2 %v10383_v44  ;;  %4511 = vmatpush.msrb.mxu3 %v10382_v14 }
 0x744   :  { %4452 = vmatpush.msrb.mxu0 %v10385_v39  ;;  %4472 = vmatpush.msrb.mxu1 %v10386_v62 }
 0x745   :  { %4492 = vmatpush.msrb.mxu2 %v10388_v53  ;;  %4512 = vmatpush.msrb.mxu3 %v10387_v51 }
 0x746   :  { %4453 = vmatpush.msrb.mxu0 %v10389_v48  ;;  %4473 = vmatpush.msrb.mxu1 %v10390_v50 }
 0x747   :  { %4493 = vmatpush.msrb.mxu2 %v10392_v42  ;;  %4513 = vmatpush.msrb.mxu3 %v10391_v33 }
 0x748   :  { %4005 = vmatmul.f32.gmra.mxu0 %v10418_v13  ;;  %4046 = vmatmul.f32.gmra.mxu1 %v10418_v13 }
 0x749   :  { %4087 = vmatmul.f32.gmra.mxu2 %v10418_v13  ;;  %4128 = vmatmul.f32.gmra.mxu3 %v10418_v13 }
 0x74a   :  { %4454 = vmatpush.msrb.mxu0 %v10393_v56  ;;  %4474 = vmatpush.msrb.mxu1 %v10394_v35 }
 0x74b   :  { %4494 = vmatpush.msrb.mxu2 %v10396_v49  ;;  %4514 = vmatpush.msrb.mxu3 %v10395_v3 }
 0x74c   :  { %4455 = vmatpush.msrb.mxu0 %v10398_v55  ;;  %4475 = vmatpush.msrb.mxu1 %v10399_v54 }
 0x74d   :  { %4495 = vmatpush.msrb.mxu2 %v10401_v40  ;;  %4515 = vmatpush.msrb.mxu3 %v10400_v45 }
 0x74e   :  { %4456 = vmatpush.msrb.mxu0 %v10402_v41  ;;  %4476 = vmatpush.msrb.mxu1 %v10403_v59 }
 0x74f   :  { %4496 = vmatpush.msrb.mxu2 %v10405_v37  ;;  %4516 = vmatpush.msrb.mxu3 %v10404_v43 }
 0x750   :  { %4008 = vmatmul.f32.gmra.mxu0 %v10419_v1  ;;  %4049 = vmatmul.f32.gmra.mxu1 %v10419_v1 }
 0x751   :  { %4090 = vmatmul.f32.gmra.mxu2 %v10419_v1  ;;  %4131 = vmatmul.f32.gmra.mxu3 %v10419_v1 }
 0x752   :  { %4457 = vmatpush.msrb.mxu0 %v10406_v38  ;;  %4477 = vmatpush.msrb.mxu1 %v10407_v58 }
 0x753   :  { %4497 = vmatpush.msrb.mxu2 %v10409_v0  ;;  %4517 = vmatpush.msrb.mxu3 %v10408_v60 }
 0x754   :  { %4458 = vmatpush.msrb.mxu0 %v10411_v47  ;;  %4478 = vmatpush.msrb.mxu1 %v10412_v36 }
 0x755   :  { %4498 = vmatpush.msrb.mxu2 %v10414_v21  ;;  %4518 = vmatpush.msrb.mxu3 %v10413_v25 }
 0x758   :  { %4011 = vmatmul.f32.gmra.mxu0 %v10420_v2  ;;  %4052 = vmatmul.f32.gmra.mxu1 %v10420_v2 }
 0x759   :  { %4093 = vmatmul.f32.gmra.mxu2 %v10420_v2  ;;  %4134 = vmatmul.f32.gmra.mxu3 %v10420_v2 }
 0x760   :  { %4014 = vmatmul.f32.gmra.mxu0 %v10421_v5  ;;  %4055 = vmatmul.f32.gmra.mxu1 %v10421_v5 }
 0x761   :  { %4096 = vmatmul.f32.gmra.mxu2 %v10421_v5  ;;  %4137 = vmatmul.f32.gmra.mxu3 %v10421_v5 }
 0x768   :  { %4017 = vmatmul.f32.gmra.mxu0 %v8756_v52  ;;  %4058 = vmatmul.f32.gmra.mxu1 %v8756_v52 }
 0x769   :  { %4099 = vmatmul.f32.gmra.mxu2 %v8756_v52  ;;  %4140 = vmatmul.f32.gmra.mxu3 %v8756_v52  ;;  %v10422_v52 = vmov 0.0  }
 0x770   :  { %4020 = vmatmul.f32.gmra.mxu0 %v8869_v17  ;;  %4061 = vmatmul.f32.gmra.mxu1 %v8869_v17 }
 0x771   :  { %4102 = vmatmul.f32.gmra.mxu2 %v8869_v17  ;;  %4143 = vmatmul.f32.gmra.mxu3 %v8869_v17 }
 0x778   :  { %4023 = vmatmul.f32.gmra.mxu0 %v8905_v63  ;;  %4064 = vmatmul.f32.gmra.mxu1 %v8905_v63 }
 0x779   :  { %4105 = vmatmul.f32.gmra.mxu2 %v8905_v63  ;;  %4146 = vmatmul.f32.gmra.mxu3 %v8905_v63 }
 0x77d   :  { %v9096_v6 = vpop.f32.mrf.mxu0  ;;  %v9098_v7 = vpop.f32.mrf.mxu1 }
 0x780   :  { %4308 = vmatmul.f32.vlgmr.msra.gmra.mxu0 %v10422_v52  ;;  %4328 = vmatmul.f32.vlgmr.msra.gmra.mxu1 %v10422_v52 }
 0x781   :  { %4348 = vmatmul.f32.vlgmr.msra.gmra.mxu2 %v10422_v52  ;;  %4368 = vmatmul.f32.vlgmr.msra.gmra.mxu3 %v10422_v52 }
 0x782   :  { %4602 = vmatpush.msra.mxu0 %v10380_v32  ;;  %4622 = vmatpush.msra.mxu1 %v10381_v61 }
 0x783   :  { %4642 = vmatpush.msra.mxu2 %v10383_v44  ;;  %4662 = vmatpush.msra.mxu3 %v10382_v14 }
 0x784   :  { %v9108_v17 = vpop.f32.mrf.mxu2  ;;  %v9110_v8 = vpop.f32.mrf.mxu3  ;;  %4603 = vmatpush.msra.mxu0 %v10385_v39  ;;  %4623 = vmatpush.msra.mxu1 %v10386_v62 }
 0x785   :  { %v3842_v9 = vpop.f32.mrf.mxu0  ;;  %v3883_v4 = vpop.f32.mrf.mxu1  ;;  %4643 = vmatpush.msra.mxu2 %v10388_v53  ;;  %4663 = vmatpush.msra.mxu3 %v10387_v51 }
 0x786   :  { %4604 = vmatpush.msra.mxu0 %v10389_v48  ;;  %4624 = vmatpush.msra.mxu1 %v10390_v50 }
 0x787   :  { %4644 = vmatpush.msra.mxu2 %v10392_v42  ;;  %4664 = vmatpush.msra.mxu3 %v10391_v33 }
 0x788   :  { %4605 = vmatpush.msra.mxu0 %v10393_v56  ;;  %4625 = vmatpush.msra.mxu1 %v10394_v35 }
 0x789   :  { %4645 = vmatpush.msra.mxu2 %v10396_v49  ;;  %4665 = vmatpush.msra.mxu3 %v10395_v3 }
 0x78a   :  { %4606 = vmatpush.msra.mxu0 %v10398_v55  ;;  %4626 = vmatpush.msra.mxu1 %v10399_v54 }
 0x78b   :  { %4646 = vmatpush.msra.mxu2 %v10401_v40  ;;  %4666 = vmatpush.msra.mxu3 %v10400_v45 }
 0x78c   :  { %v3924_v10 = vpop.f32.mrf.mxu2  ;;  %v3965_v11 = vpop.f32.mrf.mxu3  ;;  %4607 = vmatpush.msra.mxu0 %v10402_v41  ;;  %4627 = vmatpush.msra.mxu1 %v10403_v59 }
 0x78d   :  { %v3845_v12 = vpop.f32.mrf.mxu0  ;;  %v3886_v15 = vpop.f32.mrf.mxu1  ;;  %4647 = vmatpush.msra.mxu2 %v10405_v37  ;;  %4667 = vmatpush.msra.mxu3 %v10404_v43 }
 0x78e   :  { %4608 = vmatpush.msra.mxu0 %v10406_v38  ;;  %4628 = vmatpush.msra.mxu1 %v10407_v58 }
 0x78f   :  { %4648 = vmatpush.msra.mxu2 %v10409_v0  ;;  %4668 = vmatpush.msra.mxu3 %v10408_v60 }
 0x790   :  { %4609 = vmatpush.msra.mxu0 %v10411_v47  ;;  %4629 = vmatpush.msra.mxu1 %v10412_v36  ;;  %v4150_v36 = vld [vmem:[%s9621_s5] sm:$0xf] }
 0x791   :  { %4649 = vmatpush.msra.mxu2 %v10414_v21  ;;  %4669 = vmatpush.msra.mxu3 %v10413_v25  ;;  %v9179_v37 = vperm.slane %v4150_v36, 0  ;;  %v9181_v59 = vperm.slane %v4150_v36, 1  ;;  %v9189_v56 = vperm.slane %v4150_v36, 2 }
 0x794   :  { %v3927_v29 = vpop.f32.mrf.mxu2  ;;  %v3968_v16 = vpop.f32.mrf.mxu3 }
 0x795   :  { %v3848_v20 = vpop.f32.mrf.mxu0  ;;  %v3889_v23 = vpop.f32.mrf.mxu1 }
 0x79c   :  { %v3930_v24 = vpop.f32.mrf.mxu2  ;;  %v3971_v26 = vpop.f32.mrf.mxu3 }
 0x79d   :  { %v3851_v19 = vpop.f32.mrf.mxu0  ;;  %v3892_v27 = vpop.f32.mrf.mxu1 }
 0x7a4   :  { %v9140_v28 = vpop.f32.mrf.mxu2  ;;  %v9142_v31 = vpop.f32.mrf.mxu3 }
 0x7a5   :  { %v9144_v46 = vpop.f32.mrf.mxu0  ;;  %v9146_v34 = vpop.f32.mrf.mxu1 }
 0x7ac   :  { %v9148_v57 = vpop.f32.mrf.mxu2  ;;  %v9150_v30 = vpop.f32.mrf.mxu3 }
 0x7ad   :  { %v9152_v18 = vpop.f32.mrf.mxu0  ;;  %v9154_v13 = vpop.f32.mrf.mxu1 }
 0x7b4   :  { %v9156_v1 = vpop.f32.mrf.mxu2  ;;  %v9158_v2 = vpop.f32.mrf.mxu3 }
 0x7b5   :  { %v9160_v5 = vpop.f32.mrf.mxu0  ;;  %v9162_v52 = vpop.f32.mrf.mxu1 }
 0x7bc   :  { %v9164_v63 = vpop.f32.mrf.mxu2  ;;  %v9166_v22 = vpop.f32.mrf.mxu3 }
 0x7bd   :  { %v9168_v25 = vpop.f32.mrf.mxu0  ;;  %v9170_v21 = vpop.f32.mrf.mxu1 }
 0x7c4   :  { %v9175_v47 = vpop.f32.mrf.mxu2  ;;  %v9177_v60 = vpop.f32.mrf.mxu3 }
 0x7c5   :  { %v4006_v0 = vpop.f32.mrf.mxu0  ;;  %v4047_v58 = vpop.f32.mrf.mxu1 }
 0x7c6   :  { %v4007_v38 = vadd.f32 %v4006_v0, %v3842_v9  ;;  %v4048_v43 = vadd.f32 %v4047_v58, %v3883_v4  ;;  %v9191_v0 = vperm.slane %v4150_v36, 3 }
 0x7c8   :  { %v9184_v41 = vadd.f32 %v9179_v37, %v4007_v38  ;;  %v9187_v45 = vadd.f32 %v9181_v59, %v4048_v43 }
 0x7ca   :  { %10423 = vst [vmem:[#allocation254_spill] sm:$0xff] %v9184_v41 }
 0x7cb   :  { %10424 = vst [vmem:[#allocation255_spill] sm:$0xff] %v9187_v45 }
 0x7cc   :  { %v4088_v40 = vpop.f32.mrf.mxu2  ;;  %v4129_v54 = vpop.f32.mrf.mxu3 }
 0x7cd   :  { %v4089_v55 = vadd.f32 %v4088_v40, %v3924_v10  ;;  %v4130_v3 = vadd.f32 %v4129_v54, %v3965_v11  ;;  %v4009_v49 = vpop.f32.mrf.mxu0  ;;  %v4050_v35 = vpop.f32.mrf.mxu1 }
 0x7ce   :  { %v4010_v58 = vadd.f32 %v4009_v49, %v3845_v12  ;;  %v4051_v9 = vadd.f32 %v4050_v35, %v3886_v15 }
 0x7cf   :  { %v9194_v4 = vadd.f32 %v9189_v56, %v4089_v55  ;;  %v9197_v38 = vadd.f32 %v9191_v0, %v4130_v3 }
 0x7d0   :  { %v9200_v43 = vadd.f32 %v9179_v37, %v4010_v58  ;;  %v9203_v40 = vadd.f32 %v9181_v59, %v4051_v9 }
 0x7d4   :  { %v4091_v54 = vpop.f32.mrf.mxu2  ;;  %v4132_v10 = vpop.f32.mrf.mxu3 }
 0x7d5   :  { %v4092_v11 = vadd.f32 %v4091_v54, %v3927_v29  ;;  %v4133_v45 = vadd.f32 %v4132_v10, %v3968_v16  ;;  %v4012_v36 = vpop.f32.mrf.mxu0  ;;  %v4053_v41 = vpop.f32.mrf.mxu1 }
 0x7d6   :  { %v4013_v49 = vadd.f32 %v4012_v36, %v3848_v20  ;;  %v4054_v35 = vadd.f32 %v4053_v41, %v3889_v23 }
 0x7d7   :  { %v9206_v55 = vadd.f32 %v9189_v56, %v4092_v11  ;;  %v9209_v3 = vadd.f32 %v9191_v0, %v4133_v45 }
 0x7d8   :  { %v9212_v12 = vadd.f32 %v9179_v37, %v4013_v49  ;;  %v9215_v15 = vadd.f32 %v9181_v59, %v4054_v35 }
 0x7dc   :  { %v4094_v58 = vpop.f32.mrf.mxu2  ;;  %v4135_v9 = vpop.f32.mrf.mxu3 }
 0x7dd   :  { %v4095_v29 = vadd.f32 %v4094_v58, %v3930_v24  ;;  %v4136_v16 = vadd.f32 %v4135_v9, %v3971_v26  ;;  %v4015_v54 = vpop.f32.mrf.mxu0  ;;  %v4056_v10 = vpop.f32.mrf.mxu1 }
 0x7de   :  { %v4016_v20 = vadd.f32 %v4015_v54, %v3851_v19  ;;  %v4057_v41 = vadd.f32 %v4056_v10, %v3892_v27 }
 0x7df   :  { %v9218_v23 = vadd.f32 %v9189_v56, %v4095_v29  ;;  %v9221_v45 = vadd.f32 %v9191_v0, %v4136_v16 }
 0x7e0   :  { %v9224_v11 = vadd.f32 %v9179_v37, %v4016_v20  ;;  %v9227_v36 = vadd.f32 %v9181_v59, %v4057_v41 }
 0x7e1   :  { %10425 = vst [vmem:[#allocation257_spill] sm:$0xff] %v9218_v23 }
 0x7e2   :  { %10426 = vst [vmem:[#allocation274_spill] sm:$0xff] %v9221_v45 }
 0x7e3   :  { %10427 = vst [vmem:[#allocation275_spill] sm:$0xff] %v9224_v11 }
 0x7e4   :  { %10428 = vst [vmem:[#allocation256_spill] sm:$0xff] %v9227_v36  ;;  %v4097_v49 = vpop.f32.mrf.mxu2  ;;  %v4138_v35 = vpop.f32.mrf.mxu3 }
 0x7e5   :  { %v4098_v24 = vadd.f32 %v4097_v49, %v9140_v28  ;;  %v4139_v26 = vadd.f32 %v4138_v35, %v9142_v31  ;;  %v4018_v19 = vpop.f32.mrf.mxu0  ;;  %v4059_v27 = vpop.f32.mrf.mxu1 }
 0x7e6   :  { %v4019_v58 = vadd.f32 %v4018_v19, %v9144_v46  ;;  %v4060_v9 = vadd.f32 %v4059_v27, %v9146_v34 }
 0x7e7   :  { %v9234_v29 = vadd.f32 %v9189_v56, %v4098_v24  ;;  %v9237_v16 = vadd.f32 %v9191_v0, %v4139_v26 }
 0x7e8   :  { %v9240_v54 = vadd.f32 %v9179_v37, %v4019_v58  ;;  %v9243_v10 = vadd.f32 %v9181_v59, %v4060_v9 }
 0x7e9   :  { %10429 = vst [vmem:[#allocation277_spill] sm:$0xff] %v9234_v29 }
 0x7ea   :  { %10430 = vst [vmem:[#allocation276_spill] sm:$0xff] %v9237_v16 }
 0x7eb   :  { %10431 = vst [vmem:[#allocation230_spill] sm:$0xff] %v9240_v54 }
 0x7ec   :  { %10432 = vst [vmem:[#allocation231_spill] sm:$0xff] %v9243_v10  ;;  %v4100_v28 = vpop.f32.mrf.mxu2  ;;  %v4141_v31 = vpop.f32.mrf.mxu3 }
 0x7ed   :  { %v4101_v20 = vadd.f32 %v4100_v28, %v9148_v57  ;;  %v4142_v46 = vadd.f32 %v4141_v31, %v9150_v30  ;;  %v4021_v41 = vpop.f32.mrf.mxu0  ;;  %v4062_v34 = vpop.f32.mrf.mxu1 }
 0x7ee   :  { %v4022_v49 = vadd.f32 %v4021_v41, %v9152_v18  ;;  %v4063_v35 = vadd.f32 %v4062_v34, %v9154_v13  ;;  %v4004_v41 = vadd.f32 %v9168_v25, %v9096_v6 }
 0x7ef   :  { %v9250_v24 = vadd.f32 %v9189_v56, %v4101_v20  ;;  %v9253_v26 = vadd.f32 %v9191_v0, %v4142_v46 }
 0x7f0   :  { %v9256_v19 = vadd.f32 %v9179_v37, %v4022_v49  ;;  %v9259_v27 = vadd.f32 %v9181_v59, %v4063_v35  ;;  %v4160_v49 = vadd.f32 %v9179_v37, %v4004_v41 }
 0x7f1   :  { %10433 = vst [vmem:[#allocation233_spill] sm:$0xff] %v9250_v24 }
 0x7f2   :  { %10434 = vst [vmem:[#allocation226_spill] sm:$0xff] %v9253_v26 }
 0x7f3   :  { %10435 = vst [vmem:[#allocation227_spill] sm:$0xff] %v9256_v19 }
 0x7f4   :  { %10436 = vst [vmem:[#allocation232_spill] sm:$0xff] %v9259_v27  ;;  %v4103_v57 = vpop.f32.mrf.mxu2  ;;  %v4144_v30 = vpop.f32.mrf.mxu3 }
 0x7f5   :  { %v4104_v58 = vadd.f32 %v4103_v57, %v9156_v1  ;;  %v4145_v18 = vadd.f32 %v4144_v30, %v9158_v2  ;;  %v4024_v9 = vpop.f32.mrf.mxu0  ;;  %v4065_v13 = vpop.f32.mrf.mxu1  ;;  %v4045_v1 = vadd.f32 %v9170_v21, %v9098_v7  ;;  %v4127_v7 = vadd.f32 %v9177_v60, %v9110_v8 }
 0x7f6   :  { %v4025_v28 = vadd.f32 %v4024_v9, %v9160_v5  ;;  %v4066_v31 = vadd.f32 %v4065_v13, %v9162_v52  ;;  %v4086_v8 = vadd.f32 %v9175_v47, %v9108_v17 }
 0x7f7   :  { %v9266_v20 = vadd.f32 %v9189_v56, %v4104_v58  ;;  %v9269_v46 = vadd.f32 %v9191_v0, %v4145_v18  ;;  %v4161_v35 = vadd.f32 %v9181_v59, %v4045_v1 }
 0x7f8   :  { %v9276_v2 = vadd.f32 %v9179_v37, %v4025_v28  ;;  %v9279_v34 = vadd.f32 %v9181_v59, %v4066_v31 }
 0x7f9   :  { %10437 = vst [vmem:[#allocation229_spill] sm:$0xff] %v9266_v20 }
 0x7fa   :  { %10438 = vst [vmem:[#allocation228_spill] sm:$0xff] %v9269_v46 }
 0x7fb   :  { %10439 = vst [vmem:[#allocation246_spill] sm:$0xff] %v9276_v2 }
 0x7fc   :  { %10440 = vst [vmem:[#allocation247_spill] sm:$0xff] %v9279_v34  ;;  %v4106_v5 = vpop.f32.mrf.mxu2  ;;  %v4147_v52 = vpop.f32.mrf.mxu3 }
 0x7fd   :  { %v4107_v57 = vadd.f32 %v4106_v5, %v9164_v63  ;;  %v4148_v30 = vadd.f32 %v4147_v52, %v9166_v22  ;;  %v4309_v25 = vpop.f32.mrf.mxu0  ;;  %v4329_v6 = vpop.f32.mrf.mxu1  ;;  %v4163_v63 = vadd.f32 %v9191_v0, %v4127_v7 }
 0x7fe   :  { %v4372_v58 = vadd.f32 %v4309_v25, %v4160_v49  ;;  %v4373_v21 = vadd.f32 %v4329_v6, %v4161_v35  ;;  %v4162_v49 = vadd.f32 %v9189_v56, %v4086_v8 }
 0x7ff   :  { %v9288_v18 = vadd.f32 %v9189_v56, %v4107_v57  ;;  %v9291_v9 = vadd.f32 %v9191_v0, %v4148_v30 }
 0x800   :  { %v6011_v37 = vmul.f32 -1.442695, %v4372_v58  ;;  %v6012_v13 = vmul.f32 -1.442695, %v4373_v21 }
 0x801   :  { %10441 = vst [vmem:[#allocation249_spill] sm:$0xff] %v9288_v18 }
 0x802   :  { %10442 = vst [vmem:[#allocation218_spill] sm:$0xff] %v9291_v9  ;;  %6309 = vpow2.f32 %v6011_v37 }
 0x803   :  { %6311 = vpow2.f32 %v6012_v13 }
 0x804   :  { %v4369_v59 = vpop.f32.mrf.mxu3  ;;  %v4349_v5 = vpop.f32.mrf.mxu2 }
 0x805   :  { %v4375_v22 = vadd.f32 %v4369_v59, %v4163_v63  ;;  %v4374_v0 = vadd.f32 %v4349_v5, %v4162_v49 }
 0x807   :  { %v6013_v28 = vmul.f32 -1.442695, %v4375_v22 }
 0x808   :  { %v6310_v31 = vpop.eup %6309 }
 0x809   :  { %v6312_v41 = vpop.eup %6311  ;;  %v4379_v1 = vadd.f32 1.0, %v6310_v31  ;;  %6313 = vpow2.f32 %v6013_v28 }
 0x80a   :  { %v4398_v60 = vadd.f32 1.0, %v6312_v41 }
 0x80b   :  { %6315 = vrcp.f32 %v4379_v1  ;;  %v4391_v7 = vand.u32 2147483648, %v4379_v1  ;;  %v4389_v47 = vand.u32 2147483647, %v4379_v1  ;;  %vm4385_vm2 = vweird.f32 %v4379_v1 }
 0x80c   :  { %6317 = vrcp.f32 %v4398_v60  ;;  %v4410_v37 = vand.u32 2147483648, %v4398_v60  ;;  %v4408_v63 = vand.u32 2147483647, %v4398_v60  ;;  %vm4404_vm3 = vweird.f32 %v4398_v60 }
 0x80d   :  { %v4392_v22 = vor.u32 1.1754944e-38, %v4391_v7  ;;  %vm4390_vm5 = vcmp.eq.f32.partialorder %v4389_v47, 8.507059e+37 }
 0x80e   :  { %v4411_v41 = vor.u32 1.1754944e-38, %v4410_v37  ;;  %vm4409_vm7 = vcmp.eq.f32.partialorder %v4408_v63, 8.507059e+37  ;;  %v10444_v63 = vld [vmem:[#allocation135_spill] sm:$0xff] }
 0x80f   :  { %v6314_v52 = vpop.eup %6313 }
 0x810   :  { %v4418_v35 = vadd.f32 1.0, %v6314_v52 }
 0x811   :  { %v6316_v57 = vpop.eup %6315 }
 0x812   :  { %v6318_v30 = vpop.eup %6317  ;;  %v4381_v25 = vmul.f32 %v6316_v57, %v4379_v1  ;;  %6319 = vrcp.f32 %v4418_v35  ;;  %vm4386_vm0 = vweird.f32 %v6316_v57  ;;  %vm4424_vm9 = vweird.f32 %v4418_v35 }
 0x813   :  { %v4400_v6 = vmul.f32 %v6318_v30, %v4398_v60  ;;  %6321 = vtanh.f32 %v4374_v0  ;;  %vm4405_vm1 = vweird.f32 %v6318_v30  ;;  %vm4387_vm4 = vmor %vm4385_vm2, %vm4386_vm0  ;;  %v4430_v60 = vand.u32 2147483648, %v4418_v35 }
 0x814   :  { %v4382_v58 = vsub.f32 1.0, %v4381_v25  ;;  %vm4406_vm6 = vmor %vm4404_vm3, %vm4405_vm1 }
 0x815   :  { %v4401_v21 = vsub.f32 1.0, %v4400_v6  ;;  %v4431_v37 = vor.u32 1.1754944e-38, %v4430_v60  ;;  %v10461_v60 = vld [vmem:[#allocation120_spill] sm:$0xff] }
 0x816   :  { %v4383_v13 = vmul.f32 %v6316_v57, %v4382_v58 }
 0x817   :  { %v4402_v17 = vmul.f32 %v6318_v30, %v4401_v21 }
 0x818   :  { %v6320_v59 = vpop.eup %6319  ;;  %v4384_v56 = vadd.f32 %v6316_v57, %v4383_v13 }
 0x819   :  { %v4403_v28 = vadd.f32 %v6318_v30, %v4402_v17  ;;  %v4420_v31 = vmul.f32 %v6320_v59, %v4418_v35  ;;  %v6322_v5 = vpop.eup %6321  ;;  %vm4425_vm8 = vweird.f32 %v6320_v59 }
 0x81a   :  { %v4388_v8 = vsel %vm4387_vm4, %v6316_v57, %v4384_v56  ;;  %v4428_v57 = vand.u32 2147483647, %v4418_v35  ;;  %vm4426_vm10 = vmor %vm4424_vm9, %vm4425_vm8  ;;  %v10443_v35 = vld [vmem:[#allocation134_spill] sm:$0xff]  ;;  %v10446_v56 = vld [vmem:[#allocation137_spill] sm:$0xff] }
 0x81b   :  { %v4393_v52 = vsel %vm4390_vm5, %v4392_v22, %v4388_v8  ;;  %v4407_v49 = vsel %vm4406_vm6, %v6318_v30, %v4403_v28  ;;  %v4421_v0 = vsub.f32 1.0, %v4420_v31  ;;  %v10447_v22 = vld [vmem:[#allocation130_spill] sm:$0xff]  ;;  %v10448_v28 = vld [vmem:[#allocation131_spill] sm:$0xff]  ;;  %v10449_v31 = vld [vmem:[#allocation132_spill] sm:$0xff] }
 0x81c   :  { %v4412_v25 = vsel %vm4409_vm7, %v4411_v41, %v4407_v49  ;;  %v4435_v6 = vmul.f32 %v6322_v5, %v4393_v52  ;;  %vm4429_vm11 = vcmp.eq.f32.partialorder %v4428_v57, 8.507059e+37  ;;  %v10450_v41 = vld [vmem:[#allocation133_spill] sm:$0xff]  ;;  %v10451_v8 = vld [vmem:[#allocation126_spill] sm:$0xff]  ;;  %v10452_v5 = vld [vmem:[#allocation127_spill] sm:$0xff] }
 0x81d   :  { %v4434_v58 = vmul.f32 0.0, %v4412_v25  ;;  %v4422_v21 = vmul.f32 %v6320_v59, %v4421_v0  ;;  %v10453_v52 = vld [vmem:[#allocation128_spill] sm:$0xff]  ;;  %v10454_v49 = vld [vmem:[#allocation129_spill] sm:$0xff]  ;;  %v10455_v0 = vld [vmem:[#allocation122_spill] sm:$0xff] }
 0x81e   :  { %v10456_v25 = vld [vmem:[#allocation123_spill] sm:$0xff]  ;;  %v10462_v57 = vld [vmem:[#allocation121_spill] sm:$0xff] }
 0x81f   :  { %v9297_v13 = vadd.f32 %v4435_v6, %v4434_v58  ;;  %v4423_v1 = vadd.f32 %v6320_v59, %v4422_v21  ;;  %v10457_v6 = vld [vmem:[#allocation124_spill] sm:$0xff]  ;;  %v10458_v58 = vld [vmem:[#allocation125_spill] sm:$0xff]  ;;  %v10459_v21 = vld [vmem:[#allocation118_spill] sm:$0xff] }
 0x821   :  { %6323 = vtanh.f32 %v9297_v13  ;;  %v4427_v7 = vsel %vm4426_vm10, %v6320_v59, %v4423_v1  ;;  %v10445_v59 = vld [vmem:[#allocation136_spill] sm:$0xff]  ;;  %v10460_v1 = vld [vmem:[#allocation119_spill] sm:$0xff] }
 0x822   :  { %v4432_v47 = vsel %vm4429_vm11, %v4431_v37, %v4427_v7 }
 0x827   :  { %v6324_v30 = vpop.eup %6323 }
 0x828   :  { %v4438_v17 = vmul.f32 %v6324_v30, %v4432_v47  ;;  %v10463_v30 = vld [vmem:[#allocation254_spill] sm:$0xff] }
 0x82a   :  { %4459 = vmatmul.f32.vlgmr.msrb.gmra.mxu0 %v4438_v17  ;;  %4479 = vmatmul.f32.vlgmr.msrb.gmra.mxu1 %v4438_v17 }
 0x82b   :  { %4499 = vmatmul.f32.vlgmr.msrb.gmra.mxu2 %v4438_v17  ;;  %4519 = vmatmul.f32.vlgmr.msrb.gmra.mxu3 %v4438_v17  ;;  %v10464_v17 = vld [vmem:[#allocation255_spill] sm:$0xff] }
 0x82c   :  { %4753 = vmatpush.msrb.mxu0 %v10380_v32  ;;  %4773 = vmatpush.msrb.mxu1 %v10381_v61 }
 0x82d   :  { %4793 = vmatpush.msrb.mxu2 %v10383_v44  ;;  %4813 = vmatpush.msrb.mxu3 %v10382_v14 }
 0x82e   :  { %4754 = vmatpush.msrb.mxu0 %v10385_v39  ;;  %4774 = vmatpush.msrb.mxu1 %v10386_v62 }
 0x82f   :  { %4794 = vmatpush.msrb.mxu2 %v10388_v53  ;;  %4814 = vmatpush.msrb.mxu3 %v10387_v51 }
 0x830   :  { %4755 = vmatpush.msrb.mxu0 %v10389_v48  ;;  %4775 = vmatpush.msrb.mxu1 %v10390_v50 }
 0x831   :  { %4795 = vmatpush.msrb.mxu2 %v10392_v42  ;;  %4815 = vmatpush.msrb.mxu3 %v10391_v33 }
 0x832   :  { %4756 = vmatpush.msrb.mxu0 %v10443_v35  ;;  %4776 = vmatpush.msrb.mxu1 %v10444_v63 }
 0x833   :  { %4796 = vmatpush.msrb.mxu2 %v10445_v59  ;;  %4816 = vmatpush.msrb.mxu3 %v10446_v56 }
 0x834   :  { %4757 = vmatpush.msrb.mxu0 %v10447_v22  ;;  %4777 = vmatpush.msrb.mxu1 %v10448_v28 }
 0x835   :  { %4797 = vmatpush.msrb.mxu2 %v10449_v31  ;;  %4817 = vmatpush.msrb.mxu3 %v10450_v41 }
 0x836   :  { %4758 = vmatpush.msrb.mxu0 %v10451_v8  ;;  %4778 = vmatpush.msrb.mxu1 %v10452_v5 }
 0x837   :  { %4798 = vmatpush.msrb.mxu2 %v10453_v52  ;;  %4818 = vmatpush.msrb.mxu3 %v10454_v49 }
 0x838   :  { %4759 = vmatpush.msrb.mxu0 %v10455_v0  ;;  %4779 = vmatpush.msrb.mxu1 %v10456_v25 }
 0x839   :  { %4799 = vmatpush.msrb.mxu2 %v10457_v6  ;;  %4819 = vmatpush.msrb.mxu3 %v10458_v58 }
 0x83a   :  { %4760 = vmatpush.msrb.mxu0 %v10459_v21  ;;  %4780 = vmatpush.msrb.mxu1 %v10460_v1 }
 0x83b   :  { %4800 = vmatpush.msrb.mxu2 %v10461_v60  ;;  %4820 = vmatpush.msrb.mxu3 %v10462_v57 }
 0x8a7   :  { %v4460_v7 = vpop.f32.mrf.mxu0  ;;  %v4480_v37 = vpop.f32.mrf.mxu1 }
 0x8a8   :  { %v4523_v47 = vadd.f32 %v4460_v7, %v10463_v30  ;;  %v4524_v18 = vadd.f32 %v4480_v37, %v10464_v17 }
 0x8aa   :  { %v6014_v9 = vmul.f32 -1.442695, %v4523_v47  ;;  %v6015_v34 = vmul.f32 -1.442695, %v4524_v18 }
 0x8ac   :  { %6325 = vpow2.f32 %v6014_v9 }
 0x8ad   :  { %6327 = vpow2.f32 %v6015_v34 }
 0x8ae   :  { %v4520_v2 = vpop.f32.mrf.mxu3  ;;  %v4500_v10 = vpop.f32.mrf.mxu2 }
 0x8af   :  { %v4526_v20 = vadd.f32 %v4520_v2, %v9197_v38  ;;  %v4525_v37 = vadd.f32 %v4500_v10, %v9194_v4 }
 0x8b1   :  { %v6016_v46 = vmul.f32 -1.442695, %v4526_v20 }
 0x8b2   :  { %v6326_v27 = vpop.eup %6325 }
 0x8b3   :  { %v6328_v19 = vpop.eup %6327  ;;  %v4530_v24 = vadd.f32 1.0, %v6326_v27  ;;  %6329 = vpow2.f32 %v6016_v46 }
 0x8b4   :  { %v4549_v26 = vadd.f32 1.0, %v6328_v19 }
 0x8b5   :  { %6331 = vrcp.f32 %v4530_v24  ;;  %v4542_v20 = vand.u32 2147483648, %v4530_v24  ;;  %v4540_v19 = vand.u32 2147483647, %v4530_v24  ;;  %vm4536_vm14 = vweird.f32 %v4530_v24 }
 0x8b6   :  { %6333 = vrcp.f32 %v4549_v26  ;;  %v4561_v2 = vand.u32 2147483648, %v4549_v26  ;;  %v4559_v17 = vand.u32 2147483647, %v4549_v26  ;;  %vm4555_vm15 = vweird.f32 %v4549_v26 }
 0x8b7   :  { %v4543_v4 = vor.u32 1.1754944e-38, %v4542_v20  ;;  %vm4541_vm2 = vcmp.eq.f32.partialorder %v4540_v19, 8.507059e+37 }
 0x8b8   :  { %vm4560_vm3 = vcmp.eq.f32.partialorder %v4559_v17, 8.507059e+37 }
 0x8b9   :  { %v6330_v54 = vpop.eup %6329 }
 0x8ba   :  { %v4569_v7 = vadd.f32 1.0, %v6330_v54 }
 0x8bb   :  { %v6332_v30 = vpop.eup %6331 }
 0x8bc   :  { %v6334_v18 = vpop.eup %6333  ;;  %v4532_v9 = vmul.f32 %v6332_v30, %v4530_v24  ;;  %6335 = vrcp.f32 %v4569_v7  ;;  %vm4537_vm12 = vweird.f32 %v6332_v30  ;;  %v4581_v20 = vand.u32 2147483648, %v4569_v7 }
 0x8bd   :  { %v4551_v34 = vmul.f32 %v6334_v18, %v4549_v26  ;;  %6337 = vtanh.f32 %v4525_v37  ;;  %vm4556_vm13 = vweird.f32 %v6334_v18  ;;  %vm4538_vm0 = vmor %vm4536_vm14, %vm4537_vm12  ;;  %vm4575_vm5 = vweird.f32 %v4569_v7 }
 0x8be   :  { %v4533_v47 = vsub.f32 1.0, %v4532_v9  ;;  %vm4557_vm1 = vmor %vm4555_vm15, %vm4556_vm13  ;;  %v4562_v9 = vor.u32 1.1754944e-38, %v4561_v2  ;;  %v4582_v19 = vor.u32 1.1754944e-38, %v4581_v20 }
 0x8bf   :  { %v4552_v38 = vsub.f32 1.0, %v4551_v34 }
 0x8c0   :  { %v4534_v27 = vmul.f32 %v6332_v30, %v4533_v47 }
 0x8c1   :  { %v4553_v46 = vmul.f32 %v6334_v18, %v4552_v38 }
 0x8c2   :  { %v6336_v29 = vpop.eup %6335  ;;  %v4535_v54 = vadd.f32 %v6332_v30, %v4534_v27 }
 0x8c3   :  { %v4554_v10 = vadd.f32 %v6334_v18, %v4553_v46  ;;  %v4571_v16 = vmul.f32 %v6336_v29, %v4569_v7  ;;  %v6338_v37 = vpop.eup %6337  ;;  %vm4576_vm4 = vweird.f32 %v6336_v29 }
 0x8c4   :  { %v4539_v34 = vsel %vm4538_vm0, %v6332_v30, %v4535_v54  ;;  %v4579_v30 = vand.u32 2147483647, %v4569_v7  ;;  %vm4577_vm6 = vmor %vm4575_vm5, %vm4576_vm4 }
 0x8c5   :  { %v4544_v36 = vsel %vm4541_vm2, %v4543_v4, %v4539_v34  ;;  %v4558_v47 = vsel %vm4557_vm1, %v6334_v18, %v4554_v10  ;;  %v4572_v11 = vsub.f32 1.0, %v4571_v16 }
 0x8c6   :  { %v4563_v38 = vsel %vm4560_vm3, %v4562_v9, %v4558_v47  ;;  %v4586_v23 = vmul.f32 %v6338_v37, %v4544_v36  ;;  %vm4580_vm7 = vcmp.eq.f32.partialorder %v4579_v30, 8.507059e+37 }
 0x8c7   :  { %v4585_v45 = vmul.f32 %v4563_v38, %v9297_v13  ;;  %v4573_v27 = vmul.f32 %v6336_v29, %v4572_v11 }
 0x8c9   :  { %v9337_v24 = vadd.f32 %v4586_v23, %v4585_v45  ;;  %v4574_v26 = vadd.f32 %v6336_v29, %v4573_v27 }
 0x8cb   :  { %6339 = vtanh.f32 %v9337_v24  ;;  %v4578_v2 = vsel %vm4577_vm6, %v6336_v29, %v4574_v26 }
 0x8cc   :  { %v4583_v16 = vsel %vm4580_vm7, %v4582_v19, %v4578_v2 }
 0x8d1   :  { %v6340_v18 = vpop.eup %6339 }
 0x8d2   :  { %v4589_v46 = vmul.f32 %v6340_v18, %v4583_v16 }
 0x8d4   :  { %4610 = vmatmul.f32.vlgmr.msra.gmra.mxu0 %v4589_v46  ;;  %4630 = vmatmul.f32.vlgmr.msra.gmra.mxu1 %v4589_v46 }
 0x8d5   :  { %4650 = vmatmul.f32.vlgmr.msra.gmra.mxu2 %v4589_v46  ;;  %4670 = vmatmul.f32.vlgmr.msra.gmra.mxu3 %v4589_v46 }
 0x8d6   :  { %4904 = vmatpush.msra.mxu0 %v10380_v32  ;;  %4924 = vmatpush.msra.mxu1 %v10381_v61 }
 0x8d7   :  { %4944 = vmatpush.msra.mxu2 %v10383_v44  ;;  %4964 = vmatpush.msra.mxu3 %v10382_v14 }
 0x8d8   :  { %4905 = vmatpush.msra.mxu0 %v10385_v39  ;;  %4925 = vmatpush.msra.mxu1 %v10386_v62 }
 0x8d9   :  { %4945 = vmatpush.msra.mxu2 %v10388_v53  ;;  %4965 = vmatpush.msra.mxu3 %v10387_v51 }
 0x8da   :  { %4906 = vmatpush.msra.mxu0 %v10389_v48  ;;  %4926 = vmatpush.msra.mxu1 %v10390_v50 }
 0x8db   :  { %4946 = vmatpush.msra.mxu2 %v10392_v42  ;;  %4966 = vmatpush.msra.mxu3 %v10391_v33 }
 0x8dc   :  { %4907 = vmatpush.msra.mxu0 %v10443_v35  ;;  %4927 = vmatpush.msra.mxu1 %v10444_v63 }
 0x8dd   :  { %4947 = vmatpush.msra.mxu2 %v10445_v59  ;;  %4967 = vmatpush.msra.mxu3 %v10446_v56 }
 0x8de   :  { %4908 = vmatpush.msra.mxu0 %v10447_v22  ;;  %4928 = vmatpush.msra.mxu1 %v10448_v28 }
 0x8df   :  { %4948 = vmatpush.msra.mxu2 %v10449_v31  ;;  %4968 = vmatpush.msra.mxu3 %v10450_v41 }
 0x8e0   :  { %4909 = vmatpush.msra.mxu0 %v10451_v8  ;;  %4929 = vmatpush.msra.mxu1 %v10452_v5 }
 0x8e1   :  { %4949 = vmatpush.msra.mxu2 %v10453_v52  ;;  %4969 = vmatpush.msra.mxu3 %v10454_v49 }
 0x8e2   :  { %4910 = vmatpush.msra.mxu0 %v10455_v0  ;;  %4930 = vmatpush.msra.mxu1 %v10456_v25 }
 0x8e3   :  { %4950 = vmatpush.msra.mxu2 %v10457_v6  ;;  %4970 = vmatpush.msra.mxu3 %v10458_v58 }
 0x8e4   :  { %4911 = vmatpush.msra.mxu0 %v10459_v21  ;;  %4931 = vmatpush.msra.mxu1 %v10460_v1 }
 0x8e5   :  { %4951 = vmatpush.msra.mxu2 %v10461_v60  ;;  %4971 = vmatpush.msra.mxu3 %v10462_v57 }
 0x951   :  { %v4611_v23 = vpop.f32.mrf.mxu0  ;;  %v4631_v45 = vpop.f32.mrf.mxu1 }
 0x952   :  { %v4674_v11 = vadd.f32 %v4611_v23, %v9200_v43  ;;  %v4675_v36 = vadd.f32 %v4631_v45, %v9203_v40 }
 0x954   :  { %v6017_v29 = vmul.f32 -1.442695, %v4674_v11  ;;  %v6018_v13 = vmul.f32 -1.442695, %v4675_v36 }
 0x956   :  { %6341 = vpow2.f32 %v6017_v29 }
 0x957   :  { %6343 = vpow2.f32 %v6018_v13 }
 0x958   :  { %v4671_v7 = vpop.f32.mrf.mxu3  ;;  %v4651_v37 = vpop.f32.mrf.mxu2 }
 0x959   :  { %v4677_v17 = vadd.f32 %v4671_v7, %v9209_v3  ;;  %v4676_v40 = vadd.f32 %v4651_v37, %v9206_v55 }
 0x95b   :  { %v6019_v54 = vmul.f32 -1.442695, %v4677_v17 }
 0x95c   :  { %v6342_v4 = vpop.eup %6341 }
 0x95d   :  { %v6344_v10 = vpop.eup %6343  ;;  %v4681_v9 = vadd.f32 1.0, %v6342_v4  ;;  %6345 = vpow2.f32 %v6019_v54 }
 0x95e   :  { %v4700_v34 = vadd.f32 1.0, %v6344_v10 }
 0x95f   :  { %6347 = vrcp.f32 %v4681_v9  ;;  %v4693_v2 = vand.u32 2147483648, %v4681_v9  ;;  %v4691_v16 = vand.u32 2147483647, %v4681_v9  ;;  %vm4687_vm10 = vweird.f32 %v4681_v9 }
 0x960   :  { %6349 = vrcp.f32 %v4700_v34  ;;  %v4712_v19 = vand.u32 2147483648, %v4700_v34  ;;  %v4710_v23 = vand.u32 2147483647, %v4700_v34  ;;  %vm4706_vm11 = vweird.f32 %v4700_v34 }
 0x961   :  { %v4694_v55 = vor.u32 1.1754944e-38, %v4693_v2  ;;  %vm4692_vm14 = vcmp.eq.f32.partialorder %v4691_v16, 8.507059e+37 }
 0x962   :  { %v4713_v13 = vor.u32 1.1754944e-38, %v4712_v19  ;;  %vm4711_vm15 = vcmp.eq.f32.partialorder %v4710_v23, 8.507059e+37 }
 0x963   :  { %v6346_v47 = vpop.eup %6345 }
 0x964   :  { %v4720_v43 = vadd.f32 1.0, %v6346_v47 }
 0x965   :  { %v6348_v38 = vpop.eup %6347 }
 0x966   :  { %v6350_v27 = vpop.eup %6349  ;;  %v4683_v26 = vmul.f32 %v6348_v38, %v4681_v9  ;;  %6351 = vrcp.f32 %v4720_v43  ;;  %vm4688_vm8 = vweird.f32 %v6348_v38  ;;  %vm4726_vm1 = vweird.f32 %v4720_v43 }
 0x967   :  { %v4702_v20 = vmul.f32 %v6350_v27, %v4700_v34  ;;  %6353 = vtanh.f32 %v4676_v40  ;;  %vm4707_vm9 = vweird.f32 %v6350_v27  ;;  %vm4689_vm12 = vmor %vm4687_vm10, %vm4688_vm8 }
 0x968   :  { %v4684_v30 = vsub.f32 1.0, %v4683_v26  ;;  %vm4708_vm13 = vmor %vm4706_vm11, %vm4707_vm9 }
 0x969   :  { %v4703_v3 = vsub.f32 1.0, %v4702_v20  ;;  %v4732_v20 = vand.u32 2147483648, %v4720_v43 }
 0x96a   :  { %v4685_v18 = vmul.f32 %v6348_v38, %v4684_v30 }
 0x96b   :  { %v4704_v46 = vmul.f32 %v6350_v27, %v4703_v3  ;;  %v4733_v3 = vor.u32 1.1754944e-38, %v4732_v20 }
 0x96c   :  { %v6352_v45 = vpop.eup %6351  ;;  %v4686_v11 = vadd.f32 %v6348_v38, %v4685_v18 }
 0x96d   :  { %v4705_v36 = vadd.f32 %v6350_v27, %v4704_v46  ;;  %v4722_v29 = vmul.f32 %v6352_v45, %v4720_v43  ;;  %v6354_v17 = vpop.eup %6353  ;;  %vm4727_vm0 = vweird.f32 %v6352_v45 }
 0x96e   :  { %v4690_v7 = vsel %vm4689_vm12, %v6348_v38, %v4686_v11  ;;  %v4730_v38 = vand.u32 2147483647, %v4720_v43  ;;  %vm4728_vm2 = vmor %vm4726_vm1, %vm4727_vm0  ;;  %v10465_v11 = vld [vmem:[#allocation274_spill] sm:$0xff] }
 0x96f   :  { %v4695_v54 = vsel %vm4692_vm14, %v4694_v55, %v4690_v7  ;;  %v4709_v4 = vsel %vm4708_vm13, %v6350_v27, %v4705_v36  ;;  %v4723_v10 = vsub.f32 1.0, %v4722_v29 }
 0x970   :  { %v4714_v37 = vsel %vm4711_vm15, %v4713_v13, %v4709_v4  ;;  %v4737_v47 = vmul.f32 %v6354_v17, %v4695_v54  ;;  %vm4731_vm3 = vcmp.eq.f32.partialorder %v4730_v38, 8.507059e+37 }
 0x971   :  { %v4736_v40 = vmul.f32 %v4714_v37, %v9337_v24  ;;  %v4724_v26 = vmul.f32 %v6352_v45, %v4723_v10 }
 0x973   :  { %v9377_v9 = vadd.f32 %v4737_v47, %v4736_v40  ;;  %v4725_v34 = vadd.f32 %v6352_v45, %v4724_v26 }
 0x975   :  { %6355 = vtanh.f32 %v9377_v9  ;;  %v4729_v30 = vsel %vm4728_vm2, %v6352_v45, %v4725_v34 }
 0x976   :  { %v4734_v2 = vsel %vm4731_vm3, %v4733_v3, %v4729_v30 }
 0x97b   :  { %v6356_v27 = vpop.eup %6355 }
 0x97c   :  { %v4740_v19 = vmul.f32 %v6356_v27, %v4734_v2 }
 0x97e   :  { %4761 = vmatmul.f32.vlgmr.msrb.gmra.mxu0 %v4740_v19  ;;  %4781 = vmatmul.f32.vlgmr.msrb.gmra.mxu1 %v4740_v19 }
 0x97f   :  { %4801 = vmatmul.f32.vlgmr.msrb.gmra.mxu2 %v4740_v19  ;;  %4821 = vmatmul.f32.vlgmr.msrb.gmra.mxu3 %v4740_v19 }
 0x980   :  { %5055 = vmatpush.msrb.mxu0 %v10380_v32  ;;  %5075 = vmatpush.msrb.mxu1 %v10381_v61 }
 0x981   :  { %5095 = vmatpush.msrb.mxu2 %v10383_v44  ;;  %5115 = vmatpush.msrb.mxu3 %v10382_v14 }
 0x982   :  { %5056 = vmatpush.msrb.mxu0 %v10385_v39  ;;  %5076 = vmatpush.msrb.mxu1 %v10386_v62 }
 0x983   :  { %5096 = vmatpush.msrb.mxu2 %v10388_v53  ;;  %5116 = vmatpush.msrb.mxu3 %v10387_v51 }
 0x984   :  { %5057 = vmatpush.msrb.mxu0 %v10389_v48  ;;  %5077 = vmatpush.msrb.mxu1 %v10390_v50 }
 0x985   :  { %5097 = vmatpush.msrb.mxu2 %v10392_v42  ;;  %5117 = vmatpush.msrb.mxu3 %v10391_v33 }
 0x986   :  { %5058 = vmatpush.msrb.mxu0 %v10443_v35  ;;  %5078 = vmatpush.msrb.mxu1 %v10444_v63 }
 0x987   :  { %5098 = vmatpush.msrb.mxu2 %v10445_v59  ;;  %5118 = vmatpush.msrb.mxu3 %v10446_v56 }
 0x988   :  { %5059 = vmatpush.msrb.mxu0 %v10447_v22  ;;  %5079 = vmatpush.msrb.mxu1 %v10448_v28 }
 0x989   :  { %5099 = vmatpush.msrb.mxu2 %v10449_v31  ;;  %5119 = vmatpush.msrb.mxu3 %v10450_v41 }
 0x98a   :  { %5060 = vmatpush.msrb.mxu0 %v10451_v8  ;;  %5080 = vmatpush.msrb.mxu1 %v10452_v5 }
 0x98b   :  { %5100 = vmatpush.msrb.mxu2 %v10453_v52  ;;  %5120 = vmatpush.msrb.mxu3 %v10454_v49 }
 0x98c   :  { %5061 = vmatpush.msrb.mxu0 %v10455_v0  ;;  %5081 = vmatpush.msrb.mxu1 %v10456_v25 }
 0x98d   :  { %5101 = vmatpush.msrb.mxu2 %v10457_v6  ;;  %5121 = vmatpush.msrb.mxu3 %v10458_v58 }
 0x98e   :  { %5062 = vmatpush.msrb.mxu0 %v10459_v21  ;;  %5082 = vmatpush.msrb.mxu1 %v10460_v1 }
 0x98f   :  { %5102 = vmatpush.msrb.mxu2 %v10461_v60  ;;  %5122 = vmatpush.msrb.mxu3 %v10462_v57 }
 0x9fb   :  { %v4762_v24 = vpop.f32.mrf.mxu0  ;;  %v4782_v43 = vpop.f32.mrf.mxu1 }
 0x9fc   :  { %v4825_v18 = vadd.f32 %v4762_v24, %v9212_v12  ;;  %v4826_v16 = vadd.f32 %v4782_v43, %v9215_v15  ;;  %v10466_v15 = vld [vmem:[#allocation257_spill] sm:$0xff] }
 0x9fe   :  { %v6020_v46 = vmul.f32 -1.442695, %v4825_v18  ;;  %v6021_v23 = vmul.f32 -1.442695, %v4826_v16 }
 0xa00   :  { %6357 = vpow2.f32 %v6020_v46 }
 0xa01   :  { %6359 = vpow2.f32 %v6021_v23 }
 0xa02   :  { %v4822_v45 = vpop.f32.mrf.mxu3  ;;  %v4802_v54 = vpop.f32.mrf.mxu2 }
 0xa03   :  { %v4828_v55 = vadd.f32 %v4822_v45, %v10465_v11  ;;  %v4827_v37 = vadd.f32 %v4802_v54, %v10466_v15 }
 0xa05   :  { %v6022_v36 = vmul.f32 -1.442695, %v4828_v55 }
 0xa06   :  { %v6358_v29 = vpop.eup %6357 }
 0xa07   :  { %v6360_v13 = vpop.eup %6359  ;;  %v4832_v7 = vadd.f32 1.0, %v6358_v29  ;;  %6361 = vpow2.f32 %v6022_v36 }
 0xa08   :  { %v4851_v17 = vadd.f32 1.0, %v6360_v13 }
 0xa09   :  { %6363 = vrcp.f32 %v4832_v7  ;;  %v4844_v38 = vand.u32 2147483648, %v4832_v7  ;;  %v4842_v27 = vand.u32 2147483647, %v4832_v7  ;;  %vm4838_vm6 = vweird.f32 %v4832_v7 }
 0xa0a   :  { %6365 = vrcp.f32 %v4851_v17  ;;  %v4863_v30 = vand.u32 2147483648, %v4851_v17  ;;  %v4861_v19 = vand.u32 2147483647, %v4851_v17  ;;  %vm4857_vm7 = vweird.f32 %v4851_v17 }
 0xa0b   :  { %v4845_v18 = vor.u32 1.1754944e-38, %v4844_v38  ;;  %vm4843_vm10 = vcmp.eq.f32.partialorder %v4842_v27, 8.507059e+37  ;;  %v10467_v38 = vld [vmem:[#allocation275_spill] sm:$0xff] }
 0xa0c   :  { %v4864_v23 = vor.u32 1.1754944e-38, %v4863_v30  ;;  %vm4862_vm11 = vcmp.eq.f32.partialorder %v4861_v19, 8.507059e+37 }
 0xa0d   :  { %v6362_v4 = vpop.eup %6361 }
 0xa0e   :  { %v4871_v12 = vadd.f32 1.0, %v6362_v4 }
 0xa0f   :  { %v6364_v10 = vpop.eup %6363 }
 0xa10   :  { %v6366_v47 = vpop.eup %6365  ;;  %v4834_v40 = vmul.f32 %v6364_v10, %v4832_v7  ;;  %6367 = vrcp.f32 %v4871_v12  ;;  %vm4839_vm4 = vweird.f32 %v6364_v10  ;;  %vm4877_vm13 = vweird.f32 %v4871_v12 }
 0xa11   :  { %v4853_v26 = vmul.f32 %v6366_v47, %v4851_v17  ;;  %6369 = vtanh.f32 %v4827_v37  ;;  %vm4858_vm5 = vweird.f32 %v6366_v47  ;;  %vm4840_vm8 = vmor %vm4838_vm6, %vm4839_vm4  ;;  %v4883_v37 = vand.u32 2147483648, %v4871_v12 }
 0xa12   :  { %v4835_v34 = vsub.f32 1.0, %v4834_v40  ;;  %vm4859_vm9 = vmor %vm4857_vm7, %vm4858_vm5 }
 0xa13   :  { %v4854_v20 = vsub.f32 1.0, %v4853_v26  ;;  %v4884_v26 = vor.u32 1.1754944e-38, %v4883_v37 }
 0xa14   :  { %v4836_v3 = vmul.f32 %v6364_v10, %v4835_v34 }
 0xa15   :  { %v4855_v2 = vmul.f32 %v6366_v47, %v4854_v20 }
 0xa16   :  { %v6368_v24 = vpop.eup %6367  ;;  %v4837_v43 = vadd.f32 %v6364_v10, %v4836_v3  ;;  %v10468_v3 = vld [vmem:[#allocation256_spill] sm:$0xff] }
 0xa17   :  { %v4856_v16 = vadd.f32 %v6366_v47, %v4855_v2  ;;  %v4873_v46 = vmul.f32 %v6368_v24, %v4871_v12  ;;  %v6370_v11 = vpop.eup %6369  ;;  %vm4878_vm12 = vweird.f32 %v6368_v24 }
 0xa18   :  { %v4841_v45 = vsel %vm4840_vm8, %v6364_v10, %v4837_v43  ;;  %v4881_v10 = vand.u32 2147483647, %v4871_v12  ;;  %vm4879_vm14 = vmor %vm4877_vm13, %vm4878_vm12  ;;  %v10469_v43 = vld [vmem:[#allocation276_spill] sm:$0xff] }
 0xa19   :  { %v4846_v55 = vsel %vm4843_vm10, %v4845_v18, %v4841_v45  ;;  %v4860_v36 = vsel %vm4859_vm9, %v6366_v47, %v4856_v16  ;;  %v4874_v29 = vsub.f32 1.0, %v4873_v46 }
 0xa1a   :  { %v4865_v13 = vsel %vm4862_vm11, %v4864_v23, %v4860_v36  ;;  %v4888_v54 = vmul.f32 %v6370_v11, %v4846_v55  ;;  %vm4882_vm15 = vcmp.eq.f32.partialorder %v4881_v10, 8.507059e+37 }
 0xa1b   :  { %v4887_v4 = vmul.f32 %v4865_v13, %v9377_v9  ;;  %v4875_v15 = vmul.f32 %v6368_v24, %v4874_v29 }
 0xa1d   :  { %v9417_v7 = vadd.f32 %v4888_v54, %v4887_v4  ;;  %v4876_v17 = vadd.f32 %v6368_v24, %v4875_v15  ;;  %v10470_v54 = vld [vmem:[#allocation277_spill] sm:$0xff] }
 0xa1f   :  { %6371 = vtanh.f32 %v9417_v7  ;;  %v4880_v40 = vsel %vm4879_vm14, %v6368_v24, %v4876_v17 }
 0xa20   :  { %v4885_v34 = vsel %vm4882_vm15, %v4884_v26, %v4880_v40 }
 0xa25   :  { %v6372_v47 = vpop.eup %6371 }
 0xa26   :  { %v4891_v20 = vmul.f32 %v6372_v47, %v4885_v34 }
 0xa28   :  { %4912 = vmatmul.f32.vlgmr.msra.gmra.mxu0 %v4891_v20  ;;  %4932 = vmatmul.f32.vlgmr.msra.gmra.mxu1 %v4891_v20 }
 0xa29   :  { %4952 = vmatmul.f32.vlgmr.msra.gmra.mxu2 %v4891_v20  ;;  %4972 = vmatmul.f32.vlgmr.msra.gmra.mxu3 %v4891_v20 }
 0xa2a   :  { %5206 = vmatpush.msra.mxu0 %v10380_v32  ;;  %5226 = vmatpush.msra.mxu1 %v10381_v61 }
 0xa2b   :  { %5246 = vmatpush.msra.mxu2 %v10383_v44  ;;  %5266 = vmatpush.msra.mxu3 %v10382_v14 }
 0xa2c   :  { %5207 = vmatpush.msra.mxu0 %v10385_v39  ;;  %5227 = vmatpush.msra.mxu1 %v10386_v62 }
 0xa2d   :  { %5247 = vmatpush.msra.mxu2 %v10388_v53  ;;  %5267 = vmatpush.msra.mxu3 %v10387_v51 }
 0xa2e   :  { %5208 = vmatpush.msra.mxu0 %v10389_v48  ;;  %5228 = vmatpush.msra.mxu1 %v10390_v50 }
 0xa2f   :  { %5248 = vmatpush.msra.mxu2 %v10392_v42  ;;  %5268 = vmatpush.msra.mxu3 %v10391_v33 }
 0xa30   :  { %5209 = vmatpush.msra.mxu0 %v10443_v35  ;;  %5229 = vmatpush.msra.mxu1 %v10444_v63 }
 0xa31   :  { %5249 = vmatpush.msra.mxu2 %v10445_v59  ;;  %5269 = vmatpush.msra.mxu3 %v10446_v56 }
 0xa32   :  { %5210 = vmatpush.msra.mxu0 %v10447_v22  ;;  %5230 = vmatpush.msra.mxu1 %v10448_v28 }
 0xa33   :  { %5250 = vmatpush.msra.mxu2 %v10449_v31  ;;  %5270 = vmatpush.msra.mxu3 %v10450_v41 }
 0xa34   :  { %5211 = vmatpush.msra.mxu0 %v10451_v8  ;;  %5231 = vmatpush.msra.mxu1 %v10452_v5 }
 0xa35   :  { %5251 = vmatpush.msra.mxu2 %v10453_v52  ;;  %5271 = vmatpush.msra.mxu3 %v10454_v49 }
 0xa36   :  { %5212 = vmatpush.msra.mxu0 %v10455_v0  ;;  %5232 = vmatpush.msra.mxu1 %v10456_v25 }
 0xa37   :  { %5252 = vmatpush.msra.mxu2 %v10457_v6  ;;  %5272 = vmatpush.msra.mxu3 %v10458_v58 }
 0xa38   :  { %5213 = vmatpush.msra.mxu0 %v10459_v21  ;;  %5233 = vmatpush.msra.mxu1 %v10460_v1 }
 0xa39   :  { %5253 = vmatpush.msra.mxu2 %v10461_v60  ;;  %5273 = vmatpush.msra.mxu3 %v10462_v57 }
 0xaa5   :  { %v4913_v9 = vpop.f32.mrf.mxu0  ;;  %v4933_v12 = vpop.f32.mrf.mxu1 }
 0xaa6   :  { %v4976_v30 = vadd.f32 %v4913_v9, %v10467_v38  ;;  %v4977_v27 = vadd.f32 %v4933_v12, %v10468_v3 }
 0xaa8   :  { %v6023_v2 = vmul.f32 -1.442695, %v4976_v30  ;;  %v6024_v19 = vmul.f32 -1.442695, %v4977_v27 }
 0xaaa   :  { %6373 = vpow2.f32 %v6023_v2 }
 0xaab   :  { %6375 = vpow2.f32 %v6024_v19 }
 0xaac   :  { %v4973_v24 = vpop.f32.mrf.mxu3  ;;  %v4953_v55 = vpop.f32.mrf.mxu2 }
 0xaad   :  { %v4979_v18 = vadd.f32 %v4973_v24, %v10469_v43  ;;  %v4978_v4 = vadd.f32 %v4953_v55, %v10470_v54 }
 0xaaf   :  { %v6025_v16 = vmul.f32 -1.442695, %v4979_v18 }
 0xab0   :  { %v6374_v46 = vpop.eup %6373 }
 0xab1   :  { %v6376_v23 = vpop.eup %6375  ;;  %v4983_v45 = vadd.f32 1.0, %v6374_v46  ;;  %6377 = vpow2.f32 %v6025_v16 }
 0xab2   :  { %v5002_v11 = vadd.f32 1.0, %v6376_v23 }
 0xab3   :  { %6379 = vrcp.f32 %v4983_v45  ;;  %v4995_v26 = vand.u32 2147483648, %v4983_v45  ;;  %v4993_v20 = vand.u32 2147483647, %v4983_v45  ;;  %vm4989_vm2 = vweird.f32 %v4983_v45 }
 0xab4   :  { %6381 = vrcp.f32 %v5002_v11  ;;  %v5014_v47 = vand.u32 2147483648, %v5002_v11  ;;  %v5012_v12 = vand.u32 2147483647, %v5002_v11  ;;  %vm5008_vm3 = vweird.f32 %v5002_v11 }
 0xab5   :  { %v4996_v3 = vor.u32 1.1754944e-38, %v4995_v26  ;;  %vm4994_vm6 = vcmp.eq.f32.partialorder %v4993_v20, 8.507059e+37 }
 0xab6   :  { %v5015_v19 = vor.u32 1.1754944e-38, %v5014_v47  ;;  %vm5013_vm7 = vcmp.eq.f32.partialorder %v5012_v12, 8.507059e+37 }
 0xab7   :  { %v6378_v36 = vpop.eup %6377 }
 0xab8   :  { %v5022_v29 = vadd.f32 1.0, %v6378_v36 }
 0xab9   :  { %v6380_v13 = vpop.eup %6379 }
 0xaba   :  { %v6382_v15 = vpop.eup %6381  ;;  %v4985_v17 = vmul.f32 %v6380_v13, %v4983_v45  ;;  %6383 = vrcp.f32 %v5022_v29  ;;  %vm4990_vm0 = vweird.f32 %v6380_v13  ;;  %vm5028_vm9 = vweird.f32 %v5022_v29 }
 0xabb   :  { %v5004_v37 = vmul.f32 %v6382_v15, %v5002_v11  ;;  %6385 = vtanh.f32 %v4978_v4  ;;  %vm5009_vm1 = vweird.f32 %v6382_v15  ;;  %vm4991_vm4 = vmor %vm4989_vm2, %vm4990_vm0  ;;  %v5034_v4 = vand.u32 2147483648, %v5022_v29 }
 0xabc   :  { %v4986_v10 = vsub.f32 1.0, %v4985_v17  ;;  %vm5010_vm5 = vmor %vm5008_vm3, %vm5009_vm1 }
 0xabd   :  { %v5005_v40 = vsub.f32 1.0, %v5004_v37  ;;  %v5035_v37 = vor.u32 1.1754944e-38, %v5034_v4 }
 0xabe   :  { %v4987_v34 = vmul.f32 %v6380_v13, %v4986_v10 }
 0xabf   :  { %v5006_v9 = vmul.f32 %v6382_v15, %v5005_v40 }
 0xac0   :  { %v6384_v38 = vpop.eup %6383  ;;  %v4988_v30 = vadd.f32 %v6380_v13, %v4987_v34 }
 0xac1   :  { %v5007_v27 = vadd.f32 %v6382_v15, %v5006_v9  ;;  %v5024_v2 = vmul.f32 %v6384_v38, %v5022_v29  ;;  %v6386_v43 = vpop.eup %6385  ;;  %vm5029_vm8 = vweird.f32 %v6384_v38 }
 0xac2   :  { %v4992_v24 = vsel %vm4991_vm4, %v6380_v13, %v4988_v30  ;;  %v5032_v13 = vand.u32 2147483647, %v5022_v29  ;;  %vm5030_vm10 = vmor %vm5028_vm9, %vm5029_vm8 }
 0xac3   :  { %v4997_v18 = vsel %vm4994_vm6, %v4996_v3, %v4992_v24  ;;  %v5011_v16 = vsel %vm5010_vm5, %v6382_v15, %v5007_v27  ;;  %v5025_v46 = vsub.f32 1.0, %v5024_v2 }
 0xac4   :  { %v5016_v23 = vsel %vm5013_vm7, %v5015_v19, %v5011_v16  ;;  %v5039_v55 = vmul.f32 %v6386_v43, %v4997_v18  ;;  %vm5033_vm11 = vcmp.eq.f32.partialorder %v5032_v13, 8.507059e+37  ;;  %v10476_v13 = vld [vmem:[#allocation211_spill] sm:$0xff] }
 0xac5   :  { %v5038_v36 = vmul.f32 %v5016_v23, %v9417_v7  ;;  %v5026_v54 = vmul.f32 %v6384_v38, %v5025_v46 }
 0xac7   :  { %v9457_v45 = vadd.f32 %v5039_v55, %v5038_v36  ;;  %v5027_v11 = vadd.f32 %v6384_v38, %v5026_v54 }
 0xac9   :  { %6387 = vtanh.f32 %v9457_v45  ;;  %v5031_v17 = vsel %vm5030_vm10, %v6384_v38, %v5027_v11 }
 0xaca   :  { %v5036_v10 = vsel %vm5033_vm11, %v5035_v37, %v5031_v17  ;;  %v10477_v17 = vld [vmem:[#allocation213_spill] sm:$0xff]  ;;  %v10478_v37 = vld [vmem:[#allocation212_spill] sm:$0xff] }
 0xacf   :  { %v6388_v15 = vpop.eup %6387 }
 0xad0   :  { %v5042_v40 = vmul.f32 %v6388_v15, %v5036_v10  ;;  %v10479_v15 = vld [vmem:[#allocation206_spill] sm:$0xff]  ;;  %v10480_v10 = vld [vmem:[#allocation207_spill] sm:$0xff] }
 0xad2   :  { %5063 = vmatmul.f32.vlgmr.msrb.gmra.mxu0 %v5042_v40  ;;  %5083 = vmatmul.f32.vlgmr.msrb.gmra.mxu1 %v5042_v40 }
 0xad3   :  { %5103 = vmatmul.f32.vlgmr.msrb.gmra.mxu2 %v5042_v40  ;;  %5123 = vmatmul.f32.vlgmr.msrb.gmra.mxu3 %v5042_v40  ;;  %v10481_v40 = vld [vmem:[#allocation209_spill] sm:$0xff] }
 0xad4   :  { %5357 = vmatpush.msrb.mxu0 %v10380_v32  ;;  %5377 = vmatpush.msrb.mxu1 %v10381_v61 }
 0xad5   :  { %5417 = vmatpush.msrb.mxu3 %v10382_v14  ;;  %5397 = vmatpush.msrb.mxu2 %v10383_v44  ;;  %v10471_v14 = vld [vmem:[#allocation230_spill] sm:$0xff] }
 0xad6   :  { %5358 = vmatpush.msrb.mxu0 %v10385_v39  ;;  %5378 = vmatpush.msrb.mxu1 %v10386_v62  ;;  %v10472_v39 = vld [vmem:[#allocation231_spill] sm:$0xff] }
 0xad7   :  { %5418 = vmatpush.msrb.mxu3 %v10387_v51  ;;  %5398 = vmatpush.msrb.mxu2 %v10388_v53 }
 0xad8   :  { %5359 = vmatpush.msrb.mxu0 %v10389_v48  ;;  %5379 = vmatpush.msrb.mxu1 %v10390_v50  ;;  %v10473_v50 = vld [vmem:[#allocation226_spill] sm:$0xff] }
 0xad9   :  { %5419 = vmatpush.msrb.mxu3 %v10391_v33  ;;  %5399 = vmatpush.msrb.mxu2 %v10392_v42 }
 0xada   :  { %5360 = vmatpush.msrb.mxu0 %v10443_v35  ;;  %5380 = vmatpush.msrb.mxu1 %v10444_v63 }
 0xadb   :  { %5420 = vmatpush.msrb.mxu3 %v10446_v56  ;;  %5400 = vmatpush.msrb.mxu2 %v10445_v59 }
 0xadc   :  { %5361 = vmatpush.msrb.mxu0 %v10447_v22  ;;  %5381 = vmatpush.msrb.mxu1 %v10448_v28 }
 0xadd   :  { %5421 = vmatpush.msrb.mxu3 %v10450_v41  ;;  %5401 = vmatpush.msrb.mxu2 %v10449_v31 }
 0xade   :  { %5362 = vmatpush.msrb.mxu0 %v10451_v8  ;;  %5382 = vmatpush.msrb.mxu1 %v10452_v5  ;;  %v10474_v8 = vld [vmem:[#allocation233_spill] sm:$0xff] }
 0xadf   :  { %5422 = vmatpush.msrb.mxu3 %v10454_v49  ;;  %5402 = vmatpush.msrb.mxu2 %v10453_v52 }
 0xae0   :  { %5363 = vmatpush.msrb.mxu0 %v10455_v0  ;;  %5383 = vmatpush.msrb.mxu1 %v10456_v25 }
 0xae1   :  { %5423 = vmatpush.msrb.mxu3 %v10458_v58  ;;  %5403 = vmatpush.msrb.mxu2 %v10457_v6 }
 0xae2   :  { %5364 = vmatpush.msrb.mxu0 %v10459_v21  ;;  %5384 = vmatpush.msrb.mxu1 %v10460_v1 }
 0xae3   :  { %5424 = vmatpush.msrb.mxu3 %v10462_v57  ;;  %5404 = vmatpush.msrb.mxu2 %v10461_v60 }
 0xb4f   :  { %v5064_v32 = vpop.f32.mrf.mxu0  ;;  %v5084_v61 = vpop.f32.mrf.mxu1 }
 0xb50   :  { %v5127_v44 = vadd.f32 %v5064_v32, %v10471_v14  ;;  %v5128_v62 = vadd.f32 %v5084_v61, %v10472_v39  ;;  %v10482_v32 = vld [vmem:[#allocation208_spill] sm:$0xff]  ;;  %v10483_v61 = vld [vmem:[#allocation202_spill] sm:$0xff]  ;;  %v10484_v14 = vld [vmem:[#allocation203_spill] sm:$0xff] }
 0xb51   :  { %v10486_v39 = vld [vmem:[#allocation204_spill] sm:$0xff] }
 0xb52   :  { %v6026_v51 = vmul.f32 -1.442695, %v5127_v44  ;;  %v6027_v53 = vmul.f32 -1.442695, %v5128_v62  ;;  %v10485_v44 = vld [vmem:[#allocation205_spill] sm:$0xff]  ;;  %v10487_v62 = vld [vmem:[#allocation198_spill] sm:$0xff] }
 0xb54   :  { %6389 = vpow2.f32 %v6026_v51  ;;  %v10488_v51 = vld [vmem:[#allocation199_spill] sm:$0xff] }
 0xb55   :  { %6391 = vpow2.f32 %v6027_v53  ;;  %v10489_v53 = vld [vmem:[#allocation201_spill] sm:$0xff] }
 0xb56   :  { %v5124_v48 = vpop.f32.mrf.mxu3  ;;  %v5104_v22 = vpop.f32.mrf.mxu2 }
 0xb57   :  { %v5130_v33 = vadd.f32 %v5124_v48, %v10473_v50  ;;  %v5129_v5 = vadd.f32 %v5104_v22, %v10474_v8  ;;  %v10490_v48 = vld [vmem:[#allocation200_spill] sm:$0xff]  ;;  %v10491_v50 = vld [vmem:[#allocation194_spill] sm:$0xff] }
 0xb58   :  { %v10498_v22 = vld [vmem:[#allocation192_spill] sm:$0xff] }
 0xb59   :  { %v6028_v42 = vmul.f32 -1.442695, %v5130_v33  ;;  %v10492_v33 = vld [vmem:[#allocation195_spill] sm:$0xff]  ;;  %v10502_v8 = vld [vmem:[#allocation188_spill] sm:$0xff] }
 0xb5a   :  { %v6390_v35 = vpop.eup %6389 }
 0xb5b   :  { %v6392_v63 = vpop.eup %6391  ;;  %v5134_v59 = vadd.f32 1.0, %v6390_v35  ;;  %6393 = vpow2.f32 %v6028_v42  ;;  %v10493_v42 = vld [vmem:[#allocation197_spill] sm:$0xff]  ;;  %v10494_v35 = vld [vmem:[#allocation196_spill] sm:$0xff] }
 0xb5c   :  { %v5153_v56 = vadd.f32 1.0, %v6392_v63  ;;  %v10495_v63 = vld [vmem:[#allocation190_spill] sm:$0xff] }
 0xb5d   :  { %6395 = vrcp.f32 %v5134_v59  ;;  %v5146_v58 = vand.u32 2147483648, %v5134_v59  ;;  %v5144_v60 = vand.u32 2147483647, %v5134_v59  ;;  %vm5140_vm14 = vweird.f32 %v5134_v59 }
 0xb5e   :  { %6397 = vrcp.f32 %v5153_v56  ;;  %v5165_v21 = vand.u32 2147483648, %v5153_v56  ;;  %v5163_v7 = vand.u32 2147483647, %v5153_v56  ;;  %vm5159_vm15 = vweird.f32 %v5153_v56 }
 0xb5f   :  { %v5147_v47 = vor.u32 1.1754944e-38, %v5146_v58  ;;  %vm5145_vm2 = vcmp.eq.f32.partialorder %v5144_v60, 8.507059e+37  ;;  %v10507_v58 = vld [vmem:[#allocation227_spill] sm:$0xff] }
 0xb60   :  { %v5166_v9 = vor.u32 1.1754944e-38, %v5165_v21  ;;  %vm5164_vm3 = vcmp.eq.f32.partialorder %v5163_v7, 8.507059e+37 }
 0xb61   :  { %v6394_v28 = vpop.eup %6393 }
 0xb62   :  { %v5173_v31 = vadd.f32 1.0, %v6394_v28  ;;  %v10499_v28 = vld [vmem:[#allocation186_spill] sm:$0xff] }
 0xb63   :  { %v6396_v41 = vpop.eup %6395 }
 0xb64   :  { %v6398_v52 = vpop.eup %6397  ;;  %v5136_v49 = vmul.f32 %v6396_v41, %v5134_v59  ;;  %6399 = vrcp.f32 %v5173_v31  ;;  %vm5141_vm12 = vweird.f32 %v6396_v41  ;;  %v5185_v46 = vand.u32 2147483648, %v5173_v31  ;;  %v10496_v59 = vld [vmem:[#allocation191_spill] sm:$0xff] }
 0xb65   :  { %v5155_v0 = vmul.f32 %v6398_v52, %v5153_v56  ;;  %6401 = vtanh.f32 %v5129_v5  ;;  %vm5160_vm13 = vweird.f32 %v6398_v52  ;;  %vm5142_vm0 = vmor %vm5140_vm14, %vm5141_vm12  ;;  %vm5179_vm5 = vweird.f32 %v5173_v31  ;;  %v10497_v56 = vld [vmem:[#allocation193_spill] sm:$0xff]  ;;  %v10503_v5 = vld [vmem:[#allocation182_spill] sm:$0xff] }
 0xb66   :  { %v5137_v25 = vsub.f32 1.0, %v5136_v49  ;;  %vm5161_vm1 = vmor %vm5159_vm15, %vm5160_vm13  ;;  %v5183_v23 = vand.u32 2147483647, %v5173_v31  ;;  %v5186_v36 = vor.u32 1.1754944e-38, %v5185_v46  ;;  %v10505_v49 = vld [vmem:[#allocation185_spill] sm:$0xff] }
 0xb67   :  { %v5156_v6 = vsub.f32 1.0, %v5155_v0  ;;  %v10506_v0 = vld [vmem:[#allocation184_spill] sm:$0xff] }
 0xb68   :  { %v5138_v1 = vmul.f32 %v6396_v41, %v5137_v25  ;;  %vm5184_vm7 = vcmp.eq.f32.partialorder %v5183_v23, 8.507059e+37 }
 0xb69   :  { %v5157_v57 = vmul.f32 %v6398_v52, %v5156_v6 }
 0xb6a   :  { %v6400_v29 = vpop.eup %6399  ;;  %v5139_v26 = vadd.f32 %v6396_v41, %v5138_v1  ;;  %v10508_v1 = vld [vmem:[#allocation232_spill] sm:$0xff] }
 0xb6b   :  { %v5158_v34 = vadd.f32 %v6398_v52, %v5157_v57  ;;  %v5175_v20 = vmul.f32 %v6400_v29, %v5173_v31  ;;  %v6402_v38 = vpop.eup %6401  ;;  %vm5180_vm4 = vweird.f32 %v6400_v29  ;;  %v10500_v31 = vld [vmem:[#allocation187_spill] sm:$0xff] }
 0xb6c   :  { %v5143_v12 = vsel %vm5142_vm0, %v6396_v41, %v5139_v26  ;;  %vm5181_vm6 = vmor %vm5179_vm5, %vm5180_vm4  ;;  %v10501_v41 = vld [vmem:[#allocation189_spill] sm:$0xff]  ;;  %v10509_v26 = vld [vmem:[#allocation228_spill] sm:$0xff] }
 0xb6d   :  { %v5148_v30 = vsel %vm5145_vm2, %v5147_v47, %v5143_v12  ;;  %v5162_v3 = vsel %vm5161_vm1, %v6398_v52, %v5158_v34  ;;  %v5176_v27 = vsub.f32 1.0, %v5175_v20  ;;  %v10504_v52 = vld [vmem:[#allocation183_spill] sm:$0xff] }
 0xb6e   :  { %v5167_v2 = vsel %vm5164_vm3, %v5166_v9, %v5162_v3  ;;  %v5190_v19 = vmul.f32 %v6402_v38, %v5148_v30 }
 0xb6f   :  { %v5189_v24 = vmul.f32 %v5167_v2, %v9457_v45  ;;  %v5177_v43 = vmul.f32 %v6400_v29, %v5176_v27  ;;  %v10475_v45 = vld [vmem:[#allocation210_spill] sm:$0xff] }
 0xb71   :  { %v9497_v18 = vadd.f32 %v5190_v19, %v5189_v24  ;;  %v5178_v16 = vadd.f32 %v6400_v29, %v5177_v43  ;;  %v10510_v19 = vld [vmem:[#allocation229_spill] sm:$0xff] }
 0xb73   :  { %6403 = vtanh.f32 %v9497_v18  ;;  %v5182_v55 = vsel %vm5181_vm6, %v6400_v29, %v5178_v16 }
 0xb74   :  { %v5187_v11 = vsel %vm5184_vm7, %v5186_v36, %v5182_v55 }
 0xb79   :  { %v6404_v54 = vpop.eup %6403 }
 0xb7a   :  { %v5193_v4 = vmul.f32 %v6404_v54, %v5187_v11 }
 0xb7c   :  { %5214 = vmatmul.f32.vlgmr.msra.gmra.mxu0 %v5193_v4  ;;  %5234 = vmatmul.f32.vlgmr.msra.gmra.mxu1 %v5193_v4 }
 0xb7d   :  { %5254 = vmatmul.f32.vlgmr.msra.gmra.mxu2 %v5193_v4  ;;  %5274 = vmatmul.f32.vlgmr.msra.gmra.mxu3 %v5193_v4 }
 0xb7e   :  { %5632 = vmatpush.msra.mxu0 %v10475_v45  ;;  %5652 = vmatpush.msra.mxu1 %v10476_v13 }
 0xb7f   :  { %5692 = vmatpush.msra.mxu3 %v10477_v17  ;;  %5672 = vmatpush.msra.mxu2 %v10478_v37 }
 0xb80   :  { %5633 = vmatpush.msra.mxu0 %v10479_v15  ;;  %5653 = vmatpush.msra.mxu1 %v10480_v10 }
 0xb81   :  { %5693 = vmatpush.msra.mxu3 %v10481_v40  ;;  %5673 = vmatpush.msra.mxu2 %v10482_v32 }
 0xb82   :  { %5634 = vmatpush.msra.mxu0 %v10483_v61  ;;  %5654 = vmatpush.msra.mxu1 %v10484_v14 }
 0xb83   :  { %5694 = vmatpush.msra.mxu3 %v10485_v44  ;;  %5674 = vmatpush.msra.mxu2 %v10486_v39 }
 0xb84   :  { %5635 = vmatpush.msra.mxu0 %v10487_v62  ;;  %5655 = vmatpush.msra.mxu1 %v10488_v51 }
 0xb85   :  { %5695 = vmatpush.msra.mxu3 %v10489_v53  ;;  %5675 = vmatpush.msra.mxu2 %v10490_v48 }
 0xb86   :  { %5636 = vmatpush.msra.mxu0 %v10491_v50  ;;  %5656 = vmatpush.msra.mxu1 %v10492_v33 }
 0xb87   :  { %5696 = vmatpush.msra.mxu3 %v10493_v42  ;;  %5676 = vmatpush.msra.mxu2 %v10494_v35 }
 0xb88   :  { %5637 = vmatpush.msra.mxu0 %v10495_v63  ;;  %5657 = vmatpush.msra.mxu1 %v10496_v59 }
 0xb89   :  { %5697 = vmatpush.msra.mxu3 %v10497_v56  ;;  %5677 = vmatpush.msra.mxu2 %v10498_v22 }
 0xb8a   :  { %5638 = vmatpush.msra.mxu0 %v10499_v28  ;;  %5658 = vmatpush.msra.mxu1 %v10500_v31 }
 0xb8b   :  { %5698 = vmatpush.msra.mxu3 %v10501_v41  ;;  %5678 = vmatpush.msra.mxu2 %v10502_v8  ;;  %v10512_v41 = vld [vmem:[#allocation179_spill] sm:$0xff]  ;;  %v10513_v8 = vld [vmem:[#allocation181_spill] sm:$0xff] }
 0xb8c   :  { %5639 = vmatpush.msra.mxu0 %v10503_v5  ;;  %5659 = vmatpush.msra.mxu1 %v10504_v52  ;;  %v10514_v5 = vld [vmem:[#allocation180_spill] sm:$0xff]  ;;  %v10515_v52 = vld [vmem:[#allocation174_spill] sm:$0xff] }
 0xb8d   :  { %5699 = vmatpush.msra.mxu3 %v10505_v49  ;;  %5679 = vmatpush.msra.mxu2 %v10506_v0  ;;  %v10516_v49 = vld [vmem:[#allocation175_spill] sm:$0xff]  ;;  %v10517_v0 = vld [vmem:[#allocation177_spill] sm:$0xff] }
 0xbf9   :  { %v5215_v25 = vpop.f32.mrf.mxu0  ;;  %v5235_v6 = vpop.f32.mrf.mxu1 }
 0xbfa   :  { %v5278_v21 = vadd.f32 %v5215_v25, %v10507_v58  ;;  %v5279_v60 = vadd.f32 %v5235_v6, %v10508_v1  ;;  %v10518_v25 = vld [vmem:[#allocation176_spill] sm:$0xff]  ;;  %v10519_v6 = vld [vmem:[#allocation170_spill] sm:$0xff]  ;;  %v10520_v58 = vld [vmem:[#allocation171_spill] sm:$0xff] }
 0xbfb   :  { %v10522_v1 = vld [vmem:[#allocation172_spill] sm:$0xff] }
 0xbfc   :  { %v6029_v57 = vmul.f32 -1.442695, %v5278_v21  ;;  %v6030_v7 = vmul.f32 -1.442695, %v5279_v60  ;;  %v10521_v21 = vld [vmem:[#allocation173_spill] sm:$0xff]  ;;  %v10523_v60 = vld [vmem:[#allocation166_spill] sm:$0xff] }
 0xbfe   :  { %6405 = vpow2.f32 %v6029_v57  ;;  %v10524_v57 = vld [vmem:[#allocation167_spill] sm:$0xff] }
 0xbff   :  { %6407 = vpow2.f32 %v6030_v7  ;;  %v10525_v7 = vld [vmem:[#allocation169_spill] sm:$0xff] }
 0xc00   :  { %v5275_v29 = vpop.f32.mrf.mxu3  ;;  %v5255_v30 = vpop.f32.mrf.mxu2 }
 0xc01   :  { %v5281_v47 = vadd.f32 %v5275_v29, %v10509_v26  ;;  %v5280_v24 = vadd.f32 %v5255_v30, %v10510_v19  ;;  %v10526_v29 = vld [vmem:[#allocation22_spill] sm:$0xff] }
 0xc02   :  { %v10527_v26 = vld [vmem:[#allocation162_spill] sm:$0xff] }
 0xc03   :  { %v6031_v34 = vmul.f32 -1.442695, %v5281_v47  ;;  %v10528_v47 = vld [vmem:[#allocation163_spill] sm:$0xff]  ;;  %v10534_v30 = vld [vmem:[#allocation154_spill] sm:$0xff] }
 0xc04   :  { %v6406_v20 = vpop.eup %6405  ;;  %v10538_v19 = vld [vmem:[#allocation150_spill] sm:$0xff] }
 0xc05   :  { %v6408_v9 = vpop.eup %6407  ;;  %v5285_v12 = vadd.f32 1.0, %v6406_v20  ;;  %6409 = vpow2.f32 %v6031_v34  ;;  %v10529_v34 = vld [vmem:[#allocation165_spill] sm:$0xff]  ;;  %v10530_v20 = vld [vmem:[#allocation168_spill] sm:$0xff] }
 0xc06   :  { %v5304_v38 = vadd.f32 1.0, %v6408_v9  ;;  %v10531_v9 = vld [vmem:[#allocation158_spill] sm:$0xff] }
 0xc07   :  { %6411 = vrcp.f32 %v5285_v12  ;;  %v5297_v36 = vand.u32 2147483648, %v5285_v12  ;;  %v5295_v4 = vand.u32 2147483647, %v5285_v12  ;;  %vm5291_vm10 = vweird.f32 %v5285_v12 }
 0xc08   :  { %6413 = vrcp.f32 %v5304_v38  ;;  %v5316_v54 = vand.u32 2147483648, %v5304_v38  ;;  %v5314_v13 = vand.u32 2147483647, %v5304_v38  ;;  %vm5310_vm11 = vweird.f32 %v5304_v38 }
 0xc09   :  { %v5298_v15 = vor.u32 1.1754944e-38, %v5297_v36  ;;  %vm5296_vm14 = vcmp.eq.f32.partialorder %v5295_v4, 8.507059e+37 }
 0xc0a   :  { %v5317_v32 = vor.u32 1.1754944e-38, %v5316_v54  ;;  %vm5315_vm15 = vcmp.eq.f32.partialorder %v5314_v13, 8.507059e+37 }
 0xc0b   :  { %v6410_v3 = vpop.eup %6409 }
 0xc0c   :  { %v5324_v27 = vadd.f32 1.0, %v6410_v3  ;;  %v10535_v3 = vld [vmem:[#allocation155_spill] sm:$0xff] }
 0xc0d   :  { %v6412_v2 = vpop.eup %6411 }
 0xc0e   :  { %v6414_v43 = vpop.eup %6413  ;;  %v5287_v16 = vmul.f32 %v6412_v2, %v5285_v12  ;;  %6415 = vrcp.f32 %v5324_v27  ;;  %vm5292_vm8 = vweird.f32 %v6412_v2  ;;  %v5336_v35 = vand.u32 2147483648, %v5324_v27  ;;  %v10532_v12 = vld [vmem:[#allocation159_spill] sm:$0xff] }
 0xc0f   :  { %v5306_v46 = vmul.f32 %v6414_v43, %v5304_v38  ;;  %6417 = vtanh.f32 %v5280_v24  ;;  %vm5311_vm9 = vweird.f32 %v6414_v43  ;;  %vm5293_vm12 = vmor %vm5291_vm10, %vm5292_vm8  ;;  %vm5330_vm1 = vweird.f32 %v5324_v27  ;;  %v10533_v38 = vld [vmem:[#allocation161_spill] sm:$0xff]  ;;  %v10539_v24 = vld [vmem:[#allocation151_spill] sm:$0xff] }
 0xc10   :  { %v5288_v23 = vsub.f32 1.0, %v5287_v16  ;;  %vm5312_vm13 = vmor %vm5310_vm11, %vm5311_vm9  ;;  %v5334_v63 = vand.u32 2147483647, %v5324_v27  ;;  %v5337_v56 = vor.u32 1.1754944e-38, %v5336_v35  ;;  %v10541_v16 = vld [vmem:[#allocation268_spill] sm:$0xff] }
 0xc11   :  { %v5307_v55 = vsub.f32 1.0, %v5306_v46  ;;  %v10542_v46 = vld [vmem:[#allocation160_spill] sm:$0xff] }
 0xc12   :  { %v5289_v11 = vmul.f32 %v6412_v2, %v5288_v23  ;;  %vm5335_vm3 = vcmp.eq.f32.partialorder %v5334_v63, 8.507059e+37  ;;  %v10543_v23 = vld [vmem:[#allocation156_spill] sm:$0xff] }
 0xc13   :  { %v5308_v45 = vmul.f32 %v6414_v43, %v5307_v55  ;;  %v10544_v55 = vld [vmem:[#allocation152_spill] sm:$0xff] }
 0xc14   :  { %v6416_v17 = vpop.eup %6415  ;;  %v5290_v37 = vadd.f32 %v6412_v2, %v5289_v11  ;;  %v10545_v11 = vld [vmem:[#allocation246_spill] sm:$0xff] }
 0xc15   :  { %v5309_v10 = vadd.f32 %v6414_v43, %v5308_v45  ;;  %v5326_v40 = vmul.f32 %v6416_v17, %v5324_v27  ;;  %v6418_v14 = vpop.eup %6417  ;;  %vm5331_vm0 = vweird.f32 %v6416_v17  ;;  %v10536_v27 = vld [vmem:[#allocation157_spill] sm:$0xff]  ;;  %v10546_v45 = vld [vmem:[#allocation247_spill] sm:$0xff] }
 0xc16   :  { %v5294_v61 = vsel %vm5293_vm12, %v6412_v2, %v5290_v37  ;;  %vm5332_vm2 = vmor %vm5330_vm1, %vm5331_vm0  ;;  %v10537_v2 = vld [vmem:[#allocation164_spill] sm:$0xff] }
 0xc17   :  { %v5299_v44 = vsel %vm5296_vm14, %v5298_v15, %v5294_v61  ;;  %v5313_v39 = vsel %vm5312_vm13, %v6414_v43, %v5309_v10  ;;  %v5327_v62 = vsub.f32 1.0, %v5326_v40  ;;  %v10540_v43 = vld [vmem:[#allocation153_spill] sm:$0xff]  ;;  %v10547_v10 = vld [vmem:[#allocation218_spill] sm:$0xff] }
 0xc18   :  { %v5318_v51 = vsel %vm5315_vm15, %v5317_v32, %v5313_v39  ;;  %v5341_v53 = vmul.f32 %v6418_v14, %v5299_v44 }
 0xc19   :  { %v5340_v48 = vmul.f32 %v5318_v51, %v9497_v18  ;;  %v5328_v50 = vmul.f32 %v6416_v17, %v5327_v62  ;;  %v10511_v18 = vld [vmem:[#allocation178_spill] sm:$0xff] }
 0xc1b   :  { %v9537_v33 = vadd.f32 %v5341_v53, %v5340_v48  ;;  %v5329_v42 = vadd.f32 %v6416_v17, %v5328_v50  ;;  %v9586_v53 = vld [vmem:[%s9622_s6] sm:$0xf] }
 0xc1d   :  { %6419 = vtanh.f32 %v9537_v33  ;;  %v5333_v59 = vsel %vm5332_vm2, %v6416_v17, %v5329_v42  ;;  %v5786_v42 = vperm.slane %v9586_v53, 0 }
 0xc1e   :  { %v5338_v28 = vsel %vm5335_vm3, %v5337_v56, %v5333_v59  ;;  %v5787_v59 = vperm.slane %v9586_v53, 1  ;;  %v10548_v56 = vld [vmem:[#allocation249_spill] sm:$0xff] }
 0xc23   :  { %v6420_v22 = vpop.eup %6419 }
 0xc24   :  { %v5344_v31 = vmul.f32 %v6420_v22, %v5338_v28 }
 0xc26   :  { %5365 = vmatmul.f32.vlgmr.msrb.gmra.mxu0 %v5344_v31  ;;  %5385 = vmatmul.f32.vlgmr.msrb.gmra.mxu1 %v5344_v31 }
 0xc27   :  { %5405 = vmatmul.f32.vlgmr.msrb.gmra.mxu2 %v5344_v31  ;;  %5425 = vmatmul.f32.vlgmr.msrb.gmra.mxu3 %v5344_v31 }
 0xc28   :  { %5712 = vmatpush.msrb.mxu0 %v10511_v18  ;;  %5732 = vmatpush.msrb.mxu1 %v10512_v41 }
 0xc29   :  { %5772 = vmatpush.msrb.mxu3 %v10513_v8  ;;  %5752 = vmatpush.msrb.mxu2 %v10514_v5 }
 0xc2a   :  { %5713 = vmatpush.msrb.mxu0 %v10515_v52  ;;  %5733 = vmatpush.msrb.mxu1 %v10516_v49 }
 0xc2b   :  { %5773 = vmatpush.msrb.mxu3 %v10517_v0  ;;  %5753 = vmatpush.msrb.mxu2 %v10518_v25 }
 0xc2c   :  { %5714 = vmatpush.msrb.mxu0 %v10519_v6  ;;  %5734 = vmatpush.msrb.mxu1 %v10520_v58  ;;  %v5789_v6 = vperm.slane %v9586_v53, 3 }
 0xc2d   :  { %5774 = vmatpush.msrb.mxu3 %v10521_v21  ;;  %5754 = vmatpush.msrb.mxu2 %v10522_v1 }
 0xc2e   :  { %5715 = vmatpush.msrb.mxu0 %v10523_v60  ;;  %5735 = vmatpush.msrb.mxu1 %v10524_v57 }
 0xc2f   :  { %5775 = vmatpush.msrb.mxu3 %v10525_v7  ;;  %5640 = vmatmul.f32.vlgmr.msra.gmra.mxu0 %v10526_v29 }
 0xc30   :  { %5660 = vmatmul.f32.vlgmr.msra.gmra.mxu1 %v10526_v29  ;;  %5700 = vmatmul.f32.vlgmr.msra.gmra.mxu3 %v10526_v29 }
 0xc31   :  { %5716 = vmatpush.msrb.mxu0 %v10527_v26  ;;  %5736 = vmatpush.msrb.mxu1 %v10528_v47 }
 0xc32   :  { %5776 = vmatpush.msrb.mxu3 %v10529_v34  ;;  %5755 = vmatpush.msrb.mxu2 %v10530_v20 }
 0xc33   :  { %5717 = vmatpush.msrb.mxu0 %v10531_v9  ;;  %5737 = vmatpush.msrb.mxu1 %v10532_v12 }
 0xc34   :  { %5777 = vmatpush.msrb.mxu3 %v10533_v38  ;;  %5680 = vmatmul.f32.vlgmr.msra.gmra.mxu2 %v10526_v29 }
 0xc35   :  { %5718 = vmatpush.msrb.mxu0 %v10534_v30  ;;  %5738 = vmatpush.msrb.mxu1 %v10535_v3 }
 0xc36   :  { %5778 = vmatpush.msrb.mxu3 %v10536_v27  ;;  %5756 = vmatpush.msrb.mxu2 %v10537_v2 }
 0xc37   :  { %5719 = vmatpush.msrb.mxu0 %v10538_v19  ;;  %5739 = vmatpush.msrb.mxu1 %v10539_v24 }
 0xc38   :  { %5779 = vmatpush.msrb.mxu3 %v10540_v43  ;;  %5720 = vmatmul.f32.vlgmr.msrb.gmra.mxu0 %v10541_v16 }
 0xc39   :  { %5740 = vmatmul.f32.vlgmr.msrb.gmra.mxu1 %v10541_v16  ;;  %5780 = vmatmul.f32.vlgmr.msrb.gmra.mxu3 %v10541_v16 }
 0xc3a   :  { %5757 = vmatpush.msrb.mxu2 %v10542_v46 }
 0xc3c   :  { %5758 = vmatpush.msrb.mxu2 %v10543_v23 }
 0xc3e   :  { %5759 = vmatpush.msrb.mxu2 %v10544_v55 }
 0xc3f   :  { %5760 = vmatmul.f32.vlgmr.msrb.gmra.mxu2 %v10541_v16 }
 0xca3   :  { %v5366_v36 = vpop.f32.mrf.mxu0  ;;  %v5386_v54 = vpop.f32.mrf.mxu1 }
 0xca4   :  { %v5429_v4 = vadd.f32 %v5366_v36, %v10545_v11  ;;  %v5430_v13 = vadd.f32 %v5386_v54, %v10546_v45 }
 0xca6   :  { %v6032_v17 = vmul.f32 -1.442695, %v5429_v4  ;;  %v6033_v37 = vmul.f32 -1.442695, %v5430_v13 }
 0xca8   :  { %6421 = vpow2.f32 %v6032_v17 }
 0xca9   :  { %6423 = vpow2.f32 %v6033_v37 }
 0xcaa   :  { %v5426_v15 = vpop.f32.mrf.mxu3  ;;  %v5406_v48 = vpop.f32.mrf.mxu2 }
 0xcab   :  { %v5432_v40 = vadd.f32 %v5426_v15, %v10547_v10  ;;  %v5431_v22 = vadd.f32 %v5406_v48, %v10548_v56 }
 0xcac   :  { %v5641_v32 = vpop.f32.mrf.mxu0 }
 0xcad   :  { %v6034_v61 = vmul.f32 -1.442695, %v5432_v40  ;;  %v5661_v14 = vpop.f32.mrf.mxu1 }
 0xcae   :  { %v6422_v44 = vpop.eup %6421 }
 0xcaf   :  { %v6424_v39 = vpop.eup %6423  ;;  %v5436_v62 = vadd.f32 1.0, %v6422_v44  ;;  %6425 = vpow2.f32 %v6034_v61 }
 0xcb0   :  { %v5455_v51 = vadd.f32 1.0, %v6424_v39 }
 0xcb1   :  { %6427 = vrcp.f32 %v5436_v62  ;;  %v5446_v21 = vand.u32 2147483647, %v5436_v62  ;;  %v5448_v29 = vand.u32 2147483648, %v5436_v62  ;;  %vm5442_vm7 = vweird.f32 %v5436_v62 }
 0xcb2   :  { %6429 = vrcp.f32 %v5455_v51  ;;  %v5467_v7 = vand.u32 2147483648, %v5455_v51  ;;  %v5465_v20 = vand.u32 2147483647, %v5455_v51  ;;  %vm5461_vm6 = vweird.f32 %v5455_v51 }
 0xcb3   :  { %v5701_v50 = vpop.f32.mrf.mxu3  ;;  %v5449_v3 = vor.u32 1.1754944e-38, %v5448_v29  ;;  %vm5447_vm10 = vcmp.eq.f32.partialorder %v5446_v21, 8.507059e+37 }
 0xcb4   :  { %v5468_v43 = vor.u32 1.1754944e-38, %v5467_v7  ;;  %vm5466_vm11 = vcmp.eq.f32.partialorder %v5465_v20, 8.507059e+37 }
 0xcb5   :  { %v6426_v35 = vpop.eup %6425  ;;  %v5721_v63 = vpop.f32.mrf.mxu0 }
 0xcb6   :  { %v9591_v28 = vadd.f32 1.0, %v6426_v35  ;;  %v5722_v31 = vadd.f32 %v5721_v63, %v5641_v32  ;;  %v5741_v18 = vpop.f32.mrf.mxu1  ;;  %v5788_v32 = vperm.slane %v9586_v53, 2 }
 0xcb7   :  { %v6428_v41 = vpop.eup %6427  ;;  %v5742_v8 = vadd.f32 %v5741_v18, %v5661_v14  ;;  %v5681_v60 = vpop.f32.mrf.mxu2 }
 0xcb8   :  { %v6430_v5 = vpop.eup %6429  ;;  %v5438_v52 = vmul.f32 %v6428_v41, %v5436_v62  ;;  %6431 = vrcp.f32 %v9591_v28  ;;  %v5794_v49 = vadd.f32 %v5786_v42, %v5722_v31  ;;  %vm5443_vm4 = vweird.f32 %v6428_v41 }
 0xcb9   :  { %v5457_v0 = vmul.f32 %v6430_v5, %v5455_v51  ;;  %v5795_v25 = vadd.f32 %v5787_v59, %v5742_v8  ;;  %6433 = vtanh.f32 %v5431_v22  ;;  %vm5462_vm5 = vweird.f32 %v6430_v5  ;;  %vm5444_vm8 = vmor %vm5442_vm7, %vm5443_vm4 }
 0xcba   :  { %v5439_v58 = vsub.f32 1.0, %v5438_v52  ;;  %v6035_v1 = vmul.f32 -1.442695, %v5794_v49  ;;  %vm5463_vm9 = vmor %vm5461_vm6, %vm5462_vm5  ;;  %v5487_v39 = vand.u32 2147483648, %v9591_v28  ;;  %vm5481_vm13 = vweird.f32 %v9591_v28 }
 0xcbb   :  { %v5458_v57 = vsub.f32 1.0, %v5457_v0  ;;  %v6036_v26 = vmul.f32 -1.442695, %v5795_v25  ;;  %v5485_v51 = vand.u32 2147483647, %v9591_v28 }
 0xcbc   :  { %v5440_v47 = vmul.f32 %v6428_v41, %v5439_v58  ;;  %6435 = vpow2.f32 %v6035_v1  ;;  %v5781_v34 = vpop.f32.mrf.mxu3  ;;  %v5488_v59 = vor.u32 1.1754944e-38, %v5487_v39 }
 0xcbd   :  { %v5459_v9 = vmul.f32 %v6430_v5, %v5458_v57  ;;  %6437 = vpow2.f32 %v6036_v26  ;;  %v5782_v12 = vadd.f32 %v5781_v34, %v5701_v50  ;;  %vm5486_vm15 = vcmp.eq.f32.partialorder %v5485_v51, 8.507059e+37 }
 0xcbe   :  { %v6432_v38 = vpop.eup %6431  ;;  %v5441_v30 = vadd.f32 %v6428_v41, %v5440_v47 }
 0xcbf   :  { %v5797_v27 = vadd.f32 %v5789_v6, %v5782_v12  ;;  %v5460_v2 = vadd.f32 %v6430_v5, %v5459_v9  ;;  %v5477_v19 = vmul.f32 %v6432_v38, %v9591_v28  ;;  %v6434_v24 = vpop.eup %6433  ;;  %vm5482_vm12 = vweird.f32 %v6432_v38  ;;  %v6306_v28 = vld [vmem:[%s9623_s7] ss:$0 sm:$0xff] }
 0xcc0   :  { %v5445_v16 = vsel %vm5444_vm8, %v6428_v41, %v5441_v30  ;;  %vm9601_vm14 = vmor %vm5481_vm13, %vm5482_vm12  ;;  %vm5881_vm12 = vcmask 7168  }
 0xcc1   :  { %v5450_v46 = vsel %vm5447_vm10, %v5449_v3, %v5445_v16  ;;  %v6037_v23 = vmul.f32 -1.442695, %v5797_v27  ;;  %v5464_v55 = vsel %vm5463_vm9, %v6430_v5, %v5460_v2  ;;  %v5478_v36 = vsub.f32 1.0, %v5477_v19  ;;  %v6307_v16 = vld [vmem:[%s9624_s8] ss:$0 sm:$0xff] }
 0xcc2   :  { %v6436_v54 = vpop.eup %6435  ;;  %v5492_v11 = vmul.f32 %v6434_v24, %v5450_v46  ;;  %v5469_v4 = vsel %vm5466_vm11, %v5468_v43, %v5464_v55  ;;  %v5761_v37 = vpop.f32.mrf.mxu2 }
 0xcc3   :  { %v6438_v45 = vpop.eup %6437  ;;  %v5801_v13 = vadd.f32 1.0, %v6436_v54  ;;  %6439 = vpow2.f32 %v6037_v23  ;;  %v5479_v15 = vmul.f32 %v6432_v38, %v5478_v36  ;;  %v5491_v10 = vmul.f32 %v5469_v4, %v9537_v33 }
 0xcc4   :  { %v5820_v17 = vadd.f32 1.0, %v6438_v45  ;;  %v5762_v40 = vadd.f32 %v5761_v37, %v5681_v60 }
 0xcc5   :  { %6441 = vrcp.f32 %v5801_v13  ;;  %v5493_v61 = vadd.f32 %v5492_v11, %v5491_v10  ;;  %v5480_v14 = vadd.f32 %v6432_v38, %v5479_v15  ;;  %v5811_v22 = vand.u32 2147483647, %v5801_v13  ;;  %v6308_v11 = vld [vmem:[#allocation7] ss:$0 sm:$0xff] }
 0xcc6   :  { %6443 = vrcp.f32 %v5820_v17  ;;  %v5796_v50 = vadd.f32 %v5788_v32, %v5762_v40  ;;  %v5813_v41 = vand.u32 2147483648, %v5801_v13  ;;  %v5832_v5 = vand.u32 2147483648, %v5820_v17 }
 0xcc7   :  { %6445 = vtanh.f32 %v5493_v61  ;;  %v5484_v35 = vsel %vm9601_vm14, %v6432_v38, %v5480_v14  ;;  %v5830_v25 = vand.u32 2147483647, %v5820_v17  ;;  %vm5807_vm2 = vweird.f32 %v5801_v13 }
 0xcc8   :  { %v5489_v8 = vsel %vm5486_vm15, %v5488_v59, %v5484_v35  ;;  %vm5826_vm3 = vweird.f32 %v5820_v17  ;;  %v5814_v1 = vor.u32 1.1754944e-38, %v5813_v41  ;;  %vm5812_vm5 = vcmp.eq.f32.partialorder %v5811_v22, 8.507059e+37 }
 0xcc9   :  { %v6440_v44 = vpop.eup %6439  ;;  %v5833_v29 = vor.u32 1.1754944e-38, %v5832_v5  ;;  %vm5831_vm7 = vcmp.eq.f32.partialorder %v5830_v25, 8.507059e+37 }
 0xcca   :  { %v5840_v62 = vadd.f32 1.0, %v6440_v44 }
 0xccb   :  { %v6442_v48 = vpop.eup %6441 }
 0xccc   :  { %v6444_v42 = vpop.eup %6443  ;;  %v5803_v53 = vmul.f32 %v6442_v48, %v5801_v13  ;;  %6447 = vrcp.f32 %v5840_v62  ;;  %vm5808_vm0 = vweird.f32 %v6442_v48  ;;  %v5852_v2 = vand.u32 2147483648, %v5840_v62 }
 0xccd   :  { %v5822_v63 = vmul.f32 %v6444_v42, %v5820_v17  ;;  %v6446_v31 = vpop.eup %6445  ;;  %6449 = vtanh.f32 %v5796_v50  ;;  %vm5827_vm1 = vweird.f32 %v6444_v42  ;;  %vm5809_vm4 = vmor %vm5807_vm2, %vm5808_vm0  ;;  %vm5846_vm9 = vweird.f32 %v5840_v62 }
 0xcce   :  { %v5804_v56 = vsub.f32 1.0, %v5803_v53  ;;  %v5495_v49 = vmul.f32 %v6446_v31, %v5489_v8  ;;  %vm5828_vm6 = vmor %vm5826_vm3, %vm5827_vm1  ;;  %v5850_v19 = vand.u32 2147483647, %v5840_v62  ;;  %v5853_v43 = vor.u32 1.1754944e-38, %v5852_v2 }
 0xccf   :  { %v5823_v18 = vsub.f32 1.0, %v5822_v63 }
 0xcd0   :  { %v5805_v52 = vmul.f32 %v6442_v48, %v5804_v56  ;;  %v5865_v21 = vmul.f32 %v6306_v28, %v5495_v49  ;;  %vm5851_vm11 = vcmp.eq.f32.partialorder %v5850_v19, 8.507059e+37 }
 0xcd1   :  { %v5824_v0 = vmul.f32 %v6444_v42, %v5823_v18 }
 0xcd2   :  { %v6448_v6 = vpop.eup %6447  ;;  %v5806_v58 = vadd.f32 %v6442_v48, %v5805_v52  ;;  %5866 = vadd.xlane.f32.xlu0 %v5865_v21 }
 0xcd3   :  { %v5825_v60 = vadd.f32 %v6444_v42, %v5824_v0  ;;  %v5842_v57 = vmul.f32 %v6448_v6, %v5840_v62  ;;  %v6450_v26 = vpop.eup %6449  ;;  %vm5847_vm8 = vweird.f32 %v6448_v6 }
 0xcd4   :  { %v5810_v7 = vsel %vm5809_vm4, %v6442_v48, %v5806_v58  ;;  %vm5848_vm10 = vmor %vm5846_vm9, %vm5847_vm8 }
 0xcd5   :  { %v5815_v47 = vsel %vm5812_vm5, %v5814_v1, %v5810_v7  ;;  %v5829_v34 = vsel %vm5828_vm6, %v6444_v42, %v5825_v60  ;;  %v5843_v20 = vsub.f32 1.0, %v5842_v57 }
 0xcd6   :  { %v5857_v9 = vmul.f32 %v6450_v26, %v5815_v47  ;;  %v5834_v12 = vsel %vm5831_vm7, %v5833_v29, %v5829_v34 }
 0xcd7   :  { %v5844_v38 = vmul.f32 %v6448_v6, %v5843_v20  ;;  %v5856_v30 = vmul.f32 0.0, %v5834_v12 }
 0xcd9   :  { %v5858_v3 = vadd.f32 %v5857_v9, %v5856_v30  ;;  %v5845_v27 = vadd.f32 %v6448_v6, %v5844_v38 }
 0xcdb   :  { %6451 = vtanh.f32 %v5858_v3  ;;  %v5849_v24 = vsel %vm5848_vm10, %v6448_v6, %v5845_v27 }
 0xcdc   :  { %v5854_v23 = vsel %vm5851_vm11, %v5853_v43, %v5849_v24 }
 0xce1   :  { %v6452_v46 = vpop.eup %6451 }
 0xce2   :  { %v5860_v55 = vmul.f32 %v6452_v46, %v5854_v23 }
 0xce4   :  { %v5872_v36 = vmul.f32 %v6307_v16, %v5860_v55 }
 0xce6   :  { %5873 = vadd.xlane.f32.xlu0 %v5872_v36 }
 0xd45   :  { %v5867_v54 = vpop.xlane.xlu0 %5866 }
 0xd59   :  { %v5874_v4 = vpop.xlane.xlu0 %5873 }
 0xd5a   :  { %v5875_v45 = vadd.f32 %v5874_v4, %v5867_v54 }
 0xd5c   :  { %v5880_v13 = vadd.f32 %v6308_v11, %v5875_v45 }
 0xd5e   :  { %5882 = vst.msk [vmem:[%s9633_s17] sm:$0xff] %vm5881_vm12, %v5880_v13 }
 0xd5f   :  { %5887 = vsyncmov [#allocation6] }
 0xd62   :  { %s5888_s16 = vpop.sfrf %5887 }
 0xd63   :  { %p6038_p0 = scmp.ne.s32.totalorder %s5888_s16, 0 }
 0xd65   :  { %5892 = shalt.err (%p6038_p0)  }
 0xd66   :  { %5894 = vsyncmov [#allocation6 + $0x1] }
 0xd69   :  { %s5895_s8 = vpop.sfrf %5894 }
 0xd6a   :  { %p6039_p1 = scmp.ne.s32.totalorder %s5895_s8, 0 }
 0xd6c   :  { %5899 = shalt.err (%p6039_p1)  }
 0xd6d   :  { %5901 = vsyncmov [#allocation6 + $0x2] }
 0xd70   :  { %s5902_s29 = vpop.sfrf %5901 }
 0xd71   :  { %p6040_p2 = scmp.ne.s32.totalorder %s5902_s29, 0 }
 0xd73   :  { %5906 = shalt.err (%p6040_p2)  }
 0xd74   :  { %5908 = vsyncmov [#allocation6 + $0x3] }
 0xd77   :  { %s5909_s11 = vpop.sfrf %5908 }
 0xd78   :  { %p6041_p3 = scmp.ne.s32.totalorder %s5909_s11, 0 }
 0xd7a   :  { %5913 = shalt.err (%p6041_p3)  }
 0xd7b   :  { %5915 = vsyncmov [#allocation6 + $0x4] }
 0xd7e   :  { %s5916_s14 = vpop.sfrf %5915 }
 0xd7f   :  { %p6042_p4 = scmp.ne.s32.totalorder %s5916_s14, 0 }
 0xd81   :  { %5920 = shalt.err (%p6042_p4)  }
 0xd82   :  { %5922 = vsyncmov [#allocation6 + $0x5] }
 0xd85   :  { %s5923_s17 = vpop.sfrf %5922 }
 0xd86   :  { %p6043_p5 = scmp.ne.s32.totalorder %s5923_s17, 0 }
 0xd88   :  { %5927 = shalt.err (%p6043_p5)  }
 0xd89   :  { %5929 = vsyncmov [#allocation6 + $0x6] }
 0xd8c   :  { %s5930_s15 = vpop.sfrf %5929 }
 0xd8d   :  { %p6044_p6 = scmp.ne.s32.totalorder %s5930_s15, 0 }
 0xd8f   :  { %5934 = shalt.err (%p6044_p6)  }

</bundles_post_ra>
